<compile_context>
chip_gen: v7x
topology: tpu7x:2x2x1
jax: 0.10.0
libtpu: 0.0.40
codegen_flags: <defaults>
</compile_context>

<pallas_src>
import math
from functools import partial

import jax
import jax.numpy as jnp
from jax import lax
from jax.experimental import pallas as pl
from jax.experimental.pallas import tpu as pltpu

F32 = jnp.float32
BF16 = jnp.bfloat16
# 32 MiB scoped VMEM is safe on every generation (v7x has only 64 MiB physical).
# On v5e/v6e (128 MiB VMEM) this can be raised to ~64 MiB with larger row tiles.
_VMEM_LIMIT = 32 * 1024 * 1024


def _cparams(ndims=1):
    return pltpu.CompilerParams(dimension_semantics=("parallel",) * ndims,
                                vmem_limit_bytes=_VMEM_LIMIT)


def _pick_tile(m, target, mults=(16, 8)):
    """Largest divisor of m <= target that is a multiple of 16 (else 8) and,
    when possible, <= m//2 so every grid has >= 2 steps (pipelining / v7x)."""
    cap = min(target, m // 2) if (m // 2) >= mults[-1] else min(target, m)
    for mult in mults:
        t = cap - cap % mult
        while t >= mult:
            if m % t == 0:
                return t
            t -= mult
    return m


# ----------------------------------------------------------------------------
# Kernel 1: branch3x3 + branch5x5 paths (1x1 conv -> k=3 / k=5 conv, BN folded)
# ----------------------------------------------------------------------------
def inception_convs(xp, p, L):
    """xp: (B, L+4, C) bf16, zero-padded by 2 along L.  Per batch row the two
    1x1 BasicConvs (+BN+ReLU) are computed in-kernel and masked on pad rows so
    the k=3/k=5 convs (k shifted matmuls) see exact zero padding.
    Outputs (B, L, 64) and (B, L, 96) bf16."""
    B, Lp, C = xp.shape
    # TODO(synk): for very long L this kernel should additionally tile over L
    # with an overlapping-halo BlockSpec.

    def kernel(x_ref, w3a_ref, b3a_ref, w3_ref, b3_ref,
               w5a_ref, b5a_ref, w5_ref, b5_ref, o3_ref, o5_ref):
        x = x_ref[0]                                           # (Lp, C) bf16
        rows = lax.broadcasted_iota(jnp.int32, (Lp, 1), 0)
        valid = jnp.logical_and(rows >= 2, rows < 2 + L)
        z3 = jnp.maximum(jnp.dot(x, w3a_ref[...], preferred_element_type=F32)
                         + b3a_ref[...], 0.0)
        z5 = jnp.maximum(jnp.dot(x, w5a_ref[...], preferred_element_type=F32)
                         + b5a_ref[...], 0.0)
        z3 = jnp.where(valid, z3, 0.0).astype(BF16)            # (Lp, 48)
        z5 = jnp.where(valid, z5, 0.0).astype(BF16)            # (Lp, 64)
        w3 = w3_ref[...]                                       # (3, 48, 64)
        w5 = w5_ref[...]                                       # (5, 64, 96)
        acc3 = jnp.dot(z3[1:1 + L], w3[0], preferred_element_type=F32)
        for t in range(1, 3):                                  # static unroll
            acc3 = acc3 + jnp.dot(z3[1 + t:1 + t + L], w3[t],
                                  preferred_element_type=F32)
        acc5 = jnp.dot(z5[0:L], w5[0], preferred_element_type=F32)
        for t in range(1, 5):
            acc5 = acc5 + jnp.dot(z5[t:t + L], w5[t],
                                  preferred_element_type=F32)
        o3_ref[...] = jnp.maximum(acc3 + b3_ref[...], 0.0)[None].astype(o3_ref.dtype)
        o5_ref[...] = jnp.maximum(acc5 + b5_ref[...], 0.0)[None].astype(o5_ref.dtype)

    full = lambda s: pl.BlockSpec(s, lambda i: (0,) * len(s))
    return pl.pallas_call(
        kernel,
        grid=(B,),
        in_specs=[pl.BlockSpec((1, Lp, C), lambda i: (i, 0, 0)),
                  full((C, 48)), full((1, 48)), full((3, 48, 64)), full((1, 64)),
                  full((C, 64)), full((1, 64)), full((5, 64, 96)), full((1, 96))],
        out_specs=[pl.BlockSpec((1, L, 64), lambda i: (i, 0, 0)),
                   pl.BlockSpec((1, L, 96), lambda i: (i, 0, 0))],
        out_shape=(jax.ShapeDtypeStruct((B, L, 64), BF16),
                   jax.ShapeDtypeStruct((B, L, 96), BF16)),
        compiler_params=_cparams(),
    )(xp, p["w3a"], p["b3a"], p["c3_w"], p["c3_b"],
      p["w5a"], p["b5a"], p["c5_w"], p["c5_b"])


# ----------------------------------------------------------------------------
# Kernel 2: branch1x1 + 224->C reduction conv (+BN) + 0.5*residual + ReLU
# ----------------------------------------------------------------------------
def inception_reduce(xf, b3f, b5f, p, tm_target=512):
    M, C = xf.shape
    TM = _pick_tile(M, tm_target)

    def kernel(x_ref, b3_ref, b5_ref, w1_ref, b1_ref, wr_ref, br_ref, o_ref):
        x = x_ref[...]                                         # (TM, C) bf16
        b1 = jnp.maximum(jnp.dot(x, w1_ref[...], preferred_element_type=F32)
                         + b1_ref[...], 0.0).astype(BF16)      # branch1x1 in-kernel
        wr = wr_ref[...]                                       # (224, C) bf16, split
        acc = jnp.dot(b1, wr[0:64], preferred_element_type=F32)
        acc = acc + jnp.dot(b3_ref[...], wr[64:128], preferred_element_type=F32)
        acc = acc + jnp.dot(b5_ref[...], wr[128:224], preferred_element_type=F32)
        acc = acc + br_ref[...] + 0.5 * x.astype(F32)
        o_ref[...] = jnp.maximum(acc, 0.0).astype(o_ref.dtype)

    row = lambda n: pl.BlockSpec((TM, n), lambda i: (i, 0))
    full = lambda s: pl.BlockSpec(s, lambda i: (0,) * len(s))
    return pl.pallas_call(
        kernel,
        grid=(M // TM,),
        in_specs=[row(C), row(64), row(96),
                  full((C, 64)), full((1, 64)), full((224, C)), full((1, C))],
        out_specs=row(C),
        out_shape=jax.ShapeDtypeStruct((M, C), BF16),
        compiler_params=_cparams(),
    )(xf, b3f, b5f, p["w1x1"], p["b1x1"], p["red_w"], p["red_b"])


# ----------------------------------------------------------------------------
# Kernel 3: CBAM channel-attention gate (gating applied in the attention kernel)
# ----------------------------------------------------------------------------
def cbam_gate(x_blc, w1, w2):
    B, L, C = x_blc.shape
    Cr = w1.shape[1]

    def kernel(x_ref, w1_ref, w2_ref, o_ref):
        x = x_ref[0].astype(F32)                               # (L, C)
        avg = jnp.mean(x, axis=0, keepdims=True).astype(BF16)  # AdaptiveAvgPool1d(1)
        h = jnp.maximum(jnp.dot(avg, w1_ref[...], preferred_element_type=F32), 0.0)
        att = jax.nn.sigmoid(jnp.dot(h.astype(BF16), w2_ref[...],
                                     preferred_element_type=F32))
        o_ref[...] = att[None].astype(o_ref.dtype)

    return pl.pallas_call(
        kernel,
        grid=(B,),
        in_specs=[pl.BlockSpec((1, L, C), lambda i: (i, 0, 0)),
                  pl.BlockSpec((C, Cr), lambda i: (0, 0)),
                  pl.BlockSpec((Cr, C), lambda i: (0, 0))],
        out_specs=pl.BlockSpec((1, 1, C), lambda i: (i, 0, 0)),
        out_shape=jax.ShapeDtypeStruct((B, 1, C), BF16),
        compiler_params=_cparams(),
    )(x_blc, w1, w2)


# ----------------------------------------------------------------------------
# Kernel 4: CBAM gating + in_proj + MHA + out_proj + residual + LayerNorm1
# ----------------------------------------------------------------------------
def attention_block(x_nse, gate_1se, p, nhead, eps=1e-5, tn_target=64):
    """x_nse: (N=L, S=B, C) bf16 tokens (attention batch axis leading).
    gate_1se: (1, S, C) CBAM gate.  The whole self-attention sublayer runs in
    one kernel; qkv / attn outputs never touch HBM."""
    N, S, C = x_nse.shape
    Dh = C // nhead
    TN = _pick_tile(N, tn_target)

    def kernel(x_ref, g_ref, wi_ref, bi_ref, wo_ref, bo_ref, g1_ref, be1_ref, o_ref):
        x = x_ref[...].astype(F32)                             # (TN, S, C)
        tok = x * g_ref[...].astype(F32)                       # CBAM gate; f32 residual
        tok_b = tok.astype(BF16)
        # in_proj via a leading-batch einsum against a broadcast weight copy
        # (same dot_general pattern as the standard 'bqk,bkd->bqd' batched dot).
        wi = jnp.broadcast_to(wi_ref[...][None], (TN, C, 3 * C))
        qkv = jnp.einsum("nsc,ncf->nsf", tok_b, wi,
                         preferred_element_type=F32) + bi_ref[...]
        outs = []
        for h in range(nhead):                                 # static unroll (8)
            q = qkv[:, :, h * Dh:(h + 1) * Dh].astype(BF16)
            k = qkv[:, :, C + h * Dh:C + (h + 1) * Dh].astype(BF16)
            v = qkv[:, :, 2 * C + h * Dh:2 * C + (h + 1) * Dh].astype(BF16)
            s = jnp.einsum("nsd,ntd->nst", q, k, preferred_element_type=F32)
            s = s - jnp.max(s, axis=-1, keepdims=True)
            e = jnp.exp(s)
            pr = e * pl.reciprocal(jnp.sum(e, axis=-1, keepdims=True), approx=True)
            outs.append(jnp.einsum("nst,ntd->nsd", pr.astype(BF16), v,
                                   preferred_element_type=F32))
        ctx = jnp.concatenate(outs, axis=-1).astype(BF16)      # (TN, S, C)
        wo = jnp.broadcast_to(wo_ref[...][None], (TN, C, C))
        y = jnp.einsum("nsc,ncf->nsf", ctx, wo,
                       preferred_element_type=F32) + bo_ref[...]
        z = y + tok                                            # residual
        mu = jnp.mean(z, axis=-1, keepdims=True)
        var = jnp.mean((z - mu) ** 2, axis=-1, keepdims=True)
        zn = (z - mu) * lax.rsqrt(var + eps)
        o_ref[...] = (zn * g1_ref[...] + be1_ref[...]).astype(o_ref.dtype)

    full = lambda s: pl.BlockSpec(s, lambda i: (0,) * len(s))
    return pl.pallas_call(
        kernel,
        grid=(N // TN,),
        in_specs=[pl.BlockSpec((TN, S, C), lambda i: (i, 0, 0)),
                  full((1, S, C)),
                  full((C, 3 * C)), full((1, 3 * C)),
                  full((C, C)), full((1, C)), full((1, C)), full((1, C))],
        out_specs=pl.BlockSpec((TN, S, C), lambda i: (i, 0, 0)),
        out_shape=jax.ShapeDtypeStruct((N, S, C), BF16),
        compiler_params=_cparams(),
    )(x_nse, gate_1se, p["in_proj_w"], p["in_proj_b"],
      p["out_proj_w"], p["out_proj_b"], p["ln1_g"], p["ln1_b"])


# ----------------------------------------------------------------------------
# Kernel 5: FF1 + ReLU + FF2 + residual + LayerNorm2, d_ff chunked in-kernel
# ----------------------------------------------------------------------------
def ffn_ln(x, p, d_ff, eps=1e-5, chunk=512, tm_target=256):
    M, C = x.shape
    TM = _pick_tile(M, tm_target)
    assert d_ff % chunk == 0

    def kernel(x_ref, w1_ref, b1_ref, w2_ref, b2_ref, g_ref, be_ref, o_ref):
        xb = x_ref[...]                                        # (TM, C) bf16
        acc = jnp.zeros((TM, C), F32)
        for ci in range(d_ff // chunk):                        # static unroll
            lo = ci * chunk
            h = jnp.dot(xb, w1_ref[:, lo:lo + chunk],
                        preferred_element_type=F32) + b1_ref[:, lo:lo + chunk]
            h = jnp.maximum(h, 0.0).astype(BF16)
            acc = acc + jnp.dot(h, w2_ref[lo:lo + chunk, :],
                                preferred_element_type=F32)
        z = acc + b2_ref[...] + xb.astype(F32)
        mu = jnp.mean(z, axis=-1, keepdims=True)
        var = jnp.mean((z - mu) ** 2, axis=-1, keepdims=True)
        zn = (z - mu) * lax.rsqrt(var + eps)
        o_ref[...] = (zn * g_ref[...] + be_ref[...]).astype(o_ref.dtype)

    row = lambda n: pl.BlockSpec((TM, n), lambda i: (i, 0))
    full = lambda s: pl.BlockSpec(s, lambda i: (0, 0))
    return pl.pallas_call(
        kernel,
        grid=(M // TM,),
        in_specs=[row(C),
                  full((C, d_ff)), full((1, d_ff)),
                  full((d_ff, C)), full((1, C)), full((1, C)), full((1, C))],
        out_specs=row(C),
        out_shape=jax.ShapeDtypeStruct((M, C), F32),
        compiler_params=_cparams(),
    )(x, p["ff1_w"], p["ff1_b"], p["ff2_w"], p["ff2_b"], p["ln2_g"], p["ln2_b"])


# ----------------------------------------------------------------------------
# parameter construction: BN folded, q-scale folded, weights pre-cast to bf16
# ----------------------------------------------------------------------------
def init_params(C, key, d_ff=2048, nhead=8):
    assert C % nhead == 0 and C % 8 == 0
    keys = iter(jax.random.split(key, 64))

    def rn(shape, scale=0.1):
        return scale * jax.random.normal(next(keys), shape, dtype=F32)

    def bn_stats(ch):
        return (1.0 + rn((ch,), 0.05), rn((ch,), 0.05),
                rn((ch,), 0.05), 1.0 + jnp.abs(rn((ch,), 0.05)))

    def fold_bn(w, b, gamma, beta, mean, var, eps):
        a = gamma / jnp.sqrt(var + eps)            # Cout on the last axis of w
        return w * a, (b - mean) * a + beta

    def basic_conv(cin, cout, k):
        w = rn((cout, cin, k))                     # torch Conv1d layout
        b = rn((cout,))
        return fold_bn(jnp.transpose(w, (2, 1, 0)), b, *bn_stats(cout), 1e-3)

    def row_bias(b):
        return jnp.asarray(b, F32).reshape(1, -1)

    p = {}
    # InceptionResNetBlock
    w1, b1 = basic_conv(C, 64, 1)                  # branch1x1 (fused into reduce)
    p["w1x1"], p["b1x1"] = w1[0].astype(BF16), row_bias(b1)
    w3a, b3a = basic_conv(C, 48, 1)                # branch3x3_1 (fused into convs)
    p["w3a"], p["b3a"] = w3a[0].astype(BF16), row_bias(b3a)
    w5a, b5a = basic_conv(C, 64, 1)                # branch5x5_1 (fused into convs)
    p["w5a"], p["b5a"] = w5a[0].astype(BF16), row_bias(b5a)
    w3, b3 = basic_conv(48, 64, 3)
    p["c3_w"], p["c3_b"] = w3.astype(BF16), row_bias(b3)
    w5, b5 = basic_conv(64, 96, 5)
    p["c5_w"], p["c5_b"] = w5.astype(BF16), row_bias(b5)
    # 224 -> C reduction conv (with bias) + BatchNorm1d(eps=1e-5)
    wr, br = fold_bn(jnp.transpose(rn((C, 224, 1)), (2, 1, 0)), rn((C,)),
                     *bn_stats(C), 1e-5)
    p["red_w"], p["red_b"] = wr[0].astype(BF16), row_bias(br)

    # CBAM (bias-free 1x1 convs)
    p["cbam_w1"] = jnp.transpose(rn((C // 8, C, 1))[:, :, 0], (1, 0)).astype(BF16)
    p["cbam_w2"] = jnp.transpose(rn((C, C // 8, 1))[:, :, 0], (1, 0)).astype(BF16)

    # TransformerEncoderLayer (d_model=C, nhead, dim_feedforward=2048, relu, post-LN)
    scale = 1.0 / math.sqrt(C // nhead)
    in_w = jnp.transpose(rn((3 * C, C)), (1, 0))   # (C, 3C)
    in_b = rn((3 * C,))
    in_w = in_w.at[:, :C].multiply(scale)          # fold softmax scale into q
    in_b = in_b.at[:C].multiply(scale)
    p["in_proj_w"], p["in_proj_b"] = in_w.astype(BF16), row_bias(in_b)
    p["out_proj_w"] = jnp.transpose(rn((C, C)), (1, 0)).astype(BF16)
    p["out_proj_b"] = row_bias(rn((C,)))
    p["ln1_g"], p["ln1_b"] = row_bias(1.0 + rn((C,), 0.05)), row_bias(rn((C,), 0.05))
    p["ff1_w"] = jnp.transpose(rn((d_ff, C), 0.05), (1, 0)).astype(BF16)
    p["ff1_b"] = row_bias(rn((d_ff,)))
    p["ff2_w"] = jnp.transpose(rn((C, d_ff), 0.05), (1, 0)).astype(BF16)
    p["ff2_b"] = row_bias(rn((C,)))
    p["ln2_g"], p["ln2_b"] = row_bias(1.0 + rn((C,), 0.05)), row_bias(rn((C,), 0.05))
    # NOTE: CoordAttention and self.classifier are built in __init__ but never
    # used by forward(), so no parameters are materialized for them.
    return p


# ----------------------------------------------------------------------------
# forward pass of `transformer`
# ----------------------------------------------------------------------------
def transformer_forward(x_ncl, params, nhead=8, d_ff=2048):
    B, C, L = x_ncl.shape
    p = params
    x = jnp.transpose(x_ncl, (0, 2, 1)).astype(BF16)           # (B, L, C), bf16 once
    xf = x.reshape(B * L, C)
    M = B * L

    # ---- InceptionResNetBlock ----
    xp = jnp.pad(x, ((0, 0), (2, 2), (0, 0)))                  # shared pad for k=3/k=5
    b3, b5 = inception_convs(xp, p, L)                         # (B,L,64), (B,L,96) bf16
    x_inc = inception_reduce(xf, b3.reshape(M, 64), b5.reshape(M, 96), p)  # (M,C) bf16
    x_inc3 = x_inc.reshape(B, L, C)

    # ---- CBAM gate (applied inside the attention kernel) ----
    att = cbam_gate(x_inc3, p["cbam_w1"], p["cbam_w2"])        # (B, 1, C) bf16

    # ---- TransformerEncoderLayer (batch_first=False: seq = B, batch = L) ----
    x_t = jnp.transpose(x_inc3, (1, 0, 2))                     # (L, B, C) bf16
    gate = jnp.transpose(att, (1, 0, 2))                       # (1, B, C)
    h1 = attention_block(x_t, gate, p, nhead)                  # (L, B, C) bf16
    # TODO(synk): dropout / dropout1 / dropout2 are eval-mode identity here;
    # train-mode RNG masking is not implemented.
    h2 = ffn_ln(h1.reshape(L * B, C), p, d_ff)                 # (L*B, C) f32

    y = h2.reshape(L, B, C)
    return jnp.transpose(y, (1, 2, 0))                         # (B, C, L) f32


if __name__ == "__main__":
    B, C, L = 2, 32, 16          # input_channels=32 (divisible by nhead=8 and by 8)
    x = jax.random.normal(jax.random.PRNGKey(0), (B, C, L), dtype=jnp.float32)
    params = init_params(C, jax.random.PRNGKey(1))
    fwd = jax.jit(partial(transformer_forward, params=params))
    y = fwd(x)
    jax.block_until_ready(y)
    assert y.shape == (B, C, L) and y.dtype == jnp.float32
    assert bool(jnp.all(jnp.isfinite(y)))
    print("KERNEL_OK")
</pallas_src>

<mosaic_0001>
module attributes {stable_mosaic.version = 11 : i64} {
  func.func @kernel(%arg0: i32, %arg1: memref<1x20x32xbf16, #tpu.memory_space<vmem>>, %arg2: memref<32x48xbf16, #tpu.memory_space<vmem>>, %arg3: memref<1x48xf32, #tpu.memory_space<vmem>>, %arg4: memref<3x48x64xbf16, #tpu.memory_space<vmem>>, %arg5: memref<1x64xf32, #tpu.memory_space<vmem>>, %arg6: memref<32x64xbf16, #tpu.memory_space<vmem>>, %arg7: memref<1x64xf32, #tpu.memory_space<vmem>>, %arg8: memref<5x64x96xbf16, #tpu.memory_space<vmem>>, %arg9: memref<1x96xf32, #tpu.memory_space<vmem>>, %arg10: memref<1x16x64xbf16, #tpu.memory_space<vmem>>, %arg11: memref<1x16x96xbf16, #tpu.memory_space<vmem>>) attributes {dimension_semantics = [#tpu.dimension_semantics<parallel>], iteration_bounds = array<i64: 2>, scalar_prefetch = 0 : i64, scratch_operands = 0 : i64, tpu.core_type = #tpu.core_type<tc>, window_params = [{transform_indices = @transform_0, window_bounds = array<i64: 1, 20, 32>}, {pipeline_mode = #tpu.pipeline_mode<synchronous>, transform_indices = @transform_1, window_bounds = array<i64: 32, 48>}, {pipeline_mode = #tpu.pipeline_mode<synchronous>, transform_indices = @transform_2, window_bounds = array<i64: 1, 48>}, {pipeline_mode = #tpu.pipeline_mode<synchronous>, transform_indices = @transform_3, window_bounds = array<i64: 3, 48, 64>}, {pipeline_mode = #tpu.pipeline_mode<synchronous>, transform_indices = @transform_4, window_bounds = array<i64: 1, 64>}, {pipeline_mode = #tpu.pipeline_mode<synchronous>, transform_indices = @transform_5, window_bounds = array<i64: 32, 64>}, {pipeline_mode = #tpu.pipeline_mode<synchronous>, transform_indices = @transform_6, window_bounds = array<i64: 1, 64>}, {pipeline_mode = #tpu.pipeline_mode<synchronous>, transform_indices = @transform_7, window_bounds = array<i64: 5, 64, 96>}, {pipeline_mode = #tpu.pipeline_mode<synchronous>, transform_indices = @transform_8, window_bounds = array<i64: 1, 96>}, {transform_indices = @transform_9, window_bounds = array<i64: 1, 16, 64>}, {transform_indices = @transform_10, window_bounds = array<i64: 1, 16, 96>}]} {
    %c0 = arith.constant 0 : index
    %c0_0 = arith.constant 0 : index
    %c0_1 = arith.constant 0 : index
    %0 = vector.load %arg1[%c0, %c0_0, %c0_1] : memref<1x20x32xbf16, #tpu.memory_space<vmem>>, vector<1x20x32xbf16>
    %1 = vector.shape_cast %0 : vector<1x20x32xbf16> to vector<20x32xbf16>
    %2 = tpu.iota {dimensions = array<i32: 0>} : vector<20x1xi32>
    %c2_i32 = arith.constant 2 : i32
    %3 = vector.broadcast %c2_i32 : i32 to vector<20x1xi32>
    %4 = arith.cmpi sge, %2, %3 : vector<20x1xi32>
    %c18_i32 = arith.constant 18 : i32
    %5 = vector.broadcast %c18_i32 : i32 to vector<20x1xi32>
    %6 = arith.cmpi slt, %2, %5 : vector<20x1xi32>
    %7 = arith.andi %4, %6 : vector<20x1xi1>
    %c0_2 = arith.constant 0 : index
    %c0_3 = arith.constant 0 : index
    %8 = vector.load %arg2[%c0_2, %c0_3] : memref<32x48xbf16, #tpu.memory_space<vmem>>, vector<32x48xbf16>
    %cst = arith.constant dense<0.000000e+00> : vector<20x48xf32>
    %9 = tpu.matmul %1, %8, %cst {dimension_numbers = #tpu.dot_dimension_numbers<[1], [0], [0], [1], [0, 0, 1, 1], [], []>} : vector<20x32xbf16>, vector<32x48xbf16>, vector<20x48xf32> -> vector<20x48xf32>
    %c0_4 = arith.constant 0 : index
    %c0_5 = arith.constant 0 : index
    %10 = vector.load %arg3[%c0_4, %c0_5] : memref<1x48xf32, #tpu.memory_space<vmem>>, vector<1x48xf32>
    %11 = vector.broadcast %10 : vector<1x48xf32> to vector<20x48xf32>
    %12 = arith.addf %9, %11 : vector<20x48xf32>
    %cst_6 = arith.constant 0.000000e+00 : f32
    %13 = vector.broadcast %cst_6 : f32 to vector<20x48xf32>
    %14 = arith.maximumf %12, %13 : vector<20x48xf32>
    %c0_7 = arith.constant 0 : index
    %c0_8 = arith.constant 0 : index
    %15 = vector.load %arg6[%c0_7, %c0_8] : memref<32x64xbf16, #tpu.memory_space<vmem>>, vector<32x64xbf16>
    %cst_9 = arith.constant dense<0.000000e+00> : vector<20x64xf32>
    %16 = tpu.matmul %1, %15, %cst_9 {dimension_numbers = #tpu.dot_dimension_numbers<[1], [0], [0], [1], [0, 0, 1, 1], [], []>} : vector<20x32xbf16>, vector<32x64xbf16>, vector<20x64xf32> -> vector<20x64xf32>
    %c0_10 = arith.constant 0 : index
    %c0_11 = arith.constant 0 : index
    %17 = vector.load %arg7[%c0_10, %c0_11] : memref<1x64xf32, #tpu.memory_space<vmem>>, vector<1x64xf32>
    %18 = vector.broadcast %17 : vector<1x64xf32> to vector<20x64xf32>
    %19 = arith.addf %16, %18 : vector<20x64xf32>
    %cst_12 = arith.constant 0.000000e+00 : f32
    %20 = vector.broadcast %cst_12 : f32 to vector<20x64xf32>
    %21 = arith.maximumf %19, %20 : vector<20x64xf32>
    %cst_13 = arith.constant 0.000000e+00 : f32
    %22 = vector.shape_cast %7 : vector<20x1xi1> to vector<20x1xi1>
    %23 = vector.broadcast %22 : vector<20x1xi1> to vector<20x48xi1>
    %24 = vector.broadcast %cst_13 : f32 to vector<20x48xf32>
    %25 = arith.select %23, %14, %24 : vector<20x48xi1>, vector<20x48xf32>
    %26 = arith.truncf %25 : vector<20x48xf32> to vector<20x48xbf16>
    %cst_14 = arith.constant 0.000000e+00 : f32
    %27 = vector.shape_cast %7 : vector<20x1xi1> to vector<20x1xi1>
    %28 = vector.broadcast %27 : vector<20x1xi1> to vector<20x64xi1>
    %29 = vector.broadcast %cst_14 : f32 to vector<20x64xf32>
    %30 = arith.select %28, %21, %29 : vector<20x64xi1>, vector<20x64xf32>
    %31 = arith.truncf %30 : vector<20x64xf32> to vector<20x64xbf16>
    %c0_15 = arith.constant 0 : index
    %c0_16 = arith.constant 0 : index
    %c0_17 = arith.constant 0 : index
    %32 = vector.load %arg4[%c0_15, %c0_16, %c0_17] : memref<3x48x64xbf16, #tpu.memory_space<vmem>>, vector<3x48x64xbf16>
    %c0_18 = arith.constant 0 : index
    %c0_19 = arith.constant 0 : index
    %c0_20 = arith.constant 0 : index
    %33 = vector.load %arg8[%c0_18, %c0_19, %c0_20] : memref<5x64x96xbf16, #tpu.memory_space<vmem>>, vector<5x64x96xbf16>
    %34 = vector.extract_strided_slice %26 {offsets = [1, 0], sizes = [16, 48], strides = [1, 1]} : vector<20x48xbf16> to vector<16x48xbf16>
    %35 = vector.extract_strided_slice %32 {offsets = [0, 0, 0], sizes = [1, 48, 64], strides = [1, 1, 1]} : vector<3x48x64xbf16> to vector<1x48x64xbf16>
    %36 = vector.shape_cast %35 : vector<1x48x64xbf16> to vector<48x64xbf16>
    %cst_21 = arith.constant dense<0.000000e+00> : vector<16x64xf32>
    %37 = tpu.matmul %34, %36, %cst_21 {dimension_numbers = #tpu.dot_dimension_numbers<[1], [0], [0], [1], [0, 0, 1, 1], [], []>} : vector<16x48xbf16>, vector<48x64xbf16>, vector<16x64xf32> -> vector<16x64xf32>
    %38 = vector.extract_strided_slice %26 {offsets = [2, 0], sizes = [16, 48], strides = [1, 1]} : vector<20x48xbf16> to vector<16x48xbf16>
    %39 = vector.extract_strided_slice %32 {offsets = [1, 0, 0], sizes = [1, 48, 64], strides = [1, 1, 1]} : vector<3x48x64xbf16> to vector<1x48x64xbf16>
    %40 = vector.shape_cast %39 : vector<1x48x64xbf16> to vector<48x64xbf16>
    %cst_22 = arith.constant dense<0.000000e+00> : vector<16x64xf32>
    %41 = tpu.matmul %38, %40, %cst_22 {dimension_numbers = #tpu.dot_dimension_numbers<[1], [0], [0], [1], [0, 0, 1, 1], [], []>} : vector<16x48xbf16>, vector<48x64xbf16>, vector<16x64xf32> -> vector<16x64xf32>
    %42 = arith.addf %37, %41 : vector<16x64xf32>
    %43 = vector.extract_strided_slice %26 {offsets = [3, 0], sizes = [16, 48], strides = [1, 1]} : vector<20x48xbf16> to vector<16x48xbf16>
    %44 = vector.extract_strided_slice %32 {offsets = [2, 0, 0], sizes = [1, 48, 64], strides = [1, 1, 1]} : vector<3x48x64xbf16> to vector<1x48x64xbf16>
    %45 = vector.shape_cast %44 : vector<1x48x64xbf16> to vector<48x64xbf16>
    %cst_23 = arith.constant dense<0.000000e+00> : vector<16x64xf32>
    %46 = tpu.matmul %43, %45, %cst_23 {dimension_numbers = #tpu.dot_dimension_numbers<[1], [0], [0], [1], [0, 0, 1, 1], [], []>} : vector<16x48xbf16>, vector<48x64xbf16>, vector<16x64xf32> -> vector<16x64xf32>
    %47 = arith.addf %42, %46 : vector<16x64xf32>
    %48 = vector.extract_strided_slice %31 {offsets = [0, 0], sizes = [16, 64], strides = [1, 1]} : vector<20x64xbf16> to vector<16x64xbf16>
    %49 = vector.extract_strided_slice %33 {offsets = [0, 0, 0], sizes = [1, 64, 96], strides = [1, 1, 1]} : vector<5x64x96xbf16> to vector<1x64x96xbf16>
    %50 = vector.shape_cast %49 : vector<1x64x96xbf16> to vector<64x96xbf16>
    %cst_24 = arith.constant dense<0.000000e+00> : vector<16x96xf32>
    %51 = tpu.matmul %48, %50, %cst_24 {dimension_numbers = #tpu.dot_dimension_numbers<[1], [0], [0], [1], [0, 0, 1, 1], [], []>} : vector<16x64xbf16>, vector<64x96xbf16>, vector<16x96xf32> -> vector<16x96xf32>
    %52 = vector.extract_strided_slice %31 {offsets = [1, 0], sizes = [16, 64], strides = [1, 1]} : vector<20x64xbf16> to vector<16x64xbf16>
    %53 = vector.extract_strided_slice %33 {offsets = [1, 0, 0], sizes = [1, 64, 96], strides = [1, 1, 1]} : vector<5x64x96xbf16> to vector<1x64x96xbf16>
    %54 = vector.shape_cast %53 : vector<1x64x96xbf16> to vector<64x96xbf16>
    %cst_25 = arith.constant dense<0.000000e+00> : vector<16x96xf32>
    %55 = tpu.matmul %52, %54, %cst_25 {dimension_numbers = #tpu.dot_dimension_numbers<[1], [0], [0], [1], [0, 0, 1, 1], [], []>} : vector<16x64xbf16>, vector<64x96xbf16>, vector<16x96xf32> -> vector<16x96xf32>
    %56 = arith.addf %51, %55 : vector<16x96xf32>
    %57 = vector.extract_strided_slice %31 {offsets = [2, 0], sizes = [16, 64], strides = [1, 1]} : vector<20x64xbf16> to vector<16x64xbf16>
    %58 = vector.extract_strided_slice %33 {offsets = [2, 0, 0], sizes = [1, 64, 96], strides = [1, 1, 1]} : vector<5x64x96xbf16> to vector<1x64x96xbf16>
    %59 = vector.shape_cast %58 : vector<1x64x96xbf16> to vector<64x96xbf16>
    %cst_26 = arith.constant dense<0.000000e+00> : vector<16x96xf32>
    %60 = tpu.matmul %57, %59, %cst_26 {dimension_numbers = #tpu.dot_dimension_numbers<[1], [0], [0], [1], [0, 0, 1, 1], [], []>} : vector<16x64xbf16>, vector<64x96xbf16>, vector<16x96xf32> -> vector<16x96xf32>
    %61 = arith.addf %56, %60 : vector<16x96xf32>
    %62 = vector.extract_strided_slice %31 {offsets = [3, 0], sizes = [16, 64], strides = [1, 1]} : vector<20x64xbf16> to vector<16x64xbf16>
    %63 = vector.extract_strided_slice %33 {offsets = [3, 0, 0], sizes = [1, 64, 96], strides = [1, 1, 1]} : vector<5x64x96xbf16> to vector<1x64x96xbf16>
    %64 = vector.shape_cast %63 : vector<1x64x96xbf16> to vector<64x96xbf16>
    %cst_27 = arith.constant dense<0.000000e+00> : vector<16x96xf32>
    %65 = tpu.matmul %62, %64, %cst_27 {dimension_numbers = #tpu.dot_dimension_numbers<[1], [0], [0], [1], [0, 0, 1, 1], [], []>} : vector<16x64xbf16>, vector<64x96xbf16>, vector<16x96xf32> -> vector<16x96xf32>
    %66 = arith.addf %61, %65 : vector<16x96xf32>
    %67 = vector.extract_strided_slice %31 {offsets = [4, 0], sizes = [16, 64], strides = [1, 1]} : vector<20x64xbf16> to vector<16x64xbf16>
    %68 = vector.extract_strided_slice %33 {offsets = [4, 0, 0], sizes = [1, 64, 96], strides = [1, 1, 1]} : vector<5x64x96xbf16> to vector<1x64x96xbf16>
    %69 = vector.shape_cast %68 : vector<1x64x96xbf16> to vector<64x96xbf16>
    %cst_28 = arith.constant dense<0.000000e+00> : vector<16x96xf32>
    %70 = tpu.matmul %67, %69, %cst_28 {dimension_numbers = #tpu.dot_dimension_numbers<[1], [0], [0], [1], [0, 0, 1, 1], [], []>} : vector<16x64xbf16>, vector<64x96xbf16>, vector<16x96xf32> -> vector<16x96xf32>
    %71 = arith.addf %66, %70 : vector<16x96xf32>
    %c0_29 = arith.constant 0 : index
    %c0_30 = arith.constant 0 : index
    %72 = vector.load %arg5[%c0_29, %c0_30] : memref<1x64xf32, #tpu.memory_space<vmem>>, vector<1x64xf32>
    %73 = vector.broadcast %72 : vector<1x64xf32> to vector<16x64xf32>
    %74 = arith.addf %47, %73 : vector<16x64xf32>
    %cst_31 = arith.constant 0.000000e+00 : f32
    %75 = vector.broadcast %cst_31 : f32 to vector<16x64xf32>
    %76 = arith.maximumf %74, %75 : vector<16x64xf32>
    %77 = vector.shape_cast %76 : vector<16x64xf32> to vector<1x16x64xf32>
    %78 = arith.truncf %77 : vector<1x16x64xf32> to vector<1x16x64xbf16>
    %c0_32 = arith.constant 0 : index
    %c0_33 = arith.constant 0 : index
    %c0_34 = arith.constant 0 : index
    %79 = vector.load %arg10[%c0_32, %c0_33, %c0_34] : memref<1x16x64xbf16, #tpu.memory_space<vmem>>, vector<1x16x64xbf16>
    tpu.vector_store %arg10[%c0_32, %c0_33, %c0_34], %78 {strides = array<i32>} : memref<1x16x64xbf16, #tpu.memory_space<vmem>>, vector<1x16x64xbf16>,
    %c0_35 = arith.constant 0 : index
    %c0_36 = arith.constant 0 : index
    %80 = vector.load %arg9[%c0_35, %c0_36] : memref<1x96xf32, #tpu.memory_space<vmem>>, vector<1x96xf32>
    %81 = vector.broadcast %80 : vector<1x96xf32> to vector<16x96xf32>
    %82 = arith.addf %71, %81 : vector<16x96xf32>
    %cst_37 = arith.constant 0.000000e+00 : f32
    %83 = vector.broadcast %cst_37 : f32 to vector<16x96xf32>
    %84 = arith.maximumf %82, %83 : vector<16x96xf32>
    %85 = vector.shape_cast %84 : vector<16x96xf32> to vector<1x16x96xf32>
    %86 = arith.truncf %85 : vector<1x16x96xf32> to vector<1x16x96xbf16>
    %c0_38 = arith.constant 0 : index
    %c0_39 = arith.constant 0 : index
    %c0_40 = arith.constant 0 : index
    %87 = vector.load %arg11[%c0_38, %c0_39, %c0_40] : memref<1x16x96xbf16, #tpu.memory_space<vmem>>, vector<1x16x96xbf16>
    tpu.vector_store %arg11[%c0_38, %c0_39, %c0_40], %86 {strides = array<i32>} : memref<1x16x96xbf16, #tpu.memory_space<vmem>>, vector<1x16x96xbf16>,
    return
  }
  func.func @transform_0(%arg0: i32) -> (i32, i32, i32) {
    %c0_i32 = arith.constant 0 : i32
    %c0_i32_0 = arith.constant 0 : i32
    %c0_i32_1 = arith.constant 0 : i32
    return %arg0, %c0_i32, %c0_i32_0 : i32, i32, i32
  }
  func.func @transform_1(%arg0: i32) -> (i32, i32) {
    %c0_i32 = arith.constant 0 : i32
    %c0_i32_0 = arith.constant 0 : i32
    %c0_i32_1 = arith.constant 0 : i32
    return %c0_i32, %c0_i32_0 : i32, i32
  }
  func.func @transform_2(%arg0: i32) -> (i32, i32) {
    %c0_i32 = arith.constant 0 : i32
    %c0_i32_0 = arith.constant 0 : i32
    %c0_i32_1 = arith.constant 0 : i32
    return %c0_i32, %c0_i32_0 : i32, i32
  }
  func.func @transform_3(%arg0: i32) -> (i32, i32, i32) {
    %c0_i32 = arith.constant 0 : i32
    %c0_i32_0 = arith.constant 0 : i32
    %c0_i32_1 = arith.constant 0 : i32
    %c0_i32_2 = arith.constant 0 : i32
    return %c0_i32, %c0_i32_0, %c0_i32_1 : i32, i32, i32
  }
  func.func @transform_4(%arg0: i32) -> (i32, i32) {
    %c0_i32 = arith.constant 0 : i32
    %c0_i32_0 = arith.constant 0 : i32
    %c0_i32_1 = arith.constant 0 : i32
    return %c0_i32, %c0_i32_0 : i32, i32
  }
  func.func @transform_5(%arg0: i32) -> (i32, i32) {
    %c0_i32 = arith.constant 0 : i32
    %c0_i32_0 = arith.constant 0 : i32
    %c0_i32_1 = arith.constant 0 : i32
    return %c0_i32, %c0_i32_0 : i32, i32
  }
  func.func @transform_6(%arg0: i32) -> (i32, i32) {
    %c0_i32 = arith.constant 0 : i32
    %c0_i32_0 = arith.constant 0 : i32
    %c0_i32_1 = arith.constant 0 : i32
    return %c0_i32, %c0_i32_0 : i32, i32
  }
  func.func @transform_7(%arg0: i32) -> (i32, i32, i32) {
    %c0_i32 = arith.constant 0 : i32
    %c0_i32_0 = arith.constant 0 : i32
    %c0_i32_1 = arith.constant 0 : i32
    %c0_i32_2 = arith.constant 0 : i32
    return %c0_i32, %c0_i32_0, %c0_i32_1 : i32, i32, i32
  }
  func.func @transform_8(%arg0: i32) -> (i32, i32) {
    %c0_i32 = arith.constant 0 : i32
    %c0_i32_0 = arith.constant 0 : i32
    %c0_i32_1 = arith.constant 0 : i32
    return %c0_i32, %c0_i32_0 : i32, i32
  }
  func.func @transform_9(%arg0: i32) -> (i32, i32, i32) {
    %c0_i32 = arith.constant 0 : i32
    %c0_i32_0 = arith.constant 0 : i32
    %c0_i32_1 = arith.constant 0 : i32
    return %arg0, %c0_i32, %c0_i32_0 : i32, i32, i32
  }
  func.func @transform_10(%arg0: i32) -> (i32, i32, i32) {
    %c0_i32 = arith.constant 0 : i32
    %c0_i32_0 = arith.constant 0 : i32
    %c0_i32_1 = arith.constant 0 : i32
    return %arg0, %c0_i32, %c0_i32_0 : i32, i32, i32
  }
}

module attributes {stable_mosaic.version = 11 : i64} {
  func.func @kernel(%arg0: i32, %arg1: memref<1x16x32xbf16, #tpu.memory_space<vmem>>, %arg2: memref<32x4xbf16, #tpu.memory_space<vmem>>, %arg3: memref<4x32xbf16, #tpu.memory_space<vmem>>, %arg4: memref<1x1x32xbf16, #tpu.memory_space<vmem>>) attributes {dimension_semantics = [#tpu.dimension_semantics<parallel>], iteration_bounds = array<i64: 2>, scalar_prefetch = 0 : i64, scratch_operands = 0 : i64, tpu.core_type = #tpu.core_type<tc>, window_params = [{transform_indices = @transform_0, window_bounds = array<i64: 1, 16, 32>}, {pipeline_mode = #tpu.pipeline_mode<synchronous>, transform_indices = @transform_1, window_bounds = array<i64: 32, 4>}, {pipeline_mode = #tpu.pipeline_mode<synchronous>, transform_indices = @transform_2, window_bounds = array<i64: 4, 32>}, {transform_indices = @transform_3, window_bounds = array<i64: 1, 1, 32>}]} {
    %c0 = arith.constant 0 : index
    %c0_0 = arith.constant 0 : index
    %c0_1 = arith.constant 0 : index
    %0 = vector.load %arg1[%c0, %c0_0, %c0_1] : memref<1x16x32xbf16, #tpu.memory_space<vmem>>, vector<1x16x32xbf16>
    %1 = vector.shape_cast %0 : vector<1x16x32xbf16> to vector<16x32xbf16>
    %2 = arith.extf %1 : vector<16x32xbf16> to vector<16x32xf32>
    %cst = arith.constant dense<0.000000e+00> : vector<32xf32>
    %3 = vector.multi_reduction <add>, %2, %cst [0] : vector<16x32xf32> to vector<32xf32>
    %4 = vector.shape_cast %3 : vector<32xf32> to vector<1x32xf32>
    %cst_2 = arith.constant 1.600000e+01 : f32
    %5 = vector.broadcast %cst_2 : f32 to vector<1x32xf32>
    %6 = arith.divf %4, %5 : vector<1x32xf32>
    %7 = arith.truncf %6 : vector<1x32xf32> to vector<1x32xbf16>
    %c0_3 = arith.constant 0 : index
    %c0_4 = arith.constant 0 : index
    %8 = vector.load %arg2[%c0_3, %c0_4] : memref<32x4xbf16, #tpu.memory_space<vmem>>, vector<32x4xbf16>
    %cst_5 = arith.constant dense<0.000000e+00> : vector<1x4xf32>
    %9 = tpu.matmul %7, %8, %cst_5 {dimension_numbers = #tpu.dot_dimension_numbers<[1], [0], [0], [1], [0, 0, 1, 1], [], []>} : vector<1x32xbf16>, vector<32x4xbf16>, vector<1x4xf32> -> vector<1x4xf32>
    %cst_6 = arith.constant 0.000000e+00 : f32
    %10 = vector.broadcast %cst_6 : f32 to vector<1x4xf32>
    %11 = arith.maximumf %9, %10 : vector<1x4xf32>
    %12 = arith.truncf %11 : vector<1x4xf32> to vector<1x4xbf16>
    %c0_7 = arith.constant 0 : index
    %c0_8 = arith.constant 0 : index
    %13 = vector.load %arg3[%c0_7, %c0_8] : memref<4x32xbf16, #tpu.memory_space<vmem>>, vector<4x32xbf16>
    %cst_9 = arith.constant dense<0.000000e+00> : vector<1x32xf32>
    %14 = tpu.matmul %12, %13, %cst_9 {dimension_numbers = #tpu.dot_dimension_numbers<[1], [0], [0], [1], [0, 0, 1, 1], [], []>} : vector<1x4xbf16>, vector<4x32xbf16>, vector<1x32xf32> -> vector<1x32xf32>
    %15 = arith.negf %14 : vector<1x32xf32>
    %16 = math.exp %15 : vector<1x32xf32>
    %cst_10 = arith.constant 1.000000e+00 : f32
    %17 = vector.broadcast %cst_10 : f32 to vector<1x32xf32>
    %18 = arith.addf %17, %16 : vector<1x32xf32>
    %19 = arith.divf %17, %18 : vector<1x32xf32>
    %20 = vector.shape_cast %19 : vector<1x32xf32> to vector<1x1x32xf32>
    %21 = arith.truncf %20 : vector<1x1x32xf32> to vector<1x1x32xbf16>
    %c0_11 = arith.constant 0 : index
    %c0_12 = arith.constant 0 : index
    %c0_13 = arith.constant 0 : index
    %22 = vector.load %arg4[%c0_11, %c0_12, %c0_13] : memref<1x1x32xbf16, #tpu.memory_space<vmem>>, vector<1x1x32xbf16>
    tpu.vector_store %arg4[%c0_11, %c0_12, %c0_13], %21 {strides = array<i32>} : memref<1x1x32xbf16, #tpu.memory_space<vmem>>, vector<1x1x32xbf16>,
    return
  }
  func.func @transform_0(%arg0: i32) -> (i32, i32, i32) {
    %c0_i32 = arith.constant 0 : i32
    %c0_i32_0 = arith.constant 0 : i32
    %c0_i32_1 = arith.constant 0 : i32
    return %arg0, %c0_i32, %c0_i32_0 : i32, i32, i32
  }
  func.func @transform_1(%arg0: i32) -> (i32, i32) {
    %c0_i32 = arith.constant 0 : i32
    %c0_i32_0 = arith.constant 0 : i32
    %c0_i32_1 = arith.constant 0 : i32
    return %c0_i32, %c0_i32_0 : i32, i32
  }
  func.func @transform_2(%arg0: i32) -> (i32, i32) {
    %c0_i32 = arith.constant 0 : i32
    %c0_i32_0 = arith.constant 0 : i32
    %c0_i32_1 = arith.constant 0 : i32
    return %c0_i32, %c0_i32_0 : i32, i32
  }
  func.func @transform_3(%arg0: i32) -> (i32, i32, i32) {
    %c0_i32 = arith.constant 0 : i32
    %c0_i32_0 = arith.constant 0 : i32
    %c0_i32_1 = arith.constant 0 : i32
    return %arg0, %c0_i32, %c0_i32_0 : i32, i32, i32
  }
}

module attributes {stable_mosaic.version = 11 : i64} {
  func.func @kernel(%arg0: i32, %arg1: memref<16x32xbf16, #tpu.memory_space<vmem>>, %arg2: memref<16x64xbf16, #tpu.memory_space<vmem>>, %arg3: memref<16x96xbf16, #tpu.memory_space<vmem>>, %arg4: memref<32x64xbf16, #tpu.memory_space<vmem>>, %arg5: memref<1x64xf32, #tpu.memory_space<vmem>>, %arg6: memref<224x32xbf16, #tpu.memory_space<vmem>>, %arg7: memref<1x32xf32, #tpu.memory_space<vmem>>, %arg8: memref<16x32xbf16, #tpu.memory_space<vmem>>) attributes {dimension_semantics = [#tpu.dimension_semantics<parallel>], iteration_bounds = array<i64: 2>, scalar_prefetch = 0 : i64, scratch_operands = 0 : i64, tpu.core_type = #tpu.core_type<tc>, window_params = [{transform_indices = @transform_0, window_bounds = array<i64: 16, 32>}, {transform_indices = @transform_1, window_bounds = array<i64: 16, 64>}, {transform_indices = @transform_2, window_bounds = array<i64: 16, 96>}, {pipeline_mode = #tpu.pipeline_mode<synchronous>, transform_indices = @transform_3, window_bounds = array<i64: 32, 64>}, {pipeline_mode = #tpu.pipeline_mode<synchronous>, transform_indices = @transform_4, window_bounds = array<i64: 1, 64>}, {pipeline_mode = #tpu.pipeline_mode<synchronous>, transform_indices = @transform_5, window_bounds = array<i64: 224, 32>}, {pipeline_mode = #tpu.pipeline_mode<synchronous>, transform_indices = @transform_6, window_bounds = array<i64: 1, 32>}, {transform_indices = @transform_7, window_bounds = array<i64: 16, 32>}]} {
    %c0 = arith.constant 0 : index
    %c0_0 = arith.constant 0 : index
    %0 = vector.load %arg1[%c0, %c0_0] : memref<16x32xbf16, #tpu.memory_space<vmem>>, vector<16x32xbf16>
    %c0_1 = arith.constant 0 : index
    %c0_2 = arith.constant 0 : index
    %1 = vector.load %arg4[%c0_1, %c0_2] : memref<32x64xbf16, #tpu.memory_space<vmem>>, vector<32x64xbf16>
    %cst = arith.constant dense<0.000000e+00> : vector<16x64xf32>
    %2 = tpu.matmul %0, %1, %cst {dimension_numbers = #tpu.dot_dimension_numbers<[1], [0], [0], [1], [0, 0, 1, 1], [], []>} : vector<16x32xbf16>, vector<32x64xbf16>, vector<16x64xf32> -> vector<16x64xf32>
    %c0_3 = arith.constant 0 : index
    %c0_4 = arith.constant 0 : index
    %3 = vector.load %arg5[%c0_3, %c0_4] : memref<1x64xf32, #tpu.memory_space<vmem>>, vector<1x64xf32>
    %4 = vector.broadcast %3 : vector<1x64xf32> to vector<16x64xf32>
    %5 = arith.addf %2, %4 : vector<16x64xf32>
    %cst_5 = arith.constant 0.000000e+00 : f32
    %6 = vector.broadcast %cst_5 : f32 to vector<16x64xf32>
    %7 = arith.maximumf %5, %6 : vector<16x64xf32>
    %8 = arith.truncf %7 : vector<16x64xf32> to vector<16x64xbf16>
    %c0_6 = arith.constant 0 : index
    %c0_7 = arith.constant 0 : index
    %9 = vector.load %arg6[%c0_6, %c0_7] : memref<224x32xbf16, #tpu.memory_space<vmem>>, vector<224x32xbf16>
    %10 = vector.extract_strided_slice %9 {offsets = [0, 0], sizes = [64, 32], strides = [1, 1]} : vector<224x32xbf16> to vector<64x32xbf16>
    %cst_8 = arith.constant dense<0.000000e+00> : vector<16x32xf32>
    %11 = tpu.matmul %8, %10, %cst_8 {dimension_numbers = #tpu.dot_dimension_numbers<[1], [0], [0], [1], [0, 0, 1, 1], [], []>} : vector<16x64xbf16>, vector<64x32xbf16>, vector<16x32xf32> -> vector<16x32xf32>
    %c0_9 = arith.constant 0 : index
    %c0_10 = arith.constant 0 : index
    %12 = vector.load %arg2[%c0_9, %c0_10] : memref<16x64xbf16, #tpu.memory_space<vmem>>, vector<16x64xbf16>
    %13 = vector.extract_strided_slice %9 {offsets = [64, 0], sizes = [64, 32], strides = [1, 1]} : vector<224x32xbf16> to vector<64x32xbf16>
    %cst_11 = arith.constant dense<0.000000e+00> : vector<16x32xf32>
    %14 = tpu.matmul %12, %13, %cst_11 {dimension_numbers = #tpu.dot_dimension_numbers<[1], [0], [0], [1], [0, 0, 1, 1], [], []>} : vector<16x64xbf16>, vector<64x32xbf16>, vector<16x32xf32> -> vector<16x32xf32>
    %15 = arith.addf %11, %14 : vector<16x32xf32>
    %c0_12 = arith.constant 0 : index
    %c0_13 = arith.constant 0 : index
    %16 = vector.load %arg3[%c0_12, %c0_13] : memref<16x96xbf16, #tpu.memory_space<vmem>>, vector<16x96xbf16>
    %17 = vector.extract_strided_slice %9 {offsets = [128, 0], sizes = [96, 32], strides = [1, 1]} : vector<224x32xbf16> to vector<96x32xbf16>
    %cst_14 = arith.constant dense<0.000000e+00> : vector<16x32xf32>
    %18 = tpu.matmul %16, %17, %cst_14 {dimension_numbers = #tpu.dot_dimension_numbers<[1], [0], [0], [1], [0, 0, 1, 1], [], []>} : vector<16x96xbf16>, vector<96x32xbf16>, vector<16x32xf32> -> vector<16x32xf32>
    %19 = arith.addf %15, %18 : vector<16x32xf32>
    %c0_15 = arith.constant 0 : index
    %c0_16 = arith.constant 0 : index
    %20 = vector.load %arg7[%c0_15, %c0_16] : memref<1x32xf32, #tpu.memory_space<vmem>>, vector<1x32xf32>
    %21 = vector.broadcast %20 : vector<1x32xf32> to vector<16x32xf32>
    %22 = arith.addf %19, %21 : vector<16x32xf32>
    %23 = arith.extf %0 : vector<16x32xbf16> to vector<16x32xf32>
    %cst_17 = arith.constant 5.000000e-01 : f32
    %24 = vector.broadcast %cst_17 : f32 to vector<16x32xf32>
    %25 = arith.mulf %24, %23 : vector<16x32xf32>
    %26 = arith.addf %22, %25 : vector<16x32xf32>
    %cst_18 = arith.constant 0.000000e+00 : f32
    %27 = vector.broadcast %cst_18 : f32 to vector<16x32xf32>
    %28 = arith.maximumf %26, %27 : vector<16x32xf32>
    %29 = arith.truncf %28 : vector<16x32xf32> to vector<16x32xbf16>
    %c0_19 = arith.constant 0 : index
    %c0_20 = arith.constant 0 : index
    %30 = vector.load %arg8[%c0_19, %c0_20] : memref<16x32xbf16, #tpu.memory_space<vmem>>, vector<16x32xbf16>
    tpu.vector_store %arg8[%c0_19, %c0_20], %29 {strides = array<i32>} : memref<16x32xbf16, #tpu.memory_space<vmem>>, vector<16x32xbf16>,
    return
  }
  func.func @transform_0(%arg0: i32) -> (i32, i32) {
    %c0_i32 = arith.constant 0 : i32
    %c0_i32_0 = arith.constant 0 : i32
    return %arg0, %c0_i32 : i32, i32
  }
  func.func @transform_1(%arg0: i32) -> (i32, i32) {
    %c0_i32 = arith.constant 0 : i32
    %c0_i32_0 = arith.constant 0 : i32
    return %arg0, %c0_i32 : i32, i32
  }
  func.func @transform_2(%arg0: i32) -> (i32, i32) {
    %c0_i32 = arith.constant 0 : i32
    %c0_i32_0 = arith.constant 0 : i32
    return %arg0, %c0_i32 : i32, i32
  }
  func.func @transform_3(%arg0: i32) -> (i32, i32) {
    %c0_i32 = arith.constant 0 : i32
    %c0_i32_0 = arith.constant 0 : i32
    %c0_i32_1 = arith.constant 0 : i32
    return %c0_i32, %c0_i32_0 : i32, i32
  }
  func.func @transform_4(%arg0: i32) -> (i32, i32) {
    %c0_i32 = arith.constant 0 : i32
    %c0_i32_0 = arith.constant 0 : i32
    %c0_i32_1 = arith.constant 0 : i32
    return %c0_i32, %c0_i32_0 : i32, i32
  }
  func.func @transform_5(%arg0: i32) -> (i32, i32) {
    %c0_i32 = arith.constant 0 : i32
    %c0_i32_0 = arith.constant 0 : i32
    %c0_i32_1 = arith.constant 0 : i32
    return %c0_i32, %c0_i32_0 : i32, i32
  }
  func.func @transform_6(%arg0: i32) -> (i32, i32) {
    %c0_i32 = arith.constant 0 : i32
    %c0_i32_0 = arith.constant 0 : i32
    %c0_i32_1 = arith.constant 0 : i32
    return %c0_i32, %c0_i32_0 : i32, i32
  }
  func.func @transform_7(%arg0: i32) -> (i32, i32) {
    %c0_i32 = arith.constant 0 : i32
    %c0_i32_0 = arith.constant 0 : i32
    return %arg0, %c0_i32 : i32, i32
  }
}

module attributes {stable_mosaic.version = 11 : i64} {
  func.func @kernel(%arg0: i32, %arg1: memref<8x2x32xbf16, #tpu.memory_space<vmem>>, %arg2: memref<1x2x32xbf16, #tpu.memory_space<vmem>>, %arg3: memref<32x96xbf16, #tpu.memory_space<vmem>>, %arg4: memref<1x96xf32, #tpu.memory_space<vmem>>, %arg5: memref<32x32xbf16, #tpu.memory_space<vmem>>, %arg6: memref<1x32xf32, #tpu.memory_space<vmem>>, %arg7: memref<1x32xf32, #tpu.memory_space<vmem>>, %arg8: memref<1x32xf32, #tpu.memory_space<vmem>>, %arg9: memref<8x2x32xbf16, #tpu.memory_space<vmem>>) attributes {dimension_semantics = [#tpu.dimension_semantics<parallel>], iteration_bounds = array<i64: 2>, scalar_prefetch = 0 : i64, scratch_operands = 0 : i64, tpu.core_type = #tpu.core_type<tc>, window_params = [{transform_indices = @transform_0, window_bounds = array<i64: 8, 2, 32>}, {pipeline_mode = #tpu.pipeline_mode<synchronous>, transform_indices = @transform_1, window_bounds = array<i64: 1, 2, 32>}, {pipeline_mode = #tpu.pipeline_mode<synchronous>, transform_indices = @transform_2, window_bounds = array<i64: 32, 96>}, {pipeline_mode = #tpu.pipeline_mode<synchronous>, transform_indices = @transform_3, window_bounds = array<i64: 1, 96>}, {pipeline_mode = #tpu.pipeline_mode<synchronous>, transform_indices = @transform_4, window_bounds = array<i64: 32, 32>}, {pipeline_mode = #tpu.pipeline_mode<synchronous>, transform_indices = @transform_5, window_bounds = array<i64: 1, 32>}, {pipeline_mode = #tpu.pipeline_mode<synchronous>, transform_indices = @transform_6, window_bounds = array<i64: 1, 32>}, {pipeline_mode = #tpu.pipeline_mode<synchronous>, transform_indices = @transform_7, window_bounds = array<i64: 1, 32>}, {transform_indices = @transform_8, window_bounds = array<i64: 8, 2, 32>}]} {
    %c0 = arith.constant 0 : index
    %c0_0 = arith.constant 0 : index
    %c0_1 = arith.constant 0 : index
    %0 = vector.load %arg1[%c0, %c0_0, %c0_1] : memref<8x2x32xbf16, #tpu.memory_space<vmem>>, vector<8x2x32xbf16>
    %1 = arith.extf %0 : vector<8x2x32xbf16> to vector<8x2x32xf32>
    %c0_2 = arith.constant 0 : index
    %c0_3 = arith.constant 0 : index
    %c0_4 = arith.constant 0 : index
    %2 = vector.load %arg2[%c0_2, %c0_3, %c0_4] : memref<1x2x32xbf16, #tpu.memory_space<vmem>>, vector<1x2x32xbf16>
    %3 = arith.extf %2 : vector<1x2x32xbf16> to vector<1x2x32xf32>
    %4 = vector.broadcast %3 : vector<1x2x32xf32> to vector<8x2x32xf32>
    %5 = arith.mulf %1, %4 : vector<8x2x32xf32>
    %6 = arith.truncf %5 : vector<8x2x32xf32> to vector<8x2x32xbf16>
    %c0_5 = arith.constant 0 : index
    %c0_6 = arith.constant 0 : index
    %7 = vector.load %arg3[%c0_5, %c0_6] : memref<32x96xbf16, #tpu.memory_space<vmem>>, vector<32x96xbf16>
    %8 = vector.shape_cast %7 : vector<32x96xbf16> to vector<1x32x96xbf16>
    %9 = vector.shape_cast %8 : vector<1x32x96xbf16> to vector<1x32x96xbf16>
    %10 = vector.broadcast %9 : vector<1x32x96xbf16> to vector<8x32x96xbf16>
    "tpu.trace_start"() <{level = 10 : i32, message = "nsc,ncf->nsf"}> : () -> ()
    %cst = arith.constant dense<0.000000e+00> : vector<8x2x96xf32>
    %11 = tpu.matmul %6, %10, %cst {dimension_numbers = #tpu.dot_dimension_numbers<[2], [1], [1], [2], [0, 0, 0, 1, 1, 2], [0], [0]>} : vector<8x2x32xbf16>, vector<8x32x96xbf16>, vector<8x2x96xf32> -> vector<8x2x96xf32>
    "tpu.trace_stop"() : () -> ()
    %c0_7 = arith.constant 0 : index
    %c0_8 = arith.constant 0 : index
    %12 = vector.load %arg4[%c0_7, %c0_8] : memref<1x96xf32, #tpu.memory_space<vmem>>, vector<1x96xf32>
    %13 = vector.shape_cast %12 : vector<1x96xf32> to vector<1x1x96xf32>
    %14 = vector.broadcast %13 : vector<1x1x96xf32> to vector<8x2x96xf32>
    %15 = arith.addf %11, %14 : vector<8x2x96xf32>
    %16 = vector.extract_strided_slice %15 {offsets = [0, 0, 0], sizes = [8, 2, 4], strides = [1, 1, 1]} : vector<8x2x96xf32> to vector<8x2x4xf32>
    %17 = arith.truncf %16 : vector<8x2x4xf32> to vector<8x2x4xbf16>
    %18 = vector.extract_strided_slice %15 {offsets = [0, 0, 32], sizes = [8, 2, 4], strides = [1, 1, 1]} : vector<8x2x96xf32> to vector<8x2x4xf32>
    %19 = arith.truncf %18 : vector<8x2x4xf32> to vector<8x2x4xbf16>
    %20 = vector.extract_strided_slice %15 {offsets = [0, 0, 64], sizes = [8, 2, 4], strides = [1, 1, 1]} : vector<8x2x96xf32> to vector<8x2x4xf32>
    %21 = arith.truncf %20 : vector<8x2x4xf32> to vector<8x2x4xbf16>
    "tpu.trace_start"() <{level = 10 : i32, message = "nsd,ntd->nst"}> : () -> ()
    %cst_9 = arith.constant dense<0.000000e+00> : vector<8x2x2xf32>
    %22 = tpu.matmul %17, %19, %cst_9 {dimension_numbers = #tpu.dot_dimension_numbers<[2], [2], [1], [1], [0, 0, 0, 1, 1, 1], [0], [0]>} : vector<8x2x4xbf16>, vector<8x2x4xbf16>, vector<8x2x2xf32> -> vector<8x2x2xf32>
    "tpu.trace_stop"() : () -> ()
    %cst_10 = arith.constant dense<0xFF800000> : vector<8x2xf32>
    %23 = vector.multi_reduction <maximumf>, %22, %cst_10 [2] : vector<8x2x2xf32> to vector<8x2xf32>
    %24 = vector.shape_cast %23 : vector<8x2xf32> to vector<8x2x1xf32>
    %25 = vector.broadcast %24 : vector<8x2x1xf32> to vector<8x2x2xf32>
    %26 = arith.subf %22, %25 : vector<8x2x2xf32>
    %27 = math.exp %26 : vector<8x2x2xf32>
    %cst_11 = arith.constant dense<0.000000e+00> : vector<8x2xf32>
    %28 = vector.multi_reduction <add>, %27, %cst_11 [2] : vector<8x2x2xf32> to vector<8x2xf32>
    %29 = vector.shape_cast %28 : vector<8x2xf32> to vector<8x2x1xf32>
    %30 = tpu.reciprocal %29 {approx = true} : vector<8x2x1xf32> -> vector<8x2x1xf32>
    %31 = vector.broadcast %30 : vector<8x2x1xf32> to vector<8x2x2xf32>
    %32 = arith.mulf %27, %31 : vector<8x2x2xf32>
    %33 = arith.truncf %32 : vector<8x2x2xf32> to vector<8x2x2xbf16>
    "tpu.trace_start"() <{level = 10 : i32, message = "nst,ntd->nsd"}> : () -> ()
    %cst_12 = arith.constant dense<0.000000e+00> : vector<8x2x4xf32>
    %34 = tpu.matmul %33, %21, %cst_12 {dimension_numbers = #tpu.dot_dimension_numbers<[2], [1], [1], [2], [0, 0, 0, 1, 1, 2], [0], [0]>} : vector<8x2x2xbf16>, vector<8x2x4xbf16>, vector<8x2x4xf32> -> vector<8x2x4xf32>
    "tpu.trace_stop"() : () -> ()
    %35 = vector.extract_strided_slice %15 {offsets = [0, 0, 4], sizes = [8, 2, 4], strides = [1, 1, 1]} : vector<8x2x96xf32> to vector<8x2x4xf32>
    %36 = arith.truncf %35 : vector<8x2x4xf32> to vector<8x2x4xbf16>
    %37 = vector.extract_strided_slice %15 {offsets = [0, 0, 36], sizes = [8, 2, 4], strides = [1, 1, 1]} : vector<8x2x96xf32> to vector<8x2x4xf32>
    %38 = arith.truncf %37 : vector<8x2x4xf32> to vector<8x2x4xbf16>
    %39 = vector.extract_strided_slice %15 {offsets = [0, 0, 68], sizes = [8, 2, 4], strides = [1, 1, 1]} : vector<8x2x96xf32> to vector<8x2x4xf32>
    %40 = arith.truncf %39 : vector<8x2x4xf32> to vector<8x2x4xbf16>
    "tpu.trace_start"() <{level = 10 : i32, message = "nsd,ntd->nst"}> : () -> ()
    %cst_13 = arith.constant dense<0.000000e+00> : vector<8x2x2xf32>
    %41 = tpu.matmul %36, %38, %cst_13 {dimension_numbers = #tpu.dot_dimension_numbers<[2], [2], [1], [1], [0, 0, 0, 1, 1, 1], [0], [0]>} : vector<8x2x4xbf16>, vector<8x2x4xbf16>, vector<8x2x2xf32> -> vector<8x2x2xf32>
    "tpu.trace_stop"() : () -> ()
    %cst_14 = arith.constant dense<0xFF800000> : vector<8x2xf32>
    %42 = vector.multi_reduction <maximumf>, %41, %cst_14 [2] : vector<8x2x2xf32> to vector<8x2xf32>
    %43 = vector.shape_cast %42 : vector<8x2xf32> to vector<8x2x1xf32>
    %44 = vector.broadcast %43 : vector<8x2x1xf32> to vector<8x2x2xf32>
    %45 = arith.subf %41, %44 : vector<8x2x2xf32>
    %46 = math.exp %45 : vector<8x2x2xf32>
    %cst_15 = arith.constant dense<0.000000e+00> : vector<8x2xf32>
    %47 = vector.multi_reduction <add>, %46, %cst_15 [2] : vector<8x2x2xf32> to vector<8x2xf32>
    %48 = vector.shape_cast %47 : vector<8x2xf32> to vector<8x2x1xf32>
    %49 = tpu.reciprocal %48 {approx = true} : vector<8x2x1xf32> -> vector<8x2x1xf32>
    %50 = vector.broadcast %49 : vector<8x2x1xf32> to vector<8x2x2xf32>
    %51 = arith.mulf %46, %50 : vector<8x2x2xf32>
    %52 = arith.truncf %51 : vector<8x2x2xf32> to vector<8x2x2xbf16>
    "tpu.trace_start"() <{level = 10 : i32, message = "nst,ntd->nsd"}> : () -> ()
    %cst_16 = arith.constant dense<0.000000e+00> : vector<8x2x4xf32>
    %53 = tpu.matmul %52, %40, %cst_16 {dimension_numbers = #tpu.dot_dimension_numbers<[2], [1], [1], [2], [0, 0, 0, 1, 1, 2], [0], [0]>} : vector<8x2x2xbf16>, vector<8x2x4xbf16>, vector<8x2x4xf32> -> vector<8x2x4xf32>
    "tpu.trace_stop"() : () -> ()
    %54 = vector.extract_strided_slice %15 {offsets = [0, 0, 8], sizes = [8, 2, 4], strides = [1, 1, 1]} : vector<8x2x96xf32> to vector<8x2x4xf32>
    %55 = arith.truncf %54 : vector<8x2x4xf32> to vector<8x2x4xbf16>
    %56 = vector.extract_strided_slice %15 {offsets = [0, 0, 40], sizes = [8, 2, 4], strides = [1, 1, 1]} : vector<8x2x96xf32> to vector<8x2x4xf32>
    %57 = arith.truncf %56 : vector<8x2x4xf32> to vector<8x2x4xbf16>
    %58 = vector.extract_strided_slice %15 {offsets = [0, 0, 72], sizes = [8, 2, 4], strides = [1, 1, 1]} : vector<8x2x96xf32> to vector<8x2x4xf32>
    %59 = arith.truncf %58 : vector<8x2x4xf32> to vector<8x2x4xbf16>
    "tpu.trace_start"() <{level = 10 : i32, message = "nsd,ntd->nst"}> : () -> ()
    %cst_17 = arith.constant dense<0.000000e+00> : vector<8x2x2xf32>
    %60 = tpu.matmul %55, %57, %cst_17 {dimension_numbers = #tpu.dot_dimension_numbers<[2], [2], [1], [1], [0, 0, 0, 1, 1, 1], [0], [0]>} : vector<8x2x4xbf16>, vector<8x2x4xbf16>, vector<8x2x2xf32> -> vector<8x2x2xf32>
    "tpu.trace_stop"() : () -> ()
    %cst_18 = arith.constant dense<0xFF800000> : vector<8x2xf32>
    %61 = vector.multi_reduction <maximumf>, %60, %cst_18 [2] : vector<8x2x2xf32> to vector<8x2xf32>
    %62 = vector.shape_cast %61 : vector<8x2xf32> to vector<8x2x1xf32>
    %63 = vector.broadcast %62 : vector<8x2x1xf32> to vector<8x2x2xf32>
    %64 = arith.subf %60, %63 : vector<8x2x2xf32>
    %65 = math.exp %64 : vector<8x2x2xf32>
    %cst_19 = arith.constant dense<0.000000e+00> : vector<8x2xf32>
    %66 = vector.multi_reduction <add>, %65, %cst_19 [2] : vector<8x2x2xf32> to vector<8x2xf32>
    %67 = vector.shape_cast %66 : vector<8x2xf32> to vector<8x2x1xf32>
    %68 = tpu.reciprocal %67 {approx = true} : vector<8x2x1xf32> -> vector<8x2x1xf32>
    %69 = vector.broadcast %68 : vector<8x2x1xf32> to vector<8x2x2xf32>
    %70 = arith.mulf %65, %69 : vector<8x2x2xf32>
    %71 = arith.truncf %70 : vector<8x2x2xf32> to vector<8x2x2xbf16>
    "tpu.trace_start"() <{level = 10 : i32, message = "nst,ntd->nsd"}> : () -> ()
    %cst_20 = arith.constant dense<0.000000e+00> : vector<8x2x4xf32>
    %72 = tpu.matmul %71, %59, %cst_20 {dimension_numbers = #tpu.dot_dimension_numbers<[2], [1], [1], [2], [0, 0, 0, 1, 1, 2], [0], [0]>} : vector<8x2x2xbf16>, vector<8x2x4xbf16>, vector<8x2x4xf32> -> vector<8x2x4xf32>
    "tpu.trace_stop"() : () -> ()
    %73 = vector.extract_strided_slice %15 {offsets = [0, 0, 12], sizes = [8, 2, 4], strides = [1, 1, 1]} : vector<8x2x96xf32> to vector<8x2x4xf32>
    %74 = arith.truncf %73 : vector<8x2x4xf32> to vector<8x2x4xbf16>
    %75 = vector.extract_strided_slice %15 {offsets = [0, 0, 44], sizes = [8, 2, 4], strides = [1, 1, 1]} : vector<8x2x96xf32> to vector<8x2x4xf32>
    %76 = arith.truncf %75 : vector<8x2x4xf32> to vector<8x2x4xbf16>
    %77 = vector.extract_strided_slice %15 {offsets = [0, 0, 76], sizes = [8, 2, 4], strides = [1, 1, 1]} : vector<8x2x96xf32> to vector<8x2x4xf32>
    %78 = arith.truncf %77 : vector<8x2x4xf32> to vector<8x2x4xbf16>
    "tpu.trace_start"() <{level = 10 : i32, message = "nsd,ntd->nst"}> : () -> ()
    %cst_21 = arith.constant dense<0.000000e+00> : vector<8x2x2xf32>
    %79 = tpu.matmul %74, %76, %cst_21 {dimension_numbers = #tpu.dot_dimension_numbers<[2], [2], [1], [1], [0, 0, 0, 1, 1, 1], [0], [0]>} : vector<8x2x4xbf16>, vector<8x2x4xbf16>, vector<8x2x2xf32> -> vector<8x2x2xf32>
    "tpu.trace_stop"() : () -> ()
    %cst_22 = arith.constant dense<0xFF800000> : vector<8x2xf32>
    %80 = vector.multi_reduction <maximumf>, %79, %cst_22 [2] : vector<8x2x2xf32> to vector<8x2xf32>
    %81 = vector.shape_cast %80 : vector<8x2xf32> to vector<8x2x1xf32>
    %82 = vector.broadcast %81 : vector<8x2x1xf32> to vector<8x2x2xf32>
    %83 = arith.subf %79, %82 : vector<8x2x2xf32>
    %84 = math.exp %83 : vector<8x2x2xf32>
    %cst_23 = arith.constant dense<0.000000e+00> : vector<8x2xf32>
    %85 = vector.multi_reduction <add>, %84, %cst_23 [2] : vector<8x2x2xf32> to vector<8x2xf32>
    %86 = vector.shape_cast %85 : vector<8x2xf32> to vector<8x2x1xf32>
    %87 = tpu.reciprocal %86 {approx = true} : vector<8x2x1xf32> -> vector<8x2x1xf32>
    %88 = vector.broadcast %87 : vector<8x2x1xf32> to vector<8x2x2xf32>
    %89 = arith.mulf %84, %88 : vector<8x2x2xf32>
    %90 = arith.truncf %89 : vector<8x2x2xf32> to vector<8x2x2xbf16>
    "tpu.trace_start"() <{level = 10 : i32, message = "nst,ntd->nsd"}> : () -> ()
    %cst_24 = arith.constant dense<0.000000e+00> : vector<8x2x4xf32>
    %91 = tpu.matmul %90, %78, %cst_24 {dimension_numbers = #tpu.dot_dimension_numbers<[2], [1], [1], [2], [0, 0, 0, 1, 1, 2], [0], [0]>} : vector<8x2x2xbf16>, vector<8x2x4xbf16>, vector<8x2x4xf32> -> vector<8x2x4xf32>
    "tpu.trace_stop"() : () -> ()
    %92 = vector.extract_strided_slice %15 {offsets = [0, 0, 16], sizes = [8, 2, 4], strides = [1, 1, 1]} : vector<8x2x96xf32> to vector<8x2x4xf32>
    %93 = arith.truncf %92 : vector<8x2x4xf32> to vector<8x2x4xbf16>
    %94 = vector.extract_strided_slice %15 {offsets = [0, 0, 48], sizes = [8, 2, 4], strides = [1, 1, 1]} : vector<8x2x96xf32> to vector<8x2x4xf32>
    %95 = arith.truncf %94 : vector<8x2x4xf32> to vector<8x2x4xbf16>
    %96 = vector.extract_strided_slice %15 {offsets = [0, 0, 80], sizes = [8, 2, 4], strides = [1, 1, 1]} : vector<8x2x96xf32> to vector<8x2x4xf32>
    %97 = arith.truncf %96 : vector<8x2x4xf32> to vector<8x2x4xbf16>
    "tpu.trace_start"() <{level = 10 : i32, message = "nsd,ntd->nst"}> : () -> ()
    %cst_25 = arith.constant dense<0.000000e+00> : vector<8x2x2xf32>
    %98 = tpu.matmul %93, %95, %cst_25 {dimension_numbers = #tpu.dot_dimension_numbers<[2], [2], [1], [1], [0, 0, 0, 1, 1, 1], [0], [0]>} : vector<8x2x4xbf16>, vector<8x2x4xbf16>, vector<8x2x2xf32> -> vector<8x2x2xf32>
    "tpu.trace_stop"() : () -> ()
    %cst_26 = arith.constant dense<0xFF800000> : vector<8x2xf32>
    %99 = vector.multi_reduction <maximumf>, %98, %cst_26 [2] : vector<8x2x2xf32> to vector<8x2xf32>
    %100 = vector.shape_cast %99 : vector<8x2xf32> to vector<8x2x1xf32>
    %101 = vector.broadcast %100 : vector<8x2x1xf32> to vector<8x2x2xf32>
    %102 = arith.subf %98, %101 : vector<8x2x2xf32>
    %103 = math.exp %102 : vector<8x2x2xf32>
    %cst_27 = arith.constant dense<0.000000e+00> : vector<8x2xf32>
    %104 = vector.multi_reduction <add>, %103, %cst_27 [2] : vector<8x2x2xf32> to vector<8x2xf32>
    %105 = vector.shape_cast %104 : vector<8x2xf32> to vector<8x2x1xf32>
    %106 = tpu.reciprocal %105 {approx = true} : vector<8x2x1xf32> -> vector<8x2x1xf32>
    %107 = vector.broadcast %106 : vector<8x2x1xf32> to vector<8x2x2xf32>
    %108 = arith.mulf %103, %107 : vector<8x2x2xf32>
    %109 = arith.truncf %108 : vector<8x2x2xf32> to vector<8x2x2xbf16>
    "tpu.trace_start"() <{level = 10 : i32, message = "nst,ntd->nsd"}> : () -> ()
    %cst_28 = arith.constant dense<0.000000e+00> : vector<8x2x4xf32>
    %110 = tpu.matmul %109, %97, %cst_28 {dimension_numbers = #tpu.dot_dimension_numbers<[2], [1], [1], [2], [0, 0, 0, 1, 1, 2], [0], [0]>} : vector<8x2x2xbf16>, vector<8x2x4xbf16>, vector<8x2x4xf32> -> vector<8x2x4xf32>
    "tpu.trace_stop"() : () -> ()
    %111 = vector.extract_strided_slice %15 {offsets = [0, 0, 20], sizes = [8, 2, 4], strides = [1, 1, 1]} : vector<8x2x96xf32> to vector<8x2x4xf32>
    %112 = arith.truncf %111 : vector<8x2x4xf32> to vector<8x2x4xbf16>
    %113 = vector.extract_strided_slice %15 {offsets = [0, 0, 52], sizes = [8, 2, 4], strides = [1, 1, 1]} : vector<8x2x96xf32> to vector<8x2x4xf32>
    %114 = arith.truncf %113 : vector<8x2x4xf32> to vector<8x2x4xbf16>
    %115 = vector.extract_strided_slice %15 {offsets = [0, 0, 84], sizes = [8, 2, 4], strides = [1, 1, 1]} : vector<8x2x96xf32> to vector<8x2x4xf32>
    %116 = arith.truncf %115 : vector<8x2x4xf32> to vector<8x2x4xbf16>
    "tpu.trace_start"() <{level = 10 : i32, message = "nsd,ntd->nst"}> : () -> ()
    %cst_29 = arith.constant dense<0.000000e+00> : vector<8x2x2xf32>
    %117 = tpu.matmul %112, %114, %cst_29 {dimension_numbers = #tpu.dot_dimension_numbers<[2], [2], [1], [1], [0, 0, 0, 1, 1, 1], [0], [0]>} : vector<8x2x4xbf16>, vector<8x2x4xbf16>, vector<8x2x2xf32> -> vector<8x2x2xf32>
    "tpu.trace_stop"() : () -> ()
    %cst_30 = arith.constant dense<0xFF800000> : vector<8x2xf32>
    %118 = vector.multi_reduction <maximumf>, %117, %cst_30 [2] : vector<8x2x2xf32> to vector<8x2xf32>
    %119 = vector.shape_cast %118 : vector<8x2xf32> to vector<8x2x1xf32>
    %120 = vector.broadcast %119 : vector<8x2x1xf32> to vector<8x2x2xf32>
    %121 = arith.subf %117, %120 : vector<8x2x2xf32>
    %122 = math.exp %121 : vector<8x2x2xf32>
    %cst_31 = arith.constant dense<0.000000e+00> : vector<8x2xf32>
    %123 = vector.multi_reduction <add>, %122, %cst_31 [2] : vector<8x2x2xf32> to vector<8x2xf32>
    %124 = vector.shape_cast %123 : vector<8x2xf32> to vector<8x2x1xf32>
    %125 = tpu.reciprocal %124 {approx = true} : vector<8x2x1xf32> -> vector<8x2x1xf32>
    %126 = vector.broadcast %125 : vector<8x2x1xf32> to vector<8x2x2xf32>
    %127 = arith.mulf %122, %126 : vector<8x2x2xf32>
    %128 = arith.truncf %127 : vector<8x2x2xf32> to vector<8x2x2xbf16>
    "tpu.trace_start"() <{level = 10 : i32, message = "nst,ntd->nsd"}> : () -> ()
    %cst_32 = arith.constant dense<0.000000e+00> : vector<8x2x4xf32>
    %129 = tpu.matmul %128, %116, %cst_32 {dimension_numbers = #tpu.dot_dimension_numbers<[2], [1], [1], [2], [0, 0, 0, 1, 1, 2], [0], [0]>} : vector<8x2x2xbf16>, vector<8x2x4xbf16>, vector<8x2x4xf32> -> vector<8x2x4xf32>
    "tpu.trace_stop"() : () -> ()
    %130 = vector.extract_strided_slice %15 {offsets = [0, 0, 24], sizes = [8, 2, 4], strides = [1, 1, 1]} : vector<8x2x96xf32> to vector<8x2x4xf32>
    %131 = arith.truncf %130 : vector<8x2x4xf32> to vector<8x2x4xbf16>
    %132 = vector.extract_strided_slice %15 {offsets = [0, 0, 56], sizes = [8, 2, 4], strides = [1, 1, 1]} : vector<8x2x96xf32> to vector<8x2x4xf32>
    %133 = arith.truncf %132 : vector<8x2x4xf32> to vector<8x2x4xbf16>
    %134 = vector.extract_strided_slice %15 {offsets = [0, 0, 88], sizes = [8, 2, 4], strides = [1, 1, 1]} : vector<8x2x96xf32> to vector<8x2x4xf32>
    %135 = arith.truncf %134 : vector<8x2x4xf32> to vector<8x2x4xbf16>
    "tpu.trace_start"() <{level = 10 : i32, message = "nsd,ntd->nst"}> : () -> ()
    %cst_33 = arith.constant dense<0.000000e+00> : vector<8x2x2xf32>
    %136 = tpu.matmul %131, %133, %cst_33 {dimension_numbers = #tpu.dot_dimension_numbers<[2], [2], [1], [1], [0, 0, 0, 1, 1, 1], [0], [0]>} : vector<8x2x4xbf16>, vector<8x2x4xbf16>, vector<8x2x2xf32> -> vector<8x2x2xf32>
    "tpu.trace_stop"() : () -> ()
    %cst_34 = arith.constant dense<0xFF800000> : vector<8x2xf32>
    %137 = vector.multi_reduction <maximumf>, %136, %cst_34 [2] : vector<8x2x2xf32> to vector<8x2xf32>
    %138 = vector.shape_cast %137 : vector<8x2xf32> to vector<8x2x1xf32>
    %139 = vector.broadcast %138 : vector<8x2x1xf32> to vector<8x2x2xf32>
    %140 = arith.subf %136, %139 : vector<8x2x2xf32>
    %141 = math.exp %140 : vector<8x2x2xf32>
    %cst_35 = arith.constant dense<0.000000e+00> : vector<8x2xf32>
    %142 = vector.multi_reduction <add>, %141, %cst_35 [2] : vector<8x2x2xf32> to vector<8x2xf32>
    %143 = vector.shape_cast %142 : vector<8x2xf32> to vector<8x2x1xf32>
    %144 = tpu.reciprocal %143 {approx = true} : vector<8x2x1xf32> -> vector<8x2x1xf32>
    %145 = vector.broadcast %144 : vector<8x2x1xf32> to vector<8x2x2xf32>
    %146 = arith.mulf %141, %145 : vector<8x2x2xf32>
    %147 = arith.truncf %146 : vector<8x2x2xf32> to vector<8x2x2xbf16>
    "tpu.trace_start"() <{level = 10 : i32, message = "nst,ntd->nsd"}> : () -> ()
    %cst_36 = arith.constant dense<0.000000e+00> : vector<8x2x4xf32>
    %148 = tpu.matmul %147, %135, %cst_36 {dimension_numbers = #tpu.dot_dimension_numbers<[2], [1], [1], [2], [0, 0, 0, 1, 1, 2], [0], [0]>} : vector<8x2x2xbf16>, vector<8x2x4xbf16>, vector<8x2x4xf32> -> vector<8x2x4xf32>
    "tpu.trace_stop"() : () -> ()
    %149 = vector.extract_strided_slice %15 {offsets = [0, 0, 28], sizes = [8, 2, 4], strides = [1, 1, 1]} : vector<8x2x96xf32> to vector<8x2x4xf32>
    %150 = arith.truncf %149 : vector<8x2x4xf32> to vector<8x2x4xbf16>
    %151 = vector.extract_strided_slice %15 {offsets = [0, 0, 60], sizes = [8, 2, 4], strides = [1, 1, 1]} : vector<8x2x96xf32> to vector<8x2x4xf32>
    %152 = arith.truncf %151 : vector<8x2x4xf32> to vector<8x2x4xbf16>
    %153 = vector.extract_strided_slice %15 {offsets = [0, 0, 92], sizes = [8, 2, 4], strides = [1, 1, 1]} : vector<8x2x96xf32> to vector<8x2x4xf32>
    %154 = arith.truncf %153 : vector<8x2x4xf32> to vector<8x2x4xbf16>
    "tpu.trace_start"() <{level = 10 : i32, message = "nsd,ntd->nst"}> : () -> ()
    %cst_37 = arith.constant dense<0.000000e+00> : vector<8x2x2xf32>
    %155 = tpu.matmul %150, %152, %cst_37 {dimension_numbers = #tpu.dot_dimension_numbers<[2], [2], [1], [1], [0, 0, 0, 1, 1, 1], [0], [0]>} : vector<8x2x4xbf16>, vector<8x2x4xbf16>, vector<8x2x2xf32> -> vector<8x2x2xf32>
    "tpu.trace_stop"() : () -> ()
    %cst_38 = arith.constant dense<0xFF800000> : vector<8x2xf32>
    %156 = vector.multi_reduction <maximumf>, %155, %cst_38 [2] : vector<8x2x2xf32> to vector<8x2xf32>
    %157 = vector.shape_cast %156 : vector<8x2xf32> to vector<8x2x1xf32>
    %158 = vector.broadcast %157 : vector<8x2x1xf32> to vector<8x2x2xf32>
    %159 = arith.subf %155, %158 : vector<8x2x2xf32>
    %160 = math.exp %159 : vector<8x2x2xf32>
    %cst_39 = arith.constant dense<0.000000e+00> : vector<8x2xf32>
    %161 = vector.multi_reduction <add>, %160, %cst_39 [2] : vector<8x2x2xf32> to vector<8x2xf32>
    %162 = vector.shape_cast %161 : vector<8x2xf32> to vector<8x2x1xf32>
    %163 = tpu.reciprocal %162 {approx = true} : vector<8x2x1xf32> -> vector<8x2x1xf32>
    %164 = vector.broadcast %163 : vector<8x2x1xf32> to vector<8x2x2xf32>
    %165 = arith.mulf %160, %164 : vector<8x2x2xf32>
    %166 = arith.truncf %165 : vector<8x2x2xf32> to vector<8x2x2xbf16>
    "tpu.trace_start"() <{level = 10 : i32, message = "nst,ntd->nsd"}> : () -> ()
    %cst_40 = arith.constant dense<0.000000e+00> : vector<8x2x4xf32>
    %167 = tpu.matmul %166, %154, %cst_40 {dimension_numbers = #tpu.dot_dimension_numbers<[2], [1], [1], [2], [0, 0, 0, 1, 1, 2], [0], [0]>} : vector<8x2x2xbf16>, vector<8x2x4xbf16>, vector<8x2x4xf32> -> vector<8x2x4xf32>
    "tpu.trace_stop"() : () -> ()
    %168 = tpu.concatenate %34, %53, %72, %91, %110, %129, %148, %167 in 2 : vector<8x2x4xf32>, vector<8x2x4xf32>, vector<8x2x4xf32>, vector<8x2x4xf32>, vector<8x2x4xf32>, vector<8x2x4xf32>, vector<8x2x4xf32>, vector<8x2x4xf32> -> vector<8x2x32xf32>
    %169 = arith.truncf %168 : vector<8x2x32xf32> to vector<8x2x32xbf16>
    %c0_41 = arith.constant 0 : index
    %c0_42 = arith.constant 0 : index
    %170 = vector.load %arg5[%c0_41, %c0_42] : memref<32x32xbf16, #tpu.memory_space<vmem>>, vector<32x32xbf16>
    %171 = vector.shape_cast %170 : vector<32x32xbf16> to vector<1x32x32xbf16>
    %172 = vector.shape_cast %171 : vector<1x32x32xbf16> to vector<1x32x32xbf16>
    %173 = vector.broadcast %172 : vector<1x32x32xbf16> to vector<8x32x32xbf16>
    "tpu.trace_start"() <{level = 10 : i32, message = "nsc,ncf->nsf"}> : () -> ()
    %cst_43 = arith.constant dense<0.000000e+00> : vector<8x2x32xf32>
    %174 = tpu.matmul %169, %173, %cst_43 {dimension_numbers = #tpu.dot_dimension_numbers<[2], [1], [1], [2], [0, 0, 0, 1, 1, 2], [0], [0]>} : vector<8x2x32xbf16>, vector<8x32x32xbf16>, vector<8x2x32xf32> -> vector<8x2x32xf32>
    "tpu.trace_stop"() : () -> ()
    %c0_44 = arith.constant 0 : index
    %c0_45 = arith.constant 0 : index
    %175 = vector.load %arg6[%c0_44, %c0_45] : memref<1x32xf32, #tpu.memory_space<vmem>>, vector<1x32xf32>
    %176 = vector.shape_cast %175 : vector<1x32xf32> to vector<1x1x32xf32>
    %177 = vector.broadcast %176 : vector<1x1x32xf32> to vector<8x2x32xf32>
    %178 = arith.addf %174, %177 : vector<8x2x32xf32>
    %179 = arith.addf %178, %5 : vector<8x2x32xf32>
    %cst_46 = arith.constant dense<0.000000e+00> : vector<8x2xf32>
    %180 = vector.multi_reduction <add>, %179, %cst_46 [2] : vector<8x2x32xf32> to vector<8x2xf32>
    %181 = vector.shape_cast %180 : vector<8x2xf32> to vector<8x2x1xf32>
    %cst_47 = arith.constant 3.200000e+01 : f32
    %182 = vector.broadcast %cst_47 : f32 to vector<8x2x1xf32>
    %183 = arith.divf %181, %182 : vector<8x2x1xf32>
    %184 = vector.broadcast %183 : vector<8x2x1xf32> to vector<8x2x32xf32>
    %185 = arith.subf %179, %184 : vector<8x2x32xf32>
    %186 = arith.mulf %185, %185 : vector<8x2x32xf32>
    %cst_48 = arith.constant dense<0.000000e+00> : vector<8x2xf32>
    %187 = vector.multi_reduction <add>, %186, %cst_48 [2] : vector<8x2x32xf32> to vector<8x2xf32>
    %188 = vector.shape_cast %187 : vector<8x2xf32> to vector<8x2x1xf32>
    %cst_49 = arith.constant 3.200000e+01 : f32
    %189 = vector.broadcast %cst_49 : f32 to vector<8x2x1xf32>
    %190 = arith.divf %188, %189 : vector<8x2x1xf32>
    %191 = vector.broadcast %183 : vector<8x2x1xf32> to vector<8x2x32xf32>
    %192 = arith.subf %179, %191 : vector<8x2x32xf32>
    %cst_50 = arith.constant 9.99999974E-6 : f32
    %193 = vector.broadcast %cst_50 : f32 to vector<8x2x1xf32>
    %194 = arith.addf %190, %193 : vector<8x2x1xf32>
    %195 = math.rsqrt %194 : vector<8x2x1xf32>
    %196 = vector.broadcast %195 : vector<8x2x1xf32> to vector<8x2x32xf32>
    %197 = arith.mulf %192, %196 : vector<8x2x32xf32>
    %c0_51 = arith.constant 0 : index
    %c0_52 = arith.constant 0 : index
    %198 = vector.load %arg7[%c0_51, %c0_52] : memref<1x32xf32, #tpu.memory_space<vmem>>, vector<1x32xf32>
    %199 = vector.shape_cast %198 : vector<1x32xf32> to vector<1x1x32xf32>
    %200 = vector.broadcast %199 : vector<1x1x32xf32> to vector<8x2x32xf32>
    %201 = arith.mulf %197, %200 : vector<8x2x32xf32>
    %c0_53 = arith.constant 0 : index
    %c0_54 = arith.constant 0 : index
    %202 = vector.load %arg8[%c0_53, %c0_54] : memref<1x32xf32, #tpu.memory_space<vmem>>, vector<1x32xf32>
    %203 = vector.shape_cast %202 : vector<1x32xf32> to vector<1x1x32xf32>
    %204 = vector.broadcast %203 : vector<1x1x32xf32> to vector<8x2x32xf32>
    %205 = arith.addf %201, %204 : vector<8x2x32xf32>
    %206 = arith.truncf %205 : vector<8x2x32xf32> to vector<8x2x32xbf16>
    %c0_55 = arith.constant 0 : index
    %c0_56 = arith.constant 0 : index
    %c0_57 = arith.constant 0 : index
    %207 = vector.load %arg9[%c0_55, %c0_56, %c0_57] : memref<8x2x32xbf16, #tpu.memory_space<vmem>>, vector<8x2x32xbf16>
    tpu.vector_store %arg9[%c0_55, %c0_56, %c0_57], %206 {strides = array<i32>} : memref<8x2x32xbf16, #tpu.memory_space<vmem>>, vector<8x2x32xbf16>,
    return
  }
  func.func @transform_0(%arg0: i32) -> (i32, i32, i32) {
    %c0_i32 = arith.constant 0 : i32
    %c0_i32_0 = arith.constant 0 : i32
    %c0_i32_1 = arith.constant 0 : i32
    return %arg0, %c0_i32, %c0_i32_0 : i32, i32, i32
  }
  func.func @transform_1(%arg0: i32) -> (i32, i32, i32) {
    %c0_i32 = arith.constant 0 : i32
    %c0_i32_0 = arith.constant 0 : i32
    %c0_i32_1 = arith.constant 0 : i32
    %c0_i32_2 = arith.constant 0 : i32
    return %c0_i32, %c0_i32_0, %c0_i32_1 : i32, i32, i32
  }
  func.func @transform_2(%arg0: i32) -> (i32, i32) {
    %c0_i32 = arith.constant 0 : i32
    %c0_i32_0 = arith.constant 0 : i32
    %c0_i32_1 = arith.constant 0 : i32
    return %c0_i32, %c0_i32_0 : i32, i32
  }
  func.func @transform_3(%arg0: i32) -> (i32, i32) {
    %c0_i32 = arith.constant 0 : i32
    %c0_i32_0 = arith.constant 0 : i32
    %c0_i32_1 = arith.constant 0 : i32
    return %c0_i32, %c0_i32_0 : i32, i32
  }
  func.func @transform_4(%arg0: i32) -> (i32, i32) {
    %c0_i32 = arith.constant 0 : i32
    %c0_i32_0 = arith.constant 0 : i32
    %c0_i32_1 = arith.constant 0 : i32
    return %c0_i32, %c0_i32_0 : i32, i32
  }
  func.func @transform_5(%arg0: i32) -> (i32, i32) {
    %c0_i32 = arith.constant 0 : i32
    %c0_i32_0 = arith.constant 0 : i32
    %c0_i32_1 = arith.constant 0 : i32
    return %c0_i32, %c0_i32_0 : i32, i32
  }
  func.func @transform_6(%arg0: i32) -> (i32, i32) {
    %c0_i32 = arith.constant 0 : i32
    %c0_i32_0 = arith.constant 0 : i32
    %c0_i32_1 = arith.constant 0 : i32
    return %c0_i32, %c0_i32_0 : i32, i32
  }
  func.func @transform_7(%arg0: i32) -> (i32, i32) {
    %c0_i32 = arith.constant 0 : i32
    %c0_i32_0 = arith.constant 0 : i32
    %c0_i32_1 = arith.constant 0 : i32
    return %c0_i32, %c0_i32_0 : i32, i32
  }
  func.func @transform_8(%arg0: i32) -> (i32, i32, i32) {
    %c0_i32 = arith.constant 0 : i32
    %c0_i32_0 = arith.constant 0 : i32
    %c0_i32_1 = arith.constant 0 : i32
    return %arg0, %c0_i32, %c0_i32_0 : i32, i32, i32
  }
}

module attributes {stable_mosaic.version = 11 : i64} {
  func.func @kernel(%arg0: i32, %arg1: memref<16x32xbf16, #tpu.memory_space<vmem>>, %arg2: memref<32x2048xbf16, #tpu.memory_space<vmem>>, %arg3: memref<1x2048xf32, #tpu.memory_space<vmem>>, %arg4: memref<2048x32xbf16, #tpu.memory_space<vmem>>, %arg5: memref<1x32xf32, #tpu.memory_space<vmem>>, %arg6: memref<1x32xf32, #tpu.memory_space<vmem>>, %arg7: memref<1x32xf32, #tpu.memory_space<vmem>>, %arg8: memref<16x32xf32, #tpu.memory_space<vmem>>) attributes {dimension_semantics = [#tpu.dimension_semantics<parallel>], iteration_bounds = array<i64: 2>, scalar_prefetch = 0 : i64, scratch_operands = 0 : i64, tpu.core_type = #tpu.core_type<tc>, window_params = [{transform_indices = @transform_0, window_bounds = array<i64: 16, 32>}, {pipeline_mode = #tpu.pipeline_mode<synchronous>, transform_indices = @transform_1, window_bounds = array<i64: 32, 2048>}, {pipeline_mode = #tpu.pipeline_mode<synchronous>, transform_indices = @transform_2, window_bounds = array<i64: 1, 2048>}, {pipeline_mode = #tpu.pipeline_mode<synchronous>, transform_indices = @transform_3, window_bounds = array<i64: 2048, 32>}, {pipeline_mode = #tpu.pipeline_mode<synchronous>, transform_indices = @transform_4, window_bounds = array<i64: 1, 32>}, {pipeline_mode = #tpu.pipeline_mode<synchronous>, transform_indices = @transform_5, window_bounds = array<i64: 1, 32>}, {pipeline_mode = #tpu.pipeline_mode<synchronous>, transform_indices = @transform_6, window_bounds = array<i64: 1, 32>}, {transform_indices = @transform_7, window_bounds = array<i64: 16, 32>}]} {
    %c0 = arith.constant 0 : index
    %c0_0 = arith.constant 0 : index
    %0 = vector.load %arg1[%c0, %c0_0] : memref<16x32xbf16, #tpu.memory_space<vmem>>, vector<16x32xbf16>
    %cst = arith.constant 0.000000e+00 : f32
    %1 = vector.broadcast %cst : f32 to vector<16x32xf32>
    %c0_1 = arith.constant 0 : index
    %c0_2 = arith.constant 0 : index
    %2 = vector.load %arg2[%c0_1, %c0_2] : memref<32x2048xbf16, #tpu.memory_space<vmem>>, vector<32x512xbf16>
    %cst_3 = arith.constant dense<0.000000e+00> : vector<16x512xf32>
    %3 = tpu.matmul %0, %2, %cst_3 {dimension_numbers = #tpu.dot_dimension_numbers<[1], [0], [0], [1], [0, 0, 1, 1], [], []>} : vector<16x32xbf16>, vector<32x512xbf16>, vector<16x512xf32> -> vector<16x512xf32>
    %c0_4 = arith.constant 0 : index
    %c0_5 = arith.constant 0 : index
    %4 = vector.load %arg3[%c0_4, %c0_5] : memref<1x2048xf32, #tpu.memory_space<vmem>>, vector<1x512xf32>
    %5 = vector.broadcast %4 : vector<1x512xf32> to vector<16x512xf32>
    %6 = arith.addf %3, %5 : vector<16x512xf32>
    %cst_6 = arith.constant 0.000000e+00 : f32
    %7 = vector.broadcast %cst_6 : f32 to vector<16x512xf32>
    %8 = arith.maximumf %6, %7 : vector<16x512xf32>
    %9 = arith.truncf %8 : vector<16x512xf32> to vector<16x512xbf16>
    %c0_7 = arith.constant 0 : index
    %c0_8 = arith.constant 0 : index
    %10 = vector.load %arg4[%c0_7, %c0_8] : memref<2048x32xbf16, #tpu.memory_space<vmem>>, vector<512x32xbf16>
    %cst_9 = arith.constant dense<0.000000e+00> : vector<16x32xf32>
    %11 = tpu.matmul %9, %10, %cst_9 {dimension_numbers = #tpu.dot_dimension_numbers<[1], [0], [0], [1], [0, 0, 1, 1], [], []>} : vector<16x512xbf16>, vector<512x32xbf16>, vector<16x32xf32> -> vector<16x32xf32>
    %12 = arith.addf %1, %11 : vector<16x32xf32>
    %c0_10 = arith.constant 0 : index
    %c512 = arith.constant 512 : index
    %13 = vector.load %arg2[%c0_10, %c512] : memref<32x2048xbf16, #tpu.memory_space<vmem>>, vector<32x512xbf16>
    %cst_11 = arith.constant dense<0.000000e+00> : vector<16x512xf32>
    %14 = tpu.matmul %0, %13, %cst_11 {dimension_numbers = #tpu.dot_dimension_numbers<[1], [0], [0], [1], [0, 0, 1, 1], [], []>} : vector<16x32xbf16>, vector<32x512xbf16>, vector<16x512xf32> -> vector<16x512xf32>
    %c0_12 = arith.constant 0 : index
    %c512_13 = arith.constant 512 : index
    %15 = vector.load %arg3[%c0_12, %c512_13] : memref<1x2048xf32, #tpu.memory_space<vmem>>, vector<1x512xf32>
    %16 = vector.broadcast %15 : vector<1x512xf32> to vector<16x512xf32>
    %17 = arith.addf %14, %16 : vector<16x512xf32>
    %cst_14 = arith.constant 0.000000e+00 : f32
    %18 = vector.broadcast %cst_14 : f32 to vector<16x512xf32>
    %19 = arith.maximumf %17, %18 : vector<16x512xf32>
    %20 = arith.truncf %19 : vector<16x512xf32> to vector<16x512xbf16>
    %c512_15 = arith.constant 512 : index
    %c0_16 = arith.constant 0 : index
    %21 = vector.load %arg4[%c512_15, %c0_16] : memref<2048x32xbf16, #tpu.memory_space<vmem>>, vector<512x32xbf16>
    %cst_17 = arith.constant dense<0.000000e+00> : vector<16x32xf32>
    %22 = tpu.matmul %20, %21, %cst_17 {dimension_numbers = #tpu.dot_dimension_numbers<[1], [0], [0], [1], [0, 0, 1, 1], [], []>} : vector<16x512xbf16>, vector<512x32xbf16>, vector<16x32xf32> -> vector<16x32xf32>
    %23 = arith.addf %12, %22 : vector<16x32xf32>
    %c0_18 = arith.constant 0 : index
    %c1024 = arith.constant 1024 : index
    %24 = vector.load %arg2[%c0_18, %c1024] : memref<32x2048xbf16, #tpu.memory_space<vmem>>, vector<32x512xbf16>
    %cst_19 = arith.constant dense<0.000000e+00> : vector<16x512xf32>
    %25 = tpu.matmul %0, %24, %cst_19 {dimension_numbers = #tpu.dot_dimension_numbers<[1], [0], [0], [1], [0, 0, 1, 1], [], []>} : vector<16x32xbf16>, vector<32x512xbf16>, vector<16x512xf32> -> vector<16x512xf32>
    %c0_20 = arith.constant 0 : index
    %c1024_21 = arith.constant 1024 : index
    %26 = vector.load %arg3[%c0_20, %c1024_21] : memref<1x2048xf32, #tpu.memory_space<vmem>>, vector<1x512xf32>
    %27 = vector.broadcast %26 : vector<1x512xf32> to vector<16x512xf32>
    %28 = arith.addf %25, %27 : vector<16x512xf32>
    %cst_22 = arith.constant 0.000000e+00 : f32
    %29 = vector.broadcast %cst_22 : f32 to vector<16x512xf32>
    %30 = arith.maximumf %28, %29 : vector<16x512xf32>
    %31 = arith.truncf %30 : vector<16x512xf32> to vector<16x512xbf16>
    %c1024_23 = arith.constant 1024 : index
    %c0_24 = arith.constant 0 : index
    %32 = vector.load %arg4[%c1024_23, %c0_24] : memref<2048x32xbf16, #tpu.memory_space<vmem>>, vector<512x32xbf16>
    %cst_25 = arith.constant dense<0.000000e+00> : vector<16x32xf32>
    %33 = tpu.matmul %31, %32, %cst_25 {dimension_numbers = #tpu.dot_dimension_numbers<[1], [0], [0], [1], [0, 0, 1, 1], [], []>} : vector<16x512xbf16>, vector<512x32xbf16>, vector<16x32xf32> -> vector<16x32xf32>
    %34 = arith.addf %23, %33 : vector<16x32xf32>
    %c0_26 = arith.constant 0 : index
    %c1536 = arith.constant 1536 : index
    %35 = vector.load %arg2[%c0_26, %c1536] : memref<32x2048xbf16, #tpu.memory_space<vmem>>, vector<32x512xbf16>
    %cst_27 = arith.constant dense<0.000000e+00> : vector<16x512xf32>
    %36 = tpu.matmul %0, %35, %cst_27 {dimension_numbers = #tpu.dot_dimension_numbers<[1], [0], [0], [1], [0, 0, 1, 1], [], []>} : vector<16x32xbf16>, vector<32x512xbf16>, vector<16x512xf32> -> vector<16x512xf32>
    %c0_28 = arith.constant 0 : index
    %c1536_29 = arith.constant 1536 : index
    %37 = vector.load %arg3[%c0_28, %c1536_29] : memref<1x2048xf32, #tpu.memory_space<vmem>>, vector<1x512xf32>
    %38 = vector.broadcast %37 : vector<1x512xf32> to vector<16x512xf32>
    %39 = arith.addf %36, %38 : vector<16x512xf32>
    %cst_30 = arith.constant 0.000000e+00 : f32
    %40 = vector.broadcast %cst_30 : f32 to vector<16x512xf32>
    %41 = arith.maximumf %39, %40 : vector<16x512xf32>
    %42 = arith.truncf %41 : vector<16x512xf32> to vector<16x512xbf16>
    %c1536_31 = arith.constant 1536 : index
    %c0_32 = arith.constant 0 : index
    %43 = vector.load %arg4[%c1536_31, %c0_32] : memref<2048x32xbf16, #tpu.memory_space<vmem>>, vector<512x32xbf16>
    %cst_33 = arith.constant dense<0.000000e+00> : vector<16x32xf32>
    %44 = tpu.matmul %42, %43, %cst_33 {dimension_numbers = #tpu.dot_dimension_numbers<[1], [0], [0], [1], [0, 0, 1, 1], [], []>} : vector<16x512xbf16>, vector<512x32xbf16>, vector<16x32xf32> -> vector<16x32xf32>
    %45 = arith.addf %34, %44 : vector<16x32xf32>
    %c0_34 = arith.constant 0 : index
    %c0_35 = arith.constant 0 : index
    %46 = vector.load %arg5[%c0_34, %c0_35] : memref<1x32xf32, #tpu.memory_space<vmem>>, vector<1x32xf32>
    %47 = vector.broadcast %46 : vector<1x32xf32> to vector<16x32xf32>
    %48 = arith.addf %45, %47 : vector<16x32xf32>
    %49 = arith.extf %0 : vector<16x32xbf16> to vector<16x32xf32>
    %50 = arith.addf %48, %49 : vector<16x32xf32>
    %cst_36 = arith.constant dense<0.000000e+00> : vector<16xf32>
    %51 = vector.multi_reduction <add>, %50, %cst_36 [1] : vector<16x32xf32> to vector<16xf32>
    %52 = vector.shape_cast %51 : vector<16xf32> to vector<16x1xf32>
    %cst_37 = arith.constant 3.200000e+01 : f32
    %53 = vector.broadcast %cst_37 : f32 to vector<16x1xf32>
    %54 = arith.divf %52, %53 : vector<16x1xf32>
    %55 = vector.broadcast %54 : vector<16x1xf32> to vector<16x32xf32>
    %56 = arith.subf %50, %55 : vector<16x32xf32>
    %57 = arith.mulf %56, %56 : vector<16x32xf32>
    %cst_38 = arith.constant dense<0.000000e+00> : vector<16xf32>
    %58 = vector.multi_reduction <add>, %57, %cst_38 [1] : vector<16x32xf32> to vector<16xf32>
    %59 = vector.shape_cast %58 : vector<16xf32> to vector<16x1xf32>
    %cst_39 = arith.constant 3.200000e+01 : f32
    %60 = vector.broadcast %cst_39 : f32 to vector<16x1xf32>
    %61 = arith.divf %59, %60 : vector<16x1xf32>
    %62 = vector.broadcast %54 : vector<16x1xf32> to vector<16x32xf32>
    %63 = arith.subf %50, %62 : vector<16x32xf32>
    %cst_40 = arith.constant 9.99999974E-6 : f32
    %64 = vector.broadcast %cst_40 : f32 to vector<16x1xf32>
    %65 = arith.addf %61, %64 : vector<16x1xf32>
    %66 = math.rsqrt %65 : vector<16x1xf32>
    %67 = vector.broadcast %66 : vector<16x1xf32> to vector<16x32xf32>
    %68 = arith.mulf %63, %67 : vector<16x32xf32>
    %c0_41 = arith.constant 0 : index
    %c0_42 = arith.constant 0 : index
    %69 = vector.load %arg6[%c0_41, %c0_42] : memref<1x32xf32, #tpu.memory_space<vmem>>, vector<1x32xf32>
    %70 = vector.broadcast %69 : vector<1x32xf32> to vector<16x32xf32>
    %71 = arith.mulf %68, %70 : vector<16x32xf32>
    %c0_43 = arith.constant 0 : index
    %c0_44 = arith.constant 0 : index
    %72 = vector.load %arg7[%c0_43, %c0_44] : memref<1x32xf32, #tpu.memory_space<vmem>>, vector<1x32xf32>
    %73 = vector.broadcast %72 : vector<1x32xf32> to vector<16x32xf32>
    %74 = arith.addf %71, %73 : vector<16x32xf32>
    %c0_45 = arith.constant 0 : index
    %c0_46 = arith.constant 0 : index
    %75 = vector.load %arg8[%c0_45, %c0_46] : memref<16x32xf32, #tpu.memory_space<vmem>>, vector<16x32xf32>
    tpu.vector_store %arg8[%c0_45, %c0_46], %74 {strides = array<i32>} : memref<16x32xf32, #tpu.memory_space<vmem>>, vector<16x32xf32>,
    return
  }
  func.func @transform_0(%arg0: i32) -> (i32, i32) {
    %c0_i32 = arith.constant 0 : i32
    %c0_i32_0 = arith.constant 0 : i32
    return %arg0, %c0_i32 : i32, i32
  }
  func.func @transform_1(%arg0: i32) -> (i32, i32) {
    %c0_i32 = arith.constant 0 : i32
    %c0_i32_0 = arith.constant 0 : i32
    %c0_i32_1 = arith.constant 0 : i32
    return %c0_i32, %c0_i32_0 : i32, i32
  }
  func.func @transform_2(%arg0: i32) -> (i32, i32) {
    %c0_i32 = arith.constant 0 : i32
    %c0_i32_0 = arith.constant 0 : i32
    %c0_i32_1 = arith.constant 0 : i32
    return %c0_i32, %c0_i32_0 : i32, i32
  }
  func.func @transform_3(%arg0: i32) -> (i32, i32) {
    %c0_i32 = arith.constant 0 : i32
    %c0_i32_0 = arith.constant 0 : i32
    %c0_i32_1 = arith.constant 0 : i32
    return %c0_i32, %c0_i32_0 : i32, i32
  }
  func.func @transform_4(%arg0: i32) -> (i32, i32) {
    %c0_i32 = arith.constant 0 : i32
    %c0_i32_0 = arith.constant 0 : i32
    %c0_i32_1 = arith.constant 0 : i32
    return %c0_i32, %c0_i32_0 : i32, i32
  }
  func.func @transform_5(%arg0: i32) -> (i32, i32) {
    %c0_i32 = arith.constant 0 : i32
    %c0_i32_0 = arith.constant 0 : i32
    %c0_i32_1 = arith.constant 0 : i32
    return %c0_i32, %c0_i32_0 : i32, i32
  }
  func.func @transform_6(%arg0: i32) -> (i32, i32) {
    %c0_i32 = arith.constant 0 : i32
    %c0_i32_0 = arith.constant 0 : i32
    %c0_i32_1 = arith.constant 0 : i32
    return %c0_i32, %c0_i32_0 : i32, i32
  }
  func.func @transform_7(%arg0: i32) -> (i32, i32) {
    %c0_i32 = arith.constant 0 : i32
    %c0_i32_0 = arith.constant 0 : i32
    return %arg0, %c0_i32 : i32, i32
  }
}

</mosaic_0001>

<bundles_post_ra>
// kernel: transformer_forward.7
= control target key start
LH: loop header
LB: loop body
LE: loop exit
PB: predicated region body
PF: predicated region fallthrough
CT: control target
= control target key end

     0   :  { %8 = vsyncpa [#allocation3], 0  ;;  %s684_s0 = inlined_call_operand.vmem [shape: bf16[2,16,32], index: 0, kind: input, shape index: {}]   ;;  %s685_s1 = inlined_call_operand.hbm [shape: bf16[32,4], index: 1, kind: input, shape index: {}]   ;;  %s686_s2 = inlined_call_operand.hbm [shape: bf16[4,32], index: 2, kind: input, shape index: {}]   ;;  %s687_s3 = inlined_call_operand.vmem [shape: bf16[2,1,32], index: 3, kind: output, shape index: {}]  }
   0x1   :  { %9 = vsyncpa [#allocation5], 0  ;;  %s584_s12 = smov 0  }
   0x2 LB: > { %s590_s13 = sadd.s32 4294967295, %s556_s12   ;;  %p407_p0 = scmp.ge.s32.totalorder %s556_s12, 1  ;;  %s556_s12 = sphi %s584_s12, %s15_s12  }
   0x3   : > { %p114_p1 = scmp.lt.s32.totalorder %s556_s12, 3  ;;  %s558_s14 = smov [#allocation2]  }
   0x4   : > { %s126_s15 = sshll.u32 %s558_s14, 4  ;;  %p688_p3 = scmp.eq.s32.totalorder %s590_s13, 0  ;;  %s127_s15 = int_to_ptr.vmem [resolvable:$true] %s126_s15 }
   0x5   : > { %p594_p2 = pnand %p407_p0, %p114_p1  ;;  %s559_s17 = smov [#allocation4]  }
   0x6   : > { %s140_s18 = sshll.u32 %s559_s17, 4  ;;  %s486_s22 = scalar_lea.hbm %s685_s1, 256  ;;  %s607_s18 = int_to_ptr.vmem [resolvable:$true] %s140_s18 }
   0x7   : > { %s690_s16 = scalar_select %p594_p2, 1, 0 }
   0x8   : > { %p455_p4 = pneg %p594_p2  ;;  %p487_p6 = scmp.ne.s32.totalorder %s685_s1, %s486_s22 }
   0x9   : > { %p493_p10 = scmp.lt.u32.totalorder %s486_s22, %s685_s1 }
   0xa   : > { %p603_p5 = pnand %p688_p3, %p455_p4 }
   0xc   : > { %p488_p7 = pneg %p603_p5 }
   0xe   : > { %p489_p8 = pnand %p488_p7, %p487_p6 }
  0x10   : > { %p490_p9 = pneg %p489_p8 }
  0x12   : > { %p495_p11 = pnand %p493_p10, %p490_p9 }
  0x14   : > { %498 = shalt.err (!%p495_p11)
}
  0x15   : > { %s499_s27 = scalar_lea.vmem %s127_s15, 256  ;;  %p507_p1 = scmp.lt.s32.totalorder %s127_s15, %s127_s15 }
  0x16   : > { %p500_p12 = scmp.ne.s32.totalorder %s127_s15, %s499_s27  ;;  %p508_p4 = scmp.lt.s32.totalorder %s499_s27, %s499_s27 }
  0x18   : > { %p502_p13 = pnand %p500_p12, %p488_p7  ;;  %p509_p3 = por %p508_p4, %p507_p1 }
  0x1a   : > { %p503_p0 = pneg %p502_p13 }
  0x1c   : > { %p510_p2 = pnand %p509_p3, %p503_p0 }
  0x1e   : > { %513 = shalt.err (!%p510_p2)
}
  0x1f   : > { %s560_s28 = smov 64   ;;  %s561_s29 = smov 4  }
  0x20   : > { %458 = dma.hbm_to_vmem [thread:$0]  (!%p603_p5), %s685_s1, 256, %s127_s15, [#allocation3], %s560_s28, %s560_s28, %s561_s29  }
  0x21   : > { %s514_s7 = scalar_lea.hbm %s686_s2, 32 }
  0x22   : > { %p515_p6 = scmp.ne.s32.totalorder %s686_s2, %s514_s7  ;;  %p521_p8 = scmp.lt.u32.totalorder %s514_s7, %s686_s2 }
  0x24   : > { %p517_p2 = pnand %p515_p6, %p488_p7 }
  0x26   : > { %p518_p3 = pneg %p517_p2 }
  0x28   : > { %p523_p9 = pnand %p521_p8, %p518_p3 }
  0x2a   : > { %526 = shalt.err (!%p523_p9)
}
  0x2b   : > { %s527_s14 = scalar_lea.vmem %s607_s18, 32  ;;  %p535_p13 = scmp.lt.s32.totalorder %s607_s18, %s607_s18 }
  0x2c   : > { %p528_p10 = scmp.ne.s32.totalorder %s607_s18, %s527_s14  ;;  %p536_p0 = scmp.lt.s32.totalorder %s527_s14, %s527_s14 }
  0x2e   : > { %p530_p11 = pnand %p528_p10, %p488_p7  ;;  %p537_p1 = por %p536_p0, %p535_p13 }
  0x30   : > { %p531_p12 = pneg %p530_p11 }
  0x32   : > { %p538_p4 = pnand %p537_p1, %p531_p12 }
  0x34   : > { %541 = shalt.err (!%p538_p4)
}
  0x35   : > { %461 = dma.hbm_to_vmem [thread:$0]  (!%p603_p5), %s686_s2, 32, %s607_s18, [#allocation5]  }
  0x36   : > { %p692_p6 = scmp.ne.s32.totalorder %s690_s16, 0 }
  0x37   : > { %p693_p2 = scmp.eq.s32.totalorder (!%p692_p6), %s590_s13, 0 }
  0x38   : > { %161 = sbr.rel (%p692_p6) target bundleno = 552 (0x228), region = 32 }
  0x3f   : > { %547 = dma.done.wait (%p693_p2), [#allocation3], 256   ;;  %p694_p7 = pmov %p693_p2 }
  0x40   : > { %p695_p3 = pmov %p693_p2 }
  0x41   : > { %549 = vsyncadd (%p694_p7), [#allocation3], 4294967040 }
  0x42   : > { %551 = dma.done.wait (%p695_p3), [#allocation5], 32   ;;  %p696_p8 = pmov %p693_p2 }
  0x43   : > { %p187_p9 = scmp.lt.s32.totalorder %s590_s13, 1  ;;  %v562_v0 = vmov 0.0   ;;  %vm563_vm0 = vmmov 0   ;;  %v480_v1 = vld [vmem:[#allocation2] sm:$0xff]   ;;  %v481_v2 = vld [vmem:[#allocation2 + $0x8] sm:$0xff]   ;;  %vm200_vm1 = vcmask 261120  }
  0x44   : > { %553 = vsyncadd (%p696_p8), [#allocation5], 4294967264  ;;  %433 = vmatprep.subr.bf16.mxu0 %v562_v0  ;;  %437 = vmatprep.mubr.msk.bf16.mxu0 %vm563_vm0, %v562_v0  ;;  %v274_v17 = vld [vmem:[#allocation4] sm:$0x3]  ;;  %vm279_vm2 = vcmask 1041408   ;;  %vm275_vm3 = vcmask 31744  }
  0x45   : > { %s698_s13 = smov (!%p187_p9, %s590_s13), 1  ;;  %441 = vmatprep.subr.bf16.mxu1 %v562_v0  ;;  %443 = vmatprep.mubr.msk.bf16.mxu1 %vm563_vm0, %v562_v0  ;;  %v281_v18 = vsel %vm279_vm2, %v274_v17, 0  ;;  %vm330_vm4 = vcmask 253952   ;;  %vm331_vm5 = vsmask.f32 256 }
  0x46   : > { %s423_s16 = sshll.u32 %s698_s13, 3  ;;  %434 = vmatpush3.bf16.msra.mxu0 %v480_v1  ;;  %442 = vmatpush3.bf16.msra.mxu1 %v281_v18  ;;  %s194_s23 = scalar_lea.vmem %s687_s3, %s698_s13  ;;  %vm332_vm6 = vmand %vm330_vm4, %vm331_vm5 }
  0x47   : > { %s191_s20 = scalar_lea.vmem %s684_s0, %s423_s16  ;;  %435 = vmatprep.subr.bf16.mxu0 %v562_v0  ;;  %v333_v33 = vld [vmem:[%s194_s23] sm:$0x1] }
  0x48   : > { %v425_v3 = vld [vmem:[%s191_s20] sm:$0xff]  }
  0x49   : > { %v426_v4 = vunpack.c.l.bf16 %v425_v3  ;;  %v427_v5 = vunpack.c.h.bf16 %v425_v3 }
  0x4a   : > { %436 = vmatpush3.bf16.msra.mxu0 %v481_v2 }
  0x4b   : > { %v201_v6 = vsel %vm200_vm1, %v426_v4, 0.0  ;;  %v202_v7 = vsel %vm200_vm1, %v427_v5, 0.0 }
  0x4c   : > { %v203_v8 = vadd.f32 %v202_v7, %v201_v6 }
  0x4e   : > { %v204_v9 = vrot.slane %v203_v8, 4 }
  0x50   : > { %v205_v10 = vadd.f32 %v204_v9, %v203_v8 }
  0x52   : > { %v206_v11 = vrot.slane %v205_v10, 2 }
  0x54   : > { %v207_v12 = vadd.f32 %v206_v11, %v205_v10 }
  0x56   : > { %v208_v13 = vrot.slane %v207_v12, 1 }
  0x58   : > { %v209_v14 = vadd.f32 %v208_v13, %v207_v12 }
  0x5a   : > { %v211_v15 = vmul.f32 0.0625, %v209_v14 }
  0x5c   : > { %v212_v16 = vpack.c.bf16 %v211_v15, %v211_v15 }
  0x5e   : > { %438 = vmatmul.mubr.msk.bf16.vlgmr.msra.gmra.mrb[0].mxu0 %vm200_vm1, %v212_v16 }
 0x131   : > { %v266_v19 = vpop.f32.mrb[0].mxu0 }
 0x132   : > { %v272_v20 = vmax.f32 %v266_v19, 0.0  ;;  %v439_v21 = vpop.f32.mrb[1].mxu0 }
 0x133   : > { %v269_v22 = vpop.f32.mrb[2].mxu0 }
 0x134   : > { %v273_v23 = vpack.c.bf16 %v272_v20, %v272_v20  ;;  %v440_v24 = vpop.f32.mrb[3].mxu0 }
 0x136   : > { %444 = vmatmul.mubr.msk.bf16.vlgmr.msra.gmra.mrb[0].mxu1 %vm275_vm3, %v273_v23 }
 0x209   : > { %v317_v25 = vpop.f32.mrb[0].mxu1 }
 0x20a   : > { %v420_v26 = vmul.f32 -1.442695, %v317_v25  ;;  %v445_v27 = vpop.f32.mrb[1].mxu1 }
 0x20b   : > { %v320_v28 = vpop.f32.mrb[2].mxu1 }
 0x20c   : > { %482 = vpow2.f32 %v420_v26  ;;  %v446_v29 = vpop.f32.mrb[3].mxu1 }
 0x216   : > { %v483_v30 = vpop.eup %482 }
 0x217   : > { %v326_v31 = vadd.f32 1.0, %v483_v30 }
 0x219   : > { %484 = vrcp.f32 %v326_v31 }
 0x223   : > { %v485_v32 = vpop.eup %484 }
 0x224   : > { %v329_v34 = vpack.c.bf16 %v485_v32, %v485_v32 }
 0x226   : > { %v334_v35 = vsel %vm332_vm6, %v329_v34, %v333_v33 }
 0x227   : > { %335 = vst [vmem:[%s194_s23] sm:$0x1] %v334_v35 }
 0x228 PF: > { %s15_s12 = sadd.s32 1, %s556_s12  }
 0x229   : > { %p12_p5 = scmp.ge.s32.totalorder %s15_s12, 4  }
 0x22b   :  { %14 = sbr.rel (!%p12_p5) target bundleno = 2 (0x2), region = 71 }
 0x232   :  { %353 = vsyncpa [#allocation3], 1 }
 0x233   :  { %355 = vsyncpa [#allocation3 + $0x1], 1 }
 0x234   :  { %356 = vsyncpa [#allocation5], 1 }

// kernel: transformer_forward.6
= control target key start
LH: loop header
LB: loop body
LE: loop exit
PB: predicated region body
PF: predicated region fallthrough
CT: control target
= control target key end

     0   :  { %12 = vsyncpa [#allocation3], 0  ;;  %s1421_s0 = inlined_call_operand.vmem [shape: bf16[32,32], index: 0, kind: input, shape index: {}]   ;;  %s1422_s1 = inlined_call_operand.vmem [shape: bf16[32,64], index: 1, kind: input, shape index: {}]   ;;  %s1423_s2 = inlined_call_operand.vmem [shape: bf16[32,96], index: 2, kind: input, shape index: {}]   ;;  %s1424_s3 = inlined_call_operand.hbm [shape: bf16[32,64], index: 3, kind: input, shape index: {}]   ;;  %s1425_s4 = inlined_call_operand.hbm [shape: f32[1,64], index: 4, kind: input, shape index: {}]   ;;  %s1426_s5 = inlined_call_operand.hbm [shape: bf16[224,32], index: 5, kind: input, shape index: {}]   ;;  %s1427_s6 = inlined_call_operand.hbm [shape: f32[1,32], index: 6, kind: input, shape index: {}]   ;;  %s1428_s7 = inlined_call_operand.vmem [shape: bf16[32,32], index: 7, kind: output, shape index: {}]  }
   0x1   :  { %13 = vsyncpa [#allocation5], 0 }
   0x2   :  { %14 = vsyncpa [#allocation8], 0  ;;  %s1244_s24 = smov 0  }
   0x3 LB: > { %s1196_s25 = smov [#allocation4]   ;;  %s871_s27 = sadd.s32 4294967295, %s1194_s24   ;;  %s1194_s24 = sphi %s1244_s24, %s20_s24  }
   0x4   : > { %s239_s26 = sshll.u32 %s1196_s25, 4  ;;  %p873_p0 = scmp.ge.s32.totalorder %s1194_s24, 1  ;;  %s1258_s26 = int_to_ptr.vmem [resolvable:$true] %s239_s26 }
   0x5   : > { %p213_p1 = scmp.lt.s32.totalorder %s1194_s24, 3  ;;  %p1254_p2 = scmp.eq.s32.totalorder %s871_s27, 0 }
   0x6   : > { %s1197_s30 = smov [#allocation2]   ;;  %s1198_s10 = smov [#allocation6]  }
   0x7   : > { %s1432_s28 = scalar_select %p1254_p2, 1, 0 }
   0x8   : > { %p1260_p3 = pnand %p873_p0, %p213_p1  ;;  %s225_s8 = sshll.u32 %s1197_s30, 4  ;;  %s1266_s8 = int_to_ptr.vmem [resolvable:$true] %s225_s8 }
   0x9   : > { %s249_s11 = sshll.u32 %s1198_s10, 4  ;;  %s1199_s12 = smov [#allocation7]   ;;  %s1274_s11 = int_to_ptr.vmem [resolvable:$true] %s249_s11 }
   0xa   : > { %s1433_s29 = scalar_select %p1260_p3, 1, 0 }
   0xb   : > { %p1007_p4 = pneg %p1260_p3  ;;  %s1276_s13 = sshll.u32 %s1199_s12, 4  ;;  %s264_s13 = int_to_ptr.vmem [resolvable:$true] %s1276_s13 }
   0xc   : > { %s1064_s16 = scalar_lea.hbm %s1425_s4, 16 }
   0xd   : > { %p1270_p5 = pnand %p1254_p2, %p1007_p4  ;;  %p1065_p6 = scmp.ne.s32.totalorder %s1425_s4, %s1064_s16 }
   0xe   : > { %p1071_p10 = scmp.lt.u32.totalorder %s1064_s16, %s1425_s4 }
   0xf   : > { %p1286_p7 = pneg %p1270_p5 }
  0x11   : > { %p1067_p8 = pnand %p1286_p7, %p1065_p6 }
  0x13   : > { %p1068_p9 = pneg %p1067_p8 }
  0x15   : > { %p1073_p11 = pnand %p1071_p10, %p1068_p9 }
  0x17   : > { %1076 = shalt.err (!%p1073_p11)
}
  0x18   : > { %s1077_s22 = scalar_lea.vmem %s1258_s26, 16  ;;  %s1084_s23 = scalar_lea.vmem %s1258_s26, 32 }
  0x19   : > { %p1078_p12 = scmp.ne.s32.totalorder %s1258_s26, %s1077_s22  ;;  %p1085_p1 = scmp.lt.s32.totalorder %s1258_s26, %s1258_s26 }
  0x1a   : > { %p1086_p4 = scmp.lt.s32.totalorder %s1084_s23, %s1077_s22 }
  0x1b   : > { %p1080_p13 = pnand %p1078_p12, %p1286_p7 }
  0x1c   : > { %p1087_p6 = por %p1086_p4, %p1085_p1 }
  0x1d   : > { %p1081_p0 = pneg %p1080_p13 }
  0x1f   : > { %p1088_p8 = pnand %p1087_p6, %p1081_p0 }
  0x21   : > { %1091 = shalt.err (!%p1088_p8)
}
  0x22   : > { %1013 = dma.hbm_to_vmem [thread:$0]  (!%p1270_p5), %s1425_s4, 16, %s1258_s26, [#allocation5]  }
  0x23   : > { %s1092_s14 = scalar_lea.hbm %s1424_s3, 256 }
  0x24   : > { %p1093_p9 = scmp.ne.s32.totalorder %s1424_s3, %s1092_s14  ;;  %p1099_p12 = scmp.lt.u32.totalorder %s1092_s14, %s1424_s3 }
  0x26   : > { %p1095_p10 = pnand %p1093_p9, %p1286_p7 }
  0x28   : > { %p1096_p11 = pneg %p1095_p10 }
  0x2a   : > { %p1101_p13 = pnand %p1099_p12, %p1096_p11 }
  0x2c   : > { %1104 = shalt.err (!%p1101_p13)
}
  0x2d   : > { %s1105_s26 = scalar_lea.vmem %s1266_s8, 256  ;;  %p1113_p6 = scmp.lt.s32.totalorder %s1266_s8, %s1266_s8 }
  0x2e   : > { %p1106_p0 = scmp.ne.s32.totalorder %s1266_s8, %s1105_s26  ;;  %p1114_p8 = scmp.lt.s32.totalorder %s1105_s26, %s1105_s26 }
  0x30   : > { %p1108_p1 = pnand %p1106_p0, %p1286_p7  ;;  %p1115_p9 = por %p1114_p8, %p1113_p6 }
  0x32   : > { %p1109_p4 = pneg %p1108_p1 }
  0x34   : > { %p1116_p10 = pnand %p1115_p9, %p1109_p4 }
  0x36   : > { %1119 = shalt.err (!%p1116_p10)
}
  0x37   : > { %s1200_s20 = smov 64   ;;  %s1201_s21 = smov 4  }
  0x38   : > { %1010 = dma.hbm_to_vmem [thread:$0]  (!%p1270_p5), %s1424_s3, 256, %s1266_s8, [#allocation3], %s1200_s20, %s1200_s20, %s1201_s21  }
  0x39   : > { %s1120_s10 = scalar_lea.hbm %s1426_s5, 1792 }
  0x3a   : > { %p1121_p11 = scmp.ne.s32.totalorder %s1426_s5, %s1120_s10  ;;  %p1127_p0 = scmp.lt.u32.totalorder %s1120_s10, %s1426_s5 }
  0x3c   : > { %p1123_p12 = pnand %p1121_p11, %p1286_p7 }
  0x3e   : > { %p1124_p13 = pneg %p1123_p12 }
  0x40   : > { %p1129_p1 = pnand %p1127_p0, %p1124_p13 }
  0x42   : > { %1132 = shalt.err (!%p1129_p1)
}
  0x43   : > { %s1133_s8 = scalar_lea.vmem %s1274_s11, 1792  ;;  %p1141_p9 = scmp.lt.s32.totalorder %s1274_s11, %s1274_s11 }
  0x44   : > { %p1134_p4 = scmp.ne.s32.totalorder %s1274_s11, %s1133_s8  ;;  %p1142_p10 = scmp.lt.s32.totalorder %s1133_s8, %s1133_s8 }
  0x46   : > { %p1136_p6 = pnand %p1134_p4, %p1286_p7  ;;  %p1143_p11 = por %p1142_p10, %p1141_p9 }
  0x48   : > { %p1137_p8 = pneg %p1136_p6 }
  0x4a   : > { %p1144_p12 = pnand %p1143_p11, %p1137_p8 }
  0x4c   : > { %1147 = shalt.err (!%p1144_p12)
}
  0x4d   : > { %1016 = dma.hbm_to_vmem [thread:$0]  (!%p1270_p5), %s1426_s5, 1792, %s1274_s11, [#allocation5], %s1200_s20, %s1200_s20, %s1201_s21  }
  0x4e   : > { %s1148_s23 = scalar_lea.hbm %s1427_s6, 16 }
  0x4f   : > { %p1149_p13 = scmp.ne.s32.totalorder %s1427_s6, %s1148_s23  ;;  %p1155_p4 = scmp.lt.u32.totalorder %s1148_s23, %s1427_s6 }
  0x51   : > { %p1151_p0 = pnand %p1149_p13, %p1286_p7 }
  0x53   : > { %p1152_p1 = pneg %p1151_p0 }
  0x55   : > { %p1157_p6 = pnand %p1155_p4, %p1152_p1 }
  0x57   : > { %1160 = shalt.err (!%p1157_p6)
}
  0x58   : > { %s1161_s14 = scalar_lea.vmem %s264_s13, 16  ;;  %s1168_s11 = scalar_lea.vmem %s264_s13, 32 }
  0x59   : > { %p1162_p8 = scmp.ne.s32.totalorder %s264_s13, %s1161_s14  ;;  %p1169_p11 = scmp.lt.s32.totalorder %s264_s13, %s264_s13 }
  0x5a   : > { %p1170_p12 = scmp.lt.s32.totalorder %s1168_s11, %s1161_s14 }
  0x5b   : > { %p1164_p9 = pnand %p1162_p8, %p1286_p7 }
  0x5c   : > { %p1171_p2 = por %p1170_p12, %p1169_p11 }
  0x5d   : > { %p1165_p10 = pneg %p1164_p9 }
  0x5f   : > { %p1172_p3 = pnand %p1171_p2, %p1165_p10 }
  0x61   : > { %1175 = shalt.err (!%p1172_p3)
}
  0x62   : > { %1019 = dma.hbm_to_vmem [thread:$0]  (!%p1270_p5), %s1427_s6, 16, %s264_s13, [#allocation8]  }
  0x63   : > { %p1436_p13 = scmp.ne.s32.totalorder %s1433_s29, 0 }
  0x64   : > { %p1437_p0 = scmp.ne.s32.totalorder (!%p1436_p13), %s1432_s28, 0 }
  0x65   : > { %303 = sbr.rel (%p1436_p13) target bundleno = 570 (0x23a), region = 48 }
  0x6c   : > { %1181 = dma.done.wait (%p1437_p0), [#allocation3], 256  }
  0x6d   : > { %1183 = vsyncadd (%p1437_p0), [#allocation3], 4294967040 }
  0x6e   : > { %1185 = dma.done.wait (%p1437_p0), [#allocation5], 1808  }
  0x6f   : > { %1187 = vsyncadd (%p1437_p0), [#allocation5], 4294965488 }
  0x70   : > { %1189 = dma.done.wait (%p1437_p0), [#allocation8], 16  }
  0x71   : > { %1191 = vsyncadd (%p1437_p0), [#allocation8], 4294967280  ;;  %s884_s29 = sshll.u32 %s871_s27, 1  ;;  %v1202_v0 = vmov 0.0   ;;  %vm1203_vm0 = vmmov 0   ;;  %v1044_v1 = vld [vmem:[#allocation2] sm:$0xff]  }
  0x72   : > { %943 = vmatprep.subr.bf16.mxu0 %v1202_v0  ;;  %947 = vmatprep.mubr.msk.bf16.mxu0 %vm1203_vm0, %v1202_v0  ;;  %p358_p2 = scmp.lt.s32.totalorder %s884_s29, 3  ;;  %v1045_v2 = vld [vmem:[#allocation2 + $0x8] sm:$0xff]   ;;  %v1047_v4 = vld [vmem:[#allocation6 + $0x20] sm:$0xff]   ;;  %v1048_v5 = vld [vmem:[#allocation6 + $0x28] sm:$0xff]   ;;  %vm412_vm1 = vcmask 261120   ;;  %vm519_vm2 = vcmask 523264  }
  0x73   : > { %951 = vmatprep.subr.bf16.mxu1 %v1202_v0  ;;  %959 = vmatprep.mubr.msk.bf16.mxu1 %vm1203_vm0, %v1202_v0  ;;  %v1049_v6 = vld [vmem:[#allocation6 + $0x30] sm:$0xff]   ;;  %v1055_v7 = vld [vmem:[#allocation6] sm:$0xff]   ;;  %v1050_v8 = vld [vmem:[#allocation6 + $0x38] sm:$0xff]   ;;  %vm675_vm3 = vcmask 785408   ;;  %vm747_vm4 = vcmask 257024  }
  0x74   : > { %s1439_s29 = smov (!%p358_p2, %s884_s29), 3  ;;  %944 = vmatpush3.bf16.msra.mxu0 %v1044_v1  ;;  %952 = vmatpush3.bf16.msra.mxu1 %v1047_v4  ;;  %v1057_v9 = vld [vmem:[#allocation6 + $0x8] sm:$0xff]   ;;  %v1052_v11 = vld [vmem:[#allocation6 + $0x40] sm:$0xff]   ;;  %v1054_v13 = vld [vmem:[#allocation6 + $0x50] sm:$0xff]  }
  0x75   : > { %s1391_s9 = sshll.u32 %s1439_s29, 2  ;;  %945 = vmatprep.subr.bf16.mxu0 %v1202_v0  ;;  %953 = vmatprep.subr.bf16.mxu1 %v1202_v0  ;;  %v1053_v12 = vld [vmem:[#allocation6 + $0x48] sm:$0xff]   ;;  %v1056_v14 = vld [vmem:[#allocation6 + $0x58] sm:$0xff]   ;;  %v1058_v15 = vld [vmem:[#allocation6 + $0x60] sm:$0xff]  }
  0x76   : > { %s361_s28 = scalar_lea.vmem %s1421_s0, %s1391_s9  ;;  %s367_s16 = scalar_lea.vmem %s1422_s1, %s1391_s9  ;;  %v1059_v16 = vld [vmem:[#allocation6 + $0x10] sm:$0xff]   ;;  %v1060_v17 = vld [vmem:[#allocation6 + $0x68] sm:$0xff]   ;;  %v1061_v18 = vld [vmem:[#allocation6 + $0x18] sm:$0xff]  }
  0x77   : > { %v1397_v3 = vld [vmem:[%s361_s28] sm:$0xff]   ;;  %s373_s18 = scalar_lea.vmem %s1423_s2, %s1391_s9  ;;  %v892_v20 = vld [vmem:[#allocation4] ss:$0 sm:$0xff]  ;;  %s379_s23 = scalar_lea.vmem %s1428_s7, %s1391_s9 }
  0x78   : > { %946 = vmatpush3.bf16.msra.mxu0 %v1045_v2  ;;  %954 = vmatpush3.bf16.msra.mxu1 %v1048_v5  ;;  %v1051_v10 = vld [vmem:[%s367_s16] sm:$0xff]   ;;  %v731_v38 = vunpack.c.l.bf16 %v1397_v3  ;;  %v732_v42 = vunpack.c.h.bf16 %v1397_v3 }
  0x79   : > { %963 = vmatprep.subr.bf16.mxu0 %v1202_v0  ;;  %955 = vmatprep.subr.bf16.mxu1 %v1202_v0  ;;  %v1062_v19 = vld [vmem:[%s373_s18] sm:$0xff]  }
  0x7a   : > { %v916_v43 = vld [vmem:[#allocation7] ss:$0 sm:$0xff]  ;;  %v733_v46 = vmul.f32 0.5, %v731_v38  ;;  %v734_v51 = vmul.f32 0.5, %v732_v42 }
  0x7b   : > { %948 = vmatmul.mubr.msk.bf16.vlgmr.msra.gmra.mrb[0].mxu0 %vm412_vm1, %v1397_v3 }
  0x7c   : > { %971 = vmatprep.mubr.msk.bf16.mxu0 %vm1203_vm0, %v1202_v0  ;;  %956 = vmatpush3.bf16.msra.mxu1 %v1049_v6 }
  0x7d   : > { %964 = vmatpush3.bf16.msra.mxu0 %v1055_v7  ;;  %957 = vmatprep.subr.bf16.mxu1 %v1202_v0 }
  0x7e   : > { %965 = vmatprep.subr.bf16.mxu0 %v1202_v0 }
  0x80   : > { %958 = vmatpush3.bf16.msra.mxu1 %v1050_v8 }
  0x81   : > { %966 = vmatpush3.bf16.msra.mxu0 %v1057_v9  ;;  %975 = vmatprep.subr.bf16.mxu1 %v1202_v0 }
  0x82   : > { %967 = vmatprep.subr.bf16.mxu0 %v1202_v0 }
  0x83   : > { %960 = vmatmul.mubr.msk.bf16.vlgmr.msra.gmra.mrb[0].mxu1 %vm519_vm2, %v1051_v10 }
  0x84   : > { %976 = vmatpush3.bf16.msra.mxu1 %v1052_v11  ;;  %987 = vmatprep.mubr.msk.bf16.mxu1 %vm1203_vm0, %v1202_v0 }
  0x85   : > { %977 = vmatprep.subr.bf16.mxu1 %v1202_v0  ;;  %968 = vmatpush3.bf16.msra.mxu0 %v1059_v16 }
  0x86   : > { %969 = vmatprep.subr.bf16.mxu0 %v1202_v0 }
  0x88   : > { %978 = vmatpush3.bf16.msra.mxu1 %v1053_v12 }
  0x89   : > { %979 = vmatprep.subr.bf16.mxu1 %v1202_v0  ;;  %970 = vmatpush3.bf16.msra.mxu0 %v1061_v18 }
  0x8c   : > { %980 = vmatpush3.bf16.msra.mxu1 %v1054_v13 }
  0x8d   : > { %981 = vmatprep.subr.bf16.mxu1 %v1202_v0 }
  0x90   : > { %982 = vmatpush3.bf16.msra.mxu1 %v1056_v14 }
  0x91   : > { %983 = vmatprep.subr.bf16.mxu1 %v1202_v0 }
  0x94   : > { %984 = vmatpush3.bf16.msra.mxu1 %v1058_v15 }
  0x95   : > { %985 = vmatprep.subr.bf16.mxu1 %v1202_v0 }
  0x98   : > { %986 = vmatpush3.bf16.msra.mxu1 %v1060_v17 }
  0x9b   : > { %988 = vmatmul.mubr.msk.bf16.vlgmr.msra.gmra.mrb[4].mxu1 %vm675_vm3, %v1062_v19 }
 0x14e   : > { %v450_v21 = vpop.f32.mrb[0].mxu0 }
 0x14f   : > { %v451_v22 = vadd.f32 %v892_v20, %v450_v21  ;;  %v949_v23 = vpop.f32.mrb[1].mxu0 }
 0x150   : > { %v453_v24 = vpop.f32.mrb[2].mxu0 }
 0x151   : > { %v454_v25 = vadd.f32 %v892_v20, %v453_v24  ;;  %v950_v26 = vpop.f32.mrb[3].mxu0  ;;  %v457_v27 = vmax.f32 %v451_v22, 0.0 }
 0x153   : > { %v458_v28 = vmax.f32 %v454_v25, 0.0 }
 0x155   : > { %v459_v29 = vpack.c.bf16 %v458_v28, %v457_v27 }
 0x156   : > { %v557_v30 = vpop.f32.mrb[0].mxu1 }
 0x157   : > { %972 = vmatmul.mubr.msk.bf16.vlgmr.msra.gmra.mrb[4].mxu0 %vm519_vm2, %v459_v29  ;;  %v961_v31 = vpop.f32.mrb[1].mxu1 }
 0x158   : > { %v560_v32 = vpop.f32.mrb[2].mxu1 }
 0x159   : > { %v962_v33 = vpop.f32.mrb[3].mxu1 }
 0x16e   : > { %v713_v34 = vpop.f32.mrb[4].mxu1 }
 0x16f   : > { %v989_v35 = vpop.f32.mrb[5].mxu1 }
 0x170   : > { %v716_v36 = vpop.f32.mrb[6].mxu1 }
 0x171   : > { %v990_v37 = vpop.f32.mrb[7].mxu1 }
 0x22a   : > { %v625_v39 = vpop.f32.mrb[4].mxu0 }
 0x22b   : > { %v626_v40 = vadd.f32 %v625_v39, %v557_v30  ;;  %v973_v41 = vpop.f32.mrb[5].mxu0 }
 0x22c   : > { %v628_v44 = vpop.f32.mrb[6].mxu0 }
 0x22d   : > { %v720_v45 = vadd.f32 %v713_v34, %v626_v40  ;;  %v629_v47 = vadd.f32 %v628_v44, %v560_v32  ;;  %v974_v48 = vpop.f32.mrb[7].mxu0 }
 0x22f   : > { %v729_v49 = vadd.f32 %v916_v43, %v720_v45  ;;  %v721_v50 = vadd.f32 %v716_v36, %v629_v47 }
 0x231   : > { %v735_v52 = vadd.f32 %v733_v46, %v729_v49  ;;  %v730_v53 = vadd.f32 %v916_v43, %v721_v50 }
 0x233   : > { %v737_v54 = vmax.f32 %v735_v52, 0.0  ;;  %v736_v55 = vadd.f32 %v734_v51, %v730_v53 }
 0x235   : > { %v921_v56 = vpack.c.bf16 %v737_v54, %v737_v54  ;;  %v738_v57 = vmax.f32 %v736_v55, 0.0 }
 0x237   : > { %748 = vst.msk [vmem:[%s379_s23] sm:$0xf] %vm747_vm4, %v921_v56  ;;  %v922_v58 = vpack.c.bf16 %v738_v57, %v738_v57 }
 0x239   : > { %749 = vst.msk [vmem:[%s379_s23 + $0x4] sm:$0xf] %vm747_vm4, %v922_v58 }
 0x23a PF: > { %s20_s24 = sadd.s32 1, %s1194_s24  }
 0x23b   : > { %p17_p3 = scmp.ge.s32.totalorder %s20_s24, 4  }
 0x23d   :  { %19 = sbr.rel (!%p17_p3) target bundleno = 3 (0x3), region = 101 }
 0x244   :  { %772 = vsyncpa [#allocation3], 1 }
 0x245   :  { %774 = vsyncpa [#allocation3 + $0x1], 1 }
 0x246   :  { %775 = vsyncpa [#allocation5], 1 }
 0x247   :  { %776 = vsyncpa [#allocation8], 1 }

// kernel: transformer_forward.5
= control target key start
LH: loop header
LB: loop body
LE: loop exit
PB: predicated region body
PF: predicated region fallthrough
CT: control target
= control target key end

     0   :  { %s2570_s0 = inlined_call_operand.vmem [shape: bf16[2,20,32], index: 0, kind: input, shape index: {}]   ;;  %s2571_s1 = inlined_call_operand.hbm [shape: bf16[32,48], index: 1, kind: input, shape index: {}]   ;;  %s2572_s2 = inlined_call_operand.hbm [shape: f32[1,48], index: 2, kind: input, shape index: {}]   ;;  %s2573_s3 = inlined_call_operand.hbm [shape: bf16[3,48,64], index: 3, kind: input, shape index: {}]   ;;  %s2574_s4 = inlined_call_operand.hbm [shape: f32[1,64], index: 4, kind: input, shape index: {}]   ;;  %s2575_s5 = inlined_call_operand.hbm [shape: bf16[32,64], index: 5, kind: input, shape index: {}]   ;;  %s2576_s6 = inlined_call_operand.hbm [shape: f32[1,64], index: 6, kind: input, shape index: {}]   ;;  %s2577_s7 = inlined_call_operand.hbm [shape: bf16[5,64,96], index: 7, kind: input, shape index: {}]   ;;  %s2578_s8 = inlined_call_operand.hbm [shape: f32[1,96], index: 8, kind: input, shape index: {}]   ;;  %s2579_s9 = inlined_call_operand.vmem [shape: bf16[2,16,64], index: 9, kind: output, shape index: {0}]   ;;  %s2580_s10 = inlined_call_operand.vmem [shape: bf16[2,16,96], index: 10, kind: output, shape index: {1}]  }
   0x1   :  { %2583 = sst [smem:[#allocation20_spill]] %s2572_s2 }
   0x2   :  { %16 = vsyncpa [#allocation3], 0 }
   0x3   :  { %17 = vsyncpa [#allocation5], 0 }
   0x4   :  { %18 = vsyncpa [#allocation8], 0 }
   0x5   :  { %19 = vsyncpa [#allocation11], 0 }
   0x6   :  { %20 = vsyncpa [#allocation14], 0  ;;  %s2229_s13 = smov 0  }
   0x7 LB: > { %s2162_s14 = smov [#allocation4]   ;;  %s2235_s16 = sadd.s32 4294967295, %s2160_s13   ;;  %s2160_s13 = sphi %s2229_s13, %s26_s13  }
   0x8   : > { %s303_s15 = sshll.u32 %s2162_s14, 4  ;;  %p1543_p0 = scmp.ge.s32.totalorder %s2160_s13, 1  ;;  %s2240_s15 = int_to_ptr.vmem [resolvable:$true] %s303_s15 }
   0x9   : > { %p277_p1 = scmp.lt.s32.totalorder %s2160_s13, 3  ;;  %p2581_p2 = scmp.eq.s32.totalorder %s2235_s16, 0 }
   0xa   : > { %s2163_s18 = smov [#allocation7]   ;;  %s2164_s20 = smov [#allocation10]  }
   0xb   : > { %p2242_p3 = pnand %p1543_p0, %p277_p1  ;;  %s327_s19 = sshll.u32 %s2163_s18, 4  ;;  %s2248_s19 = int_to_ptr.vmem [resolvable:$true] %s327_s19 }
   0xc   : > { %s351_s21 = sshll.u32 %s2164_s20, 4  ;;  %s2165_s23 = smov [#allocation2]   ;;  %s2256_s21 = int_to_ptr.vmem [resolvable:$true] %s351_s21 }
   0xd   : > { %s2584_s17 = scalar_select %p2242_p3, 1, 0 }
   0xe   : > { %p1814_p4 = pneg %p2242_p3  ;;  %s289_s24 = sshll.u32 %s2165_s23, 4  ;;  %s2258_s24 = int_to_ptr.vmem [resolvable:$true] %s289_s24 }
   0xf   : > { %s2586_s2 = sld [smem:[#allocation20_spill]] }
  0x10   : > { %p2252_p5 = pnand %p2581_p2, %p1814_p4 }
  0x12   : > { %p2268_p7 = pneg %p2252_p5 }
  0x15   : > { %s1910_s27 = scalar_lea.hbm %s2586_s2, 16 }
  0x16   : > { %p1911_p6 = scmp.ne.s32.totalorder %s2586_s2, %s1910_s27  ;;  %p1917_p10 = scmp.lt.u32.totalorder %s1910_s27, %s2586_s2 }
  0x18   : > { %p1913_p8 = pnand %p2268_p7, %p1911_p6 }
  0x1a   : > { %p1914_p9 = pneg %p1913_p8 }
  0x1c   : > { %p1919_p11 = pnand %p1917_p10, %p1914_p9 }
  0x1e   : > { %1922 = shalt.err (!%p1919_p11)
}
  0x1f   : > { %s1923_s14 = scalar_lea.vmem %s2240_s15, 16  ;;  %s1930_s18 = scalar_lea.vmem %s2240_s15, 32 }
  0x20   : > { %p1924_p12 = scmp.ne.s32.totalorder %s2240_s15, %s1923_s14  ;;  %p1931_p1 = scmp.lt.s32.totalorder %s2240_s15, %s2240_s15 }
  0x21   : > { %p1932_p4 = scmp.lt.s32.totalorder %s1930_s18, %s1923_s14 }
  0x22   : > { %p1926_p13 = pnand %p1924_p12, %p2268_p7 }
  0x23   : > { %p1933_p6 = por %p1932_p4, %p1931_p1 }
  0x24   : > { %p1927_p0 = pneg %p1926_p13 }
  0x26   : > { %p1934_p8 = pnand %p1933_p6, %p1927_p0 }
  0x28   : > { %1937 = shalt.err (!%p1934_p8)
}
  0x29   : > { %1820 = dma.hbm_to_vmem [thread:$0]  (!%p2252_p5), %s2586_s2, 16, %s2240_s15, [#allocation5]  }
  0x2a   : > { %s1938_s27 = scalar_lea.hbm %s2574_s4, 16 }
  0x2b   : > { %p1939_p9 = scmp.ne.s32.totalorder %s2574_s4, %s1938_s27  ;;  %p1945_p12 = scmp.lt.u32.totalorder %s1938_s27, %s2574_s4 }
  0x2d   : > { %p1941_p10 = pnand %p1939_p9, %p2268_p7 }
  0x2f   : > { %p1942_p11 = pneg %p1941_p10 }
  0x31   : > { %p1947_p13 = pnand %p1945_p12, %p1942_p11 }
  0x33   : > { %1950 = shalt.err (!%p1947_p13)
}
  0x34   : > { %s1951_s15 = scalar_lea.vmem %s2248_s19, 16  ;;  %s1958_s14 = scalar_lea.vmem %s2248_s19, 32 }
  0x35   : > { %p1952_p0 = scmp.ne.s32.totalorder %s2248_s19, %s1951_s15  ;;  %p1959_p6 = scmp.lt.s32.totalorder %s2248_s19, %s2248_s19 }
  0x36   : > { %p1960_p8 = scmp.lt.s32.totalorder %s1958_s14, %s1951_s15 }
  0x37   : > { %p1954_p1 = pnand %p1952_p0, %p2268_p7 }
  0x38   : > { %p1961_p9 = por %p1960_p8, %p1959_p6 }
  0x39   : > { %p1955_p4 = pneg %p1954_p1 }
  0x3b   : > { %p1962_p10 = pnand %p1961_p9, %p1955_p4 }
  0x3d   : > { %1965 = shalt.err (!%p1962_p10)
}
  0x3e   : > { %1826 = dma.hbm_to_vmem [thread:$0]  (!%p2252_p5), %s2574_s4, 16, %s2248_s19, [#allocation8]  }
  0x3f   : > { %s1966_s26 = scalar_lea.hbm %s2576_s6, 16 }
  0x40   : > { %p1967_p11 = scmp.ne.s32.totalorder %s2576_s6, %s1966_s26  ;;  %p1973_p0 = scmp.lt.u32.totalorder %s1966_s26, %s2576_s6 }
  0x42   : > { %p1969_p12 = pnand %p1967_p11, %p2268_p7 }
  0x44   : > { %p1970_p13 = pneg %p1969_p12 }
  0x46   : > { %p1975_p1 = pnand %p1973_p0, %p1970_p13 }
  0x48   : > { %1978 = shalt.err (!%p1975_p1)
}
  0x49   : > { %s1979_s19 = scalar_lea.vmem %s2256_s21, 16  ;;  %s1986_s12 = scalar_lea.vmem %s2256_s21, 32 }
  0x4a   : > { %p1980_p4 = scmp.ne.s32.totalorder %s2256_s21, %s1979_s19  ;;  %p1987_p9 = scmp.lt.s32.totalorder %s2256_s21, %s2256_s21 }
  0x4b   : > { %p1988_p10 = scmp.lt.s32.totalorder %s1986_s12, %s1979_s19 }
  0x4c   : > { %p1982_p6 = pnand %p1980_p4, %p2268_p7 }
  0x4d   : > { %p1989_p11 = por %p1988_p10, %p1987_p9 }
  0x4e   : > { %p1983_p8 = pneg %p1982_p6 }
  0x50   : > { %p1990_p12 = pnand %p1989_p11, %p1983_p8 }
  0x52   : > { %1993 = shalt.err (!%p1990_p12)
}
  0x53   : > { %1832 = dma.hbm_to_vmem [thread:$0]  (!%p2252_p5), %s2576_s6, 16, %s2256_s21, [#allocation11]  }
  0x54   : > { %s1994_s23 = scalar_lea.hbm %s2571_s1, 256 }
  0x55   : > { %p1995_p13 = scmp.ne.s32.totalorder %s2571_s1, %s1994_s23  ;;  %p2001_p4 = scmp.lt.u32.totalorder %s1994_s23, %s2571_s1 }
  0x57   : > { %p1997_p0 = pnand %p1995_p13, %p2268_p7 }
  0x59   : > { %p1998_p1 = pneg %p1997_p0 }
  0x5b   : > { %p2003_p6 = pnand %p2001_p4, %p1998_p1 }
  0x5d   : > { %2006 = shalt.err (!%p2003_p6)
}
  0x5e   : > { %s2007_s21 = scalar_lea.vmem %s2258_s24, 256  ;;  %p2015_p11 = scmp.lt.s32.totalorder %s2258_s24, %s2258_s24 }
  0x5f   : > { %p2008_p8 = scmp.ne.s32.totalorder %s2258_s24, %s2007_s21  ;;  %p2016_p12 = scmp.lt.s32.totalorder %s2007_s21, %s2007_s21 }
  0x61   : > { %p2010_p9 = pnand %p2008_p8, %p2268_p7  ;;  %p2017_p13 = por %p2016_p12, %p2015_p11 }
  0x63   : > { %p2011_p10 = pneg %p2010_p9 }
  0x65   : > { %p2018_p0 = pnand %p2017_p13, %p2011_p10 }
  0x67   : > { %2021 = shalt.err (!%p2018_p0)
}
  0x68   : > { %s2166_s29 = smov 64   ;;  %s2167_s11 = smov 4  }
  0x69   : > { %1817 = dma.hbm_to_vmem [thread:$0]  (!%p2252_p5), %s2571_s1, 256, %s2258_s24, [#allocation3], %s2166_s29, %s2166_s29, %s2167_s11  }
  0x6a   : > { %s2168_s15 = smov [#allocation6]   ;;  %s2169_s18 = smov [#allocation9]  }
  0x6b   : > { %s313_s14 = sshll.u32 %s2168_s15, 4  ;;  %s337_s20 = sshll.u32 %s2169_s18, 4  ;;  %s314_s14 = int_to_ptr.vmem [resolvable:$true] %s313_s14  ;;  %s338_s20 = int_to_ptr.vmem [resolvable:$true] %s337_s20 }
  0x6c   : > { %s2022_s26 = scalar_lea.hbm %s2573_s3, 1152 }
  0x6d   : > { %p2023_p1 = scmp.ne.s32.totalorder %s2573_s3, %s2022_s26  ;;  %p2029_p8 = scmp.lt.u32.totalorder %s2022_s26, %s2573_s3 }
  0x6f   : > { %p2025_p4 = pnand %p2023_p1, %p2268_p7 }
  0x71   : > { %p2026_p6 = pneg %p2025_p4 }
  0x73   : > { %p2031_p9 = pnand %p2029_p8, %p2026_p6 }
  0x75   : > { %2034 = shalt.err (!%p2031_p9)
}
  0x76   : > { %s2035_s24 = scalar_lea.vmem %s314_s14, 1152  ;;  %p2043_p13 = scmp.lt.s32.totalorder %s314_s14, %s314_s14 }
  0x77   : > { %p2036_p10 = scmp.ne.s32.totalorder %s314_s14, %s2035_s24  ;;  %p2044_p0 = scmp.lt.s32.totalorder %s2035_s24, %s2035_s24 }
  0x79   : > { %p2038_p11 = pnand %p2036_p10, %p2268_p7  ;;  %p2045_p2 = por %p2044_p0, %p2043_p13 }
  0x7b   : > { %p2039_p12 = pneg %p2038_p11 }
  0x7d   : > { %p2046_p3 = pnand %p2045_p2, %p2039_p12 }
  0x7f   : > { %2049 = shalt.err (!%p2046_p3)
}
  0x80   : > { %1823 = dma.hbm_to_vmem [thread:$0]  (!%p2252_p5), %s2573_s3, 1152, %s314_s14, [#allocation5], %s2166_s29, %s2166_s29, %s2167_s11  }
  0x81   : > { %s2050_s18 = scalar_lea.hbm %s2575_s5, 256 }
  0x82   : > { %p2051_p2 = scmp.ne.s32.totalorder %s2575_s5, %s2050_s18  ;;  %p2057_p4 = scmp.lt.u32.totalorder %s2050_s18, %s2575_s5 }
  0x84   : > { %p2053_p3 = pnand %p2051_p2, %p2268_p7 }
  0x86   : > { %p2054_p1 = pneg %p2053_p3 }
  0x88   : > { %p2059_p6 = pnand %p2057_p4, %p2054_p1 }
  0x8a   : > { %2062 = shalt.err (!%p2059_p6)
}
  0x8b   : > { %s2063_s28 = scalar_lea.vmem %s338_s20, 256  ;;  %p2071_p11 = scmp.lt.s32.totalorder %s338_s20, %s338_s20 }
  0x8c   : > { %p2064_p8 = scmp.ne.s32.totalorder %s338_s20, %s2063_s28  ;;  %p2072_p12 = scmp.lt.s32.totalorder %s2063_s28, %s2063_s28 }
  0x8e   : > { %p2066_p9 = pnand %p2064_p8, %p2268_p7  ;;  %p2073_p13 = por %p2072_p12, %p2071_p11 }
  0x90   : > { %p2067_p10 = pneg %p2066_p9 }
  0x92   : > { %p2074_p0 = pnand %p2073_p13, %p2067_p10 }
  0x94   : > { %2077 = shalt.err (!%p2074_p0)
}
  0x95   : > { %1829 = dma.hbm_to_vmem [thread:$0]  (!%p2252_p5), %s2575_s5, 256, %s338_s20, [#allocation8], %s2166_s29, %s2166_s29, %s2167_s11  }
  0x96   : > { %s2170_s24 = smov [#allocation12]   ;;  %s2171_s19 = smov [#allocation13]  }
  0x97   : > { %s361_s2 = sshll.u32 %s2170_s24, 4  ;;  %s375_s12 = sshll.u32 %s2171_s19, 4  ;;  %s362_s2 = int_to_ptr.vmem [resolvable:$true] %s361_s2  ;;  %s376_s12 = int_to_ptr.vmem [resolvable:$true] %s375_s12 }
  0x98   : > { %s2078_s23 = scalar_lea.hbm %s2577_s7, 2560 }
  0x99   : > { %p2079_p2 = scmp.ne.s32.totalorder %s2577_s7, %s2078_s23  ;;  %p2085_p4 = scmp.lt.u32.totalorder %s2078_s23, %s2577_s7 }
  0x9b   : > { %p2081_p3 = pnand %p2079_p2, %p2268_p7 }
  0x9d   : > { %p2082_p1 = pneg %p2081_p3 }
  0x9f   : > { %p2087_p6 = pnand %p2085_p4, %p2082_p1 }
  0xa1   : > { %2090 = shalt.err (!%p2087_p6)
}
  0xa2   : > { %s2091_s20 = scalar_lea.vmem %s362_s2, 2560  ;;  %p2099_p11 = scmp.lt.s32.totalorder %s362_s2, %s362_s2 }
  0xa3   : > { %p2092_p8 = scmp.ne.s32.totalorder %s362_s2, %s2091_s20  ;;  %p2100_p12 = scmp.lt.s32.totalorder %s2091_s20, %s2091_s20 }
  0xa5   : > { %p2094_p9 = pnand %p2092_p8, %p2268_p7  ;;  %p2101_p13 = por %p2100_p12, %p2099_p11 }
  0xa7   : > { %p2095_p10 = pneg %p2094_p9 }
  0xa9   : > { %p2102_p0 = pnand %p2101_p13, %p2095_p10 }
  0xab   : > { %2105 = shalt.err (!%p2102_p0)
}
  0xac   : > { %1835 = dma.hbm_to_vmem [thread:$0]  (!%p2252_p5), %s2577_s7, 2560, %s362_s2, [#allocation11], %s2166_s29, %s2166_s29, %s2167_s11  }
  0xad   : > { %s2106_s15 = scalar_lea.hbm %s2578_s8, 16 }
  0xae   : > { %p2107_p2 = scmp.ne.s32.totalorder %s2578_s8, %s2106_s15  ;;  %p2113_p4 = scmp.lt.u32.totalorder %s2106_s15, %s2578_s8 }
  0xb0   : > { %p2109_p3 = pnand %p2107_p2, %p2268_p7 }
  0xb2   : > { %p2110_p1 = pneg %p2109_p3 }
  0xb4   : > { %p2115_p6 = pnand %p2113_p4, %p2110_p1 }
  0xb6   : > { %2118 = shalt.err (!%p2115_p6)
}
  0xb7   : > { %s2119_s27 = scalar_lea.vmem %s376_s12, 16  ;;  %s2126_s29 = scalar_lea.vmem %s376_s12, 32 }
  0xb8   : > { %p2120_p8 = scmp.ne.s32.totalorder %s376_s12, %s2119_s27  ;;  %p2127_p11 = scmp.lt.s32.totalorder %s376_s12, %s376_s12 }
  0xb9   : > { %p2128_p12 = scmp.lt.s32.totalorder %s2126_s29, %s2119_s27 }
  0xba   : > { %p2122_p9 = pnand %p2120_p8, %p2268_p7 }
  0xbb   : > { %p2129_p13 = por %p2128_p12, %p2127_p11 }
  0xbc   : > { %p2123_p10 = pneg %p2122_p9 }
  0xbe   : > { %p2130_p0 = pnand %p2129_p13, %p2123_p10 }
  0xc0   : > { %2133 = shalt.err (!%p2130_p0)
}
  0xc1   : > { %1838 = dma.hbm_to_vmem [thread:$0]  (!%p2252_p5), %s2578_s8, 16, %s376_s12, [#allocation14]  }
  0xc2   : > { %p2588_p2 = scmp.ne.s32.totalorder %s2584_s17, 0 }
  0xc3   : > { %p2589_p3 = scmp.eq.s32.totalorder (!%p2588_p2), %s2235_s16, 0 }
  0xc4   : > { %396 = sbr.rel (%p2588_p2) target bundleno = 725 (0x2d5), region = 56 }
  0xcb   : > { %2139 = dma.done.wait (%p2589_p3), [#allocation3], 256   ;;  %p2590_p7 = pmov %p2589_p3 }
  0xcc   : > { %p2591_p1 = pmov %p2589_p3 }
  0xcd   : > { %2141 = vsyncadd (%p2590_p7), [#allocation3], 4294967040 }
  0xce   : > { %2143 = dma.done.wait (%p2591_p1), [#allocation5], 1168   ;;  %p2592_p4 = pmov %p2591_p1 }
  0xcf   : > { %p2593_p6 = pmov %p2591_p1 }
  0xd0   : > { %2145 = vsyncadd (%p2592_p4), [#allocation5], 4294966128 }
  0xd1   : > { %2147 = dma.done.wait (%p2593_p6), [#allocation8], 272   ;;  %p2594_p5 = pmov %p2591_p1 }
  0xd2   : > { %p2595_p8 = pmov %p2591_p1 }
  0xd3   : > { %2149 = vsyncadd (%p2594_p5), [#allocation8], 4294967024 }
  0xd4   : > { %2151 = dma.done.wait (%p2595_p8), [#allocation11], 2576   ;;  %p2596_p9 = pmov %p2591_p1 }
  0xd5   : > { %p2597_p10 = pmov %p2591_p1 }
  0xd6   : > { %2153 = vsyncadd (%p2596_p9), [#allocation11], 4294964720 }
  0xd7   : > { %2155 = dma.done.wait (%p2597_p10), [#allocation14], 16   ;;  %p2598_p11 = pmov %p2591_p1 }
  0xd8   : > { %p467_p12 = scmp.lt.s32.totalorder %s2235_s16, 1  ;;  %v1875_v0 = vld [vmem:[#allocation2] sm:$0xff]   ;;  %v1876_v1 = vld [vmem:[#allocation2 + $0x8] sm:$0xff]   ;;  %vm530_vm0 = vcmask 261120   ;;  %v2172_v7 = vmov 0.0   ;;  %v1882_v8 = vld [vmem:[#allocation6 + $0x20] sm:$0xff]   ;;  %v486_v13 = vlaneseq }
  0xd9   : > { %2157 = vsyncadd (%p2598_p11), [#allocation14], 4294967280  ;;  %1675 = vmatprep.subr.bf16.mxu0 %v1875_v0  ;;  %v1879_v4 = vld [vmem:[#allocation9] sm:$0xff]   ;;  %v1880_v5 = vld [vmem:[#allocation9 + $0x8] sm:$0xff]   ;;  %vm2173_vm1 = vmmov 0   ;;  %vm738_vm4 = vcmask 1046528  }
  0xda   : > { %s2600_s16 = smov (!%p467_p12, %s2235_s16), 1  ;;  %1676 = vmatpush3.bf16.msra.mxu0 %v1875_v0  ;;  %1683 = vmatprep.subr.bf16.mxu1 %v1879_v4  ;;  %v1881_v6 = vld [vmem:[#allocation6 + $0x18] sm:$0xff]   ;;  %v1883_v9 = vld [vmem:[#allocation6] sm:$0xff]   ;;  %v1884_v10 = vld [vmem:[#allocation6 + $0x28] sm:$0xff]   ;;  %v487_v14 = vshrl.u32 %v486_v13, 7  ;;  %vm760_vm5 = vcmask 392192  }
  0xdb   : > { %s1781_s17 = smul.u32 12, %s2600_s16  ;;  %1677 = vmatprep.subr.bf16.mxu0 %v1876_v1  ;;  %1684 = vmatpush3.bf16.msra.mxu1 %v1879_v4  ;;  %v1885_v11 = vld [vmem:[#allocation6 + $0x8] sm:$0xff]   ;;  %v1886_v12 = vld [vmem:[#allocation6 + $0x10] sm:$0xff]   ;;  %v1567_v16 = vld [vmem:[#allocation4] ss:$0 sm:$0xff]  ;;  %vm1256_vm8 = vcmask 1045504  }
  0xdc   : > { %1685 = vmatprep.subr.bf16.mxu1 %v1880_v5  ;;  %v489_v15 = vadd.s32 16, %v487_v14  ;;  %vm490_vm3 = vcmp.ge.s32.totalorder %v487_v14, 2  ;;  %v1574_v24 = vld [vmem:[#allocation10] ss:$0 sm:$0xff]  ;;  %vm805_vm6 = vsmask.f32 7424 }
  0xdd   : > { %s471_s12 = scalar_lea.vmem %s2570_s0, %s1781_s17  ;;  %vm880_vm7 = vsmask.f32 6400  ;;  %v1887_v48 = vld [vmem:[#allocation6 + $0x30] sm:$0xff]   ;;  %v1888_v62 = vld [vmem:[#allocation6 + $0x38] sm:$0xff]   ;;  %vm990_vm9 = vcmask 523264   ;;  %s1624_s28 = sshll.u32 %s2600_s16, 3 }
  0xde   : > { %v1877_v2 = vld [vmem:[%s471_s12] sm:$0xff]   ;;  %v1878_v3 = vld [vmem:[%s471_s12 + $0x8] ss:$0 sps:$4 sm:$0x33]   ;;  %1678 = vmatpush3.bf16.msra.mxu0 %v1876_v1  ;;  %vm495_vm2 = vcmp.lt.s32.totalorder %v489_v15, 18  ;;  %v1890_v15 = vld [vmem:[#allocation6 + $0x40] sm:$0xff]   ;;  %s476_s21 = scalar_lea.vmem %s2579_s9, %s1624_s28  ;;  %s481_s15 = scalar_lea.vmem %s2580_s10, %s1624_s28 }
  0xdf   : > { %1679 = vmatprep.mubr.msk.bf16.mxu0 %vm530_vm0, %v1877_v2  ;;  %1687 = vmatprep.mubr.msk.bf16.mxu1 %vm530_vm0, %v1877_v2  ;;  %v1889_v2 = vld [vmem:[#allocation12 + $0x20] sm:$0xff]   ;;  %vm1349_vm10 = vcmask 519168   ;;  %vm1371_vm11 = vcmask 781312  }
  0xe0   : > { %1686 = vmatpush3.bf16.msra.mxu1 %v1880_v5  ;;  %1691 = vmatprep.subr.bf16.mxu0 %v2172_v7 }
  0xe1   : > { %1680 = vmatmul.mubr.msk.bf16.vlgmr.msra.gmra.mrb[0].mxu0 %vm530_vm0, %v1878_v3  ;;  %1701 = vmatprep.subr.bf16.mxu1 %v2172_v7 }
  0xe2   : > { %1692 = vmatpush3.bf16.msra.mxu0 %v1881_v6  ;;  %1697 = vmatprep.mubr.msk.bf16.mxu0 %vm2173_vm1, %v2172_v7 }
  0xe3   : > { %1688 = vmatmul.mubr.msk.bf16.vlgmr.msra.gmra.mrb[0].mxu1 %vm530_vm0, %v1878_v3  ;;  %1693 = vmatprep.subr.bf16.mxu0 %v2172_v7 }
  0xe4   : > { %1702 = vmatpush3.bf16.msra.mxu1 %v1883_v9  ;;  %1707 = vmatprep.mubr.msk.bf16.mxu1 %vm2173_vm1, %v2172_v7 }
  0xe5   : > { %1703 = vmatprep.subr.bf16.mxu1 %v2172_v7 }
  0xe6   : > { %1694 = vmatpush3.bf16.msra.mxu0 %v1882_v8 }
  0xe7   : > { %1695 = vmatprep.subr.bf16.mxu0 %v2172_v7 }
  0xe8   : > { %1704 = vmatpush3.bf16.msra.mxu1 %v1885_v11 }
  0xe9   : > { %1705 = vmatprep.subr.bf16.mxu1 %v2172_v7 }
  0xea   : > { %1696 = vmatpush3.bf16.msra.mxu0 %v1884_v10 }
  0xeb   : > { %1711 = vmatprep.subr.bf16.mxu0 %v2172_v7 }
  0xec   : > { %1706 = vmatpush3.bf16.msra.mxu1 %v1886_v12 }
  0xed   : > { %1721 = vmatprep.subr.bf16.mxu1 %v2172_v7 }
 0x1b4   : > { %v1681_v17 = vpop.f32.mrb[0].mxu0 }
 0x1b5   : > { %v580_v18 = vadd.f32 %v1681_v17, %v1567_v16  ;;  %v571_v19 = vpop.f32.mrb[1].mxu0 }
 0x1b6   : > { %v572_v20 = vadd.f32 %v1567_v16, %v571_v19  ;;  %v1682_v21 = vpop.f32.mrb[2].mxu0  ;;  %v1689_v27 = vpop.f32.mrb[0].mxu1 }
 0x1b7   : > { %v587_v22 = vmax.f32 %v580_v18, 0.0  ;;  %v574_v23 = vpop.f32.mrb[3].mxu0  ;;  %v654_v29 = vadd.f32 %v1689_v27, %v1574_v24  ;;  %v645_v30 = vpop.f32.mrb[1].mxu1 }
 0x1b8   : > { %v585_v25 = vmax.f32 %v572_v20, 0.0  ;;  %v575_v26 = vadd.f32 %v1567_v16, %v574_v23  ;;  %v646_v34 = vadd.f32 %v1574_v24, %v645_v30  ;;  %v1690_v35 = vpop.f32.mrb[2].mxu1  ;;  %v1891_v20 = vld [vmem:[#allocation12 + $0x28] sm:$0xff]   ;;  %v1894_v30 = vld [vmem:[#allocation12 + $0x38] sm:$0xff]  }
 0x1b9   : > { %v670_v28 = vsel %vm495_vm2, %v587_v22, 0.0  ;;  %v661_v36 = vmax.f32 %v654_v29, 0.0  ;;  %v648_v37 = vpop.f32.mrb[3].mxu1  ;;  %v1895_v29 = vld [vmem:[#allocation12 + $0x8] sm:$0xff]   ;;  %v1901_v35 = vld [vmem:[#allocation12 + $0x60] sm:$0xff]  }
 0x1ba   : > { %v672_v31 = vpack.c.bf16 %v670_v28, %v670_v28  ;;  %v668_v32 = vsel %vm490_vm3, %v585_v25, 0.0  ;;  %v586_v33 = vmax.f32 %v575_v26, 0.0  ;;  %v659_v42 = vmax.f32 %v646_v34, 0.0  ;;  %v1893_v25 = vld [vmem:[#allocation12] sm:$0xff]   ;;  %v1892_v28 = vld [vmem:[#allocation12 + $0x30] sm:$0xff]   ;;  %v1899_v34 = vld [vmem:[#allocation12 + $0x48] sm:$0xff]  }
 0x1bb   : > { %v675_v41 = vsel %vm495_vm2, %v661_v36, 0.0  ;;  %v649_v43 = vadd.f32 %v1574_v24, %v648_v37  ;;  %v1900_v36 = vld [vmem:[#allocation12 + $0x50] sm:$0xff]   ;;  %v1903_v37 = vld [vmem:[#allocation12 + $0x68] sm:$0xff]  }
 0x1bc   : > { %v814_v38 = vshll.u32 %v672_v31, 16  ;;  %v884_v39 = vshrl.u32 %v672_v31, 16  ;;  %v671_v40 = vpack.c.bf16 %v586_v33, %v668_v32  ;;  %v740_v44 = vrot.slane %v672_v31, 1  ;;  %v1896_v31 = vld [vmem:[#allocation12 + $0x10] sm:$0xff]   ;;  %v1897_v32 = vld [vmem:[#allocation12 + $0x40] sm:$0xff]   ;;  %v1898_v33 = vld [vmem:[#allocation12 + $0x18] sm:$0xff]  }
 0x1bd   : > { %v677_v51 = vpack.c.bf16 %v675_v41, %v675_v41  ;;  %v673_v52 = vsel %vm490_vm3, %v659_v42, 0.0  ;;  %v660_v55 = vmax.f32 %v649_v43, 0.0  ;;  %v1906_v41 = vld [vmem:[#allocation12 + $0x78] sm:$0xff]   ;;  %v1907_v42 = vld [vmem:[#allocation12 + $0x88] sm:$0xff]   ;;  %v1908_v43 = vld [vmem:[#allocation12 + $0x90] sm:$0xff]  }
 0x1be   : > { %v886_v45 = vrot.slane %v884_v39, 1  ;;  %v887_v46 = vrot.slane %v814_v38, 2  ;;  %v739_v47 = vrot.slane %v671_v40, 1  ;;  %v807_v49 = vshrl.u32 %v671_v40, 16  ;;  %v1904_v39 = vld [vmem:[#allocation12 + $0x70] sm:$0xff]  }
 0x1bf   : > { %v809_v50 = vshll.u32 %v671_v40, 16  ;;  %v816_v53 = vrot.slane %v814_v38, 1  ;;  %v962_v59 = vshll.u32 %v677_v51, 16  ;;  %v1180_v60 = vshrl.u32 %v677_v51, 16  ;;  %v1902_v38 = vld [vmem:[#allocation12 + $0x58] sm:$0xff]   ;;  %v1905_v40 = vld [vmem:[#allocation12 + $0x80] sm:$0xff]  }
 0x1c0   : > { %v741_v54 = vsel %vm738_vm4, %v739_v47, %v740_v44  ;;  %v881_v57 = vrot.slane %v807_v49, 1  ;;  %v2497_v61 = vpack.c.bf16 %v660_v55, %v673_v52  ;;  %v888_v63 = vor.u32 %v887_v46, %v886_v45  ;;  %v1909_v44 = vld [vmem:[#allocation12 + $0x98] sm:$0xff]  }
 0x1c1   : > { %v811_v56 = vrot.slane %v809_v50, 1  ;;  %v882_v58 = vrot.slane %v809_v50, 2  ;;  %1698 = vmatmul.mubr.msk.bf16.vlgmr.msra.gmra.mrb[4].mxu0 %vm760_vm5, %v741_v54  ;;  %v1105_v0 = vrot.slane %v677_v51, 1  ;;  %v1183_v4 = vrot.slane %v962_v59, 2 }
 0x1c2   : > { %1712 = vmatpush3.bf16.msra.mxu0 %v1887_v48  ;;  %1717 = vmatprep.mubr.msk.bf16.mxu0 %vm2173_vm1, %v2172_v7  ;;  %v1258_v5 = vrot.slane %v677_v51, 2  ;;  %v1182_v6 = vrot.slane %v1180_v60, 1  ;;  %v955_v8 = vshrl.u32 %v2497_v61, 16  ;;  %v957_v9 = vshll.u32 %v2497_v61, 16 }
 0x1c3   : > { %v812_v1 = vor.u32 %v811_v56, %v807_v49  ;;  %1713 = vmatprep.subr.bf16.mxu0 %v2172_v7  ;;  %v883_v3 = vor.u32 %v882_v58, %v881_v57  ;;  %v1104_v10 = vrot.slane %v2497_v61, 1  ;;  %v964_v13 = vrot.slane %v962_v59, 1  ;;  %v1616_v56 = vld [vmem:[#allocation7] ss:$0 sm:$0xff] }
 0x1c4   : > { %v1257_v14 = vrot.slane %v2497_v61, 2  ;;  %v959_v16 = vrot.slane %v957_v9, 1  ;;  %v1177_v18 = vrot.slane %v955_v8, 1  ;;  %v1178_v19 = vrot.slane %v957_v9, 2 }
 0x1c5   : > { %v817_v11 = vsel %vm805_vm6, %v812_v1, %v816_v53  ;;  %v889_v12 = vsel %vm880_vm7, %v883_v3, %v888_v63  ;;  %v2510_v17 = vsel %vm738_vm4, %v1104_v10, %v1105_v0  ;;  %v1184_v21 = vor.u32 %v1183_v4, %v1182_v6 }
 0x1c6   : > { %1708 = vmatmul.mubr.msk.bf16.vlgmr.msra.gmra.mrb[4].mxu1 %vm760_vm5, %v817_v11  ;;  %1714 = vmatpush3.bf16.msra.mxu0 %v1888_v62  ;;  %v2514_v22 = vsel %vm1256_vm8, %v1257_v14, %v1258_v5  ;;  %v960_v23 = vor.u32 %v959_v16, %v955_v8  ;;  %v1179_v24 = vor.u32 %v1178_v19, %v1177_v18 }
 0x1c7   : > { %1722 = vmatpush3.bf16.msra.mxu1 %v1889_v2  ;;  %1715 = vmatprep.subr.bf16.mxu0 %v2172_v7 }
 0x1c8   : > { %1723 = vmatprep.subr.bf16.mxu1 %v2172_v7  ;;  %1729 = vmatprep.mubr.msk.bf16.mxu1 %vm2173_vm1, %v2172_v7  ;;  %v965_v26 = vsel %vm805_vm6, %v960_v23, %v964_v13  ;;  %v1185_v27 = vsel %vm880_vm7, %v1179_v24, %v1184_v21 }
 0x1ca   : > { %1716 = vmatpush3.bf16.msra.mxu0 %v1890_v15 }
 0x1cb   : > { %1724 = vmatpush3.bf16.msra.mxu1 %v1891_v20  ;;  %1733 = vmatprep.subr.bf16.mxu0 %v2172_v7 }
 0x1cc   : > { %1725 = vmatprep.subr.bf16.mxu1 %v2172_v7 }
 0x1cd   : > { %1718 = vmatmul.mubr.msk.bf16.vlgmr.msra.gmra.mrb[8].mxu0 %vm760_vm5, %v889_v12 }
 0x1ce   : > { %1734 = vmatpush3.bf16.msra.mxu0 %v1893_v25  ;;  %1741 = vmatprep.mubr.msk.bf16.mxu0 %vm2173_vm1, %v2172_v7 }
 0x1cf   : > { %1726 = vmatpush3.bf16.msra.mxu1 %v1892_v28  ;;  %1735 = vmatprep.subr.bf16.mxu0 %v2172_v7 }
 0x1d0   : > { %1727 = vmatprep.subr.bf16.mxu1 %v2172_v7 }
 0x1d2   : > { %1736 = vmatpush3.bf16.msra.mxu0 %v1895_v29 }
 0x1d3   : > { %1728 = vmatpush3.bf16.msra.mxu1 %v1894_v30  ;;  %1737 = vmatprep.subr.bf16.mxu0 %v2172_v7 }
 0x1d4   : > { %1745 = vmatprep.subr.bf16.mxu1 %v2172_v7 }
 0x1d6   : > { %1730 = vmatmul.mubr.msk.bf16.vlgmr.msra.gmra.mrb[8].mxu1 %vm990_vm9, %v965_v26  ;;  %1738 = vmatpush3.bf16.msra.mxu0 %v1896_v31 }
 0x1d7   : > { %1746 = vmatpush3.bf16.msra.mxu1 %v1897_v32  ;;  %1739 = vmatprep.subr.bf16.mxu0 %v2172_v7 }
 0x1d8   : > { %1747 = vmatprep.subr.bf16.mxu1 %v2172_v7  ;;  %1753 = vmatprep.mubr.msk.bf16.mxu1 %vm2173_vm1, %v2172_v7 }
 0x1da   : > { %1740 = vmatpush3.bf16.msra.mxu0 %v1898_v33 }
 0x1db   : > { %1748 = vmatpush3.bf16.msra.mxu1 %v1899_v34  ;;  %1757 = vmatprep.subr.bf16.mxu0 %v2172_v7 }
 0x1dc   : > { %1749 = vmatprep.subr.bf16.mxu1 %v2172_v7 }
 0x1dd   : > { %1742 = vmatmul.mubr.msk.bf16.vlgmr.msra.gmra.mrb[12].mxu0 %vm990_vm9, %v2497_v61 }
 0x1de   : > { %1758 = vmatpush3.bf16.msra.mxu0 %v1901_v35  ;;  %1765 = vmatprep.mubr.msk.bf16.mxu0 %vm2173_vm1, %v2172_v7 }
 0x1df   : > { %1750 = vmatpush3.bf16.msra.mxu1 %v1900_v36  ;;  %1759 = vmatprep.subr.bf16.mxu0 %v2172_v7 }
 0x1e0   : > { %1751 = vmatprep.subr.bf16.mxu1 %v2172_v7 }
 0x1e2   : > { %1760 = vmatpush3.bf16.msra.mxu0 %v1903_v37 }
 0x1e3   : > { %1752 = vmatpush3.bf16.msra.mxu1 %v1902_v38  ;;  %1761 = vmatprep.subr.bf16.mxu0 %v2172_v7 }
 0x1e4   : > { %1769 = vmatprep.subr.bf16.mxu1 %v2172_v7 }
 0x1e6   : > { %1754 = vmatmul.mubr.msk.bf16.vlgmr.msra.gmra.mrb[12].mxu1 %vm990_vm9, %v2510_v17  ;;  %1762 = vmatpush3.bf16.msra.mxu0 %v1904_v39 }
 0x1e7   : > { %1770 = vmatpush3.bf16.msra.mxu1 %v1905_v40  ;;  %1763 = vmatprep.subr.bf16.mxu0 %v2172_v7 }
 0x1e8   : > { %1771 = vmatprep.subr.bf16.mxu1 %v2172_v7  ;;  %1777 = vmatprep.mubr.msk.bf16.mxu1 %vm2173_vm1, %v2172_v7 }
 0x1ea   : > { %1764 = vmatpush3.bf16.msra.mxu0 %v1906_v41 }
 0x1eb   : > { %1772 = vmatpush3.bf16.msra.mxu1 %v1907_v42 }
 0x1ec   : > { %1773 = vmatprep.subr.bf16.mxu1 %v2172_v7 }
 0x1ed   : > { %1766 = vmatmul.mubr.msk.bf16.vlgmr.msra.gmra.mrb[16].mxu0 %vm990_vm9, %v1185_v27  ;;  %v1619_v27 = vld [vmem:[#allocation13] ss:$0 sm:$0xff] }
 0x1ef   : > { %1774 = vmatpush3.bf16.msra.mxu1 %v1908_v43 }
 0x1f0   : > { %1775 = vmatprep.subr.bf16.mxu1 %v2172_v7 }
 0x1f3   : > { %1776 = vmatpush3.bf16.msra.mxu1 %v1909_v44 }
 0x1f6   : > { %1778 = vmatmul.mubr.msk.bf16.vlgmr.msra.gmra.mrb[16].mxu1 %vm990_vm9, %v2514_v22 }
 0x294   : > { %v798_v45 = vpop.f32.mrb[4].mxu0 }
 0x295   : > { %v1699_v46 = vpop.f32.mrb[5].mxu0 }
 0x296   : > { %v801_v47 = vpop.f32.mrb[6].mxu0 }
 0x297   : > { %v1700_v48 = vpop.f32.mrb[7].mxu0 }
 0x299   : > { %v873_v49 = vpop.f32.mrb[4].mxu1 }
 0x29a   : > { %v874_v50 = vadd.f32 %v873_v49, %v798_v45  ;;  %v1709_v51 = vpop.f32.mrb[5].mxu1 }
 0x29b   : > { %v876_v52 = vpop.f32.mrb[6].mxu1 }
 0x29c   : > { %v877_v53 = vadd.f32 %v876_v52, %v801_v47  ;;  %v1710_v54 = vpop.f32.mrb[7].mxu1 }
 0x2a0   : > { %v945_v55 = vpop.f32.mrb[8].mxu0 }
 0x2a1   : > { %v952_v57 = vadd.f32 %v945_v55, %v874_v50  ;;  %v1719_v7 = vpop.f32.mrb[9].mxu0 }
 0x2a2   : > { %v948_v58 = vpop.f32.mrb[10].mxu0 }
 0x2a3   : > { %v1337_v59 = vadd.f32 %v1616_v56, %v952_v57  ;;  %v953_v60 = vadd.f32 %v948_v58, %v877_v53  ;;  %v1720_v61 = vpop.f32.mrb[11].mxu0 }
 0x2a5   : > { %v1339_v62 = vmax.f32 %v1337_v59, 0.0  ;;  %v1338_v63 = vadd.f32 %v1616_v56, %v953_v60 }
 0x2a7   : > { %v1626_v0 = vpack.c.bf16 %v1339_v62, %v1339_v62  ;;  %v1340_v1 = vmax.f32 %v1338_v63, 0.0 }
 0x2a9   : > { %1350 = vst.msk [vmem:[%s476_s21] sm:$0xf] %vm1349_vm10, %v1626_v0  ;;  %v1627_v2 = vpack.c.bf16 %v1340_v1, %v1340_v1  ;;  %v1028_v3 = vpop.f32.mrb[8].mxu1 }
 0x2aa   : > { %v1731_v4 = vpop.f32.mrb[9].mxu1 }
 0x2ab   : > { %1351 = vst.msk [vmem:[%s476_s21 + $0x4] sm:$0xf] %vm1349_vm10, %v1627_v2  ;;  %v1031_v5 = vpop.f32.mrb[10].mxu1 }
 0x2ac   : > { %v1732_v6 = vpop.f32.mrb[11].mxu1 }
 0x2b0   : > { %v1095_v8 = vpop.f32.mrb[12].mxu0 }
 0x2b1   : > { %v1096_v9 = vadd.f32 %v1095_v8, %v1028_v3  ;;  %v1743_v10 = vpop.f32.mrb[13].mxu0 }
 0x2b2   : > { %v1098_v11 = vpop.f32.mrb[14].mxu0 }
 0x2b3   : > { %v1099_v12 = vadd.f32 %v1098_v11, %v1031_v5  ;;  %v1744_v13 = vpop.f32.mrb[15].mxu0 }
 0x2b9   : > { %v1168_v14 = vpop.f32.mrb[12].mxu1 }
 0x2ba   : > { %v1175_v15 = vadd.f32 %v1168_v14, %v1096_v9  ;;  %v1755_v16 = vpop.f32.mrb[13].mxu1 }
 0x2bb   : > { %v1171_v17 = vpop.f32.mrb[14].mxu1 }
 0x2bc   : > { %v1176_v18 = vadd.f32 %v1171_v17, %v1099_v12  ;;  %v1756_v19 = vpop.f32.mrb[15].mxu1 }
 0x2c0   : > { %v1247_v20 = vpop.f32.mrb[16].mxu0 }
 0x2c1   : > { %v1254_v21 = vadd.f32 %v1247_v20, %v1175_v15  ;;  %v1767_v22 = vpop.f32.mrb[17].mxu0 }
 0x2c2   : > { %v1250_v23 = vpop.f32.mrb[18].mxu0 }
 0x2c3   : > { %v1255_v24 = vadd.f32 %v1250_v23, %v1176_v18  ;;  %v1768_v25 = vpop.f32.mrb[19].mxu0 }
 0x2c9   : > { %v1321_v26 = vpop.f32.mrb[16].mxu1 }
 0x2ca   : > { %v1328_v28 = vadd.f32 %v1321_v26, %v1254_v21  ;;  %v1779_v29 = vpop.f32.mrb[17].mxu1 }
 0x2cb   : > { %v1324_v30 = vpop.f32.mrb[18].mxu1 }
 0x2cc   : > { %v1359_v31 = vadd.f32 %v1619_v27, %v1328_v28  ;;  %v1329_v32 = vadd.f32 %v1324_v30, %v1255_v24  ;;  %v1780_v33 = vpop.f32.mrb[19].mxu1 }
 0x2ce   : > { %v1361_v34 = vmax.f32 %v1359_v31, 0.0  ;;  %v1360_v35 = vadd.f32 %v1619_v27, %v1329_v32 }
 0x2d0   : > { %v1628_v36 = vpack.c.bf16 %v1361_v34, %v1361_v34  ;;  %v1362_v37 = vmax.f32 %v1360_v35, 0.0 }
 0x2d2   : > { %1372 = vst.msk [vmem:[%s481_s15] sm:$0xf] %vm1371_vm11, %v1628_v36  ;;  %v1629_v38 = vpack.c.bf16 %v1362_v37, %v1362_v37 }
 0x2d4   : > { %1373 = vst.msk [vmem:[%s481_s15 + $0x4] sm:$0xf] %vm1371_vm11, %v1629_v38 }
 0x2d5 PF: > { %s26_s13 = sadd.s32 1, %s2160_s13  }
 0x2d6   : > { %p23_p13 = scmp.ge.s32.totalorder %s26_s13, 4  }
 0x2d8   :  { %25 = sbr.rel (!%p23_p13) target bundleno = 7 (0x7), region = 131 }
 0x2df   :  { %1411 = vsyncpa [#allocation3], 1 }
 0x2e0   :  { %1413 = vsyncpa [#allocation3 + $0x1], 1 }
 0x2e1   :  { %1414 = vsyncpa [#allocation5], 1 }
 0x2e2   :  { %1415 = vsyncpa [#allocation8], 1 }
 0x2e3   :  { %1416 = vsyncpa [#allocation11], 1 }
 0x2e4   :  { %1417 = vsyncpa [#allocation14], 1 }

// kernel: transformer_forward.9
= control target key start
LH: loop header
LB: loop body
LE: loop exit
PB: predicated region body
PF: predicated region fallthrough
CT: control target
= control target key end

     0   :  { %s2990_s24 = smov 0   ;;  %s3606_s0 = inlined_call_operand.vmem [shape: bf16[32,32], index: 0, kind: input, shape index: {}]   ;;  %s3607_s1 = inlined_call_operand.vmem [shape: bf16[32,2048], index: 1, kind: input, shape index: {}]   ;;  %s3608_s2 = inlined_call_operand.vmem [shape: f32[1,2048], index: 2, kind: input, shape index: {}]   ;;  %s3609_s3 = inlined_call_operand.vmem [shape: bf16[2048,32], index: 3, kind: input, shape index: {}]   ;;  %s3610_s4 = inlined_call_operand.vmem [shape: f32[1,32], index: 4, kind: input, shape index: {}]   ;;  %s3611_s5 = inlined_call_operand.vmem [shape: f32[1,32], index: 5, kind: input, shape index: {}]   ;;  %s3612_s6 = inlined_call_operand.vmem [shape: f32[1,32], index: 6, kind: input, shape index: {}]   ;;  %s3613_s7 = inlined_call_operand.vmem [shape: f32[32,32], index: 7, kind: output, shape index: {}]  }
   0x1 LB: > { %s2438_s25 = sadd.s32 4294967295, %s2947_s24   ;;  %p2442_p0 = scmp.ge.s32.totalorder %s2947_s24, 1  ;;  %s2947_s24 = sphi %s2990_s24, %s17_s24  }
   0x2   : > { %p238_p1 = scmp.lt.s32.totalorder %s2947_s24, 3 }
   0x4   : > { %p239_p2 = pnand %p2442_p0, %p238_p1 }
   0x5   : > { %v285_v0 = vld [vmem:[%s3607_s1] sm:$0xff] (!%p239_p2)  ;;  %v286_v2 = vld [vmem:[%s3607_s1 + $0x8] sm:$0xff] (!%p239_p2)  ;;  %s2443_s9 = sshll.u32 (!%p239_p2), %s2438_s25, 1  ;;  %v2949_v8 = vmov (!%p239_p2), 0   ;;  %v526_v14 = vld [vmem:[%s3607_s1 + $0x10] sm:$0xff] (!%p239_p2)  ;;  %vm360_vm0 = vcmask (!%p239_p2), 261120  }
   0x6   : > { %242 = sbr.rel (%p239_p2) target bundleno = 1280 (0x500), region = 48  ;;  %v287_v1 = vld [vmem:[%s3607_s1 + $0x40] sm:$0xff] (!%p239_p2)  ;;  %v288_v4 = vld [vmem:[%s3607_s1 + $0x48] sm:$0xff] (!%p239_p2)  ;;  %396 = vmatprep.mubr.bf16.mxu0 (!%p239_p2), %v2949_v8  ;;  %439 = vmatprep.mubr.bf16.mxu1 (!%p239_p2), %v2949_v8  ;;  %p271_p3 = scmp.lt.s32.totalorder (!%p239_p2), %s2443_s9, 3  ;;  %v528_v16 = vld [vmem:[%s3607_s1 + $0x50] sm:$0xff] (!%p239_p2) }
   0x7   : > { %v2449_v3 = vcombine.high (!%p239_p2), %v285_v0, %v287_v1  ;;  %v2448_v5 = vcombine.low (!%p239_p2), %v285_v0, %v287_v1  ;;  %v289_v6 = vld [vmem:[%s3607_s1 + $0x80] sm:$0xff] (!%p239_p2)  ;;  %v2451_v9 = vcombine.high (!%p239_p2), %v286_v2, %v288_v4  ;;  %v2450_v10 = vcombine.low (!%p239_p2), %v286_v2, %v288_v4  ;;  %v290_v12 = vld [vmem:[%s3607_s1 + $0x88] sm:$0xff] (!%p239_p2)  ;;  %v527_v17 = vld [vmem:[%s3607_s1 + $0x18] sm:$0xff] (!%p239_p2) }
   0x8   : > { %v291_v7 = vld [vmem:[%s3607_s1 + $0xc0] sm:$0xff] (!%p239_p2)  ;;  %v292_v13 = vld [vmem:[%s3607_s1 + $0xc8] sm:$0xff] (!%p239_p2)  ;;  %v529_v18 = vld [vmem:[%s3607_s1 + $0x58] sm:$0xff] (!%p239_p2)  ;;  %v2459_v22 = vcombine.high (!%p239_p2), %v526_v14, %v528_v16  ;;  %v2458_v28 = vcombine.low (!%p239_p2), %v526_v14, %v528_v16  ;;  %v295_v4 = vlaneseq (!%p239_p2) }
   0x9   : > { %v2453_v11 = vcombine.high (!%p239_p2), %v289_v6, %v291_v7  ;;  %364 = vmatprep.subr.bf16.mxu0 (!%p239_p2), %v2449_v3  ;;  %v2455_v15 = vcombine.high (!%p239_p2), %v290_v12, %v292_v13  ;;  %407 = vmatprep.subr.bf16.mxu1 (!%p239_p2), %v2451_v9  ;;  %v2452_v19 = vcombine.low (!%p239_p2), %v289_v6, %v291_v7  ;;  %v530_v20 = vld [vmem:[%s3607_s1 + $0x90] sm:$0xff] (!%p239_p2)  ;;  %v531_v25 = vld [vmem:[%s3607_s1 + $0x98] sm:$0xff] (!%p239_p2)  ;;  %v2807_v34 = vld [vmem:[%s3609_s3 + $0x140] sm:$0xff] (!%p239_p2)  }
   0xa   : > { %365 = vmatpush1.bf16.msra.mxu0 (!%p239_p2), %v2448_v5  ;;  %408 = vmatpush1.bf16.msra.mxu1 (!%p239_p2), %v2450_v10  ;;  %v2454_v21 = vcombine.low (!%p239_p2), %v290_v12, %v292_v13  ;;  %v532_v23 = vld [vmem:[%s3607_s1 + $0xd0] sm:$0xff] (!%p239_p2)  ;;  %v2461_v24 = vcombine.high (!%p239_p2), %v527_v17, %v529_v18  ;;  %v533_v27 = vld [vmem:[%s3607_s1 + $0xd8] sm:$0xff] (!%p239_p2)  ;;  %v2460_v29 = vcombine.low (!%p239_p2), %v527_v17, %v529_v18  ;;  %v2808_v35 = vld [vmem:[%s3609_s3 + $0x1c0] sm:$0xff] (!%p239_p2)   ;;  %v296_v5 = vshrl.u32 (!%p239_p2), %v295_v4, 7 }
   0xb   : > { %366 = vmatprep.subr.bf16.mxu0 (!%p239_p2), %v2453_v11  ;;  %409 = vmatprep.subr.bf16.mxu1 (!%p239_p2), %v2455_v15  ;;  %v2463_v30 = vcombine.high (!%p239_p2), %v530_v20, %v532_v23  ;;  %v2465_v31 = vcombine.high (!%p239_p2), %v531_v25, %v533_v27  ;;  %v2462_v32 = vcombine.low (!%p239_p2), %v530_v20, %v532_v23  ;;  %v2809_v36 = vld [vmem:[%s3609_s3 + $0x100] sm:$0xff] (!%p239_p2)   ;;  %v2811_v38 = vld [vmem:[%s3609_s3 + $0x148] sm:$0xff] (!%p239_p2)   ;;  %v2815_v42 = vld [vmem:[%s3609_s3 + $0x150] sm:$0xff] (!%p239_p2)  }
   0xc   : > { %v2464_v33 = vcombine.low (!%p239_p2), %v531_v25, %v533_v27  ;;  %v2810_v37 = vld [vmem:[%s3609_s3 + $0x180] sm:$0xff] (!%p239_p2)   ;;  %v2812_v39 = vld [vmem:[%s3609_s3 + $0x1c8] sm:$0xff] (!%p239_p2)   ;;  %v2816_v43 = vld [vmem:[%s3609_s3 + $0x1d0] sm:$0xff] (!%p239_p2)   ;;  %v3171_v6 = vsub.s32 (!%p239_p2), 0, %v296_v5  ;;  %v3176_v9 = vsub.s32 (!%p239_p2), 2, %v296_v5  ;;  %v3178_v10 = vsub.s32 (!%p239_p2), 1, %v296_v5 }
   0xd   : > { %s3615_s9 = smov (!%p271_p3, %s2443_s9), 3  ;;  %v2813_v40 = vld [vmem:[%s3609_s3 + $0x108] sm:$0xff]   ;;  %v2817_v44 = vld [vmem:[%s3609_s3 + $0x110] sm:$0xff]   ;;  %v2819_v46 = vld [vmem:[%s3609_s3 + $0x158] sm:$0xff]   ;;  %v3180_v11 = vsub.s32 3, %v296_v5 }
   0xe   : > { %s2444_s8 = sshll.u32 %s3615_s9, 2  ;;  %367 = vmatpush1.bf16.msra.mxu0 %v2452_v19  ;;  %410 = vmatpush1.bf16.msra.mxu1 %v2454_v21  ;;  %v2814_v41 = vld [vmem:[%s3609_s3 + $0x188] sm:$0xff]   ;;  %v2818_v45 = vld [vmem:[%s3609_s3 + $0x190] sm:$0xff]   ;;  %v2820_v47 = vld [vmem:[%s3609_s3 + $0x1d8] sm:$0xff]   ;;  %s2446_s18 = sshll.u32 %s3615_s9, 3 }
   0xf   : > { %s3048_s14 = scalar_lea.vmem %s3606_s0, %s2444_s8  ;;  %596 = vmatprep.subr.bf16.mxu0 %v2459_v22  ;;  %639 = vmatprep.subr.bf16.mxu1 %v2461_v24  ;;  %v2821_v48 = vld [vmem:[%s3609_s3 + $0x118] sm:$0xff]   ;;  %v2823_v50 = vld [vmem:[%s3609_s3 + $0x160] sm:$0xff]   ;;  %v2827_v54 = vld [vmem:[%s3609_s3 + $0x168] sm:$0xff]   ;;  %s280_s23 = scalar_lea.vmem %s3613_s7, %s2446_s18 }
  0x10   : > { %v3054_v26 = vld [vmem:[%s3048_s14] sm:$0xff]   ;;  %v2822_v49 = vld [vmem:[%s3609_s3 + $0x198] sm:$0xff]   ;;  %v2828_v55 = vld [vmem:[%s3609_s3 + $0x1e8] sm:$0xff]  }
  0x11   : > { %2456 = vmatmul.mubr.msk.bf16.vlgmr.msra.gmra.mrb[0].mxu0 %vm360_vm0, %v3054_v26  ;;  %2457 = vmatmul.mubr.msk.bf16.vlgmr.msra.gmra.mrb[0].mxu1 %vm360_vm0, %v3054_v26  ;;  %v2824_v51 = vld [vmem:[%s3609_s3 + $0x1e0] sm:$0xff]   ;;  %v2829_v56 = vld [vmem:[%s3609_s3 + $0x128] sm:$0xff]   ;;  %v2831_v58 = vld [vmem:[%s3609_s3 + $0x170] sm:$0xff]  }
  0x12   : > { %597 = vmatpush1.bf16.msra.mxu0 %v2458_v28  ;;  %640 = vmatpush1.bf16.msra.mxu1 %v2460_v29  ;;  %v2825_v52 = vld [vmem:[%s3609_s3 + $0x120] sm:$0xff]   ;;  %v2830_v57 = vld [vmem:[%s3609_s3 + $0x1a8] sm:$0xff]   ;;  %v2832_v59 = vld [vmem:[%s3609_s3 + $0x1f0] sm:$0xff]  }
  0x13   : > { %598 = vmatprep.subr.bf16.mxu0 %v2463_v30  ;;  %641 = vmatprep.subr.bf16.mxu1 %v2465_v31  ;;  %v2826_v53 = vld [vmem:[%s3609_s3 + $0x1a0] sm:$0xff]   ;;  %v2833_v60 = vld [vmem:[%s3609_s3 + $0x130] sm:$0xff]   ;;  %v2835_v62 = vld [vmem:[%s3609_s3 + $0x178] sm:$0xff]  }
  0x14   : > { %628 = vmatprep.mubr.bf16.mxu0 %v2949_v8  ;;  %671 = vmatprep.mubr.bf16.mxu1 %v2949_v8  ;;  %v2834_v61 = vld [vmem:[%s3609_s3 + $0x1b0] sm:$0xff]   ;;  %v2836_v63 = vld [vmem:[%s3609_s3 + $0x1f8] sm:$0xff]   ;;  %v2839_v2 = vld [vmem:[%s3609_s3 + $0x40] sm:$0xff]  }
  0x15   : > { %v2837_v0 = vld [vmem:[%s3609_s3 + $0x138] sm:$0xff]   ;;  %v2840_v3 = vld [vmem:[%s3609_s3 + $0xc0] sm:$0xff]  }
  0x16   : > { %599 = vmatpush1.bf16.msra.mxu0 %v2462_v32  ;;  %642 = vmatpush1.bf16.msra.mxu1 %v2464_v33  ;;  %v2838_v1 = vld [vmem:[%s3609_s3 + $0x1b8] sm:$0xff]   ;;  %v293_v7 = vld [vmem:[%s3608_s2] sm:$0xf]  ;;  %v534_v20 = vld [vmem:[%s3608_s2 + $0x4] sm:$0xf] }
  0x17   : > { %2621 = vmatprep.subr.bf16.mxu0 %v2807_v34  ;;  %2643 = vmatprep.subr.bf16.mxu1 %v2808_v35  ;;  %v298_v12 = vrot.slane %v293_v7, %v3171_v6  ;;  %v306_v13 = vrot.slane %v293_v7, %v3176_v9  ;;  %v302_v14 = vrot.slane %v293_v7, %v3178_v10 }
  0x18   : > { %v310_v15 = vrot.slane %v293_v7, %v3180_v11  ;;  %v539_v33 = vrot.slane %v534_v20, %v3171_v6  ;;  %v547_v34 = vrot.slane %v534_v20, %v3176_v9 }
  0x19   : > { %2466 = vmatmul.mubr.msk.bf16.vlgmr.msra.gmra.mrb[4].mxu0 %vm360_vm0, %v3054_v26  ;;  %2467 = vmatmul.mubr.msk.bf16.vlgmr.msra.gmra.mrb[4].mxu1 %vm360_vm0, %v3054_v26 }
  0x1a   : > { %2622 = vmatpush3.bf16.msra.mxu0 %v2809_v36  ;;  %2644 = vmatpush3.bf16.msra.mxu1 %v2810_v37 }
  0x1b   : > { %2623 = vmatprep.subr.bf16.mxu0 %v2811_v38  ;;  %2645 = vmatprep.subr.bf16.mxu1 %v2812_v39  ;;  %v543_v38 = vrot.slane %v534_v20, %v3178_v10 }
  0x1e   : > { %2624 = vmatpush3.bf16.msra.mxu0 %v2813_v40  ;;  %2646 = vmatpush3.bf16.msra.mxu1 %v2814_v41 }
  0x1f   : > { %2625 = vmatprep.subr.bf16.mxu0 %v2815_v42  ;;  %2647 = vmatprep.subr.bf16.mxu1 %v2816_v43 }
  0x22   : > { %2626 = vmatpush3.bf16.msra.mxu0 %v2817_v44  ;;  %2648 = vmatpush3.bf16.msra.mxu1 %v2818_v45 }
  0x23   : > { %2627 = vmatprep.subr.bf16.mxu0 %v2819_v46  ;;  %2649 = vmatprep.subr.bf16.mxu1 %v2820_v47  ;;  %v551_v46 = vrot.slane %v534_v20, %v3180_v11  ;;  %v2842_v20 = vld [vmem:[%s3609_s3 + $0x80] sm:$0xff]  }
  0x26   : > { %2628 = vmatpush3.bf16.msra.mxu0 %v2821_v48  ;;  %2650 = vmatpush3.bf16.msra.mxu1 %v2822_v49 }
  0x27   : > { %2629 = vmatprep.subr.bf16.mxu0 %v2823_v50  ;;  %2651 = vmatprep.subr.bf16.mxu1 %v2824_v51 }
  0x2a   : > { %2630 = vmatpush3.bf16.msra.mxu0 %v2825_v52  ;;  %2652 = vmatpush3.bf16.msra.mxu1 %v2826_v53 }
  0x2b   : > { %2631 = vmatprep.subr.bf16.mxu0 %v2827_v54  ;;  %2653 = vmatprep.subr.bf16.mxu1 %v2828_v55 }
  0x2e   : > { %2632 = vmatpush3.bf16.msra.mxu0 %v2829_v56  ;;  %2654 = vmatpush3.bf16.msra.mxu1 %v2830_v57 }
  0x2f   : > { %2633 = vmatprep.subr.bf16.mxu0 %v2831_v58  ;;  %2655 = vmatprep.subr.bf16.mxu1 %v2832_v59 }
  0x32   : > { %2634 = vmatpush3.bf16.msra.mxu0 %v2833_v60  ;;  %2656 = vmatpush3.bf16.msra.mxu1 %v2834_v61 }
  0x33   : > { %2635 = vmatprep.subr.bf16.mxu0 %v2835_v62  ;;  %2657 = vmatprep.subr.bf16.mxu1 %v2836_v63 }
  0x36   : > { %2636 = vmatpush3.bf16.msra.mxu0 %v2837_v0  ;;  %2658 = vmatpush3.bf16.msra.mxu1 %v2838_v1 }
  0x37   : > { %2665 = vmatprep.subr.bf16.mxu0 %v2839_v2  ;;  %2687 = vmatprep.subr.bf16.mxu1 %v2840_v3 }
  0xe4   : > { %v398_v16 = vpop.f32.mrb[0].mxu0  ;;  %v441_v18 = vpop.f32.mrb[0].mxu1 }
  0xe5   : > { %v399_v17 = vadd.f32 %v398_v16, %v298_v12  ;;  %v400_v19 = vpop.f32.mrb[1].mxu0  ;;  %v442_v21 = vadd.f32 %v441_v18, %v306_v13  ;;  %v443_v23 = vpop.f32.mrb[1].mxu1  ;;  %v2841_v18 = vld [vmem:[%s3609_s3] sm:$0xff]  }
  0xe6   : > { %v401_v22 = vadd.f32 %v400_v19, %v302_v14  ;;  %v402_v24 = vpop.f32.mrb[2].mxu0  ;;  %v444_v25 = vadd.f32 %v443_v23, %v310_v15  ;;  %v445_v28 = vpop.f32.mrb[2].mxu1  ;;  %v2845_v23 = vld [vmem:[%s3609_s3 + $0x8] sm:$0xff]  }
  0xe7   : > { %v403_v27 = vadd.f32 %v402_v24, %v298_v12  ;;  %v404_v29 = vpop.f32.mrb[3].mxu0  ;;  %v446_v30 = vadd.f32 %v445_v28, %v306_v13  ;;  %v447_v32 = vpop.f32.mrb[3].mxu1  ;;  %v450_v35 = vmax.f32 %v399_v17, 0.0  ;;  %v452_v39 = vmax.f32 %v442_v21, 0.0  ;;  %v2843_v21 = vld [vmem:[%s3609_s3 + $0x48] sm:$0xff]   ;;  %v2849_v28 = vld [vmem:[%s3609_s3 + $0x10] sm:$0xff]  }
  0xe8   : > { %v405_v31 = vadd.f32 %v404_v29, %v302_v14  ;;  %v448_v37 = vadd.f32 %v447_v32, %v310_v15  ;;  %v451_v40 = vmax.f32 %v401_v22, 0.0  ;;  %v453_v43 = vmax.f32 %v444_v25, 0.0  ;;  %v2844_v22 = vld [vmem:[%s3609_s3 + $0xc8] sm:$0xff]   ;;  %v2847_v25 = vld [vmem:[%s3609_s3 + $0x50] sm:$0xff]   ;;  %v2853_v32 = vld [vmem:[%s3609_s3 + $0x18] sm:$0xff]  }
  0xe9   : > { %v454_v36 = vmax.f32 %v403_v27, 0.0  ;;  %v456_v41 = vmax.f32 %v446_v30, 0.0  ;;  %v2846_v24 = vld [vmem:[%s3609_s3 + $0x88] sm:$0xff]   ;;  %v2848_v27 = vld [vmem:[%s3609_s3 + $0xd0] sm:$0xff]   ;;  %v2851_v30 = vld [vmem:[%s3609_s3 + $0x58] sm:$0xff]  }
  0xea   : > { %v455_v42 = vmax.f32 %v405_v31, 0.0  ;;  %v457_v45 = vmax.f32 %v448_v37, 0.0  ;;  %v2850_v29 = vld [vmem:[%s3609_s3 + $0x90] sm:$0xff]   ;;  %v2852_v31 = vld [vmem:[%s3609_s3 + $0xd8] sm:$0xff]   ;;  %v2858_v37 = vld [vmem:[%s3609_s3 + $0xa0] sm:$0xff]  }
  0xeb   : > { %v3192_v44 = vpack.c.bf16 %v454_v36, %v450_v35  ;;  %v3195_v47 = vpack.c.bf16 %v456_v41, %v452_v39  ;;  %v2856_v35 = vld [vmem:[%s3609_s3 + $0xe0] sm:$0xff]   ;;  %v2860_v39 = vld [vmem:[%s3609_s3 + $0xe8] sm:$0xff]  }
  0xec   : > { %v459_v48 = vpack.c.bf16 %v455_v42, %v451_v40  ;;  %v630_v49 = vpop.f32.mrb[4].mxu0  ;;  %v461_v50 = vpack.c.bf16 %v457_v45, %v453_v43  ;;  %v673_v52 = vpop.f32.mrb[4].mxu1  ;;  %v2857_v36 = vld [vmem:[%s3609_s3 + $0x20] sm:$0xff]   ;;  %v2861_v40 = vld [vmem:[%s3609_s3 + $0x28] sm:$0xff]   ;;  %v2863_v42 = vld [vmem:[%s3609_s3 + $0x70] sm:$0xff]  }
  0xed   : > { %v631_v51 = vadd.f32 %v630_v49, %v539_v33  ;;  %v632_v53 = vpop.f32.mrb[5].mxu0  ;;  %v674_v54 = vadd.f32 %v673_v52, %v547_v34  ;;  %v675_v56 = vpop.f32.mrb[5].mxu1  ;;  %v2862_v41 = vld [vmem:[%s3609_s3 + $0xa8] sm:$0xff]   ;;  %v2864_v43 = vld [vmem:[%s3609_s3 + $0xf0] sm:$0xff]   ;;  %v2868_v49 = vld [vmem:[%s3609_s3 + $0xf8] sm:$0xff]  }
  0xee   : > { %v633_v55 = vadd.f32 %v632_v53, %v543_v38  ;;  %v634_v57 = vpop.f32.mrb[6].mxu0  ;;  %v676_v58 = vadd.f32 %v675_v56, %v551_v46  ;;  %v677_v60 = vpop.f32.mrb[6].mxu1  ;;  %v2865_v45 = vld [vmem:[%s3609_s3 + $0x30] sm:$0xff]   ;;  %v1307_v52 = vld [vmem:[%s3607_s1 + $0x28] sm:$0xff] }
  0xef   : > { %v635_v59 = vadd.f32 %v634_v57, %v539_v33  ;;  %v636_v61 = vpop.f32.mrb[7].mxu0  ;;  %v678_v62 = vadd.f32 %v677_v60, %v547_v34  ;;  %v679_v0 = vpop.f32.mrb[7].mxu1  ;;  %v682_v1 = vmax.f32 %v631_v51, 0.0  ;;  %v684_v4 = vmax.f32 %v674_v54, 0.0  ;;  %v2854_v33 = vld [vmem:[%s3609_s3 + $0x98] sm:$0xff]   ;;  %v2855_v34 = vld [vmem:[%s3609_s3 + $0x60] sm:$0xff]  }
  0xf0   : > { %v637_v63 = vadd.f32 %v636_v61, %v543_v38  ;;  %v680_v3 = vadd.f32 %v679_v0, %v551_v46  ;;  %v683_v5 = vmax.f32 %v633_v55, 0.0  ;;  %v685_v13 = vmax.f32 %v676_v58, 0.0  ;;  %v2859_v38 = vld [vmem:[%s3609_s3 + $0x68] sm:$0xff]   ;;  %v2866_v46 = vld [vmem:[%s3609_s3 + $0xb0] sm:$0xff]   ;;  %v1308_v51 = vld [vmem:[%s3607_s1 + $0x60] sm:$0xff] }
  0xf1   : > { %v686_v2 = vmax.f32 %v635_v59, 0.0  ;;  %v688_v7 = vmax.f32 %v678_v62, 0.0  ;;  %v1309_v53 = vld [vmem:[%s3607_s1 + $0x68] sm:$0xff]  ;;  %v2869_v54 = vld [vmem:[%s3609_s3 + $0x38] sm:$0xff]   ;;  %v1310_v58 = vld [vmem:[%s3607_s1 + $0xa0] sm:$0xff] }
  0xf2   : > { %v687_v12 = vmax.f32 %v637_v63, 0.0  ;;  %v689_v15 = vmax.f32 %v680_v3, 0.0  ;;  %v2870_v55 = vld [vmem:[%s3609_s3 + $0xb8] sm:$0xff]   ;;  %v2535_v57 = vcombine.high %v1307_v52, %v1309_v53  ;;  %v1312_v59 = vld [vmem:[%s3607_s1 + $0xe0] sm:$0xff]  ;;  %v1311_v60 = vld [vmem:[%s3607_s1 + $0xa8] sm:$0xff]  ;;  %v2534_v63 = vcombine.low %v1307_v52, %v1309_v53 }
  0xf3   : > { %v690_v14 = vpack.c.bf16 %v686_v2, %v682_v1  ;;  %v692_v16 = vpack.c.bf16 %v688_v7, %v684_v4  ;;  %v1313_v61 = vld [vmem:[%s3607_s1 + $0xe8] sm:$0xff]  ;;  %v2537_v0 = vcombine.high %v1310_v58, %v1312_v59  ;;  %v2536_v2 = vcombine.low %v1310_v58, %v1312_v59  ;;  %v2873_v4 = vld [vmem:[%s3609_s3 + $0x200] sm:$0xff]  }
  0xf4   : > { %v691_v17 = vpack.c.bf16 %v687_v12, %v683_v5  ;;  %v693_v19 = vpack.c.bf16 %v689_v15, %v685_v13  ;;  %v2539_v1 = vcombine.high %v1311_v60, %v1313_v61  ;;  %v2538_v3 = vcombine.low %v1311_v60, %v1313_v61  ;;  %v2874_v5 = vld [vmem:[%s3609_s3 + $0x280] sm:$0xff]   ;;  %v2875_v7 = vld [vmem:[%s3609_s3 + $0x248] sm:$0xff]   ;;  %v2879_v15 = vld [vmem:[%s3609_s3 + $0x250] sm:$0xff]  }
  0xf5   : > { %v2876_v12 = vld [vmem:[%s3609_s3 + $0x2c8] sm:$0xff]  }
  0xf6   : > { %982 = vmatprep.mubr.bf16.mxu0 %v691_v17  ;;  %1023 = vmatprep.mubr.bf16.mxu1 %v693_v19  ;;  %v2877_v13 = vld [vmem:[%s3609_s3 + $0x208] sm:$0xff]   ;;  %v2881_v17 = vld [vmem:[%s3609_s3 + $0x210] sm:$0xff]   ;;  %v2883_v19 = vld [vmem:[%s3609_s3 + $0x258] sm:$0xff]  }
  0xf7   : > { %983 = vmatmul.mubr.bf16.vlgmr.msra.gmra.mrb[8].mxu0 %v690_v14  ;;  %1024 = vmatmul.mubr.bf16.vlgmr.msra.gmra.mrb[8].mxu1 %v692_v16  ;;  %v2878_v14 = vld [vmem:[%s3609_s3 + $0x288] sm:$0xff]   ;;  %v2880_v16 = vld [vmem:[%s3609_s3 + $0x2d0] sm:$0xff]  }
  0xf8   : > { %2666 = vmatpush3.bf16.msra.mxu0 %v2841_v18  ;;  %2688 = vmatpush3.bf16.msra.mxu1 %v2842_v20  ;;  %v2882_v18 = vld [vmem:[%s3609_s3 + $0x290] sm:$0xff]   ;;  %v2884_v20 = vld [vmem:[%s3609_s3 + $0x2d8] sm:$0xff]  }
  0xf9   : > { %1256 = vmatprep.mubr.bf16.mxu0 %v459_v48  ;;  %1297 = vmatprep.mubr.bf16.mxu1 %v461_v50  ;;  %v2867_v48 = vld [vmem:[%s3609_s3 + $0x78] sm:$0xff]   ;;  %v1306_v50 = vld [vmem:[%s3607_s1 + $0x20] sm:$0xff] }
  0xfa   : > { %2667 = vmatprep.subr.bf16.mxu0 %v2843_v21  ;;  %2689 = vmatprep.subr.bf16.mxu1 %v2844_v22  ;;  %v2533_v56 = vcombine.high %v1306_v50, %v1308_v51  ;;  %v2532_v62 = vcombine.low %v1306_v50, %v1308_v51  ;;  %v2885_v21 = vld [vmem:[%s3609_s3 + $0x218] sm:$0xff]  }
  0xfb   : > { %v2886_v22 = vld [vmem:[%s3609_s3 + $0x298] sm:$0xff]  }
  0xfc   : > { %2668 = vmatpush3.bf16.msra.mxu0 %v2845_v23  ;;  %2690 = vmatpush3.bf16.msra.mxu1 %v2846_v24  ;;  %v2887_v23 = vld [vmem:[%s3609_s3 + $0x260] sm:$0xff]  }
  0xfd   : > { %2669 = vmatprep.subr.bf16.mxu0 %v2847_v25  ;;  %2691 = vmatprep.subr.bf16.mxu1 %v2848_v27  ;;  %v2888_v24 = vld [vmem:[%s3609_s3 + $0x2e0] sm:$0xff]  }
  0xfe   : > { %v2889_v25 = vld [vmem:[%s3609_s3 + $0x220] sm:$0xff]  }
  0xff   : > { %v2890_v27 = vld [vmem:[%s3609_s3 + $0x2a0] sm:$0xff]  }
 0x100   : > { %2670 = vmatpush3.bf16.msra.mxu0 %v2849_v28  ;;  %2692 = vmatpush3.bf16.msra.mxu1 %v2850_v29  ;;  %v2891_v28 = vld [vmem:[%s3609_s3 + $0x268] sm:$0xff]  }
 0x101   : > { %2671 = vmatprep.subr.bf16.mxu0 %v2851_v30  ;;  %2693 = vmatprep.subr.bf16.mxu1 %v2852_v31  ;;  %v2892_v29 = vld [vmem:[%s3609_s3 + $0x2e8] sm:$0xff]  }
 0x102   : > { %v2893_v30 = vld [vmem:[%s3609_s3 + $0x228] sm:$0xff]  }
 0x103   : > { %v2894_v31 = vld [vmem:[%s3609_s3 + $0x2a8] sm:$0xff]  }
 0x104   : > { %2672 = vmatpush3.bf16.msra.mxu0 %v2853_v32  ;;  %2694 = vmatpush3.bf16.msra.mxu1 %v2854_v33  ;;  %v2895_v32 = vld [vmem:[%s3609_s3 + $0x270] sm:$0xff]  }
 0x105   : > { %2673 = vmatprep.subr.bf16.mxu0 %v2855_v34  ;;  %2695 = vmatprep.subr.bf16.mxu1 %v2856_v35  ;;  %v2896_v33 = vld [vmem:[%s3609_s3 + $0x2f0] sm:$0xff]  }
 0x106   : > { %v2897_v34 = vld [vmem:[%s3609_s3 + $0x230] sm:$0xff]  }
 0x107   : > { %v2898_v35 = vld [vmem:[%s3609_s3 + $0x2b0] sm:$0xff]  }
 0x108   : > { %2674 = vmatpush3.bf16.msra.mxu0 %v2857_v36  ;;  %2696 = vmatpush3.bf16.msra.mxu1 %v2858_v37  ;;  %v2899_v36 = vld [vmem:[%s3609_s3 + $0x278] sm:$0xff]  }
 0x109   : > { %2675 = vmatprep.subr.bf16.mxu0 %v2859_v38  ;;  %2697 = vmatprep.subr.bf16.mxu1 %v2860_v39  ;;  %v2900_v37 = vld [vmem:[%s3609_s3 + $0x2f8] sm:$0xff]  }
 0x10a   : > { %v2901_v38 = vld [vmem:[%s3609_s3 + $0x238] sm:$0xff]  }
 0x10b   : > { %v2902_v39 = vld [vmem:[%s3609_s3 + $0x2b8] sm:$0xff]  }
 0x10c   : > { %2676 = vmatpush3.bf16.msra.mxu0 %v2861_v40  ;;  %2698 = vmatpush3.bf16.msra.mxu1 %v2862_v41  ;;  %v3418_v40 = vld [vmem:[%s3607_s1 + $0x30] sm:$0xff] }
 0x10d   : > { %2677 = vmatprep.subr.bf16.mxu0 %v2863_v42  ;;  %2699 = vmatprep.subr.bf16.mxu1 %v2864_v43  ;;  %v3423_v41 = vld [vmem:[%s3607_s1 + $0x70] sm:$0xff]  ;;  %v3428_v42 = vld [vmem:[%s3607_s1 + $0x38] sm:$0xff] }
 0x10e   : > { %v2575_v43 = vcombine.high %v3418_v40, %v3423_v41 }
 0x110   : > { %2678 = vmatpush3.bf16.msra.mxu0 %v2865_v45  ;;  %2700 = vmatpush3.bf16.msra.mxu1 %v2866_v46  ;;  %v3435_v45 = vld [vmem:[%s3607_s1 + $0x78] sm:$0xff]  ;;  %v2574_v46 = vcombine.low %v3418_v40, %v3423_v41  ;;  %v2905_v40 = vld [vmem:[%s3609_s3 + $0x300] sm:$0xff]  }
 0x111   : > { %2679 = vmatprep.subr.bf16.mxu0 %v2867_v48  ;;  %2701 = vmatprep.subr.bf16.mxu1 %v2868_v49  ;;  %v2576_v48 = vcombine.low %v3428_v42, %v3435_v45  ;;  %v2577_v49 = vcombine.high %v3428_v42, %v3435_v45  ;;  %v2906_v41 = vld [vmem:[%s3609_s3 + $0x380] sm:$0xff]   ;;  %v2907_v42 = vld [vmem:[%s3609_s3 + $0x348] sm:$0xff]  }
 0x112   : > { %v2909_v45 = vld [vmem:[%s3609_s3 + $0x308] sm:$0xff]  }
 0x114   : > { %2680 = vmatpush3.bf16.msra.mxu0 %v2869_v54  ;;  %2702 = vmatpush3.bf16.msra.mxu1 %v2870_v55 }
 0x115   : > { %1376 = vmatprep.subr.bf16.mxu0 %v2533_v56  ;;  %1419 = vmatprep.subr.bf16.mxu1 %v2535_v57 }
 0x117   : > { %1257 = vmatmul.mubr.bf16.vlgmr.msra.gmra.mrb[12].mxu0 %v3192_v44  ;;  %1298 = vmatmul.mubr.bf16.vlgmr.msra.gmra.mrb[12].mxu1 %v3195_v47  ;;  %v2871_v44 = vld [vmem:[%s3609_s3 + $0x240] sm:$0xff]  }
 0x118   : > { %1377 = vmatpush1.bf16.msra.mxu0 %v2532_v62  ;;  %1420 = vmatpush1.bf16.msra.mxu1 %v2534_v63  ;;  %v2872_v47 = vld [vmem:[%s3609_s3 + $0x2c0] sm:$0xff]  }
 0x119   : > { %1378 = vmatprep.subr.bf16.mxu0 %v2537_v0  ;;  %1421 = vmatprep.subr.bf16.mxu1 %v2539_v1 }
 0x11a   : > { %1408 = vmatprep.mubr.bf16.mxu0 %v2949_v8  ;;  %1451 = vmatprep.mubr.bf16.mxu1 %v2949_v8 }
 0x11c   : > { %1379 = vmatpush1.bf16.msra.mxu0 %v2536_v2  ;;  %1422 = vmatpush1.bf16.msra.mxu1 %v2538_v3 }
 0x11d   : > { %2709 = vmatprep.subr.bf16.mxu0 %v2871_v44  ;;  %2731 = vmatprep.subr.bf16.mxu1 %v2872_v47 }
 0x11f   : > { %2540 = vmatmul.mubr.msk.bf16.vlgmr.msra.gmra.mrb[16].mxu0 %vm360_vm0, %v3054_v26  ;;  %2541 = vmatmul.mubr.msk.bf16.vlgmr.msra.gmra.mrb[16].mxu1 %vm360_vm0, %v3054_v26 }
 0x120   : > { %2710 = vmatpush3.bf16.msra.mxu0 %v2873_v4  ;;  %2732 = vmatpush3.bf16.msra.mxu1 %v2874_v5  ;;  %v1314_v4 = vld [vmem:[%s3608_s2 + $0x8] sm:$0xf] }
 0x121   : > { %2711 = vmatprep.subr.bf16.mxu0 %v2875_v7  ;;  %2733 = vmatprep.subr.bf16.mxu1 %v2876_v12 }
 0x124   : > { %2712 = vmatpush3.bf16.msra.mxu0 %v2877_v13  ;;  %2734 = vmatpush3.bf16.msra.mxu1 %v2878_v14 }
 0x125   : > { %2713 = vmatprep.subr.bf16.mxu0 %v2879_v15  ;;  %2735 = vmatprep.subr.bf16.mxu1 %v2880_v16 }
 0x128   : > { %2714 = vmatpush3.bf16.msra.mxu0 %v2881_v17  ;;  %2736 = vmatpush3.bf16.msra.mxu1 %v2882_v18  ;;  %v1319_v17 = vrot.slane %v1314_v4, %v3171_v6 }
 0x129   : > { %2715 = vmatprep.subr.bf16.mxu0 %v2883_v19  ;;  %2737 = vmatprep.subr.bf16.mxu1 %v2884_v20  ;;  %v1327_v20 = vrot.slane %v1314_v4, %v3176_v9 }
 0x12c   : > { %2716 = vmatpush3.bf16.msra.mxu0 %v2885_v21  ;;  %2738 = vmatpush3.bf16.msra.mxu1 %v2886_v22  ;;  %v1323_v21 = vrot.slane %v1314_v4, %v3178_v10  ;;  %v1331_v22 = vrot.slane %v1314_v4, %v3180_v11  ;;  %v2904_v4 = vld [vmem:[%s3609_s3 + $0x3c0] sm:$0xff]  }
 0x12d   : > { %2717 = vmatprep.subr.bf16.mxu0 %v2887_v23  ;;  %2739 = vmatprep.subr.bf16.mxu1 %v2888_v24 }
 0x130   : > { %2718 = vmatpush3.bf16.msra.mxu0 %v2889_v25  ;;  %2740 = vmatpush3.bf16.msra.mxu1 %v2890_v27 }
 0x131   : > { %2719 = vmatprep.subr.bf16.mxu0 %v2891_v28  ;;  %2741 = vmatprep.subr.bf16.mxu1 %v2892_v29 }
 0x134   : > { %2720 = vmatpush3.bf16.msra.mxu0 %v2893_v30  ;;  %2742 = vmatpush3.bf16.msra.mxu1 %v2894_v31 }
 0x135   : > { %2721 = vmatprep.subr.bf16.mxu0 %v2895_v32  ;;  %2743 = vmatprep.subr.bf16.mxu1 %v2896_v33 }
 0x138   : > { %2722 = vmatpush3.bf16.msra.mxu0 %v2897_v34  ;;  %2744 = vmatpush3.bf16.msra.mxu1 %v2898_v35 }
 0x139   : > { %2723 = vmatprep.subr.bf16.mxu0 %v2899_v36  ;;  %2745 = vmatprep.subr.bf16.mxu1 %v2900_v37 }
 0x13c   : > { %2724 = vmatpush3.bf16.msra.mxu0 %v2901_v38  ;;  %2746 = vmatpush3.bf16.msra.mxu1 %v2902_v39 }
 0x13d   : > { %1884 = vmatprep.subr.bf16.mxu0 %v2575_v43  ;;  %1927 = vmatprep.subr.bf16.mxu1 %v2577_v49 }
 0x1ca   : > { %v2637_v50 = vpop.f32.mrb[8].mxu0  ;;  %v2659_v51 = vpop.f32.mrb[8].mxu1 }
 0x1cb   : > { %v2638_v52 = vpop.f32.mrb[9].mxu0  ;;  %v2660_v54 = vpop.f32.mrb[9].mxu1 }
 0x1cc   : > { %v2639_v53 = vadd.f32 %v2638_v52, %v2637_v50  ;;  %v2640_v55 = vpop.f32.mrb[10].mxu0  ;;  %v2661_v56 = vadd.f32 %v2660_v54, %v2659_v51  ;;  %v2662_v57 = vpop.f32.mrb[10].mxu1 }
 0x1cd   : > { %v2641_v58 = vpop.f32.mrb[11].mxu0  ;;  %v2663_v60 = vpop.f32.mrb[11].mxu1 }
 0x1ce   : > { %v2642_v59 = vadd.f32 %v2641_v58, %v2640_v55  ;;  %v1026_v61 = vadd.f32 %v2661_v56, %v2639_v53  ;;  %v2664_v62 = vadd.f32 %v2663_v60, %v2662_v57  ;;  %v1818_v55 = vld [vmem:[%s3607_s1 + $0xb0] sm:$0xff]  ;;  %v1819_v60 = vld [vmem:[%s3607_s1 + $0xb8] sm:$0xff] }
 0x1cf   : > { %v1820_v56 = vld [vmem:[%s3607_s1 + $0xf0] sm:$0xff] }
 0x1d0   : > { %v1029_v63 = vadd.f32 %v2664_v62, %v2642_v59 }
 0x1ea   : > { %v2681_v0 = vpop.f32.mrb[12].mxu0  ;;  %v2703_v1 = vpop.f32.mrb[12].mxu1 }
 0x1eb   : > { %v2682_v2 = vpop.f32.mrb[13].mxu0  ;;  %v2704_v44 = vpop.f32.mrb[13].mxu1 }
 0x1ec   : > { %v2683_v3 = vadd.f32 %v2682_v2, %v2681_v0  ;;  %v2684_v47 = vpop.f32.mrb[14].mxu0  ;;  %v2705_v5 = vadd.f32 %v2704_v44, %v2703_v1  ;;  %v2706_v7 = vpop.f32.mrb[14].mxu1  ;;  %v2579_v1 = vcombine.high %v1818_v55, %v1820_v56 }
 0x1ed   : > { %v2685_v12 = vpop.f32.mrb[15].mxu0  ;;  %v2707_v15 = vpop.f32.mrb[15].mxu1 }
 0x1ee   : > { %v1259_v13 = vadd.f32 %v2683_v3, %v1026_v61  ;;  %v2686_v14 = vadd.f32 %v2685_v12, %v2684_v47  ;;  %v2708_v16 = vadd.f32 %v2707_v15, %v2706_v7  ;;  %v1821_v61 = vld [vmem:[%s3607_s1 + $0xf8] sm:$0xff]  ;;  %v2578_v3 = vcombine.low %v1818_v55, %v1820_v56  ;;  %v2903_v47 = vld [vmem:[%s3609_s3 + $0x340] sm:$0xff]   ;;  %v2914_v7 = vld [vmem:[%s3609_s3 + $0x390] sm:$0xff]  }
 0x1ef   : > { %v2581_v2 = vcombine.high %v1819_v60, %v1821_v61  ;;  %v2580_v44 = vcombine.low %v1819_v60, %v1821_v61  ;;  %v2915_v12 = vld [vmem:[%s3609_s3 + $0x358] sm:$0xff]  }
 0x1f0   : > { %v3447_v18 = vadd.f32 %v2705_v5, %v1259_v13  ;;  %v1262_v19 = vadd.f32 %v2686_v14, %v1029_v63  ;;  %v2913_v5 = vld [vmem:[%s3609_s3 + $0x310] sm:$0xff]   ;;  %v2916_v13 = vld [vmem:[%s3609_s3 + $0x3d8] sm:$0xff]  }
 0x1f1   : > { %v2917_v14 = vld [vmem:[%s3609_s3 + $0x318] sm:$0xff]  }
 0x1f2   : > { %v3452_v23 = vadd.f32 %v2708_v16, %v1262_v19  ;;  %v1410_v24 = vpop.f32.mrb[16].mxu0  ;;  %v1453_v27 = vpop.f32.mrb[16].mxu1  ;;  %v2918_v15 = vld [vmem:[%s3609_s3 + $0x398] sm:$0xff]   ;;  %v2919_v16 = vld [vmem:[%s3609_s3 + $0x360] sm:$0xff]  }
 0x1f3   : > { %v1411_v25 = vadd.f32 %v1410_v24, %v1319_v17  ;;  %v1412_v28 = vpop.f32.mrb[17].mxu0  ;;  %v1454_v29 = vadd.f32 %v1453_v27, %v1327_v20  ;;  %v1455_v31 = vpop.f32.mrb[17].mxu1  ;;  %v2921_v19 = vld [vmem:[%s3609_s3 + $0x320] sm:$0xff]   ;;  %v2925_v24 = vld [vmem:[%s3609_s3 + $0x328] sm:$0xff]   ;;  %v2927_v27 = vld [vmem:[%s3609_s3 + $0x370] sm:$0xff]  }
 0x1f4   : > { %v1413_v30 = vadd.f32 %v1412_v28, %v1323_v21  ;;  %v1414_v32 = vpop.f32.mrb[18].mxu0  ;;  %v1456_v33 = vadd.f32 %v1455_v31, %v1331_v22  ;;  %v1457_v35 = vpop.f32.mrb[18].mxu1  ;;  %v2928_v28 = vld [vmem:[%s3609_s3 + $0x3f0] sm:$0xff]   ;;  %v2931_v31 = vld [vmem:[%s3609_s3 + $0x378] sm:$0xff]  }
 0x1f5   : > { %v1415_v34 = vadd.f32 %v1414_v32, %v1319_v17  ;;  %v1416_v36 = vpop.f32.mrb[19].mxu0  ;;  %v1458_v37 = vadd.f32 %v1457_v35, %v1327_v20  ;;  %v1459_v39 = vpop.f32.mrb[19].mxu1  ;;  %v1462_v43 = vmax.f32 %v1411_v25, 0.0  ;;  %v1464_v51 = vmax.f32 %v1454_v29, 0.0  ;;  %v2920_v17 = vld [vmem:[%s3609_s3 + $0x3e0] sm:$0xff]   ;;  %v2926_v25 = vld [vmem:[%s3609_s3 + $0x3a8] sm:$0xff]  }
 0x1f6   : > { %v1417_v38 = vadd.f32 %v1416_v36, %v1323_v21  ;;  %v1460_v50 = vadd.f32 %v1459_v39, %v1331_v22  ;;  %v1463_v52 = vmax.f32 %v1413_v30, 0.0  ;;  %v1465_v57 = vmax.f32 %v1456_v33, 0.0  ;;  %v2922_v20 = vld [vmem:[%s3609_s3 + $0x3a0] sm:$0xff]   ;;  %v2923_v21 = vld [vmem:[%s3609_s3 + $0x368] sm:$0xff]   ;;  %v2929_v29 = vld [vmem:[%s3609_s3 + $0x330] sm:$0xff]  }
 0x1f7   : > { %v1466_v49 = vmax.f32 %v1415_v34, 0.0  ;;  %v1468_v53 = vmax.f32 %v1458_v37, 0.0  ;;  %v2924_v22 = vld [vmem:[%s3609_s3 + $0x3e8] sm:$0xff]   ;;  %v2930_v30 = vld [vmem:[%s3609_s3 + $0x3b0] sm:$0xff]   ;;  %v2932_v32 = vld [vmem:[%s3609_s3 + $0x3f8] sm:$0xff]  }
 0x1f8   : > { %v1467_v54 = vmax.f32 %v1417_v38, 0.0  ;;  %v1469_v59 = vmax.f32 %v1460_v50, 0.0  ;;  %v2933_v33 = vld [vmem:[%s3609_s3 + $0x338] sm:$0xff]  }
 0x1f9   : > { %v1470_v58 = vpack.c.bf16 %v1466_v49, %v1462_v43  ;;  %v1472_v62 = vpack.c.bf16 %v1468_v53, %v1464_v51  ;;  %v2934_v34 = vld [vmem:[%s3609_s3 + $0x3b8] sm:$0xff]   ;;  %v1822_v49 = vld [vmem:[%s3608_s2 + $0xc] sm:$0xf] }
 0x1fa   : > { %v1471_v63 = vpack.c.bf16 %v1467_v54, %v1463_v52  ;;  %v1473_v0 = vpack.c.bf16 %v1469_v59, %v1465_v57  ;;  %v1827_v57 = vrot.slane %v1822_v49, %v3171_v6  ;;  %v1831_v59 = vrot.slane %v1822_v49, %v3178_v10 }
 0x1fc   : > { %1762 = vmatprep.mubr.bf16.mxu0 %v1471_v63  ;;  %1803 = vmatprep.mubr.bf16.mxu1 %v1473_v0 }
 0x1fd   : > { %1763 = vmatmul.mubr.bf16.vlgmr.msra.gmra.mrb[20].mxu0 %v1470_v58  ;;  %1804 = vmatmul.mubr.bf16.vlgmr.msra.gmra.mrb[20].mxu1 %v1472_v62  ;;  %v1835_v58 = vrot.slane %v1822_v49, %v3176_v9  ;;  %v1839_v62 = vrot.slane %v1822_v49, %v3180_v11 }
 0x1fe   : > { %1885 = vmatpush1.bf16.msra.mxu0 %v2574_v46  ;;  %1928 = vmatpush1.bf16.msra.mxu1 %v2576_v48  ;;  %v2910_v46 = vld [vmem:[%s3609_s3 + $0x388] sm:$0xff]   ;;  %v2911_v48 = vld [vmem:[%s3609_s3 + $0x350] sm:$0xff]  }
 0x1ff   : > { %1886 = vmatprep.subr.bf16.mxu0 %v2579_v1  ;;  %1929 = vmatprep.subr.bf16.mxu1 %v2581_v2 }
 0x200   : > { %1916 = vmatprep.mubr.bf16.mxu0 %v2949_v8  ;;  %1959 = vmatprep.mubr.bf16.mxu1 %v2949_v8  ;;  %v2908_v8 = vld [vmem:[%s3609_s3 + $0x3c8] sm:$0xff]  }
 0x202   : > { %1887 = vmatpush1.bf16.msra.mxu0 %v2578_v3  ;;  %1930 = vmatpush1.bf16.msra.mxu1 %v2580_v44 }
 0x203   : > { %2753 = vmatprep.subr.bf16.mxu0 %v2903_v47  ;;  %2775 = vmatprep.subr.bf16.mxu1 %v2904_v4 }
 0x205   : > { %2582 = vmatmul.mubr.msk.bf16.vlgmr.msra.gmra.mrb[24].mxu0 %vm360_vm0, %v3054_v26  ;;  %2583 = vmatmul.mubr.msk.bf16.vlgmr.msra.gmra.mrb[24].mxu1 %vm360_vm0, %v3054_v26  ;;  %v2912_v26 = vld [vmem:[%s3609_s3 + $0x3d0] sm:$0xff]  }
 0x206   : > { %2754 = vmatpush3.bf16.msra.mxu0 %v2905_v40  ;;  %2776 = vmatpush3.bf16.msra.mxu1 %v2906_v41 }
 0x207   : > { %2755 = vmatprep.subr.bf16.mxu0 %v2907_v42  ;;  %2777 = vmatprep.subr.bf16.mxu1 %v2908_v8 }
 0x20a   : > { %2756 = vmatpush3.bf16.msra.mxu0 %v2909_v45  ;;  %2778 = vmatpush3.bf16.msra.mxu1 %v2910_v46 }
 0x20b   : > { %2757 = vmatprep.subr.bf16.mxu0 %v2911_v48  ;;  %2779 = vmatprep.subr.bf16.mxu1 %v2912_v26 }
 0x20e   : > { %2758 = vmatpush3.bf16.msra.mxu0 %v2913_v5  ;;  %2780 = vmatpush3.bf16.msra.mxu1 %v2914_v7 }
 0x20f   : > { %2759 = vmatprep.subr.bf16.mxu0 %v2915_v12  ;;  %2781 = vmatprep.subr.bf16.mxu1 %v2916_v13 }
 0x212   : > { %2760 = vmatpush3.bf16.msra.mxu0 %v2917_v14  ;;  %2782 = vmatpush3.bf16.msra.mxu1 %v2918_v15 }
 0x213   : > { %2761 = vmatprep.subr.bf16.mxu0 %v2919_v16  ;;  %2783 = vmatprep.subr.bf16.mxu1 %v2920_v17 }
 0x216   : > { %2762 = vmatpush3.bf16.msra.mxu0 %v2921_v19  ;;  %2784 = vmatpush3.bf16.msra.mxu1 %v2922_v20 }
 0x217   : > { %2763 = vmatprep.subr.bf16.mxu0 %v2923_v21  ;;  %2785 = vmatprep.subr.bf16.mxu1 %v2924_v22 }
 0x21a   : > { %2764 = vmatpush3.bf16.msra.mxu0 %v2925_v24  ;;  %2786 = vmatpush3.bf16.msra.mxu1 %v2926_v25 }
 0x21b   : > { %2765 = vmatprep.subr.bf16.mxu0 %v2927_v27  ;;  %2787 = vmatprep.subr.bf16.mxu1 %v2928_v28 }
 0x21e   : > { %2766 = vmatpush3.bf16.msra.mxu0 %v2929_v29  ;;  %2788 = vmatpush3.bf16.msra.mxu1 %v2930_v30 }
 0x21f   : > { %2767 = vmatprep.subr.bf16.mxu0 %v2931_v31  ;;  %2789 = vmatprep.subr.bf16.mxu1 %v2932_v32 }
 0x222   : > { %2768 = vmatpush3.bf16.msra.mxu0 %v2933_v33  ;;  %2790 = vmatpush3.bf16.msra.mxu1 %v2934_v34  ;;  %v2616_v33 = vld [vmem:[%s3610_s4] ss:$0 sm:$0xff] }
 0x2d0   : > { %v2725_v35 = vpop.f32.mrb[20].mxu0  ;;  %v2747_v36 = vpop.f32.mrb[20].mxu1 }
 0x2d1   : > { %v2726_v37 = vpop.f32.mrb[21].mxu0  ;;  %v2748_v39 = vpop.f32.mrb[21].mxu1 }
 0x2d2   : > { %v2727_v38 = vadd.f32 %v2726_v37, %v2725_v35  ;;  %v2728_v43 = vpop.f32.mrb[22].mxu0  ;;  %v2749_v50 = vadd.f32 %v2748_v39, %v2747_v36  ;;  %v2750_v51 = vpop.f32.mrb[22].mxu1  ;;  %v2940_v36 = vld [vmem:[%s3048_s14] sm:$0xff]  }
 0x2d3   : > { %v2729_v52 = vpop.f32.mrb[23].mxu0  ;;  %v2751_v54 = vpop.f32.mrb[23].mxu1  ;;  %v2331_v37 = vunpack.c.l.bf16 %v2940_v36 }
 0x2d4   : > { %v2730_v53 = vadd.f32 %v2729_v52, %v2728_v43  ;;  %v1806_v55 = vadd.f32 %v2749_v50, %v2727_v38  ;;  %v2752_v56 = vadd.f32 %v2751_v54, %v2750_v51  ;;  %v2332_v43 = vunpack.c.h.bf16 %v2940_v36 }
 0x2d6   : > { %v1812_v60 = vadd.f32 %v1806_v55, %v3447_v18  ;;  %v1809_v61 = vadd.f32 %v2752_v56, %v2730_v53 }
 0x2d8   : > { %v1918_v63 = vpop.f32.mrb[24].mxu0  ;;  %v1813_v0 = vadd.f32 %v1809_v61, %v3452_v23  ;;  %v1961_v2 = vpop.f32.mrb[24].mxu1 }
 0x2d9   : > { %v1919_v1 = vadd.f32 %v1918_v63, %v1827_v57  ;;  %v1920_v3 = vpop.f32.mrb[25].mxu0  ;;  %v1962_v44 = vadd.f32 %v1961_v2, %v1835_v58  ;;  %v1963_v4 = vpop.f32.mrb[25].mxu1 }
 0x2da   : > { %v1921_v47 = vadd.f32 %v1920_v3, %v1831_v59  ;;  %v1922_v40 = vpop.f32.mrb[26].mxu0  ;;  %v1964_v6 = vadd.f32 %v1963_v4, %v1839_v62  ;;  %v1965_v9 = vpop.f32.mrb[26].mxu1 }
 0x2db   : > { %v1923_v41 = vadd.f32 %v1922_v40, %v1827_v57  ;;  %v1924_v42 = vpop.f32.mrb[27].mxu0  ;;  %v1966_v10 = vadd.f32 %v1965_v9, %v1835_v58  ;;  %v1967_v18 = vpop.f32.mrb[27].mxu1  ;;  %v1970_v45 = vmax.f32 %v1919_v1, 0.0  ;;  %v1972_v48 = vmax.f32 %v1962_v44, 0.0  ;;  %v2617_v40 = vld [vmem:[%s3611_s5] ss:$0 sm:$0xff] }
 0x2dc   : > { %v1925_v8 = vadd.f32 %v1924_v42, %v1831_v59  ;;  %v1968_v11 = vadd.f32 %v1967_v18, %v1839_v62  ;;  %v1971_v26 = vmax.f32 %v1921_v47, 0.0  ;;  %v1973_v7 = vmax.f32 %v1964_v6, 0.0 }
 0x2dd   : > { %v1974_v46 = vmax.f32 %v1923_v41, 0.0  ;;  %v1976_v23 = vmax.f32 %v1966_v10, 0.0  ;;  %v2618_v41 = vld [vmem:[%s3612_s6] ss:$0 sm:$0xff] }
 0x2de   : > { %v1975_v5 = vmax.f32 %v1925_v8, 0.0  ;;  %v1977_v13 = vmax.f32 %v1968_v11, 0.0 }
 0x2df   : > { %v1978_v12 = vpack.c.bf16 %v1974_v46, %v1970_v45  ;;  %v1980_v14 = vpack.c.bf16 %v1976_v23, %v1972_v48 }
 0x2e0   : > { %v1979_v15 = vpack.c.bf16 %v1975_v5, %v1971_v26  ;;  %v1981_v16 = vpack.c.bf16 %v1977_v13, %v1973_v7 }
 0x2e2   : > { %2270 = vmatprep.mubr.bf16.mxu0 %v1979_v15  ;;  %2311 = vmatprep.mubr.bf16.mxu1 %v1981_v16 }
 0x2e3   : > { %2271 = vmatmul.mubr.bf16.vlgmr.msra.gmra.mrb[28].mxu0 %v1978_v12  ;;  %2312 = vmatmul.mubr.bf16.vlgmr.msra.gmra.mrb[28].mxu1 %v1980_v14 }
 0x3b6   : > { %v2769_v17 = vpop.f32.mrb[28].mxu0  ;;  %v2791_v19 = vpop.f32.mrb[28].mxu1 }
 0x3b7   : > { %v2770_v20 = vpop.f32.mrb[29].mxu0  ;;  %v2792_v22 = vpop.f32.mrb[29].mxu1 }
 0x3b8   : > { %v2771_v21 = vadd.f32 %v2770_v20, %v2769_v17  ;;  %v2772_v24 = vpop.f32.mrb[30].mxu0  ;;  %v2793_v25 = vadd.f32 %v2792_v22, %v2791_v19  ;;  %v2794_v27 = vpop.f32.mrb[30].mxu1 }
 0x3b9   : > { %v2773_v28 = vpop.f32.mrb[31].mxu0  ;;  %v2795_v30 = vpop.f32.mrb[31].mxu1 }
 0x3ba   : > { %v2774_v29 = vadd.f32 %v2773_v28, %v2772_v24  ;;  %v2314_v31 = vadd.f32 %v2793_v25, %v2771_v21  ;;  %v2796_v32 = vadd.f32 %v2795_v30, %v2794_v27 }
 0x3bc   : > { %v2320_v34 = vadd.f32 %v2314_v31, %v1812_v60  ;;  %v2317_v35 = vadd.f32 %v2796_v32, %v2774_v29 }
 0x3be   : > { %v2321_v38 = vadd.f32 %v2317_v35, %v1813_v0  ;;  %v2329_v39 = vadd.f32 %v2616_v33, %v2320_v34 }
 0x3c0   : > { %v2333_v49 = vadd.f32 %v2331_v37, %v2329_v39  ;;  %v2330_v50 = vadd.f32 %v2616_v33, %v2321_v38 }
 0x3c2   : > { %v2335_v51 = vsel %vm360_vm0, %v2333_v49, 0.0  ;;  %v2334_v52 = vadd.f32 %v2332_v43, %v2330_v50 }
 0x3c3   : > { %2336 = vadd.xlane.f32.xlu0 %v2335_v51 }
 0x3c4   : > { %v2338_v53 = vsel %vm360_vm0, %v2334_v52, 0.0 }
 0x3c7   : > { %2339 = vadd.xlane.f32.xlu0 %v2338_v53 }
 0x450   : > { %v2337_v54 = vpop.xlane.xlu0 %2336 }
 0x451   : > { %v2342_v55 = vmul.f32 0.03125, %v2337_v54 }
 0x453   : > { %v2344_v56 = vsub.f32 %v2333_v49, %v2342_v55 }
 0x454   : > { %v2340_v57 = vpop.xlane.xlu0 %2339 }
 0x455   : > { %v2343_v58 = vmul.f32 0.03125, %v2340_v57  ;;  %v2346_v59 = vmul.f32 %v2344_v56, %v2344_v56 }
 0x457   : > { %v2345_v60 = vsub.f32 %v2334_v52, %v2343_v58  ;;  %v2348_v61 = vsel %vm360_vm0, %v2346_v59, 0.0 }
 0x458   : > { %2349 = vadd.xlane.f32.xlu1 %v2348_v61 }
 0x459   : > { %v2347_v62 = vmul.f32 %v2345_v60, %v2345_v60 }
 0x45b   : > { %v2351_v63 = vsel %vm360_vm0, %v2347_v62, 0.0 }
 0x45c   : > { %2352 = vadd.xlane.f32.xlu1 %v2351_v63 }
 0x4e5   : > { %v2350_v0 = vpop.xlane.xlu1 %2349 }
 0x4e6   : > { %v2354_v1 = vmul.f32 0.03125, %v2350_v0 }
 0x4e8   : > { %v2356_v2 = vadd.f32 1e-05, %v2354_v1 }
 0x4e9   : > { %v2353_v3 = vpop.xlane.xlu1 %2352 }
 0x4ea   : > { %2936 = vrsqrt.f32 %v2356_v2  ;;  %v2355_v44 = vmul.f32 0.03125, %v2353_v3 }
 0x4ec   : > { %v2357_v47 = vadd.f32 1e-05, %v2355_v44 }
 0x4ee   : > { %2938 = vrsqrt.f32 %v2357_v47 }
 0x4f4   : > { %v2937_v4 = vpop.eup %2936 }
 0x4f5   : > { %v2360_v6 = vmul.f32 %v2937_v4, %v2344_v56 }
 0x4f7   : > { %v2369_v9 = vmul.f32 %v2617_v40, %v2360_v6 }
 0x4f8   : > { %v2939_v42 = vpop.eup %2938 }
 0x4f9   : > { %v2378_v10 = vadd.f32 %v2618_v41, %v2369_v9  ;;  %v2361_v8 = vmul.f32 %v2939_v42, %v2345_v60 }
 0x4fb   : > { %2380 = vst.msk [vmem:[%s280_s23] sm:$0xff] %vm360_vm0, %v2378_v10  ;;  %v2370_v18 = vmul.f32 %v2617_v40, %v2361_v8 }
 0x4fd   : > { %v2379_v45 = vadd.f32 %v2618_v41, %v2370_v18 }
 0x4ff   : > { %2381 = vst.msk [vmem:[%s280_s23 + $0x8] sm:$0xff] %vm360_vm0, %v2379_v45 }
 0x500 PF: > { %s17_s24 = sadd.s32 1, %s2947_s24  }
 0x501   : > { %p14_p4 = scmp.ge.s32.totalorder %s17_s24, 4  }
 0x503   :  { %16 = sbr.rel (!%p14_p4) target bundleno = 1 (0x1), region = 78 }

// kernel: transformer_forward.8
= control target key start
LH: loop header
LB: loop body
LE: loop exit
PB: predicated region body
PF: predicated region fallthrough
CT: control target
= control target key end

     0   :  { %13 = vsyncpa [#allocation3], 0  ;;  %s13104_s0 = inlined_call_operand.vmem [shape: bf16[16,2,32], index: 0, kind: input, shape index: {}]   ;;  %s13105_s1 = inlined_call_operand.vmem [shape: bf16[1,2,32], index: 1, kind: input, shape index: {}]   ;;  %s13106_s2 = inlined_call_operand.hbm [shape: bf16[32,96], index: 2, kind: input, shape index: {}]   ;;  %s13107_s3 = inlined_call_operand.hbm [shape: f32[1,96], index: 3, kind: input, shape index: {}]   ;;  %s13108_s4 = inlined_call_operand.hbm [shape: bf16[32,32], index: 4, kind: input, shape index: {}]   ;;  %s13109_s5 = inlined_call_operand.hbm [shape: f32[1,32], index: 5, kind: input, shape index: {}]   ;;  %s13110_s6 = inlined_call_operand.hbm [shape: f32[1,32], index: 6, kind: input, shape index: {}]   ;;  %s13111_s7 = inlined_call_operand.hbm [shape: f32[1,32], index: 7, kind: input, shape index: {}]   ;;  %s13112_s8 = inlined_call_operand.vmem [shape: bf16[16,2,32], index: 8, kind: output, shape index: {}]  }
   0x1   :  { %14 = vsyncpa [#allocation5], 0 }
   0x2   :  { %15 = vsyncpa [#allocation8], 0 }
   0x3   :  { %16 = vsyncpa [#allocation11], 0  ;;  %s10929_s27 = smov 0  }
   0x4 LB: > { %s10844_s28 = smov [#allocation4]   ;;  %s8760_s30 = sadd.s32 4294967295, %s10842_s27   ;;  %s10842_s27 = sphi %s10929_s27, %s22_s27  }
   0x5   : > { %s255_s29 = sshll.u32 %s10844_s28, 4  ;;  %p8762_p0 = scmp.ge.s32.totalorder %s10842_s27, 1  ;;  %s10943_s29 = int_to_ptr.vmem [resolvable:$true] %s255_s29 }
   0x6   : > { %p226_p1 = scmp.lt.s32.totalorder %s10842_s27, 3  ;;  %p10939_p2 = scmp.eq.s32.totalorder %s8760_s30, 0 }
   0x7   : > { %s10845_s11 = smov [#allocation7]   ;;  %s10846_s13 = smov [#allocation2]  }
   0x8   : > { %s13137_s9 = scalar_select %p10939_p2, 1, 0 }
   0x9   : > { %p10945_p3 = pnand %p8762_p0, %p226_p1  ;;  %s279_s12 = sshll.u32 %s10845_s11, 4  ;;  %s10951_s12 = int_to_ptr.vmem [resolvable:$true] %s279_s12 }
   0xa   : > { %s241_s14 = sshll.u32 %s10846_s13, 4  ;;  %s10847_s16 = smov [#allocation6]   ;;  %s10959_s14 = int_to_ptr.vmem [resolvable:$true] %s241_s14 }
   0xb   : > { %s13138_s10 = scalar_select %p10945_p3, 1, 0 }
   0xc   : > { %p10157_p4 = pneg %p10945_p3  ;;  %s10961_s17 = sshll.u32 %s10847_s16, 4  ;;  %s266_s17 = int_to_ptr.vmem [resolvable:$true] %s10961_s17 }
   0xd   : > { %s10652_s20 = scalar_lea.hbm %s13107_s3, 16 }
   0xe   : > { %p10955_p5 = pnand %p10939_p2, %p10157_p4  ;;  %p10653_p6 = scmp.ne.s32.totalorder %s13107_s3, %s10652_s20 }
   0xf   : > { %p10659_p10 = scmp.lt.u32.totalorder %s10652_s20, %s13107_s3 }
  0x10   : > { %p10971_p7 = pneg %p10955_p5 }
  0x12   : > { %p10655_p8 = pnand %p10971_p7, %p10653_p6 }
  0x14   : > { %p10656_p9 = pneg %p10655_p8 }
  0x16   : > { %p10661_p11 = pnand %p10659_p10, %p10656_p9 }
  0x18   : > { %10664 = shalt.err (!%p10661_p11)
}
  0x19   : > { %s10665_s26 = scalar_lea.vmem %s10943_s29, 16  ;;  %s10672_s28 = scalar_lea.vmem %s10943_s29, 32 }
  0x1a   : > { %p10666_p12 = scmp.ne.s32.totalorder %s10943_s29, %s10665_s26  ;;  %p10673_p1 = scmp.lt.s32.totalorder %s10943_s29, %s10943_s29 }
  0x1b   : > { %p10674_p4 = scmp.lt.s32.totalorder %s10672_s28, %s10665_s26 }
  0x1c   : > { %p10668_p13 = pnand %p10666_p12, %p10971_p7 }
  0x1d   : > { %p10675_p6 = por %p10674_p4, %p10673_p1 }
  0x1e   : > { %p10669_p0 = pneg %p10668_p13 }
  0x20   : > { %p10676_p8 = pnand %p10675_p6, %p10669_p0 }
  0x22   : > { %10679 = shalt.err (!%p10676_p8)
}
  0x23   : > { %10163 = dma.hbm_to_vmem [thread:$0]  (!%p10955_p5), %s13107_s3, 16, %s10943_s29, [#allocation5]  }
  0x24   : > { %s10680_s19 = scalar_lea.hbm %s13109_s5, 16 }
  0x25   : > { %p10681_p9 = scmp.ne.s32.totalorder %s13109_s5, %s10680_s19  ;;  %p10687_p12 = scmp.lt.u32.totalorder %s10680_s19, %s13109_s5 }
  0x27   : > { %p10683_p10 = pnand %p10681_p9, %p10971_p7 }
  0x29   : > { %p10684_p11 = pneg %p10683_p10 }
  0x2b   : > { %p10689_p13 = pnand %p10687_p12, %p10684_p11 }
  0x2d   : > { %10692 = shalt.err (!%p10689_p13)
}
  0x2e   : > { %s10693_s29 = scalar_lea.vmem %s10951_s12, 16  ;;  %s10700_s25 = scalar_lea.vmem %s10951_s12, 32 }
  0x2f   : > { %p10694_p0 = scmp.ne.s32.totalorder %s10951_s12, %s10693_s29  ;;  %p10701_p6 = scmp.lt.s32.totalorder %s10951_s12, %s10951_s12 }
  0x30   : > { %p10702_p8 = scmp.lt.s32.totalorder %s10700_s25, %s10693_s29 }
  0x31   : > { %p10696_p1 = pnand %p10694_p0, %p10971_p7 }
  0x32   : > { %p10703_p9 = por %p10702_p8, %p10701_p6 }
  0x33   : > { %p10697_p4 = pneg %p10696_p1 }
  0x35   : > { %p10704_p10 = pnand %p10703_p9, %p10697_p4 }
  0x37   : > { %10707 = shalt.err (!%p10704_p10)
}
  0x38   : > { %10169 = dma.hbm_to_vmem [thread:$0]  (!%p10955_p5), %s13109_s5, 16, %s10951_s12, [#allocation8]  }
  0x39   : > { %s10708_s16 = scalar_lea.hbm %s13106_s2, 256 }
  0x3a   : > { %p10709_p11 = scmp.ne.s32.totalorder %s13106_s2, %s10708_s16  ;;  %p10715_p0 = scmp.lt.u32.totalorder %s10708_s16, %s13106_s2 }
  0x3c   : > { %p10711_p12 = pnand %p10709_p11, %p10971_p7 }
  0x3e   : > { %p10712_p13 = pneg %p10711_p12 }
  0x40   : > { %p10717_p1 = pnand %p10715_p0, %p10712_p13 }
  0x42   : > { %10720 = shalt.err (!%p10717_p1)
}
  0x43   : > { %s10721_s12 = scalar_lea.vmem %s10959_s14, 256  ;;  %p10729_p9 = scmp.lt.s32.totalorder %s10959_s14, %s10959_s14 }
  0x44   : > { %p10722_p4 = scmp.ne.s32.totalorder %s10959_s14, %s10721_s12  ;;  %p10730_p10 = scmp.lt.s32.totalorder %s10721_s12, %s10721_s12 }
  0x46   : > { %p10724_p6 = pnand %p10722_p4, %p10971_p7  ;;  %p10731_p11 = por %p10730_p10, %p10729_p9 }
  0x48   : > { %p10725_p8 = pneg %p10724_p6 }
  0x4a   : > { %p10732_p12 = pnand %p10731_p11, %p10725_p8 }
  0x4c   : > { %10735 = shalt.err (!%p10732_p12)
}
  0x4d   : > { %s10848_s22 = smov 64   ;;  %s10849_s24 = smov 4  }
  0x4e   : > { %10160 = dma.hbm_to_vmem [thread:$0]  (!%p10955_p5), %s13106_s2, 256, %s10959_s14, [#allocation3], %s10848_s22, %s10848_s22, %s10849_s24  }
  0x4f   : > { %s10736_s11 = scalar_lea.hbm %s13108_s4, 256 }
  0x50   : > { %p10737_p13 = scmp.ne.s32.totalorder %s13108_s4, %s10736_s11  ;;  %p10743_p4 = scmp.lt.u32.totalorder %s10736_s11, %s13108_s4 }
  0x52   : > { %p10739_p0 = pnand %p10737_p13, %p10971_p7 }
  0x54   : > { %p10740_p1 = pneg %p10739_p0 }
  0x56   : > { %p10745_p6 = pnand %p10743_p4, %p10740_p1 }
  0x58   : > { %10748 = shalt.err (!%p10745_p6)
}
  0x59   : > { %s10749_s20 = scalar_lea.vmem %s266_s17, 256  ;;  %p10757_p11 = scmp.lt.s32.totalorder %s266_s17, %s266_s17 }
  0x5a   : > { %p10750_p8 = scmp.ne.s32.totalorder %s266_s17, %s10749_s20  ;;  %p10758_p12 = scmp.lt.s32.totalorder %s10749_s20, %s10749_s20 }
  0x5c   : > { %p10752_p9 = pnand %p10750_p8, %p10971_p7  ;;  %p10759_p2 = por %p10758_p12, %p10757_p11 }
  0x5e   : > { %p10753_p10 = pneg %p10752_p9 }
  0x60   : > { %p10760_p3 = pnand %p10759_p2, %p10753_p10 }
  0x62   : > { %10763 = shalt.err (!%p10760_p3)
}
  0x63   : > { %10166 = dma.hbm_to_vmem [thread:$0]  (!%p10955_p5), %s13108_s4, 256, %s266_s17, [#allocation5], %s10848_s22, %s10848_s22, %s10849_s24  }
  0x64   : > { %s10850_s12 = smov [#allocation9]   ;;  %s10851_s25 = smov [#allocation10]  }
  0x65   : > { %s290_s29 = sshll.u32 %s10850_s12, 4  ;;  %s301_s26 = sshll.u32 %s10851_s25, 4  ;;  %s291_s29 = int_to_ptr.vmem [resolvable:$true] %s290_s29  ;;  %s302_s26 = int_to_ptr.vmem [resolvable:$true] %s301_s26 }
  0x66   : > { %s10764_s13 = scalar_lea.hbm %s13110_s6, 16 }
  0x67   : > { %p10765_p2 = scmp.ne.s32.totalorder %s13110_s6, %s10764_s13  ;;  %p10771_p0 = scmp.lt.u32.totalorder %s10764_s13, %s13110_s6 }
  0x69   : > { %p10767_p3 = pnand %p10765_p2, %p10971_p7 }
  0x6b   : > { %p10768_p13 = pneg %p10767_p3 }
  0x6d   : > { %p10773_p1 = pnand %p10771_p0, %p10768_p13 }
  0x6f   : > { %10776 = shalt.err (!%p10773_p1)
}
  0x70   : > { %s10777_s17 = scalar_lea.vmem %s291_s29, 16  ;;  %s10784_s22 = scalar_lea.vmem %s291_s29, 32 }
  0x71   : > { %p10778_p4 = scmp.ne.s32.totalorder %s291_s29, %s10777_s17  ;;  %p10785_p9 = scmp.lt.s32.totalorder %s291_s29, %s291_s29 }
  0x72   : > { %p10786_p10 = scmp.lt.s32.totalorder %s10784_s22, %s10777_s17 }
  0x73   : > { %p10780_p6 = pnand %p10778_p4, %p10971_p7 }
  0x74   : > { %p10787_p11 = por %p10786_p10, %p10785_p9 }
  0x75   : > { %p10781_p8 = pneg %p10780_p6 }
  0x77   : > { %p10788_p12 = pnand %p10787_p11, %p10781_p8 }
  0x79   : > { %10791 = shalt.err (!%p10788_p12)
}
  0x7a   : > { %10172 = dma.hbm_to_vmem [thread:$0]  (!%p10955_p5), %s13110_s6, 16, %s291_s29, [#allocation8]  }
  0x7b   : > { %s10792_s25 = scalar_lea.hbm %s13111_s7, 16 }
  0x7c   : > { %p10793_p2 = scmp.ne.s32.totalorder %s13111_s7, %s10792_s25  ;;  %p10799_p0 = scmp.lt.u32.totalorder %s10792_s25, %s13111_s7 }
  0x7e   : > { %p10795_p3 = pnand %p10793_p2, %p10971_p7 }
  0x80   : > { %p10796_p13 = pneg %p10795_p3 }
  0x82   : > { %p10801_p1 = pnand %p10799_p0, %p10796_p13 }
  0x84   : > { %10804 = shalt.err (!%p10801_p1)
}
  0x85   : > { %s10805_s18 = scalar_lea.vmem %s302_s26, 16  ;;  %s10812_s29 = scalar_lea.vmem %s302_s26, 32 }
  0x86   : > { %p10806_p4 = scmp.ne.s32.totalorder %s302_s26, %s10805_s18  ;;  %p10813_p9 = scmp.lt.s32.totalorder %s302_s26, %s302_s26 }
  0x87   : > { %p10814_p10 = scmp.lt.s32.totalorder %s10812_s29, %s10805_s18 }
  0x88   : > { %p10808_p6 = pnand %p10806_p4, %p10971_p7 }
  0x89   : > { %p10815_p11 = por %p10814_p10, %p10813_p9 }
  0x8a   : > { %p10809_p8 = pneg %p10808_p6 }
  0x8c   : > { %p10816_p12 = pnand %p10815_p11, %p10809_p8 }
  0x8e   : > { %10819 = shalt.err (!%p10816_p12)
}
  0x8f   : > { %10175 = dma.hbm_to_vmem [thread:$0]  (!%p10955_p5), %s13111_s7, 16, %s302_s26, [#allocation11]  }
  0x90   : > { %p13141_p2 = scmp.ne.s32.totalorder %s13138_s10, 0 }
  0x92   : > { %322 = sbr.rel (%p13141_p2) target bundleno = 6217 (0x1849), region = 52 }
  0x99   : > { %p13142_p3 = scmp.ne.s32.totalorder %s13137_s9, 0 }
  0x9b   : > { %10825 = dma.done.wait (%p13142_p3), [#allocation3], 256  }
  0x9c   : > { %10827 = vsyncadd (%p13142_p3), [#allocation3], 4294967040 }
  0x9d   : > { %10829 = dma.done.wait (%p13142_p3), [#allocation5], 272  }
  0x9e   : > { %10831 = vsyncadd (%p13142_p3), [#allocation5], 4294967024 }
  0x9f   : > { %10833 = dma.done.wait (%p13142_p3), [#allocation8], 32  }
  0xa0   : > { %10835 = vsyncadd (%p13142_p3), [#allocation8], 4294967264 }
  0xa1   : > { %10837 = dma.done.wait (%p13142_p3), [#allocation11], 16  }
  0xa2   : > { %10839 = vsyncadd (%p13142_p3), [#allocation11], 4294967280  ;;  %s8777_s10 = sshll.u32 %s8760_s30, 3  ;;  %v13116_v0 = vmov 0.0   ;;  %vm10853_vm0 = vmmov 0   ;;  %v11129_v1 = vld [vmem:[#allocation2] sm:$0xff]  }
  0xa3   : > { %9237 = vmatprep.subr.bf16.mxu0 %v13116_v0  ;;  %9245 = vmatprep.subr.bf16.mxu1 %v13116_v0  ;;  %p375_p5 = scmp.lt.s32.totalorder %s8777_s10, 15  ;;  %v11131_v2 = vld [vmem:[#allocation2 + $0x8] sm:$0xff]   ;;  %v401_v4 = vld [vmem:[%s13105_s1] sm:$0x1]  ;;  %vm442_vm1 = vcmask 261120   ;;  %s10854_s17 = smov 96  }
  0xa4   : > { %9241 = vmatprep.mubr.msk.bf16.mxu0 %vm10853_vm0, %v13116_v0  ;;  %9249 = vmatprep.mubr.msk.bf16.mxu1 %vm10853_vm0, %v13116_v0  ;;  %v402_v7 = vunpack.c.l.bf16 %v401_v4  ;;  %v8779_v37 = vld [vmem:[#allocation4] ss:$0 sm:$0xff]  ;;  %s10855_s22 = smov 64   ;;  %vm798_vm2 = vcmask 31744   ;;  %vm1291_vm3 = vcmask 1040384   ;;  %vm1188_vm4 = vcmask 9216  }
  0xa5   : > { %s13223_s10 = smov (!%p375_p5, %s8777_s10), 15  ;;  %9238 = vmatpush3.bf16.msra.mxu0 %v11129_v1  ;;  %9246 = vmatpush3.bf16.msra.mxu1 %v11129_v1  ;;  %s10856_s24 = smov 92   ;;  %vm1287_vm5 = vcmask 15360   ;;  %vm8063_vm6 = vcmask 64512   ;;  %vm8072_vm7 = vcmask 97280   ;;  %vm8081_vm8 = vcmask 130048  }
  0xa6   : > { %s11127_s30 = scalar_lea.vmem %s13104_s0, %s13223_s10  ;;  %9239 = vmatprep.subr.bf16.mxu0 %v13116_v0  ;;  %9247 = vmatprep.subr.bf16.mxu1 %v13116_v0  ;;  %s10857_s14 = smov 124   ;;  %vm8090_vm9 = vcmask 162816   ;;  %vm8099_vm10 = vcmask 195584   ;;  %vm8108_vm11 = vcmask 228352   ;;  %vm8500_vm12 = vcmask 254976  }
  0xa7   : > { %v385_v3 = vld [vmem:[%s11127_s30] sm:$0x1]  ;;  %v386_v5 = vld [vmem:[%s11127_s30 + $0x1] sm:$0x1]  ;;  %v387_v9 = vld [vmem:[%s11127_s30 + $0x2] sm:$0x1] }
  0xa8   : > { %v393_v6 = vunpack.c.l.bf16 %v385_v3  ;;  %v394_v8 = vunpack.c.l.bf16 %v386_v5  ;;  %v388_v10 = vld [vmem:[%s11127_s30 + $0x3] sm:$0x1]  ;;  %v395_v13 = vunpack.c.l.bf16 %v387_v9  ;;  %v389_v19 = vld [vmem:[%s11127_s30 + $0x4] sm:$0x1]  ;;  %v390_v20 = vld [vmem:[%s11127_s30 + $0x5] sm:$0x1] }
  0xa9   : > { %v396_v14 = vunpack.c.l.bf16 %v388_v10  ;;  %9240 = vmatpush3.bf16.msra.mxu0 %v11131_v2  ;;  %9248 = vmatpush3.bf16.msra.mxu1 %v11131_v2  ;;  %v397_v23 = vunpack.c.l.bf16 %v389_v19  ;;  %v398_v24 = vunpack.c.l.bf16 %v390_v20  ;;  %v391_v27 = vld [vmem:[%s11127_s30 + $0x6] sm:$0x1]  ;;  %v392_v28 = vld [vmem:[%s11127_s30 + $0x7] sm:$0x1]  ;;  %s10858_s21 = smov 60   ;;  %s10859_s12 = smov 88  }
  0xaa   : > { %v11144_v11 = vmul.f32 %v402_v7, %v393_v6  ;;  %v11146_v12 = vmul.f32 %v402_v7, %v394_v8  ;;  %9253 = vmatprep.subr.bf16.mxu0 %v13116_v0  ;;  %9261 = vmatprep.subr.bf16.mxu1 %v13116_v0  ;;  %v11158_v17 = vmul.f32 %v402_v7, %v395_v13  ;;  %v399_v31 = vunpack.c.l.bf16 %v391_v27  ;;  %s10860_s25 = smov 120   ;;  %s10861_s28 = smov 56  }
  0xab   : > { %v11160_v18 = vmul.f32 %v402_v7, %v396_v14  ;;  %v11182_v25 = vmul.f32 %v402_v7, %v397_v23  ;;  %v11184_v26 = vmul.f32 %v402_v7, %v398_v24  ;;  %v400_v32 = vunpack.c.l.bf16 %v392_v28  ;;  %s10862_s11 = smov 84   ;;  %s10863_s13 = smov 116  }
  0xac   : > { %13143 = vst [vmem:[#allocation16_spill] sm:$0xff] %v11144_v11  ;;  %13144 = vst [vmem:[#allocation17_spill] sm:$0xff] %v11146_v12  ;;  %v411_v15 = vpack.c.bf16 %v11144_v11, %v11144_v11  ;;  %v412_v16 = vpack.c.bf16 %v11146_v12, %v11146_v12  ;;  %v413_v21 = vpack.c.bf16 %v11158_v17, %v11158_v17  ;;  %s10864_s16 = smov 52   ;;  %s10865_s18 = smov 80   ;;  %vm8644_vm13 = vcmask 253952  }
  0xad   : > { %13145 = vst [vmem:[#allocation18_spill] sm:$0xff] %v11158_v17  ;;  %13146 = vst [vmem:[#allocation19_spill] sm:$0xff] %v11160_v18  ;;  %v414_v22 = vpack.c.bf16 %v11160_v18, %v11160_v18  ;;  %v415_v29 = vpack.c.bf16 %v11182_v25, %v11182_v25  ;;  %v416_v30 = vpack.c.bf16 %v11184_v26, %v11184_v26  ;;  %s10866_s29 = smov 112   ;;  %s10867_s19 = smov 48  }
  0xae   : > { %9242 = vmatmul.mubr.msk.bf16.vlgmr.msra.gmra.mrb[0].mxu0 %vm442_vm1, %v411_v15  ;;  %9250 = vmatmul.mubr.msk.bf16.vlgmr.msra.gmra.mrb[0].mxu1 %vm442_vm1, %v412_v16  ;;  %13147 = vst [vmem:[#allocation20_spill] sm:$0xff] %v11182_v25  ;;  %13148 = vst [vmem:[#allocation21_spill] sm:$0xff] %v11184_v26  ;;  %v11206_v33 = vmul.f32 %v402_v7, %v399_v31  ;;  %v11208_v34 = vmul.f32 %v402_v7, %v400_v32  ;;  %s10868_s20 = smov 76   ;;  %s10869_s9 = smov 108  }
  0xaf   : > { %9254 = vmatpush3.bf16.msra.mxu0 %v11129_v1  ;;  %9262 = vmatpush3.bf16.msra.mxu1 %v11129_v1  ;;  %s10870_s15 = smov 44   ;;  %s10871_s30 = smov 72  }
  0xb0   : > { %9255 = vmatprep.subr.bf16.mxu0 %v13116_v0  ;;  %9263 = vmatprep.subr.bf16.mxu1 %v13116_v0  ;;  %13149 = vst [vmem:[#allocation22_spill] sm:$0xff] %v11206_v33  ;;  %13150 = vst [vmem:[#allocation23_spill] sm:$0xff] %v11208_v34  ;;  %v417_v35 = vpack.c.bf16 %v11206_v33, %v11206_v33  ;;  %v418_v36 = vpack.c.bf16 %v11208_v34, %v11208_v34  ;;  %s10872_s23 = smov 104   ;;  %s10873_s26 = smov 40  }
  0xb1   : > { %9257 = vmatprep.mubr.msk.bf16.mxu0 %vm10853_vm0, %v13116_v0  ;;  %9265 = vmatprep.mubr.msk.bf16.mxu1 %vm10853_vm0, %v13116_v0 }
  0xb3   : > { %9256 = vmatpush3.bf16.msra.mxu0 %v11131_v2  ;;  %9264 = vmatpush3.bf16.msra.mxu1 %v11131_v2 }
  0xb4   : > { %9269 = vmatprep.subr.bf16.mxu0 %v13116_v0  ;;  %9277 = vmatprep.subr.bf16.mxu1 %v13116_v0 }
  0xb6   : > { %9258 = vmatmul.mubr.msk.bf16.vlgmr.msra.gmra.mrb[4].mxu0 %vm442_vm1, %v413_v21  ;;  %9266 = vmatmul.mubr.msk.bf16.vlgmr.msra.gmra.mrb[4].mxu1 %vm442_vm1, %v414_v22 }
  0xb7   : > { %9270 = vmatpush3.bf16.msra.mxu0 %v11129_v1  ;;  %9278 = vmatpush3.bf16.msra.mxu1 %v11129_v1 }
  0xb8   : > { %9271 = vmatprep.subr.bf16.mxu0 %v13116_v0  ;;  %9279 = vmatprep.subr.bf16.mxu1 %v13116_v0 }
  0xb9   : > { %9273 = vmatprep.mubr.msk.bf16.mxu0 %vm10853_vm0, %v13116_v0  ;;  %9281 = vmatprep.mubr.msk.bf16.mxu1 %vm10853_vm0, %v13116_v0 }
  0xbb   : > { %9272 = vmatpush3.bf16.msra.mxu0 %v11131_v2  ;;  %9280 = vmatpush3.bf16.msra.mxu1 %v11131_v2 }
  0xbc   : > { %9285 = vmatprep.subr.bf16.mxu0 %v13116_v0  ;;  %9293 = vmatprep.subr.bf16.mxu1 %v13116_v0 }
  0xbe   : > { %9274 = vmatmul.mubr.msk.bf16.vlgmr.msra.gmra.mrb[8].mxu0 %vm442_vm1, %v415_v29  ;;  %9282 = vmatmul.mubr.msk.bf16.vlgmr.msra.gmra.mrb[8].mxu1 %vm442_vm1, %v416_v30 }
  0xbf   : > { %9286 = vmatpush3.bf16.msra.mxu0 %v11129_v1  ;;  %9294 = vmatpush3.bf16.msra.mxu1 %v11129_v1 }
  0xc0   : > { %9287 = vmatprep.subr.bf16.mxu0 %v13116_v0  ;;  %9295 = vmatprep.subr.bf16.mxu1 %v13116_v0 }
  0xc1   : > { %9289 = vmatprep.mubr.msk.bf16.mxu0 %vm10853_vm0, %v13116_v0  ;;  %9297 = vmatprep.mubr.msk.bf16.mxu1 %vm10853_vm0, %v13116_v0 }
  0xc3   : > { %9288 = vmatpush3.bf16.msra.mxu0 %v11131_v2  ;;  %9296 = vmatpush3.bf16.msra.mxu1 %v11131_v2 }
  0xc4   : > { %9301 = vmatprep.subr.bf16.mxu0 %v13116_v0  ;;  %9307 = vmatprep.subr.bf16.mxu1 %v13116_v0 }
  0xc6   : > { %9290 = vmatmul.mubr.msk.bf16.vlgmr.msra.gmra.mrb[12].mxu0 %vm442_vm1, %v417_v35  ;;  %9298 = vmatmul.mubr.msk.bf16.vlgmr.msra.gmra.mrb[12].mxu1 %vm442_vm1, %v418_v36 }
  0xc7   : > { %9303 = vmatprep.mubr.msk.bf16.mxu0 %vm10853_vm0, %v13116_v0  ;;  %9309 = vmatprep.mubr.msk.bf16.mxu1 %vm10853_vm0, %v13116_v0 }
 0x181   : > { %v480_v38 = vpop.f32.mrb[0].mxu0  ;;  %v523_v39 = vpop.f32.mrb[0].mxu1 }
 0x182   : > { %v481_v40 = vadd.f32 %v8779_v37, %v480_v38  ;;  %v9243_v41 = vpop.f32.mrb[1].mxu0  ;;  %v524_v42 = vadd.f32 %v8779_v37, %v523_v39  ;;  %v9251_v43 = vpop.f32.mrb[1].mxu1 }
 0x183   : > { %v483_v44 = vpop.f32.mrb[2].mxu0  ;;  %v526_v45 = vpop.f32.mrb[2].mxu1 }
 0x184   : > { %v11232_v46 = vpack.c.bf16 %v481_v40, %v481_v40  ;;  %v9244_v47 = vpop.f32.mrb[3].mxu0  ;;  %v9252_v48 = vpop.f32.mrb[3].mxu1  ;;  %v11234_v49 = vpack.c.bf16 %v524_v42, %v524_v42 }
 0x186   : > { %796 = vrot.lane.b32.xlu0 %v11232_v46, %s10854_s17 }
 0x189   : > { %v566_v50 = vpop.f32.mrb[4].mxu0  ;;  %v609_v51 = vpop.f32.mrb[4].mxu1 }
 0x18a   : > { %v567_v52 = vadd.f32 %v8779_v37, %v566_v50  ;;  %v610_v53 = vadd.f32 %v8779_v37, %v609_v51  ;;  %846 = vrot.lane.b32.xlu0 %v11234_v49, %s10854_s17  ;;  %v9259_v54 = vpop.f32.mrb[5].mxu0  ;;  %v9267_v55 = vpop.f32.mrb[5].mxu1 }
 0x18b   : > { %v569_v56 = vpop.f32.mrb[6].mxu0  ;;  %v612_v57 = vpop.f32.mrb[6].mxu1 }
 0x18c   : > { %v11240_v58 = vpack.c.bf16 %v567_v52, %v567_v52  ;;  %v9260_v59 = vpop.f32.mrb[7].mxu0  ;;  %v9268_v60 = vpop.f32.mrb[7].mxu1  ;;  %v11242_v61 = vpack.c.bf16 %v610_v53, %v610_v53 }
 0x18e   : > { %895 = vrot.lane.b32.xlu1 %v11240_v58, %s10854_s17 }
 0x191   : > { %v652_v62 = vpop.f32.mrb[8].mxu0  ;;  %v695_v63 = vpop.f32.mrb[8].mxu1 }
 0x192   : > { %v653_v1 = vadd.f32 %v8779_v37, %v652_v62  ;;  %v696_v2 = vadd.f32 %v8779_v37, %v695_v63  ;;  %944 = vrot.lane.b32.xlu1 %v11242_v61, %s10854_s17  ;;  %v9275_v3 = vpop.f32.mrb[9].mxu0  ;;  %v9283_v4 = vpop.f32.mrb[9].mxu1 }
 0x193   : > { %v655_v5 = vpop.f32.mrb[10].mxu0  ;;  %v698_v6 = vpop.f32.mrb[10].mxu1 }
 0x194   : > { %v11248_v7 = vpack.c.bf16 %v653_v1, %v653_v1  ;;  %v11250_v8 = vpack.c.bf16 %v696_v2, %v696_v2  ;;  %v9276_v9 = vpop.f32.mrb[11].mxu0  ;;  %v9284_v10 = vpop.f32.mrb[11].mxu1 }
 0x196   : > { %993 = vrot.lane.b32.xlu0 %v11248_v7, %s10854_s17  ;;  %1042 = vrot.lane.b32.xlu1 %v11250_v8, %s10854_s17 }
 0x199   : > { %v738_v13 = vpop.f32.mrb[12].mxu0  ;;  %v781_v14 = vpop.f32.mrb[12].mxu1 }
 0x19a   : > { %v739_v15 = vadd.f32 %v8779_v37, %v738_v13  ;;  %v782_v16 = vadd.f32 %v8779_v37, %v781_v14  ;;  %v9291_v19 = vpop.f32.mrb[13].mxu0  ;;  %v9299_v20 = vpop.f32.mrb[13].mxu1 }
 0x19b   : > { %v741_v21 = vpop.f32.mrb[14].mxu0  ;;  %v784_v22 = vpop.f32.mrb[14].mxu1 }
 0x19c   : > { %v11256_v23 = vpack.c.bf16 %v739_v15, %v739_v15  ;;  %v11258_v24 = vpack.c.bf16 %v782_v16, %v782_v16  ;;  %v9292_v27 = vpop.f32.mrb[15].mxu0  ;;  %v9300_v28 = vpop.f32.mrb[15].mxu1 }
 0x19e   : > { %1140 = vrot.lane.b32.xlu1 %v11258_v24, %s10854_s17  ;;  %1091 = vrot.lane.b32.xlu0 %v11256_v23, %s10854_s17  ;;  %s10874_s17 = smov 68  }
 0x1a2   : > { %1285 = vrot.lane.b32.xlu1 %v11232_v46, %s10855_s22  ;;  %1335 = vrot.lane.b32.xlu0 %v11234_v49, %s10855_s22 }
 0x1a6   : > { %1383 = vrot.lane.b32.xlu1 %v11240_v58, %s10855_s22 }
 0x1aa   : > { %1431 = vrot.lane.b32.xlu1 %v11242_v61, %s10855_s22 }
 0x1f8   : > { %v797_v29 = vpop.permute.xlu0 %796 }
 0x1f9   : > { %v803_v30 = vsel %vm798_vm2, %v797_v29, 0 }
 0x1fa   : > { %9302 = vmatpush3.bf16.xpose.msra.mxu0 %v803_v30 }
 0x1fb   : > { %9313 = vmatprep.subr.bf16.mxu0 %v13116_v0 }
 0x1fc   : > { %v847_v31 = vpop.permute.xlu0 %846 }
 0x1fd   : > { %v852_v32 = vsel %vm798_vm2, %v847_v31, 0 }
 0x1fe   : > { %9308 = vmatpush3.bf16.xpose.msra.mxu1 %v852_v32 }
 0x1ff   : > { %9319 = vmatprep.subr.bf16.mxu1 %v13116_v0 }
 0x200   : > { %v896_v35 = vpop.permute.xlu1 %895 }
 0x201   : > { %v901_v36 = vsel %vm798_vm2, %v896_v35, 0  ;;  %9304 = vmatmul.mubr.msk.bf16.vlgmr.msra.gmra.mrb[16].mxu0 %vm798_vm2, %v11232_v46 }
 0x202   : > { %9314 = vmatpush3.bf16.xpose.msra.mxu0 %v901_v36  ;;  %9315 = vmatprep.mubr.msk.bf16.mxu0 %vm10853_vm0, %v13116_v0 }
 0x203   : > { %9325 = vmatprep.subr.bf16.mxu0 %v13116_v0 }
 0x204   : > { %v945_v37 = vpop.permute.xlu1 %944 }
 0x205   : > { %v950_v38 = vsel %vm798_vm2, %v945_v37, 0  ;;  %9310 = vmatmul.mubr.msk.bf16.vlgmr.msra.gmra.mrb[16].mxu1 %vm798_vm2, %v11234_v49 }
 0x206   : > { %9320 = vmatpush3.bf16.xpose.msra.mxu1 %v950_v38  ;;  %9321 = vmatprep.mubr.msk.bf16.mxu1 %vm10853_vm0, %v13116_v0 }
 0x207   : > { %9331 = vmatprep.subr.bf16.mxu1 %v13116_v0 }
 0x208   : > { %v994_v39 = vpop.permute.xlu0 %993  ;;  %v1043_v40 = vpop.permute.xlu1 %1042 }
 0x209   : > { %v999_v41 = vsel %vm798_vm2, %v994_v39, 0  ;;  %9316 = vmatmul.mubr.msk.bf16.vlgmr.msra.gmra.mrb[20].mxu0 %vm798_vm2, %v11240_v58  ;;  %v1048_v42 = vsel %vm798_vm2, %v1043_v40, 0 }
 0x20a   : > { %9326 = vmatpush3.bf16.xpose.msra.mxu0 %v999_v41  ;;  %9327 = vmatprep.mubr.msk.bf16.mxu0 %vm10853_vm0, %v13116_v0 }
 0x20b   : > { %9337 = vmatprep.subr.bf16.mxu0 %v13116_v0 }
 0x20d   : > { %9322 = vmatmul.mubr.msk.bf16.vlgmr.msra.gmra.mrb[20].mxu1 %vm798_vm2, %v11242_v61 }
 0x20e   : > { %9332 = vmatpush3.bf16.xpose.msra.mxu1 %v1048_v42  ;;  %9333 = vmatprep.mubr.msk.bf16.mxu1 %vm10853_vm0, %v13116_v0 }
 0x20f   : > { %9343 = vmatprep.subr.bf16.mxu1 %v13116_v0 }
 0x210   : > { %v1141_v43 = vpop.permute.xlu1 %1140  ;;  %v1092_v44 = vpop.permute.xlu0 %1091 }
 0x211   : > { %v1097_v45 = vsel %vm798_vm2, %v1092_v44, 0  ;;  %9328 = vmatmul.mubr.msk.bf16.vlgmr.msra.gmra.mrb[24].mxu0 %vm798_vm2, %v11248_v7  ;;  %v1146_v47 = vsel %vm798_vm2, %v1141_v43, 0 }
 0x212   : > { %9338 = vmatpush3.bf16.xpose.msra.mxu0 %v1097_v45  ;;  %9339 = vmatprep.mubr.msk.bf16.mxu0 %vm10853_vm0, %v13116_v0 }
 0x213   : > { %9349 = vmatprep.subr.bf16.mxu0 %v13116_v0 }
 0x214   : > { %v1286_v48 = vpop.permute.xlu1 %1285  ;;  %v1336_v51 = vpop.permute.xlu0 %1335 }
 0x215   : > { %9334 = vmatmul.mubr.msk.bf16.vlgmr.msra.gmra.mrb[24].mxu1 %vm798_vm2, %v11250_v8  ;;  %v1293_v50 = vsel %vm1291_vm3, %v1286_v48, 0  ;;  %v1341_v52 = vsel %vm1291_vm3, %v1336_v51, 0 }
 0x216   : > { %9344 = vmatpush3.bf16.xpose.msra.mxu1 %v1146_v47  ;;  %9345 = vmatprep.mubr.msk.bf16.mxu1 %vm10853_vm0, %v13116_v0 }
 0x217   : > { %9355 = vmatprep.subr.bf16.mxu1 %v13116_v0 }
 0x218   : > { %v11339_v44 = vpop.permute.xlu1 %1383 }
 0x219   : > { %9340 = vmatmul.mubr.msk.bf16.vlgmr.msra.gmra.mrb[28].mxu0 %vm798_vm2, %v11256_v23 }
 0x21a   : > { %9350 = vmatpush3.bf16.msra.mxu0 %v1293_v50  ;;  %9351 = vmatprep.mubr.msk.bf16.mxu0 %vm10853_vm0, %v13116_v0 }
 0x21b   : > { %9361 = vmatprep.subr.bf16.mxu0 %v13116_v0 }
 0x21c   : > { %v11341_v45 = vpop.permute.xlu1 %1431 }
 0x21d   : > { %9346 = vmatmul.mubr.msk.bf16.vlgmr.msra.gmra.mrb[28].mxu1 %vm798_vm2, %v11258_v24 }
 0x21e   : > { %9356 = vmatpush3.bf16.msra.mxu1 %v1341_v52  ;;  %9357 = vmatprep.mubr.msk.bf16.mxu1 %vm10853_vm0, %v13116_v0 }
 0x21f   : > { %9367 = vmatprep.subr.bf16.mxu1 %v13116_v0 }
 0x2d4   : > { %v839_v53 = vpop.f32.mrb[16].mxu0 }
 0x2d5   : > { %v9305_v54 = vpop.f32.mrb[17].mxu0  ;;  %v1189_v55 = vsel %vm1188_vm4, %v839_v53, -inf }
 0x2d6   : > { %1190 = vmax.xlane.f32.xlu0 %v1189_v55  ;;  %v842_v56 = vpop.f32.mrb[18].mxu0 }
 0x2d7   : > { %v9306_v57 = vpop.f32.mrb[19].mxu0 }
 0x2d8   : > { %v888_v59 = vpop.f32.mrb[16].mxu1 }
 0x2d9   : > { %v9311_v60 = vpop.f32.mrb[17].mxu1  ;;  %v1192_v62 = vsel %vm1188_vm4, %v888_v59, -inf }
 0x2da   : > { %v891_v63 = vpop.f32.mrb[18].mxu1  ;;  %1193 = vmax.xlane.f32.xlu1 %v1192_v62 }
 0x2db   : > { %v9312_v1 = vpop.f32.mrb[19].mxu1 }
 0x2dc   : > { %v937_v2 = vpop.f32.mrb[20].mxu0 }
 0x2dd   : > { %v9317_v3 = vpop.f32.mrb[21].mxu0  ;;  %v1195_v4 = vsel %vm1188_vm4, %v937_v2, -inf }
 0x2de   : > { %1196 = vmax.xlane.f32.xlu0 %v1195_v4  ;;  %v940_v5 = vpop.f32.mrb[22].mxu0 }
 0x2df   : > { %v9318_v6 = vpop.f32.mrb[23].mxu0 }
 0x2e0   : > { %v986_v9 = vpop.f32.mrb[20].mxu1 }
 0x2e1   : > { %v9323_v10 = vpop.f32.mrb[21].mxu1  ;;  %v1198_v13 = vsel %vm1188_vm4, %v986_v9, -inf }
 0x2e2   : > { %v989_v14 = vpop.f32.mrb[22].mxu1  ;;  %1199 = vmax.xlane.f32.xlu0 %v1198_v13 }
 0x2e3   : > { %v9324_v15 = vpop.f32.mrb[23].mxu1 }
 0x2e4   : > { %v1035_v16 = vpop.f32.mrb[24].mxu0 }
 0x2e5   : > { %v9329_v19 = vpop.f32.mrb[25].mxu0  ;;  %v1201_v20 = vsel %vm1188_vm4, %v1035_v16, -inf }
 0x2e6   : > { %1202 = vmax.xlane.f32.xlu1 %v1201_v20  ;;  %v1038_v21 = vpop.f32.mrb[26].mxu0 }
 0x2e7   : > { %v9330_v22 = vpop.f32.mrb[27].mxu0 }
 0x2e8   : > { %v1084_v27 = vpop.f32.mrb[24].mxu1 }
 0x2e9   : > { %v9335_v28 = vpop.f32.mrb[25].mxu1  ;;  %v1204_v29 = vsel %vm1188_vm4, %v1084_v27, -inf }
 0x2ea   : > { %v1087_v30 = vpop.f32.mrb[26].mxu1  ;;  %1205 = vmax.xlane.f32.xlu0 %v1204_v29 }
 0x2eb   : > { %v9336_v31 = vpop.f32.mrb[27].mxu1 }
 0x2ec   : > { %v11330_v32 = vpop.f32.mrb[28].mxu0 }
 0x2ed   : > { %v9341_v35 = vpop.f32.mrb[29].mxu0  ;;  %v1207_v36 = vsel %vm1188_vm4, %v11330_v32, -inf }
 0x2ee   : > { %1208 = vmax.xlane.f32.xlu1 %v1207_v36  ;;  %v1136_v37 = vpop.f32.mrb[30].mxu0 }
 0x2ef   : > { %v9342_v38 = vpop.f32.mrb[31].mxu0 }
 0x2f0   : > { %v1182_v39 = vpop.f32.mrb[28].mxu1 }
 0x2f1   : > { %v9347_v40 = vpop.f32.mrb[29].mxu1  ;;  %v1210_v41 = vsel %vm1188_vm4, %v1182_v39, -inf }
 0x2f2   : > { %v1185_v42 = vpop.f32.mrb[30].mxu1  ;;  %1211 = vmax.xlane.f32.xlu0 %v1210_v41 }
 0x2f3   : > { %v9348_v43 = vpop.f32.mrb[31].mxu1 }
 0x2ff   : > { %1527 = vrot.lane.b32.xlu1 %v11250_v8, %s10855_s22 }
 0x308   : > { %1479 = vrot.lane.b32.xlu0 %v11248_v7, %s10855_s22 }
 0x363   : > { %v1191_v47 = vpop.xlane.xlu0 %1190 }
 0x364   : > { %v1213_v48 = vsub.f32 %v839_v53, %v1191_v47 }
 0x366   : > { %v1221_v50 = vmul.f32 1.442695, %v1213_v48 }
 0x367   : > { %v1194_v51 = vpop.xlane.xlu1 %1193 }
 0x368   : > { %10380 = vpow2.f32 %v1221_v50  ;;  %v1214_v52 = vsub.f32 %v888_v59, %v1194_v51 }
 0x36a   : > { %v1223_v54 = vmul.f32 1.442695, %v1214_v52 }
 0x36b   : > { %v1197_v55 = vpop.xlane.xlu0 %1196 }
 0x36c   : > { %10382 = vpow2.f32 %v1223_v54  ;;  %v1215_v56 = vsub.f32 %v937_v2, %v1197_v55  ;;  %v1389_v54 = vsel %vm1291_vm3, %v11339_v44, 0 }
 0x36e   : > { %v1225_v57 = vmul.f32 1.442695, %v1215_v56 }
 0x36f   : > { %v1200_v60 = vpop.xlane.xlu0 %1199 }
 0x370   : > { %10384 = vpow2.f32 %v1225_v57  ;;  %v1216_v62 = vsub.f32 %v986_v9, %v1200_v60 }
 0x372   : > { %v11343_v63 = vpop.eup %10380  ;;  %v1227_v1 = vmul.f32 1.442695, %v1216_v62  ;;  %v1437_v62 = vsel %vm1291_vm3, %v11341_v45, 0 }
 0x373   : > { %v1203_v3 = vpop.xlane.xlu1 %1202  ;;  %v1237_v4 = vsel %vm1188_vm4, %v11343_v63, 0.0 }
 0x374   : > { %10386 = vpow2.f32 %v1227_v1  ;;  %v1217_v53 = vsub.f32 %v1035_v16, %v1203_v3  ;;  %1238 = vadd.xlane.f32.xlu1 %v1237_v4 }
 0x376   : > { %v11347_v5 = vpop.eup %10382  ;;  %v1229_v59 = vmul.f32 1.442695, %v1217_v53 }
 0x377   : > { %v1206_v6 = vpop.xlane.xlu0 %1205  ;;  %v1240_v2 = vsel %vm1188_vm4, %v11347_v5, 0.0 }
 0x378   : > { %10388 = vpow2.f32 %v1229_v59  ;;  %v1218_v10 = vsub.f32 %v1084_v27, %v1206_v6  ;;  %1241 = vadd.xlane.f32.xlu0 %v1240_v2 }
 0x37a   : > { %v11351_v9 = vpop.eup %10384  ;;  %v1231_v13 = vmul.f32 1.442695, %v1218_v10 }
 0x37b   : > { %v1243_v14 = vsel %vm1188_vm4, %v11351_v9, 0.0  ;;  %v1209_v27 = vpop.xlane.xlu1 %1208 }
 0x37c   : > { %10390 = vpow2.f32 %v1231_v13  ;;  %1244 = vadd.xlane.f32.xlu1 %v1243_v14  ;;  %v1219_v28 = vsub.f32 %v11330_v32, %v1209_v27 }
 0x37e   : > { %v11355_v15 = vpop.eup %10386  ;;  %v1233_v30 = vmul.f32 1.442695, %v1219_v28 }
 0x37f   : > { %v1246_v16 = vsel %vm1188_vm4, %v11355_v15, 0.0  ;;  %v1212_v29 = vpop.xlane.xlu0 %1211  ;;  %v1528_v32 = vpop.permute.xlu1 %1527 }
 0x380   : > { %1247 = vadd.xlane.f32.xlu0 %v1246_v16  ;;  %v1220_v31 = vsub.f32 %v1182_v39, %v1212_v29  ;;  %10392 = vpow2.f32 %v1233_v30  ;;  %v1533_v59 = vsel %vm1291_vm3, %v1528_v32, 0 }
 0x382   : > { %v11359_v19 = vpop.eup %10388  ;;  %v1235_v35 = vmul.f32 1.442695, %v1220_v31 }
 0x383   : > { %v1249_v20 = vsel %vm1188_vm4, %v11359_v19, 0.0  ;;  %v1480_v39 = vpop.permute.xlu0 %1479 }
 0x384   : > { %1250 = vadd.xlane.f32.xlu1 %v1249_v20  ;;  %10394 = vpow2.f32 %v1235_v35  ;;  %v1485_v4 = vsel %vm1291_vm3, %v1480_v39, 0 }
 0x386   : > { %v11363_v21 = vpop.eup %10390 }
 0x387   : > { %v1252_v22 = vsel %vm1188_vm4, %v11363_v21, 0.0 }
 0x388   : > { %1253 = vadd.xlane.f32.xlu0 %v1252_v22 }
 0x38a   : > { %v11372_v36 = vpop.eup %10392 }
 0x38b   : > { %v1255_v37 = vsel %vm1188_vm4, %v11372_v36, 0.0 }
 0x38e   : > { %v11376_v38 = vpop.eup %10394 }
 0x38f   : > { %v1258_v40 = vsel %vm1188_vm4, %v11376_v38, 0.0 }
 0x395   : > { %1623 = vrot.lane.b32.xlu1 %v11258_v24, %s10855_s22 }
 0x39e   : > { %1575 = vrot.lane.b32.xlu0 %v11256_v23, %s10855_s22  ;;  %s10875_s22 = smov 100  }
 0x3b9   : > { %1256 = vadd.xlane.f32.xlu1 %v1255_v37 }
 0x3bd   : > { %1259 = vadd.xlane.f32.xlu0 %v1258_v40 }
 0x3ca   : > { %1723 = vrot.lane.b32.xlu1 %v11234_v49, %s10856_s24 }
 0x3ce   : > { %1721 = vrot.lane.b32.xlu1 %v11234_v49, %s10857_s14 }
 0x3d2   : > { %1823 = vrot.lane.b32.xlu1 %v11242_v61, %s10856_s24 }
 0x3d3   : > { %1673 = vrot.lane.b32.xlu0 %v11232_v46, %s10856_s24 }
 0x3d6   : > { %1821 = vrot.lane.b32.xlu1 %v11242_v61, %s10857_s14 }
 0x3d7   : > { %1671 = vrot.lane.b32.xlu0 %v11232_v46, %s10857_s14 }
 0x3da   : > { %1923 = vrot.lane.b32.xlu1 %v11250_v8, %s10856_s24 }
 0x3db   : > { %1773 = vrot.lane.b32.xlu0 %v11240_v58, %s10856_s24 }
 0x3de   : > { %1921 = vrot.lane.b32.xlu1 %v11250_v8, %s10857_s14 }
 0x3df   : > { %1771 = vrot.lane.b32.xlu0 %v11240_v58, %s10857_s14 }
 0x3e2   : > { %2023 = vrot.lane.b32.xlu1 %v11258_v24, %s10856_s24 }
 0x3e3   : > { %1873 = vrot.lane.b32.xlu0 %v11248_v7, %s10856_s24 }
 0x3e6   : > { %2021 = vrot.lane.b32.xlu1 %v11258_v24, %s10857_s14 }
 0x3e7   : > { %1871 = vrot.lane.b32.xlu0 %v11248_v7, %s10857_s14 }
 0x3ea   : > { %2167 = vrot.lane.b32.xlu1 %v11232_v46, %s10858_s21 }
 0x3eb   : > { %1973 = vrot.lane.b32.xlu0 %v11256_v23, %s10856_s24  ;;  %s10876_s24 = smov 36  }
 0x3ee   : > { %2263 = vrot.lane.b32.xlu1 %v11240_v58, %s10858_s21 }
 0x3ef   : > { %1971 = vrot.lane.b32.xlu0 %v11256_v23, %s10857_s14  ;;  %s10877_s14 = smov 8  }
 0x3f2   : > { %2311 = vrot.lane.b32.xlu1 %v11242_v61, %s10858_s21 }
 0x3f3   : > { %2215 = vrot.lane.b32.xlu0 %v11234_v49, %s10858_s21 }
 0x401   : > { %v1239_v41 = vpop.xlane.xlu1 %1238 }
 0x402   : > { %10396 = vrcp.f32 %v1239_v41 }
 0x405   : > { %v1242_v42 = vpop.xlane.xlu0 %1241 }
 0x406   : > { %10398 = vrcp.f32 %v1242_v42 }
 0x409   : > { %v1245_v43 = vpop.xlane.xlu1 %1244 }
 0x40a   : > { %10400 = vrcp.f32 %v1245_v43 }
 0x40c   : > { %v10397_v47 = vpop.eup %10396 }
 0x40d   : > { %v1248_v48 = vpop.xlane.xlu0 %1247  ;;  %v1269_v50 = vmul.f32 %v10397_v47, %v11343_v63 }
 0x40e   : > { %10402 = vrcp.f32 %v1248_v48 }
 0x40f   : > { %v1277_v51 = vpack.c.bf16 %v1269_v50, %v1269_v50 }
 0x410   : > { %v10399_v52 = vpop.eup %10398 }
 0x411   : > { %9352 = vmatmul.mubr.msk.bf16.vlgmr.msra.gmra.mrb[32].mxu0 %vm1287_vm5, %v1277_v51  ;;  %v1251_v55 = vpop.xlane.xlu1 %1250  ;;  %v1270_v56 = vmul.f32 %v10399_v52, %v11347_v5 }
 0x412   : > { %9362 = vmatpush3.bf16.msra.mxu0 %v1389_v54  ;;  %10404 = vrcp.f32 %v1251_v55  ;;  %9363 = vmatprep.mubr.msk.bf16.mxu0 %vm10853_vm0, %v13116_v0 }
 0x413   : > { %v1278_v57 = vpack.c.bf16 %v1270_v56, %v1270_v56  ;;  %9373 = vmatprep.subr.bf16.mxu0 %v13116_v0 }
 0x414   : > { %v10401_v60 = vpop.eup %10400 }
 0x415   : > { %9358 = vmatmul.mubr.msk.bf16.vlgmr.msra.gmra.mrb[32].mxu1 %vm1287_vm5, %v1278_v57  ;;  %v1254_v44 = vpop.xlane.xlu0 %1253  ;;  %v1271_v63 = vmul.f32 %v10401_v60, %v11351_v9 }
 0x416   : > { %9368 = vmatpush3.bf16.msra.mxu1 %v1437_v62  ;;  %10406 = vrcp.f32 %v1254_v44  ;;  %9369 = vmatprep.mubr.msk.bf16.mxu1 %vm10853_vm0, %v13116_v0 }
 0x417   : > { %v1279_v1 = vpack.c.bf16 %v1271_v63, %v1271_v63  ;;  %9379 = vmatprep.subr.bf16.mxu1 %v13116_v0 }
 0x418   : > { %v10403_v3 = vpop.eup %10402 }
 0x419   : > { %9364 = vmatmul.mubr.msk.bf16.vlgmr.msra.gmra.mrb[36].mxu0 %vm1287_vm5, %v1279_v1  ;;  %v1272_v45 = vmul.f32 %v10403_v3, %v11355_v15  ;;  %v1576_v2 = vpop.permute.xlu0 %1575  ;;  %v1624_v15 = vpop.permute.xlu1 %1623 }
 0x41a   : > { %9374 = vmatpush3.bf16.msra.mxu0 %v1485_v4  ;;  %9375 = vmatprep.mubr.msk.bf16.mxu0 %vm10853_vm0, %v13116_v0  ;;  %v1581_v13 = vsel %vm1291_vm3, %v1576_v2, 0 }
 0x41b   : > { %v1280_v53 = vpack.c.bf16 %v1272_v45, %v1272_v45  ;;  %9385 = vmatprep.subr.bf16.mxu0 %v13116_v0 }
 0x41c   : > { %v10405_v5 = vpop.eup %10404 }
 0x41d   : > { %9370 = vmatmul.mubr.msk.bf16.vlgmr.msra.gmra.mrb[36].mxu1 %vm1287_vm5, %v1280_v53  ;;  %v1273_v6 = vmul.f32 %v10405_v5, %v11359_v19  ;;  %v1629_v19 = vsel %vm1291_vm3, %v1624_v15, 0 }
 0x41e   : > { %9380 = vmatpush3.bf16.msra.mxu1 %v1533_v59  ;;  %9381 = vmatprep.mubr.msk.bf16.mxu1 %vm10853_vm0, %v13116_v0 }
 0x41f   : > { %v1281_v10 = vpack.c.bf16 %v1273_v6, %v1273_v6  ;;  %9391 = vmatprep.subr.bf16.mxu1 %v13116_v0 }
 0x420   : > { %v10407_v9 = vpop.eup %10406 }
 0x421   : > { %9376 = vmatmul.mubr.msk.bf16.vlgmr.msra.gmra.mrb[40].mxu0 %vm1287_vm5, %v1281_v10  ;;  %v1274_v14 = vmul.f32 %v10407_v9, %v11363_v21 }
 0x422   : > { %9386 = vmatpush3.bf16.msra.mxu0 %v1581_v13  ;;  %9387 = vmatprep.mubr.msk.bf16.mxu0 %vm10853_vm0, %v13116_v0 }
 0x423   : > { %v1282_v16 = vpack.c.bf16 %v1274_v14, %v1274_v14  ;;  %9397 = vmatprep.subr.bf16.mxu0 %v13116_v0 }
 0x425   : > { %9382 = vmatmul.mubr.msk.bf16.vlgmr.msra.gmra.mrb[40].mxu1 %vm1287_vm5, %v1282_v16 }
 0x426   : > { %9392 = vmatpush3.bf16.msra.mxu1 %v1629_v19  ;;  %9393 = vmatprep.mubr.msk.bf16.mxu1 %vm10853_vm0, %v13116_v0 }
 0x427   : > { %9403 = vmatprep.subr.bf16.mxu1 %v13116_v0 }
 0x446   : > { %v1257_v20 = vpop.xlane.xlu1 %1256 }
 0x447   : > { %10408 = vrcp.f32 %v1257_v20 }
 0x44a   : > { %v1260_v21 = vpop.xlane.xlu0 %1259  ;;  %v1724_v22 = vpop.permute.xlu1 %1723 }
 0x44b   : > { %10410 = vrcp.f32 %v1260_v21  ;;  %v1729_v47 = vsel %vm798_vm2, %v1724_v22, 0 }
 0x44e   : > { %v1674_v27 = vpop.permute.xlu0 %1673  ;;  %v1722_v28 = vpop.permute.xlu1 %1721 }
 0x44f   : > { %v1679_v32 = vsel %vm798_vm2, %v1674_v27, 0 }
 0x451   : > { %v10409_v29 = vpop.eup %10408 }
 0x452   : > { %v1672_v30 = vpop.permute.xlu0 %1671  ;;  %v1824_v31 = vpop.permute.xlu1 %1823  ;;  %v1275_v35 = vmul.f32 %v10409_v29, %v11372_v36 }
 0x453   : > { %v1829_v52 = vsel %vm798_vm2, %v1824_v31, 0 }
 0x454   : > { %v1283_v37 = vpack.c.bf16 %v1275_v35, %v1275_v35 }
 0x455   : > { %v10411_v40 = vpop.eup %10410 }
 0x456   : > { %v1774_v39 = vpop.permute.xlu0 %1773  ;;  %9388 = vmatmul.mubr.msk.bf16.vlgmr.msra.gmra.mrb[44].mxu0 %vm1287_vm5, %v1283_v37  ;;  %v1822_v41 = vpop.permute.xlu1 %1821  ;;  %v1276_v42 = vmul.f32 %v10411_v40, %v11376_v38 }
 0x457   : > { %9398 = vmatpush3.bf16.xpose.msra.mxu0 %v1679_v32  ;;  %9399 = vmatprep.mubr.msk.bf16.mxu0 %vm10853_vm0, %v13116_v0  ;;  %v1779_v38 = vsel %vm798_vm2, %v1774_v39, 0 }
 0x458   : > { %v1284_v43 = vpack.c.bf16 %v1276_v42, %v1276_v42  ;;  %9409 = vmatprep.subr.bf16.mxu0 %v13116_v0 }
 0x45a   : > { %v1772_v36 = vpop.permute.xlu0 %1771  ;;  %9394 = vmatmul.mubr.msk.bf16.vlgmr.msra.gmra.mrb[44].mxu1 %vm1287_vm5, %v1284_v43  ;;  %v1924_v48 = vpop.permute.xlu1 %1923 }
 0x45b   : > { %9404 = vmatpush3.bf16.xpose.msra.mxu1 %v1729_v47  ;;  %9405 = vmatprep.mubr.msk.bf16.mxu1 %vm10853_vm0, %v13116_v0  ;;  %v1929_v57 = vsel %vm798_vm2, %v1924_v48, 0 }
 0x45c   : > { %9415 = vmatprep.subr.bf16.mxu1 %v13116_v0 }
 0x45e   : > { %9400 = vmatmul.mubr.msk.bf16.vlgmr.msra.gmra.mrb[48].mxu0 %vm798_vm2, %v1672_v30  ;;  %v1874_v50 = vpop.permute.xlu0 %1873  ;;  %v1922_v51 = vpop.permute.xlu1 %1921 }
 0x45f   : > { %9410 = vmatpush3.bf16.xpose.msra.mxu0 %v1779_v38  ;;  %9411 = vmatprep.mubr.msk.bf16.mxu0 %vm10853_vm0, %v13116_v0  ;;  %v1879_v55 = vsel %vm798_vm2, %v1874_v50, 0 }
 0x460   : > { %9421 = vmatprep.subr.bf16.mxu0 %v13116_v0 }
 0x462   : > { %9406 = vmatmul.mubr.msk.bf16.vlgmr.msra.gmra.mrb[48].mxu1 %vm798_vm2, %v1722_v28  ;;  %v1872_v54 = vpop.permute.xlu0 %1871  ;;  %v2024_v56 = vpop.permute.xlu1 %2023 }
 0x463   : > { %9416 = vmatpush3.bf16.xpose.msra.mxu1 %v1829_v52  ;;  %9417 = vmatprep.mubr.msk.bf16.mxu1 %vm10853_vm0, %v13116_v0  ;;  %v2029_v1 = vsel %vm798_vm2, %v2024_v56, 0 }
 0x464   : > { %9427 = vmatprep.subr.bf16.mxu1 %v13116_v0 }
 0x466   : > { %9412 = vmatmul.mubr.msk.bf16.vlgmr.msra.gmra.mrb[52].mxu0 %vm798_vm2, %v1772_v36  ;;  %v1974_v60 = vpop.permute.xlu0 %1973  ;;  %v2022_v62 = vpop.permute.xlu1 %2021 }
 0x467   : > { %9422 = vmatpush3.bf16.xpose.msra.mxu0 %v1879_v55  ;;  %9423 = vmatprep.mubr.msk.bf16.mxu0 %vm10853_vm0, %v13116_v0  ;;  %v1979_v44 = vsel %vm798_vm2, %v1974_v60, 0 }
 0x468   : > { %9433 = vmatprep.subr.bf16.mxu0 %v13116_v0 }
 0x46a   : > { %9418 = vmatmul.mubr.msk.bf16.vlgmr.msra.gmra.mrb[52].mxu1 %vm798_vm2, %v1822_v41  ;;  %v1972_v63 = vpop.permute.xlu0 %1971  ;;  %v2168_v3 = vpop.permute.xlu1 %2167 }
 0x46b   : > { %9428 = vmatpush3.bf16.xpose.msra.mxu1 %v1929_v57  ;;  %9429 = vmatprep.mubr.msk.bf16.mxu1 %vm10853_vm0, %v13116_v0  ;;  %v2173_v4 = vsel %vm1291_vm3, %v2168_v3, 0 }
 0x46c   : > { %9439 = vmatprep.subr.bf16.mxu1 %v13116_v0 }
 0x46e   : > { %9424 = vmatmul.mubr.msk.bf16.vlgmr.msra.gmra.mrb[56].mxu0 %vm798_vm2, %v1872_v54  ;;  %v2216_v45 = vpop.permute.xlu0 %2215 }
 0x46f   : > { %9434 = vmatpush3.bf16.xpose.msra.mxu0 %v1979_v44  ;;  %9435 = vmatprep.mubr.msk.bf16.mxu0 %vm10853_vm0, %v13116_v0  ;;  %v2221_v53 = vsel %vm1291_vm3, %v2216_v45, 0 }
 0x470   : > { %9445 = vmatprep.subr.bf16.mxu0 %v13116_v0 }
 0x472   : > { %9430 = vmatmul.mubr.msk.bf16.vlgmr.msra.gmra.mrb[56].mxu1 %vm798_vm2, %v1922_v51 }
 0x473   : > { %9440 = vmatpush3.bf16.xpose.msra.mxu1 %v2029_v1  ;;  %9441 = vmatprep.mubr.msk.bf16.mxu1 %vm10853_vm0, %v13116_v0 }
 0x474   : > { %9451 = vmatprep.subr.bf16.mxu1 %v13116_v0 }
 0x476   : > { %9436 = vmatmul.mubr.msk.bf16.vlgmr.msra.gmra.mrb[60].mxu0 %vm798_vm2, %v1972_v63 }
 0x477   : > { %9446 = vmatpush3.bf16.msra.mxu0 %v2173_v4  ;;  %9447 = vmatprep.mubr.msk.bf16.mxu0 %vm10853_vm0, %v13116_v0 }
 0x478   : > { %9457 = vmatprep.subr.bf16.mxu0 %v13116_v0 }
 0x47a   : > { %9442 = vmatmul.mubr.msk.bf16.vlgmr.msra.gmra.mrb[60].mxu1 %vm798_vm2, %v2022_v62 }
 0x47b   : > { %9452 = vmatpush3.bf16.msra.mxu1 %v2221_v53  ;;  %9453 = vmatprep.mubr.msk.bf16.mxu1 %vm10853_vm0, %v13116_v0 }
 0x47c   : > { %9463 = vmatprep.subr.bf16.mxu1 %v13116_v0 }
 0x4e4   : > { %v11494_v5 = vpop.f32.mrb[32].mxu0 }
 0x4e5   : > { %13151 = vst [vmem:[#allocation24_spill] sm:$0xff] %v11494_v5  ;;  %v9353_v59 = vpop.f32.mrb[33].mxu0 }
 0x4e6   : > { %v1332_v6 = vpop.f32.mrb[34].mxu0 }
 0x4e7   : > { %v9354_v2 = vpop.f32.mrb[35].mxu0 }
 0x4e8   : > { %v11496_v10 = vpop.f32.mrb[32].mxu1 }
 0x4e9   : > { %13152 = vst [vmem:[#allocation25_spill] sm:$0xff] %v11496_v10  ;;  %v9359_v9 = vpop.f32.mrb[33].mxu1 }
 0x4ea   : > { %v1380_v13 = vpop.f32.mrb[34].mxu1 }
 0x4eb   : > { %v9360_v14 = vpop.f32.mrb[35].mxu1 }
 0x4ec   : > { %v11498_v15 = vpop.f32.mrb[36].mxu0 }
 0x4ed   : > { %13153 = vst [vmem:[#allocation26_spill] sm:$0xff] %v11498_v15  ;;  %v9365_v16 = vpop.f32.mrb[37].mxu0 }
 0x4ee   : > { %v1428_v19 = vpop.f32.mrb[38].mxu0 }
 0x4ef   : > { %v9366_v20 = vpop.f32.mrb[39].mxu0 }
 0x4f0   : > { %v11500_v21 = vpop.f32.mrb[36].mxu1 }
 0x4f1   : > { %13154 = vst [vmem:[#allocation27_spill] sm:$0xff] %v11500_v21  ;;  %v9371_v22 = vpop.f32.mrb[37].mxu1 }
 0x4f2   : > { %v1476_v27 = vpop.f32.mrb[38].mxu1 }
 0x4f3   : > { %v9372_v28 = vpop.f32.mrb[39].mxu1 }
 0x4f4   : > { %v11502_v29 = vpop.f32.mrb[40].mxu0 }
 0x4f5   : > { %13155 = vst [vmem:[#allocation28_spill] sm:$0xff] %v11502_v29  ;;  %v9377_v30 = vpop.f32.mrb[41].mxu0 }
 0x4f6   : > { %v1524_v31 = vpop.f32.mrb[42].mxu0 }
 0x4f7   : > { %v9378_v35 = vpop.f32.mrb[43].mxu0 }
 0x4f8   : > { %v11504_v37 = vpop.f32.mrb[40].mxu1 }
 0x4f9   : > { %13156 = vst [vmem:[#allocation29_spill] sm:$0xff] %v11504_v37  ;;  %v9383_v40 = vpop.f32.mrb[41].mxu1 }
 0x4fa   : > { %v1572_v32 = vpop.f32.mrb[42].mxu1 }
 0x4fb   : > { %v9384_v39 = vpop.f32.mrb[43].mxu1 }
 0x529   : > { %v11506_v41 = vpop.f32.mrb[44].mxu0 }
 0x52a   : > { %13157 = vst [vmem:[#allocation30_spill] sm:$0xff] %v11506_v41  ;;  %v9389_v42 = vpop.f32.mrb[45].mxu0 }
 0x52b   : > { %v1620_v43 = vpop.f32.mrb[46].mxu0 }
 0x52c   : > { %v9390_v47 = vpop.f32.mrb[47].mxu0 }
 0x52d   : > { %v11508_v36 = vpop.f32.mrb[44].mxu1 }
 0x52e   : > { %13158 = vst [vmem:[#allocation31_spill] sm:$0xff] %v11508_v36  ;;  %v9395_v48 = vpop.f32.mrb[45].mxu1 }
 0x52f   : > { %v1668_v38 = vpop.f32.mrb[46].mxu1 }
 0x530   : > { %v9396_v50 = vpop.f32.mrb[47].mxu1 }
 0x531   : > { %v1715_v51 = vpop.f32.mrb[48].mxu0 }
 0x532   : > { %v9401_v52 = vpop.f32.mrb[49].mxu0  ;;  %v2071_v54 = vsel %vm1188_vm4, %v1715_v51, -inf }
 0x533   : > { %2072 = vmax.xlane.f32.xlu0 %v2071_v54  ;;  %v1718_v55 = vpop.f32.mrb[50].mxu0  ;;  %v11525_v54 = vpop.permute.xlu1 %2263 }
 0x534   : > { %v9402_v56 = vpop.f32.mrb[51].mxu0 }
 0x535   : > { %v1765_v57 = vpop.f32.mrb[48].mxu1 }
 0x536   : > { %v9407_v60 = vpop.f32.mrb[49].mxu1  ;;  %v2074_v62 = vsel %vm1188_vm4, %v1765_v57, -inf }
 0x537   : > { %2075 = vmax.xlane.f32.xlu1 %v2074_v62  ;;  %v1768_v44 = vpop.f32.mrb[50].mxu1  ;;  %v11527_v55 = vpop.permute.xlu1 %2311 }
 0x538   : > { %v9408_v63 = vpop.f32.mrb[51].mxu1 }
 0x539   : > { %v1815_v1 = vpop.f32.mrb[52].mxu0 }
 0x53a   : > { %v9413_v3 = vpop.f32.mrb[53].mxu0  ;;  %v2077_v4 = vsel %vm1188_vm4, %v1815_v1, -inf }
 0x53b   : > { %2078 = vmax.xlane.f32.xlu0 %v2077_v4  ;;  %v1818_v45 = vpop.f32.mrb[54].mxu0 }
 0x53c   : > { %v9414_v53 = vpop.f32.mrb[55].mxu0 }
 0x53d   : > { %v1865_v59 = vpop.f32.mrb[52].mxu1 }
 0x53e   : > { %v9419_v6 = vpop.f32.mrb[53].mxu1  ;;  %v2080_v2 = vsel %vm1188_vm4, %v1865_v59, -inf }
 0x53f   : > { %v1868_v9 = vpop.f32.mrb[54].mxu1  ;;  %2081 = vmax.xlane.f32.xlu0 %v2080_v2 }
 0x540   : > { %v9420_v13 = vpop.f32.mrb[55].mxu1 }
 0x541   : > { %v1915_v14 = vpop.f32.mrb[56].mxu0 }
 0x542   : > { %v9425_v16 = vpop.f32.mrb[57].mxu0  ;;  %v2083_v19 = vsel %vm1188_vm4, %v1915_v14, -inf }
 0x543   : > { %2084 = vmax.xlane.f32.xlu1 %v2083_v19  ;;  %v1918_v20 = vpop.f32.mrb[58].mxu0 }
 0x544   : > { %v9426_v22 = vpop.f32.mrb[59].mxu0 }
 0x545   : > { %v1965_v27 = vpop.f32.mrb[56].mxu1 }
 0x546   : > { %v9431_v28 = vpop.f32.mrb[57].mxu1  ;;  %v2086_v30 = vsel %vm1188_vm4, %v1965_v27, -inf }
 0x547   : > { %v1968_v31 = vpop.f32.mrb[58].mxu1  ;;  %2087 = vmax.xlane.f32.xlu0 %v2086_v30 }
 0x548   : > { %v9432_v35 = vpop.f32.mrb[59].mxu1 }
 0x549   : > { %v11516_v40 = vpop.f32.mrb[60].mxu0 }
 0x54a   : > { %v9437_v32 = vpop.f32.mrb[61].mxu0  ;;  %v2089_v39 = vsel %vm1188_vm4, %v11516_v40, -inf }
 0x54b   : > { %2090 = vmax.xlane.f32.xlu1 %v2089_v39  ;;  %v2018_v42 = vpop.f32.mrb[62].mxu0 }
 0x54c   : > { %v9438_v43 = vpop.f32.mrb[63].mxu0 }
 0x54d   : > { %v2065_v47 = vpop.f32.mrb[60].mxu1 }
 0x54e   : > { %v9443_v48 = vpop.f32.mrb[61].mxu1  ;;  %v2092_v38 = vsel %vm1188_vm4, %v2065_v47, -inf }
 0x54f   : > { %v2068_v50 = vpop.f32.mrb[62].mxu1  ;;  %2093 = vmax.xlane.f32.xlu0 %v2092_v38 }
 0x550   : > { %v9444_v52 = vpop.f32.mrb[63].mxu1 }
 0x55c   : > { %2407 = vrot.lane.b32.xlu1 %v11250_v8, %s10858_s21 }
 0x565   : > { %2359 = vrot.lane.b32.xlu0 %v11248_v7, %s10858_s21 }
 0x5c0   : > { %v2073_v56 = vpop.xlane.xlu0 %2072 }
 0x5c1   : > { %v2095_v60 = vsub.f32 %v1715_v51, %v2073_v56 }
 0x5c3   : > { %v2103_v62 = vmul.f32 1.442695, %v2095_v60 }
 0x5c4   : > { %v2076_v44 = vpop.xlane.xlu1 %2075 }
 0x5c5   : > { %10412 = vpow2.f32 %v2103_v62  ;;  %v2096_v63 = vsub.f32 %v1765_v57, %v2076_v44 }
 0x5c7   : > { %v2105_v3 = vmul.f32 1.442695, %v2096_v63 }
 0x5c8   : > { %v2079_v4 = vpop.xlane.xlu0 %2078 }
 0x5c9   : > { %10414 = vpow2.f32 %v2105_v3  ;;  %v2097_v45 = vsub.f32 %v1815_v1, %v2079_v4 }
 0x5cb   : > { %v2107_v53 = vmul.f32 1.442695, %v2097_v45 }
 0x5cc   : > { %v2082_v6 = vpop.xlane.xlu0 %2081 }
 0x5cd   : > { %10416 = vpow2.f32 %v2107_v53  ;;  %v2098_v2 = vsub.f32 %v1865_v59, %v2082_v6 }
 0x5cf   : > { %v11529_v9 = vpop.eup %10412  ;;  %v2109_v13 = vmul.f32 1.442695, %v2098_v2 }
 0x5d0   : > { %v2085_v16 = vpop.xlane.xlu1 %2084  ;;  %v2119_v19 = vsel %vm1188_vm4, %v11529_v9, 0.0 }
 0x5d1   : > { %10418 = vpow2.f32 %v2109_v13  ;;  %v2099_v51 = vsub.f32 %v1915_v14, %v2085_v16  ;;  %2120 = vadd.xlane.f32.xlu1 %v2119_v19  ;;  %v2269_v19 = vsel %vm1291_vm3, %v11525_v54, 0 }
 0x5d3   : > { %v11533_v20 = vpop.eup %10414  ;;  %v2111_v57 = vmul.f32 1.442695, %v2099_v51 }
 0x5d4   : > { %v2088_v22 = vpop.xlane.xlu0 %2087  ;;  %v2122_v1 = vsel %vm1188_vm4, %v11533_v20, 0.0 }
 0x5d5   : > { %10420 = vpow2.f32 %v2111_v57  ;;  %v2100_v28 = vsub.f32 %v1965_v27, %v2088_v22  ;;  %2123 = vadd.xlane.f32.xlu0 %v2122_v1  ;;  %v2317_v1 = vsel %vm1291_vm3, %v11527_v55, 0 }
 0x5d7   : > { %v11537_v59 = vpop.eup %10416  ;;  %v2113_v30 = vmul.f32 1.442695, %v2100_v28 }
 0x5d8   : > { %v2125_v31 = vsel %vm1188_vm4, %v11537_v59, 0.0  ;;  %v2091_v43 = vpop.xlane.xlu1 %2090 }
 0x5d9   : > { %10422 = vpow2.f32 %v2113_v30  ;;  %2126 = vadd.xlane.f32.xlu1 %v2125_v31  ;;  %v2101_v48 = vsub.f32 %v11516_v40, %v2091_v43 }
 0x5db   : > { %v11541_v14 = vpop.eup %10418  ;;  %v2115_v50 = vmul.f32 1.442695, %v2101_v48 }
 0x5dc   : > { %v2128_v35 = vsel %vm1188_vm4, %v11541_v14, 0.0  ;;  %v2094_v38 = vpop.xlane.xlu0 %2093  ;;  %v2408_v40 = vpop.permute.xlu1 %2407 }
 0x5dd   : > { %2129 = vadd.xlane.f32.xlu0 %v2128_v35  ;;  %v2102_v52 = vsub.f32 %v2065_v47, %v2094_v38  ;;  %10424 = vpow2.f32 %v2115_v50 }
 0x5df   : > { %v11545_v32 = vpop.eup %10420  ;;  %v2117_v56 = vmul.f32 1.442695, %v2102_v52 }
 0x5e0   : > { %v2131_v27 = vsel %vm1188_vm4, %v11545_v32, 0.0  ;;  %v2360_v47 = vpop.permute.xlu0 %2359 }
 0x5e1   : > { %2132 = vadd.xlane.f32.xlu1 %v2131_v27  ;;  %10426 = vpow2.f32 %v2117_v56  ;;  %v2365_v31 = vsel %vm1291_vm3, %v2360_v47, 0  ;;  %v2413_v27 = vsel %vm1291_vm3, %v2408_v40, 0 }
 0x5e3   : > { %v11549_v39 = vpop.eup %10422 }
 0x5e4   : > { %v2134_v42 = vsel %vm1188_vm4, %v11549_v39, 0.0 }
 0x5e5   : > { %2135 = vadd.xlane.f32.xlu0 %v2134_v42 }
 0x5e7   : > { %v11558_v60 = vpop.eup %10424 }
 0x5e8   : > { %v2137_v62 = vsel %vm1188_vm4, %v11558_v60, 0.0 }
 0x5eb   : > { %v11562_v44 = vpop.eup %10426 }
 0x5ec   : > { %v2140_v63 = vsel %vm1188_vm4, %v11562_v44, 0.0 }
 0x5f2   : > { %2503 = vrot.lane.b32.xlu1 %v11258_v24, %s10858_s21 }
 0x5fb   : > { %2455 = vrot.lane.b32.xlu0 %v11256_v23, %s10858_s21  ;;  %s10878_s21 = smov 16  }
 0x616   : > { %2138 = vadd.xlane.f32.xlu1 %v2137_v62 }
 0x61a   : > { %2141 = vadd.xlane.f32.xlu0 %v2140_v63 }
 0x627   : > { %2603 = vrot.lane.b32.xlu1 %v11234_v49, %s10859_s12 }
 0x62b   : > { %2601 = vrot.lane.b32.xlu1 %v11234_v49, %s10860_s25 }
 0x62f   : > { %2703 = vrot.lane.b32.xlu1 %v11242_v61, %s10859_s12 }
 0x630   : > { %2553 = vrot.lane.b32.xlu0 %v11232_v46, %s10859_s12 }
 0x633   : > { %2701 = vrot.lane.b32.xlu1 %v11242_v61, %s10860_s25 }
 0x634   : > { %2551 = vrot.lane.b32.xlu0 %v11232_v46, %s10860_s25 }
 0x637   : > { %2803 = vrot.lane.b32.xlu1 %v11250_v8, %s10859_s12 }
 0x638   : > { %2653 = vrot.lane.b32.xlu0 %v11240_v58, %s10859_s12 }
 0x63b   : > { %2801 = vrot.lane.b32.xlu1 %v11250_v8, %s10860_s25 }
 0x63c   : > { %2651 = vrot.lane.b32.xlu0 %v11240_v58, %s10860_s25 }
 0x63f   : > { %2903 = vrot.lane.b32.xlu1 %v11258_v24, %s10859_s12 }
 0x640   : > { %2753 = vrot.lane.b32.xlu0 %v11248_v7, %s10859_s12 }
 0x643   : > { %2901 = vrot.lane.b32.xlu1 %v11258_v24, %s10860_s25 }
 0x644   : > { %2751 = vrot.lane.b32.xlu0 %v11248_v7, %s10860_s25 }
 0x647   : > { %3047 = vrot.lane.b32.xlu1 %v11232_v46, %s10861_s28 }
 0x648   : > { %2853 = vrot.lane.b32.xlu0 %v11256_v23, %s10859_s12  ;;  %s10879_s12 = smov 24  }
 0x64b   : > { %3143 = vrot.lane.b32.xlu1 %v11240_v58, %s10861_s28 }
 0x64c   : > { %2851 = vrot.lane.b32.xlu0 %v11256_v23, %s10860_s25  ;;  %s10880_s25 = smov 4  }
 0x64f   : > { %3191 = vrot.lane.b32.xlu1 %v11242_v61, %s10861_s28 }
 0x650   : > { %3095 = vrot.lane.b32.xlu0 %v11234_v49, %s10861_s28 }
 0x65e   : > { %v2121_v3 = vpop.xlane.xlu1 %2120 }
 0x65f   : > { %10428 = vrcp.f32 %v2121_v3 }
 0x662   : > { %v2124_v4 = vpop.xlane.xlu0 %2123 }
 0x663   : > { %10430 = vrcp.f32 %v2124_v4 }
 0x666   : > { %v2127_v45 = vpop.xlane.xlu1 %2126 }
 0x667   : > { %10432 = vrcp.f32 %v2127_v45 }
 0x669   : > { %v10429_v53 = vpop.eup %10428 }
 0x66a   : > { %v2130_v6 = vpop.xlane.xlu0 %2129  ;;  %v2151_v2 = vmul.f32 %v10429_v53, %v11529_v9 }
 0x66b   : > { %10434 = vrcp.f32 %v2130_v6 }
 0x66c   : > { %v2159_v13 = vpack.c.bf16 %v2151_v2, %v2151_v2 }
 0x66d   : > { %v10431_v16 = vpop.eup %10430 }
 0x66e   : > { %9448 = vmatmul.mubr.msk.bf16.vlgmr.msra.gmra.mrb[64].mxu0 %vm1287_vm5, %v2159_v13  ;;  %v2133_v51 = vpop.xlane.xlu1 %2132  ;;  %v2152_v57 = vmul.f32 %v10431_v16, %v11533_v20 }
 0x66f   : > { %9458 = vmatpush3.bf16.msra.mxu0 %v2269_v19  ;;  %10436 = vrcp.f32 %v2133_v51  ;;  %9459 = vmatprep.mubr.msk.bf16.mxu0 %vm10853_vm0, %v13116_v0 }
 0x670   : > { %v2160_v22 = vpack.c.bf16 %v2152_v57, %v2152_v57  ;;  %9469 = vmatprep.subr.bf16.mxu0 %v13116_v0 }
 0x671   : > { %v10433_v9 = vpop.eup %10432 }
 0x672   : > { %9454 = vmatmul.mubr.msk.bf16.vlgmr.msra.gmra.mrb[64].mxu1 %vm1287_vm5, %v2160_v22  ;;  %v2136_v54 = vpop.xlane.xlu0 %2135  ;;  %v2153_v28 = vmul.f32 %v10433_v9, %v11537_v59  ;;  %v2504_v52 = vpop.permute.xlu1 %2503 }
 0x673   : > { %9464 = vmatpush3.bf16.msra.mxu1 %v2317_v1  ;;  %10438 = vrcp.f32 %v2136_v54  ;;  %9465 = vmatprep.mubr.msk.bf16.mxu1 %vm10853_vm0, %v13116_v0  ;;  %v2509_v56 = vsel %vm1291_vm3, %v2504_v52, 0 }
 0x674   : > { %v2161_v20 = vpack.c.bf16 %v2153_v28, %v2153_v28  ;;  %9475 = vmatprep.subr.bf16.mxu1 %v13116_v0 }
 0x675   : > { %v10435_v30 = vpop.eup %10434 }
 0x676   : > { %9460 = vmatmul.mubr.msk.bf16.vlgmr.msra.gmra.mrb[68].mxu0 %vm1287_vm5, %v2161_v20  ;;  %v2154_v55 = vmul.f32 %v10435_v30, %v11541_v14  ;;  %v2456_v43 = vpop.permute.xlu0 %2455 }
 0x677   : > { %9470 = vmatpush3.bf16.msra.mxu0 %v2365_v31  ;;  %9471 = vmatprep.mubr.msk.bf16.mxu0 %vm10853_vm0, %v13116_v0  ;;  %v2461_v38 = vsel %vm1291_vm3, %v2456_v43, 0 }
 0x678   : > { %v2162_v59 = vpack.c.bf16 %v2154_v55, %v2154_v55  ;;  %9481 = vmatprep.subr.bf16.mxu0 %v13116_v0 }
 0x679   : > { %v10437_v35 = vpop.eup %10436 }
 0x67a   : > { %9466 = vmatmul.mubr.msk.bf16.vlgmr.msra.gmra.mrb[68].mxu1 %vm1287_vm5, %v2162_v59  ;;  %v2155_v42 = vmul.f32 %v10437_v35, %v11545_v32 }
 0x67b   : > { %9476 = vmatpush3.bf16.msra.mxu1 %v2413_v27  ;;  %9477 = vmatprep.mubr.msk.bf16.mxu1 %vm10853_vm0, %v13116_v0 }
 0x67c   : > { %v2163_v14 = vpack.c.bf16 %v2155_v42, %v2155_v42  ;;  %9487 = vmatprep.subr.bf16.mxu1 %v13116_v0 }
 0x67d   : > { %v10439_v48 = vpop.eup %10438 }
 0x67e   : > { %9472 = vmatmul.mubr.msk.bf16.vlgmr.msra.gmra.mrb[72].mxu0 %vm1287_vm5, %v2163_v14  ;;  %v2156_v50 = vmul.f32 %v10439_v48, %v11549_v39 }
 0x67f   : > { %9482 = vmatpush3.bf16.msra.mxu0 %v2461_v38  ;;  %9483 = vmatprep.mubr.msk.bf16.mxu0 %vm10853_vm0, %v13116_v0 }
 0x680   : > { %v2164_v32 = vpack.c.bf16 %v2156_v50, %v2156_v50  ;;  %9493 = vmatprep.subr.bf16.mxu0 %v13116_v0 }
 0x682   : > { %9478 = vmatmul.mubr.msk.bf16.vlgmr.msra.gmra.mrb[72].mxu1 %vm1287_vm5, %v2164_v32 }
 0x683   : > { %9488 = vmatpush3.bf16.msra.mxu1 %v2509_v56  ;;  %9489 = vmatprep.mubr.msk.bf16.mxu1 %vm10853_vm0, %v13116_v0 }
 0x684   : > { %9499 = vmatprep.subr.bf16.mxu1 %v13116_v0 }
 0x6a3   : > { %v2139_v62 = vpop.xlane.xlu1 %2138 }
 0x6a4   : > { %10440 = vrcp.f32 %v2139_v62 }
 0x6a7   : > { %v2142_v39 = vpop.xlane.xlu0 %2141  ;;  %v2604_v63 = vpop.permute.xlu1 %2603 }
 0x6a8   : > { %10442 = vrcp.f32 %v2142_v39  ;;  %v2609_v22 = vsel %vm798_vm2, %v2604_v63, 0 }
 0x6ab   : > { %v2554_v40 = vpop.permute.xlu0 %2553  ;;  %v2602_v47 = vpop.permute.xlu1 %2601 }
 0x6ac   : > { %v2559_v13 = vsel %vm798_vm2, %v2554_v40, 0 }
 0x6ae   : > { %v10441_v3 = vpop.eup %10440 }
 0x6af   : > { %v2552_v4 = vpop.permute.xlu0 %2551  ;;  %v2704_v45 = vpop.permute.xlu1 %2703  ;;  %v2157_v53 = vmul.f32 %v10441_v3, %v11558_v60 }
 0x6b0   : > { %v2709_v28 = vsel %vm798_vm2, %v2704_v45, 0 }
 0x6b1   : > { %v2165_v6 = vpack.c.bf16 %v2157_v53, %v2157_v53 }
 0x6b2   : > { %v10443_v2 = vpop.eup %10442 }
 0x6b3   : > { %v2654_v16 = vpop.permute.xlu0 %2653  ;;  %9484 = vmatmul.mubr.msk.bf16.vlgmr.msra.gmra.mrb[76].mxu0 %vm1287_vm5, %v2165_v6  ;;  %v2702_v19 = vpop.permute.xlu1 %2701  ;;  %v2158_v51 = vmul.f32 %v10443_v2, %v11562_v44 }
 0x6b4   : > { %9494 = vmatpush3.bf16.xpose.msra.mxu0 %v2559_v13  ;;  %9495 = vmatprep.mubr.msk.bf16.mxu0 %vm10853_vm0, %v13116_v0  ;;  %v2659_v44 = vsel %vm798_vm2, %v2654_v16, 0 }
 0x6b5   : > { %v2166_v57 = vpack.c.bf16 %v2158_v51, %v2158_v51  ;;  %9505 = vmatprep.subr.bf16.mxu0 %v13116_v0 }
 0x6b7   : > { %v2652_v60 = vpop.permute.xlu0 %2651  ;;  %9490 = vmatmul.mubr.msk.bf16.vlgmr.msra.gmra.mrb[76].mxu1 %vm1287_vm5, %v2166_v57  ;;  %v2804_v9 = vpop.permute.xlu1 %2803 }
 0x6b8   : > { %9500 = vmatpush3.bf16.xpose.msra.mxu1 %v2609_v22  ;;  %9501 = vmatprep.mubr.msk.bf16.mxu1 %vm10853_vm0, %v13116_v0  ;;  %v2809_v55 = vsel %vm798_vm2, %v2804_v9, 0 }
 0x6b9   : > { %9511 = vmatprep.subr.bf16.mxu1 %v13116_v0 }
 0x6bb   : > { %9496 = vmatmul.mubr.msk.bf16.vlgmr.msra.gmra.mrb[80].mxu0 %vm798_vm2, %v2552_v4  ;;  %v2754_v1 = vpop.permute.xlu0 %2753  ;;  %v2802_v54 = vpop.permute.xlu1 %2801 }
 0x6bc   : > { %9506 = vmatpush3.bf16.xpose.msra.mxu0 %v2659_v44  ;;  %9507 = vmatprep.mubr.msk.bf16.mxu0 %vm10853_vm0, %v13116_v0  ;;  %v2759_v30 = vsel %vm798_vm2, %v2754_v1, 0 }
 0x6bd   : > { %9517 = vmatprep.subr.bf16.mxu0 %v13116_v0 }
 0x6bf   : > { %9502 = vmatmul.mubr.msk.bf16.vlgmr.msra.gmra.mrb[80].mxu1 %vm798_vm2, %v2602_v47  ;;  %v2752_v20 = vpop.permute.xlu0 %2751  ;;  %v2904_v31 = vpop.permute.xlu1 %2903 }
 0x6c0   : > { %9512 = vmatpush3.bf16.xpose.msra.mxu1 %v2709_v28  ;;  %9513 = vmatprep.mubr.msk.bf16.mxu1 %vm10853_vm0, %v13116_v0  ;;  %v2909_v43 = vsel %vm798_vm2, %v2904_v31, 0 }
 0x6c1   : > { %9523 = vmatprep.subr.bf16.mxu1 %v13116_v0 }
 0x6c3   : > { %9508 = vmatmul.mubr.msk.bf16.vlgmr.msra.gmra.mrb[84].mxu0 %vm798_vm2, %v2652_v60  ;;  %v2854_v59 = vpop.permute.xlu0 %2853  ;;  %v2902_v35 = vpop.permute.xlu1 %2901 }
 0x6c4   : > { %9518 = vmatpush3.bf16.xpose.msra.mxu0 %v2759_v30  ;;  %9519 = vmatprep.mubr.msk.bf16.mxu0 %vm10853_vm0, %v13116_v0  ;;  %v2859_v27 = vsel %vm798_vm2, %v2854_v59, 0 }
 0x6c5   : > { %9529 = vmatprep.subr.bf16.mxu0 %v13116_v0 }
 0x6c7   : > { %9514 = vmatmul.mubr.msk.bf16.vlgmr.msra.gmra.mrb[84].mxu1 %vm798_vm2, %v2702_v19  ;;  %v2852_v42 = vpop.permute.xlu0 %2851  ;;  %v3048_v14 = vpop.permute.xlu1 %3047 }
 0x6c8   : > { %9524 = vmatpush3.bf16.xpose.msra.mxu1 %v2809_v55  ;;  %9525 = vmatprep.mubr.msk.bf16.mxu1 %vm10853_vm0, %v13116_v0  ;;  %v3053_v48 = vsel %vm1291_vm3, %v3048_v14, 0 }
 0x6c9   : > { %9535 = vmatprep.subr.bf16.mxu1 %v13116_v0 }
 0x6cb   : > { %9520 = vmatmul.mubr.msk.bf16.vlgmr.msra.gmra.mrb[88].mxu0 %vm798_vm2, %v2752_v20  ;;  %v3096_v38 = vpop.permute.xlu0 %3095 }
 0x6cc   : > { %9530 = vmatpush3.bf16.xpose.msra.mxu0 %v2859_v27  ;;  %9531 = vmatprep.mubr.msk.bf16.mxu0 %vm10853_vm0, %v13116_v0  ;;  %v3101_v50 = vsel %vm1291_vm3, %v3096_v38, 0 }
 0x6cd   : > { %9541 = vmatprep.subr.bf16.mxu0 %v13116_v0 }
 0x6cf   : > { %9526 = vmatmul.mubr.msk.bf16.vlgmr.msra.gmra.mrb[88].mxu1 %vm798_vm2, %v2802_v54 }
 0x6d0   : > { %9536 = vmatpush3.bf16.xpose.msra.mxu1 %v2909_v43  ;;  %9537 = vmatprep.mubr.msk.bf16.mxu1 %vm10853_vm0, %v13116_v0 }
 0x6d1   : > { %9547 = vmatprep.subr.bf16.mxu1 %v13116_v0 }
 0x6d3   : > { %9532 = vmatmul.mubr.msk.bf16.vlgmr.msra.gmra.mrb[92].mxu0 %vm798_vm2, %v2852_v42 }
 0x6d4   : > { %9542 = vmatpush3.bf16.msra.mxu0 %v3053_v48  ;;  %9543 = vmatprep.mubr.msk.bf16.mxu0 %vm10853_vm0, %v13116_v0 }
 0x6d5   : > { %9553 = vmatprep.subr.bf16.mxu0 %v13116_v0 }
 0x6d7   : > { %9538 = vmatmul.mubr.msk.bf16.vlgmr.msra.gmra.mrb[92].mxu1 %vm798_vm2, %v2902_v35 }
 0x6d8   : > { %9548 = vmatpush3.bf16.msra.mxu1 %v3101_v50  ;;  %9549 = vmatprep.mubr.msk.bf16.mxu1 %vm10853_vm0, %v13116_v0 }
 0x6d9   : > { %9559 = vmatprep.subr.bf16.mxu1 %v13116_v0 }
 0x741   : > { %v11680_v52 = vpop.f32.mrb[64].mxu0 }
 0x742   : > { %v9449_v32 = vpop.f32.mrb[65].mxu0 }
 0x743   : > { %v2212_v56 = vpop.f32.mrb[66].mxu0 }
 0x744   : > { %v9450_v62 = vpop.f32.mrb[67].mxu0 }
 0x745   : > { %v11682_v39 = vpop.f32.mrb[64].mxu1 }
 0x746   : > { %v9455_v40 = vpop.f32.mrb[65].mxu1 }
 0x747   : > { %v2260_v47 = vpop.f32.mrb[66].mxu1 }
 0x748   : > { %v9456_v3 = vpop.f32.mrb[67].mxu1 }
 0x749   : > { %v11686_v4 = vpop.f32.mrb[68].mxu0 }
 0x74a   : > { %v9461_v45 = vpop.f32.mrb[69].mxu0 }
 0x74b   : > { %v2308_v53 = vpop.f32.mrb[70].mxu0 }
 0x74c   : > { %v9462_v6 = vpop.f32.mrb[71].mxu0 }
 0x74d   : > { %v11688_v2 = vpop.f32.mrb[68].mxu1 }
 0x74e   : > { %v9467_v16 = vpop.f32.mrb[69].mxu1 }
 0x74f   : > { %v2356_v19 = vpop.f32.mrb[70].mxu1 }
 0x750   : > { %v9468_v51 = vpop.f32.mrb[71].mxu1 }
 0x751   : > { %v11692_v57 = vpop.f32.mrb[72].mxu0 }
 0x752   : > { %v9473_v22 = vpop.f32.mrb[73].mxu0 }
 0x753   : > { %v2404_v60 = vpop.f32.mrb[74].mxu0 }
 0x754   : > { %v9474_v9 = vpop.f32.mrb[75].mxu0 }
 0x755   : > { %v11694_v44 = vpop.f32.mrb[72].mxu1 }
 0x756   : > { %v9479_v54 = vpop.f32.mrb[73].mxu1 }
 0x757   : > { %v2452_v28 = vpop.f32.mrb[74].mxu1 }
 0x758   : > { %v9480_v20 = vpop.f32.mrb[75].mxu1 }
 0x786   : > { %v11698_v30 = vpop.f32.mrb[76].mxu0 }
 0x787   : > { %13159 = vst [vmem:[#allocation32_spill] sm:$0xff] %v11698_v30  ;;  %v9485_v31 = vpop.f32.mrb[77].mxu0 }
 0x788   : > { %v2500_v55 = vpop.f32.mrb[78].mxu0 }
 0x789   : > { %v9486_v59 = vpop.f32.mrb[79].mxu0 }
 0x78a   : > { %v11700_v35 = vpop.f32.mrb[76].mxu1 }
 0x78b   : > { %13160 = vst [vmem:[#allocation33_spill] sm:$0xff] %v11700_v35  ;;  %v9491_v42 = vpop.f32.mrb[77].mxu1 }
 0x78c   : > { %v2548_v43 = vpop.f32.mrb[78].mxu1 }
 0x78d   : > { %v9492_v14 = vpop.f32.mrb[79].mxu1 }
 0x78e   : > { %v2595_v48 = vpop.f32.mrb[80].mxu0 }
 0x78f   : > { %v9497_v38 = vpop.f32.mrb[81].mxu0  ;;  %v2951_v50 = vsel %vm1188_vm4, %v2595_v48, -inf }
 0x790   : > { %2952 = vmax.xlane.f32.xlu0 %v2951_v50  ;;  %v2598_v32 = vpop.f32.mrb[82].mxu0 }
 0x791   : > { %v9498_v56 = vpop.f32.mrb[83].mxu0 }
 0x792   : > { %v2645_v62 = vpop.f32.mrb[80].mxu1 }
 0x793   : > { %v9503_v40 = vpop.f32.mrb[81].mxu1  ;;  %v2954_v47 = vsel %vm1188_vm4, %v2645_v62, -inf }
 0x794   : > { %2955 = vmax.xlane.f32.xlu1 %v2954_v47  ;;  %v2648_v3 = vpop.f32.mrb[82].mxu1 }
 0x795   : > { %v9504_v45 = vpop.f32.mrb[83].mxu1 }
 0x796   : > { %v2695_v53 = vpop.f32.mrb[84].mxu0 }
 0x797   : > { %v9509_v6 = vpop.f32.mrb[85].mxu0  ;;  %v2957_v16 = vsel %vm1188_vm4, %v2695_v53, -inf }
 0x798   : > { %2958 = vmax.xlane.f32.xlu0 %v2957_v16  ;;  %v2698_v19 = vpop.f32.mrb[86].mxu0 }
 0x799   : > { %v9510_v51 = vpop.f32.mrb[87].mxu0 }
 0x79a   : > { %v2745_v22 = vpop.f32.mrb[84].mxu1 }
 0x79b   : > { %v9515_v60 = vpop.f32.mrb[85].mxu1  ;;  %v2960_v9 = vsel %vm1188_vm4, %v2745_v22, -inf }
 0x79c   : > { %v2748_v54 = vpop.f32.mrb[86].mxu1  ;;  %2961 = vmax.xlane.f32.xlu0 %v2960_v9  ;;  %v11719_v9 = vpop.permute.xlu1 %3143 }
 0x79d   : > { %v9516_v28 = vpop.f32.mrb[87].mxu1 }
 0x79e   : > { %v2795_v20 = vpop.f32.mrb[88].mxu0 }
 0x79f   : > { %v9521_v31 = vpop.f32.mrb[89].mxu0  ;;  %v2963_v55 = vsel %vm1188_vm4, %v2795_v20, -inf }
 0x7a0   : > { %2964 = vmax.xlane.f32.xlu1 %v2963_v55  ;;  %v2798_v59 = vpop.f32.mrb[90].mxu0  ;;  %v11721_v54 = vpop.permute.xlu1 %3191 }
 0x7a1   : > { %v9522_v42 = vpop.f32.mrb[91].mxu0 }
 0x7a2   : > { %v2845_v43 = vpop.f32.mrb[88].mxu1 }
 0x7a3   : > { %v9527_v14 = vpop.f32.mrb[89].mxu1  ;;  %v2966_v38 = vsel %vm1188_vm4, %v2845_v43, -inf }
 0x7a4   : > { %v2848_v50 = vpop.f32.mrb[90].mxu1  ;;  %2967 = vmax.xlane.f32.xlu0 %v2966_v38 }
 0x7a5   : > { %v9528_v32 = vpop.f32.mrb[91].mxu1 }
 0x7a6   : > { %v11710_v56 = vpop.f32.mrb[92].mxu0 }
 0x7a7   : > { %v9533_v40 = vpop.f32.mrb[93].mxu0  ;;  %v2969_v47 = vsel %vm1188_vm4, %v11710_v56, -inf }
 0x7a8   : > { %2970 = vmax.xlane.f32.xlu1 %v2969_v47  ;;  %v2898_v3 = vpop.f32.mrb[94].mxu0 }
 0x7a9   : > { %v9534_v45 = vpop.f32.mrb[95].mxu0 }
 0x7aa   : > { %v2945_v6 = vpop.f32.mrb[92].mxu1 }
 0x7ab   : > { %v9539_v16 = vpop.f32.mrb[93].mxu1  ;;  %v2972_v19 = vsel %vm1188_vm4, %v2945_v6, -inf }
 0x7ac   : > { %v2948_v51 = vpop.f32.mrb[94].mxu1  ;;  %2973 = vmax.xlane.f32.xlu0 %v2972_v19 }
 0x7ad   : > { %v9540_v60 = vpop.f32.mrb[95].mxu1 }
 0x7b9   : > { %3287 = vrot.lane.b32.xlu1 %v11250_v8, %s10861_s28 }
 0x7c2   : > { %3239 = vrot.lane.b32.xlu0 %v11248_v7, %s10861_s28 }
 0x81d   : > { %v2953_v28 = vpop.xlane.xlu0 %2952 }
 0x81e   : > { %v2975_v31 = vsub.f32 %v2595_v48, %v2953_v28 }
 0x820   : > { %v2983_v55 = vmul.f32 1.442695, %v2975_v31 }
 0x821   : > { %v2956_v59 = vpop.xlane.xlu1 %2955 }
 0x822   : > { %10444 = vpow2.f32 %v2983_v55  ;;  %v2976_v42 = vsub.f32 %v2645_v62, %v2956_v59 }
 0x824   : > { %v2985_v14 = vmul.f32 1.442695, %v2976_v42 }
 0x825   : > { %v2959_v38 = vpop.xlane.xlu0 %2958 }
 0x826   : > { %10446 = vpow2.f32 %v2985_v14  ;;  %v2977_v50 = vsub.f32 %v2695_v53, %v2959_v38 }
 0x828   : > { %v2987_v32 = vmul.f32 1.442695, %v2977_v50 }
 0x829   : > { %v2962_v40 = vpop.xlane.xlu0 %2961 }
 0x82a   : > { %10448 = vpow2.f32 %v2987_v32  ;;  %v2978_v47 = vsub.f32 %v2745_v22, %v2962_v40 }
 0x82c   : > { %v11723_v3 = vpop.eup %10444  ;;  %v2989_v45 = vmul.f32 1.442695, %v2978_v47 }
 0x82d   : > { %v2965_v16 = vpop.xlane.xlu1 %2964  ;;  %v2999_v19 = vsel %vm1188_vm4, %v11723_v3, 0.0 }
 0x82e   : > { %10450 = vpow2.f32 %v2989_v45  ;;  %v2979_v48 = vsub.f32 %v2795_v20, %v2965_v16  ;;  %3000 = vadd.xlane.f32.xlu1 %v2999_v19 }
 0x830   : > { %v11727_v51 = vpop.eup %10446  ;;  %v2991_v62 = vmul.f32 1.442695, %v2979_v48 }
 0x831   : > { %v2968_v60 = vpop.xlane.xlu0 %2967  ;;  %v3002_v53 = vsel %vm1188_vm4, %v11727_v51, 0.0 }
 0x832   : > { %10452 = vpow2.f32 %v2991_v62  ;;  %v2980_v28 = vsub.f32 %v2845_v43, %v2968_v60  ;;  %3003 = vadd.xlane.f32.xlu0 %v3002_v53 }
 0x834   : > { %v11731_v22 = vpop.eup %10448  ;;  %v2993_v31 = vmul.f32 1.442695, %v2980_v28 }
 0x835   : > { %v3005_v55 = vsel %vm1188_vm4, %v11731_v22, 0.0  ;;  %v2971_v50 = vpop.xlane.xlu1 %2970 }
 0x836   : > { %10454 = vpow2.f32 %v2993_v31  ;;  %3006 = vadd.xlane.f32.xlu1 %v3005_v55  ;;  %v2981_v32 = vsub.f32 %v11710_v56, %v2971_v50 }
 0x838   : > { %v11735_v20 = vpop.eup %10450  ;;  %v2995_v47 = vmul.f32 1.442695, %v2981_v32  ;;  %v3149_v32 = vsel %vm1291_vm3, %v11719_v9, 0 }
 0x839   : > { %v3008_v59 = vsel %vm1188_vm4, %v11735_v20, 0.0  ;;  %v2974_v40 = vpop.xlane.xlu0 %2973  ;;  %v3288_v56 = vpop.permute.xlu1 %3287 }
 0x83a   : > { %3009 = vadd.xlane.f32.xlu0 %v3008_v59  ;;  %v2982_v45 = vsub.f32 %v2945_v6, %v2974_v40  ;;  %10456 = vpow2.f32 %v2995_v47 }
 0x83c   : > { %v11739_v42 = vpop.eup %10452  ;;  %v2997_v16 = vmul.f32 1.442695, %v2982_v45 }
 0x83d   : > { %v3011_v43 = vsel %vm1188_vm4, %v11739_v42, 0.0  ;;  %v3240_v6 = vpop.permute.xlu0 %3239 }
 0x83e   : > { %3012 = vadd.xlane.f32.xlu1 %v3011_v43  ;;  %10458 = vpow2.f32 %v2997_v16  ;;  %v3197_v16 = vsel %vm1291_vm3, %v11721_v54, 0 }
 0x840   : > { %v11743_v14 = vpop.eup %10454 }
 0x841   : > { %v3014_v38 = vsel %vm1188_vm4, %v11743_v14, 0.0 }
 0x842   : > { %3015 = vadd.xlane.f32.xlu0 %v3014_v38 }
 0x844   : > { %v11752_v19 = vpop.eup %10456 }
 0x845   : > { %v3017_v48 = vsel %vm1188_vm4, %v11752_v19, 0.0 }
 0x848   : > { %v11756_v62 = vpop.eup %10458 }
 0x849   : > { %v3020_v60 = vsel %vm1188_vm4, %v11756_v62, 0.0 }
 0x84f   : > { %3383 = vrot.lane.b32.xlu1 %v11258_v24, %s10861_s28 }
 0x858   : > { %3335 = vrot.lane.b32.xlu0 %v11256_v23, %s10861_s28  ;;  %s10881_s28 = smov 12  }
 0x873   : > { %3018 = vadd.xlane.f32.xlu1 %v3017_v48 }
 0x877   : > { %3021 = vadd.xlane.f32.xlu0 %v3020_v60 }
 0x884   : > { %3483 = vrot.lane.b32.xlu1 %v11234_v49, %s10862_s11 }
 0x888   : > { %3481 = vrot.lane.b32.xlu1 %v11234_v49, %s10863_s13 }
 0x88c   : > { %3583 = vrot.lane.b32.xlu1 %v11242_v61, %s10862_s11 }
 0x88d   : > { %3433 = vrot.lane.b32.xlu0 %v11232_v46, %s10862_s11 }
 0x890   : > { %3581 = vrot.lane.b32.xlu1 %v11242_v61, %s10863_s13 }
 0x891   : > { %3431 = vrot.lane.b32.xlu0 %v11232_v46, %s10863_s13 }
 0x894   : > { %3683 = vrot.lane.b32.xlu1 %v11250_v8, %s10862_s11 }
 0x895   : > { %3533 = vrot.lane.b32.xlu0 %v11240_v58, %s10862_s11 }
 0x898   : > { %3681 = vrot.lane.b32.xlu1 %v11250_v8, %s10863_s13 }
 0x899   : > { %3531 = vrot.lane.b32.xlu0 %v11240_v58, %s10863_s13 }
 0x89c   : > { %3783 = vrot.lane.b32.xlu1 %v11258_v24, %s10862_s11 }
 0x89d   : > { %3633 = vrot.lane.b32.xlu0 %v11248_v7, %s10862_s11 }
 0x8a0   : > { %3781 = vrot.lane.b32.xlu1 %v11258_v24, %s10863_s13 }
 0x8a1   : > { %3631 = vrot.lane.b32.xlu0 %v11248_v7, %s10863_s13 }
 0x8a4   : > { %3927 = vrot.lane.b32.xlu1 %v11232_v46, %s10864_s16 }
 0x8a5   : > { %3733 = vrot.lane.b32.xlu0 %v11256_v23, %s10862_s11  ;;  %s10882_s11 = smov 20  }
 0x8a8   : > { %4023 = vrot.lane.b32.xlu1 %v11240_v58, %s10864_s16 }
 0x8a9   : > { %3731 = vrot.lane.b32.xlu0 %v11256_v23, %s10863_s13  ;;  %s10883_s13 = smov 28  }
 0x8ac   : > { %4071 = vrot.lane.b32.xlu1 %v11242_v61, %s10864_s16 }
 0x8ad   : > { %3975 = vrot.lane.b32.xlu0 %v11234_v49, %s10864_s16 }
 0x8bb   : > { %v3001_v53 = vpop.xlane.xlu1 %3000 }
 0x8bc   : > { %10460 = vrcp.f32 %v3001_v53  ;;  %v3245_v53 = vsel %vm1291_vm3, %v3240_v6, 0 }
 0x8bf   : > { %v3004_v28 = vpop.xlane.xlu0 %3003 }
 0x8c0   : > { %10462 = vrcp.f32 %v3004_v28 }
 0x8c3   : > { %v3007_v31 = vpop.xlane.xlu1 %3006 }
 0x8c4   : > { %10464 = vrcp.f32 %v3007_v31  ;;  %v3293_v31 = vsel %vm1291_vm3, %v3288_v56, 0 }
 0x8c6   : > { %v10461_v55 = vpop.eup %10460 }
 0x8c7   : > { %v3010_v59 = vpop.xlane.xlu0 %3009  ;;  %v3031_v43 = vmul.f32 %v10461_v55, %v11723_v3 }
 0x8c8   : > { %10466 = vrcp.f32 %v3010_v59 }
 0x8c9   : > { %v3039_v38 = vpack.c.bf16 %v3031_v43, %v3031_v43 }
 0x8ca   : > { %v10463_v50 = vpop.eup %10462 }
 0x8cb   : > { %9544 = vmatmul.mubr.msk.bf16.vlgmr.msra.gmra.mrb[96].mxu0 %vm1287_vm5, %v3039_v38  ;;  %v3013_v40 = vpop.xlane.xlu1 %3012  ;;  %v3032_v47 = vmul.f32 %v10463_v50, %v11727_v51 }
 0x8cc   : > { %9554 = vmatpush3.bf16.msra.mxu0 %v3149_v32  ;;  %10468 = vrcp.f32 %v3013_v40  ;;  %9555 = vmatprep.mubr.msk.bf16.mxu0 %vm10853_vm0, %v13116_v0 }
 0x8cd   : > { %v3040_v45 = vpack.c.bf16 %v3032_v47, %v3032_v47  ;;  %9565 = vmatprep.subr.bf16.mxu0 %v13116_v0 }
 0x8ce   : > { %v10465_v3 = vpop.eup %10464 }
 0x8cf   : > { %9550 = vmatmul.mubr.msk.bf16.vlgmr.msra.gmra.mrb[96].mxu1 %vm1287_vm5, %v3040_v45  ;;  %v3016_v9 = vpop.xlane.xlu0 %3015  ;;  %v3033_v48 = vmul.f32 %v10465_v3, %v11731_v22  ;;  %v3384_v56 = vpop.permute.xlu1 %3383 }
 0x8d0   : > { %9560 = vmatpush3.bf16.msra.mxu1 %v3197_v16  ;;  %10470 = vrcp.f32 %v3016_v9  ;;  %9561 = vmatprep.mubr.msk.bf16.mxu1 %vm10853_vm0, %v13116_v0  ;;  %v3389_v50 = vsel %vm1291_vm3, %v3384_v56, 0 }
 0x8d1   : > { %v3041_v51 = vpack.c.bf16 %v3033_v48, %v3033_v48  ;;  %9571 = vmatprep.subr.bf16.mxu1 %v13116_v0 }
 0x8d2   : > { %v10467_v60 = vpop.eup %10466 }
 0x8d3   : > { %9556 = vmatmul.mubr.msk.bf16.vlgmr.msra.gmra.mrb[100].mxu0 %vm1287_vm5, %v3041_v51  ;;  %v3034_v54 = vmul.f32 %v10467_v60, %v11735_v20  ;;  %v3336_v59 = vpop.permute.xlu0 %3335 }
 0x8d4   : > { %9566 = vmatpush3.bf16.msra.mxu0 %v3245_v53  ;;  %9567 = vmatprep.mubr.msk.bf16.mxu0 %vm10853_vm0, %v13116_v0  ;;  %v3341_v43 = vsel %vm1291_vm3, %v3336_v59, 0 }
 0x8d5   : > { %v3042_v22 = vpack.c.bf16 %v3034_v54, %v3034_v54  ;;  %9577 = vmatprep.subr.bf16.mxu0 %v13116_v0 }
 0x8d6   : > { %v10469_v28 = vpop.eup %10468 }
 0x8d7   : > { %9562 = vmatmul.mubr.msk.bf16.vlgmr.msra.gmra.mrb[100].mxu1 %vm1287_vm5, %v3042_v22  ;;  %v3035_v55 = vmul.f32 %v10469_v28, %v11739_v42 }
 0x8d8   : > { %9572 = vmatpush3.bf16.msra.mxu1 %v3293_v31  ;;  %9573 = vmatprep.mubr.msk.bf16.mxu1 %vm10853_vm0, %v13116_v0 }
 0x8d9   : > { %v3043_v20 = vpack.c.bf16 %v3035_v55, %v3035_v55  ;;  %9583 = vmatprep.subr.bf16.mxu1 %v13116_v0 }
 0x8da   : > { %v10471_v6 = vpop.eup %10470 }
 0x8db   : > { %9568 = vmatmul.mubr.msk.bf16.vlgmr.msra.gmra.mrb[104].mxu0 %vm1287_vm5, %v3043_v20  ;;  %v3036_v38 = vmul.f32 %v10471_v6, %v11743_v14 }
 0x8dc   : > { %9578 = vmatpush3.bf16.msra.mxu0 %v3341_v43  ;;  %9579 = vmatprep.mubr.msk.bf16.mxu0 %vm10853_vm0, %v13116_v0 }
 0x8dd   : > { %v3044_v42 = vpack.c.bf16 %v3036_v38, %v3036_v38  ;;  %9589 = vmatprep.subr.bf16.mxu0 %v13116_v0 }
 0x8df   : > { %9574 = vmatmul.mubr.msk.bf16.vlgmr.msra.gmra.mrb[104].mxu1 %vm1287_vm5, %v3044_v42 }
 0x8e0   : > { %9584 = vmatpush3.bf16.msra.mxu1 %v3389_v50  ;;  %9585 = vmatprep.mubr.msk.bf16.mxu1 %vm10853_vm0, %v13116_v0 }
 0x8e1   : > { %9595 = vmatprep.subr.bf16.mxu1 %v13116_v0 }
 0x900   : > { %v3019_v32 = vpop.xlane.xlu1 %3018 }
 0x901   : > { %10472 = vrcp.f32 %v3019_v32 }
 0x904   : > { %v3022_v14 = vpop.xlane.xlu0 %3021  ;;  %v3484_v40 = vpop.permute.xlu1 %3483 }
 0x905   : > { %10474 = vrcp.f32 %v3022_v14  ;;  %v3489_v55 = vsel %vm798_vm2, %v3484_v40, 0 }
 0x908   : > { %v3434_v47 = vpop.permute.xlu0 %3433  ;;  %v3482_v45 = vpop.permute.xlu1 %3481 }
 0x909   : > { %v3439_v53 = vsel %vm798_vm2, %v3434_v47, 0 }
 0x90b   : > { %v10473_v3 = vpop.eup %10472 }
 0x90c   : > { %v3432_v16 = vpop.permute.xlu0 %3431  ;;  %v3584_v9 = vpop.permute.xlu1 %3583  ;;  %v3037_v48 = vmul.f32 %v10473_v3, %v11752_v19 }
 0x90d   : > { %v3589_v43 = vsel %vm798_vm2, %v3584_v9, 0 }
 0x90e   : > { %v3045_v51 = vpack.c.bf16 %v3037_v48, %v3037_v48 }
 0x90f   : > { %v10475_v60 = vpop.eup %10474 }
 0x910   : > { %v3534_v54 = vpop.permute.xlu0 %3533  ;;  %9580 = vmatmul.mubr.msk.bf16.vlgmr.msra.gmra.mrb[108].mxu0 %vm1287_vm5, %v3045_v51  ;;  %v3582_v22 = vpop.permute.xlu1 %3581  ;;  %v3038_v28 = vmul.f32 %v10475_v60, %v11756_v62 }
 0x911   : > { %9590 = vmatpush3.bf16.xpose.msra.mxu0 %v3439_v53  ;;  %9591 = vmatprep.mubr.msk.bf16.mxu0 %vm10853_vm0, %v13116_v0  ;;  %v3539_v62 = vsel %vm798_vm2, %v3534_v54, 0 }
 0x912   : > { %v3046_v31 = vpack.c.bf16 %v3038_v28, %v3038_v28  ;;  %9601 = vmatprep.subr.bf16.mxu0 %v13116_v0 }
 0x914   : > { %v3532_v19 = vpop.permute.xlu0 %3531  ;;  %9586 = vmatmul.mubr.msk.bf16.vlgmr.msra.gmra.mrb[108].mxu1 %vm1287_vm5, %v3046_v31  ;;  %v3684_v59 = vpop.permute.xlu1 %3683 }
 0x915   : > { %9596 = vmatpush3.bf16.xpose.msra.mxu1 %v3489_v55  ;;  %9597 = vmatprep.mubr.msk.bf16.mxu1 %vm10853_vm0, %v13116_v0  ;;  %v3689_v50 = vsel %vm798_vm2, %v3684_v59, 0 }
 0x916   : > { %9607 = vmatprep.subr.bf16.mxu1 %v13116_v0 }
 0x918   : > { %9592 = vmatmul.mubr.msk.bf16.vlgmr.msra.gmra.mrb[112].mxu0 %vm798_vm2, %v3432_v16  ;;  %v3634_v20 = vpop.permute.xlu0 %3633  ;;  %v3682_v6 = vpop.permute.xlu1 %3681 }
 0x919   : > { %9602 = vmatpush3.bf16.xpose.msra.mxu0 %v3539_v62  ;;  %9603 = vmatprep.mubr.msk.bf16.mxu0 %vm10853_vm0, %v13116_v0  ;;  %v3639_v56 = vsel %vm798_vm2, %v3634_v20, 0 }
 0x91a   : > { %9613 = vmatprep.subr.bf16.mxu0 %v13116_v0 }
 0x91c   : > { %9598 = vmatmul.mubr.msk.bf16.vlgmr.msra.gmra.mrb[112].mxu1 %vm798_vm2, %v3482_v45  ;;  %v3632_v38 = vpop.permute.xlu0 %3631  ;;  %v3784_v42 = vpop.permute.xlu1 %3783 }
 0x91d   : > { %9608 = vmatpush3.bf16.xpose.msra.mxu1 %v3589_v43  ;;  %9609 = vmatprep.mubr.msk.bf16.mxu1 %vm10853_vm0, %v13116_v0  ;;  %v3789_v45 = vsel %vm798_vm2, %v3784_v42, 0 }
 0x91e   : > { %9619 = vmatprep.subr.bf16.mxu1 %v13116_v0 }
 0x920   : > { %9604 = vmatmul.mubr.msk.bf16.vlgmr.msra.gmra.mrb[116].mxu0 %vm798_vm2, %v3532_v19  ;;  %v3734_v32 = vpop.permute.xlu0 %3733  ;;  %v3782_v14 = vpop.permute.xlu1 %3781 }
 0x921   : > { %9614 = vmatpush3.bf16.xpose.msra.mxu0 %v3639_v56  ;;  %9615 = vmatprep.mubr.msk.bf16.mxu0 %vm10853_vm0, %v13116_v0  ;;  %v3739_v40 = vsel %vm798_vm2, %v3734_v32, 0 }
 0x922   : > { %9625 = vmatprep.subr.bf16.mxu0 %v13116_v0 }
 0x924   : > { %9610 = vmatmul.mubr.msk.bf16.vlgmr.msra.gmra.mrb[116].mxu1 %vm798_vm2, %v3582_v22  ;;  %v3732_v47 = vpop.permute.xlu0 %3731  ;;  %v3928_v3 = vpop.permute.xlu1 %3927 }
 0x925   : > { %9620 = vmatpush3.bf16.xpose.msra.mxu1 %v3689_v50  ;;  %9621 = vmatprep.mubr.msk.bf16.mxu1 %vm10853_vm0, %v13116_v0  ;;  %v3933_v16 = vsel %vm1291_vm3, %v3928_v3, 0 }
 0x926   : > { %9631 = vmatprep.subr.bf16.mxu1 %v13116_v0 }
 0x928   : > { %9616 = vmatmul.mubr.msk.bf16.vlgmr.msra.gmra.mrb[120].mxu0 %vm798_vm2, %v3632_v38  ;;  %v3976_v9 = vpop.permute.xlu0 %3975 }
 0x929   : > { %9626 = vmatpush3.bf16.xpose.msra.mxu0 %v3739_v40  ;;  %9627 = vmatprep.mubr.msk.bf16.mxu0 %vm10853_vm0, %v13116_v0  ;;  %v3981_v48 = vsel %vm1291_vm3, %v3976_v9, 0 }
 0x92a   : > { %9637 = vmatprep.subr.bf16.mxu0 %v13116_v0 }
 0x92c   : > { %9622 = vmatmul.mubr.msk.bf16.vlgmr.msra.gmra.mrb[120].mxu1 %vm798_vm2, %v3682_v6 }
 0x92d   : > { %9632 = vmatpush3.bf16.xpose.msra.mxu1 %v3789_v45  ;;  %9633 = vmatprep.mubr.msk.bf16.mxu1 %vm10853_vm0, %v13116_v0 }
 0x92e   : > { %9643 = vmatprep.subr.bf16.mxu1 %v13116_v0 }
 0x930   : > { %9628 = vmatmul.mubr.msk.bf16.vlgmr.msra.gmra.mrb[124].mxu0 %vm798_vm2, %v3732_v47 }
 0x931   : > { %9638 = vmatpush3.bf16.msra.mxu0 %v3933_v16  ;;  %9639 = vmatprep.mubr.msk.bf16.mxu0 %vm10853_vm0, %v13116_v0 }
 0x932   : > { %9649 = vmatprep.subr.bf16.mxu0 %v13116_v0 }
 0x934   : > { %9634 = vmatmul.mubr.msk.bf16.vlgmr.msra.gmra.mrb[124].mxu1 %vm798_vm2, %v3782_v14 }
 0x935   : > { %9644 = vmatpush3.bf16.msra.mxu1 %v3981_v48  ;;  %9645 = vmatprep.mubr.msk.bf16.mxu1 %vm10853_vm0, %v13116_v0 }
 0x936   : > { %9655 = vmatprep.subr.bf16.mxu1 %v13116_v0 }
 0x99e   : > { %v11874_v51 = vpop.f32.mrb[96].mxu0 }
 0x99f   : > { %v9545_v60 = vpop.f32.mrb[97].mxu0 }
 0x9a0   : > { %v3092_v53 = vpop.f32.mrb[98].mxu0 }
 0x9a1   : > { %v9546_v54 = vpop.f32.mrb[99].mxu0 }
 0x9a2   : > { %v11876_v22 = vpop.f32.mrb[96].mxu1 }
 0x9a3   : > { %v9551_v31 = vpop.f32.mrb[97].mxu1 }
 0x9a4   : > { %v3140_v55 = vpop.f32.mrb[98].mxu1 }
 0x9a5   : > { %v9552_v19 = vpop.f32.mrb[99].mxu1 }
 0x9a6   : > { %v11880_v59 = vpop.f32.mrb[100].mxu0 }
 0x9a7   : > { %v9557_v62 = vpop.f32.mrb[101].mxu0 }
 0x9a8   : > { %v3188_v20 = vpop.f32.mrb[102].mxu0 }
 0x9a9   : > { %v9558_v6 = vpop.f32.mrb[103].mxu0 }
 0x9aa   : > { %v11882_v43 = vpop.f32.mrb[100].mxu1 }
 0x9ab   : > { %v9563_v56 = vpop.f32.mrb[101].mxu1 }
 0x9ac   : > { %v3236_v42 = vpop.f32.mrb[102].mxu1 }
 0x9ad   : > { %v9564_v50 = vpop.f32.mrb[103].mxu1 }
 0x9ae   : > { %v11886_v32 = vpop.f32.mrb[104].mxu0 }
 0x9af   : > { %v9569_v14 = vpop.f32.mrb[105].mxu0 }
 0x9b0   : > { %v3284_v40 = vpop.f32.mrb[106].mxu0 }
 0x9b1   : > { %v9570_v47 = vpop.f32.mrb[107].mxu0 }
 0x9b2   : > { %v11888_v45 = vpop.f32.mrb[104].mxu1 }
 0x9b3   : > { %v9575_v16 = vpop.f32.mrb[105].mxu1 }
 0x9b4   : > { %v3332_v9 = vpop.f32.mrb[106].mxu1 }
 0x9b5   : > { %v9576_v48 = vpop.f32.mrb[107].mxu1 }
 0x9e3   : > { %v11892_v60 = vpop.f32.mrb[108].mxu0 }
 0x9e4   : > { %13161 = vst [vmem:[#allocation34_spill] sm:$0xff] %v11892_v60  ;;  %v9581_v53 = vpop.f32.mrb[109].mxu0 }
 0x9e5   : > { %v3380_v54 = vpop.f32.mrb[110].mxu0 }
 0x9e6   : > { %v9582_v31 = vpop.f32.mrb[111].mxu0 }
 0x9e7   : > { %v11894_v55 = vpop.f32.mrb[108].mxu1 }
 0x9e8   : > { %13162 = vst [vmem:[#allocation35_spill] sm:$0xff] %v11894_v55  ;;  %v9587_v62 = vpop.f32.mrb[109].mxu1 }
 0x9e9   : > { %v3428_v20 = vpop.f32.mrb[110].mxu1 }
 0x9ea   : > { %v9588_v6 = vpop.f32.mrb[111].mxu1 }
 0x9eb   : > { %v3475_v56 = vpop.f32.mrb[112].mxu0 }
 0x9ec   : > { %v9593_v42 = vpop.f32.mrb[113].mxu0  ;;  %v3831_v50 = vsel %vm1188_vm4, %v3475_v56, -inf }
 0x9ed   : > { %3832 = vmax.xlane.f32.xlu0 %v3831_v50  ;;  %v3478_v14 = vpop.f32.mrb[114].mxu0 }
 0x9ee   : > { %v9594_v40 = vpop.f32.mrb[115].mxu0 }
 0x9ef   : > { %v3525_v47 = vpop.f32.mrb[112].mxu1 }
 0x9f0   : > { %v9599_v16 = vpop.f32.mrb[113].mxu1  ;;  %v3834_v9 = vsel %vm1188_vm4, %v3525_v47, -inf }
 0x9f1   : > { %3835 = vmax.xlane.f32.xlu1 %v3834_v9  ;;  %v3528_v48 = vpop.f32.mrb[114].mxu1 }
 0x9f2   : > { %v9600_v53 = vpop.f32.mrb[115].mxu1 }
 0x9f3   : > { %v3575_v54 = vpop.f32.mrb[116].mxu0 }
 0x9f4   : > { %v9605_v31 = vpop.f32.mrb[117].mxu0  ;;  %v3837_v62 = vsel %vm1188_vm4, %v3575_v54, -inf }
 0x9f5   : > { %3838 = vmax.xlane.f32.xlu0 %v3837_v62  ;;  %v3578_v20 = vpop.f32.mrb[118].mxu0 }
 0x9f6   : > { %v9606_v6 = vpop.f32.mrb[119].mxu0 }
 0x9f7   : > { %v3625_v42 = vpop.f32.mrb[116].mxu1 }
 0x9f8   : > { %v9611_v27 = vpop.f32.mrb[117].mxu1  ;;  %v3840_v50 = vsel %vm1188_vm4, %v3625_v42, -inf }
 0x9f9   : > { %v3628_v14 = vpop.f32.mrb[118].mxu1  ;;  %3841 = vmax.xlane.f32.xlu0 %v3840_v50 }
 0x9fa   : > { %v9612_v40 = vpop.f32.mrb[119].mxu1 }
 0x9fb   : > { %v3675_v16 = vpop.f32.mrb[120].mxu0 }
 0x9fc   : > { %v9617_v19 = vpop.f32.mrb[121].mxu0  ;;  %v3843_v9 = vsel %vm1188_vm4, %v3675_v16, -inf }
 0x9fd   : > { %3844 = vmax.xlane.f32.xlu1 %v3843_v9  ;;  %v3678_v48 = vpop.f32.mrb[122].mxu0 }
 0x9fe   : > { %v9618_v53 = vpop.f32.mrb[123].mxu0 }
 0x9ff   : > { %v3725_v31 = vpop.f32.mrb[120].mxu1 }
 0xa00   : > { %v9623_v1 = vpop.f32.mrb[121].mxu1  ;;  %v3846_v62 = vsel %vm1188_vm4, %v3725_v31, -inf }
 0xa01   : > { %v3728_v20 = vpop.f32.mrb[122].mxu1  ;;  %3847 = vmax.xlane.f32.xlu0 %v3846_v62 }
 0xa02   : > { %v9624_v6 = vpop.f32.mrb[123].mxu1 }
 0xa03   : > { %v11904_v27 = vpop.f32.mrb[124].mxu0 }
 0xa04   : > { %v9629_v3 = vpop.f32.mrb[125].mxu0  ;;  %v3849_v50 = vsel %vm1188_vm4, %v11904_v27, -inf }
 0xa05   : > { %3850 = vmax.xlane.f32.xlu1 %v3849_v50  ;;  %v3778_v19 = vpop.f32.mrb[126].mxu0  ;;  %v11913_v3 = vpop.permute.xlu1 %4023 }
 0xa06   : > { %v9630_v14 = vpop.f32.mrb[127].mxu0 }
 0xa07   : > { %v3825_v40 = vpop.f32.mrb[124].mxu1 }
 0xa08   : > { %v9635_v9 = vpop.f32.mrb[125].mxu1  ;;  %v3852_v48 = vsel %vm1188_vm4, %v3825_v40, -inf }
 0xa09   : > { %v3828_v53 = vpop.f32.mrb[126].mxu1  ;;  %3853 = vmax.xlane.f32.xlu0 %v3852_v48  ;;  %v11915_v62 = vpop.permute.xlu1 %4071 }
 0xa0a   : > { %v9636_v1 = vpop.f32.mrb[127].mxu1 }
 0xa16   : > { %4167 = vrot.lane.b32.xlu1 %v11250_v8, %s10864_s16 }
 0xa1f   : > { %4119 = vrot.lane.b32.xlu0 %v11248_v7, %s10864_s16 }
 0xa7a   : > { %v3833_v20 = vpop.xlane.xlu0 %3832 }
 0xa7b   : > { %v3855_v6 = vsub.f32 %v3475_v56, %v3833_v20 }
 0xa7d   : > { %v3863_v50 = vmul.f32 1.442695, %v3855_v6 }
 0xa7e   : > { %v3836_v19 = vpop.xlane.xlu1 %3835 }
 0xa7f   : > { %10476 = vpow2.f32 %v3863_v50  ;;  %v3856_v14 = vsub.f32 %v3525_v47, %v3836_v19 }
 0xa81   : > { %v3865_v9 = vmul.f32 1.442695, %v3856_v14 }
 0xa82   : > { %v3839_v53 = vpop.xlane.xlu0 %3838 }
 0xa83   : > { %10478 = vpow2.f32 %v3865_v9  ;;  %v3857_v48 = vsub.f32 %v3575_v54, %v3839_v53 }
 0xa85   : > { %v3867_v1 = vmul.f32 1.442695, %v3857_v48 }
 0xa86   : > { %v3842_v38 = vpop.xlane.xlu0 %3841 }
 0xa87   : > { %10480 = vpow2.f32 %v3867_v1  ;;  %v3858_v13 = vsub.f32 %v3625_v42, %v3842_v38 }
 0xa89   : > { %v11917_v63 = vpop.eup %10476  ;;  %v3869_v28 = vmul.f32 1.442695, %v3858_v13 }
 0xa8a   : > { %v3845_v0 = vpop.xlane.xlu1 %3844  ;;  %v3879_v34 = vsel %vm1188_vm4, %v11917_v63, 0.0 }
 0xa8b   : > { %10482 = vpow2.f32 %v3869_v28  ;;  %v3859_v56 = vsub.f32 %v3675_v16, %v3845_v0  ;;  %3880 = vadd.xlane.f32.xlu1 %v3879_v34 }
 0xa8d   : > { %v11921_v20 = vpop.eup %10478  ;;  %v3871_v47 = vmul.f32 1.442695, %v3859_v56 }
 0xa8e   : > { %v3848_v6 = vpop.xlane.xlu0 %3847  ;;  %v3882_v54 = vsel %vm1188_vm4, %v11921_v20, 0.0 }
 0xa8f   : > { %10484 = vpow2.f32 %v3871_v47  ;;  %v3860_v50 = vsub.f32 %v3725_v31, %v3848_v6  ;;  %3883 = vadd.xlane.f32.xlu0 %v3882_v54 }
 0xa91   : > { %v11925_v38 = vpop.eup %10480  ;;  %v3873_v13 = vmul.f32 1.442695, %v3860_v50 }
 0xa92   : > { %v3885_v42 = vsel %vm1188_vm4, %v11925_v38, 0.0  ;;  %v3851_v14 = vpop.xlane.xlu1 %3850 }
 0xa93   : > { %10486 = vpow2.f32 %v3873_v13  ;;  %3886 = vadd.xlane.f32.xlu1 %v3885_v42  ;;  %v3861_v9 = vsub.f32 %v11904_v27, %v3851_v14 }
 0xa95   : > { %v11929_v0 = vpop.eup %10482  ;;  %v3875_v48 = vmul.f32 1.442695, %v3861_v9 }
 0xa96   : > { %v3888_v34 = vsel %vm1188_vm4, %v11929_v0, 0.0  ;;  %v3854_v53 = vpop.xlane.xlu0 %3853  ;;  %v4168_v27 = vpop.permute.xlu1 %4167 }
 0xa97   : > { %3889 = vadd.xlane.f32.xlu0 %v3888_v34  ;;  %v3862_v1 = vsub.f32 %v3825_v40, %v3854_v53  ;;  %10488 = vpow2.f32 %v3875_v48  ;;  %v4029_v48 = vsel %vm1291_vm3, %v11913_v3, 0 }
 0xa99   : > { %v11933_v28 = vpop.eup %10484  ;;  %v3877_v56 = vmul.f32 1.442695, %v3862_v1 }
 0xa9a   : > { %v3891_v16 = vsel %vm1188_vm4, %v11933_v28, 0.0  ;;  %v4120_v40 = vpop.permute.xlu0 %4119 }
 0xa9b   : > { %3892 = vadd.xlane.f32.xlu1 %v3891_v16  ;;  %10490 = vpow2.f32 %v3877_v56 }
 0xa9d   : > { %v11937_v31 = vpop.eup %10486 }
 0xa9e   : > { %v3894_v19 = vsel %vm1188_vm4, %v11937_v31, 0.0 }
 0xa9f   : > { %3895 = vadd.xlane.f32.xlu0 %v3894_v19 }
 0xaa1   : > { %v11946_v47 = vpop.eup %10488 }
 0xaa2   : > { %v3897_v6 = vsel %vm1188_vm4, %v11946_v47, 0.0 }
 0xaa5   : > { %v11950_v54 = vpop.eup %10490 }
 0xaa6   : > { %v3900_v50 = vsel %vm1188_vm4, %v11950_v54, 0.0 }
 0xaac   : > { %4263 = vrot.lane.b32.xlu1 %v11258_v24, %s10864_s16 }
 0xab5   : > { %4215 = vrot.lane.b32.xlu0 %v11256_v23, %s10864_s16 }
 0xad0   : > { %3898 = vadd.xlane.f32.xlu1 %v3897_v6  ;;  %v13163_v6 = vmov 0.0  }
 0xad4   : > { %3901 = vadd.xlane.f32.xlu0 %v3900_v50 }
 0xae1   : > { %4363 = vrot.lane.b32.xlu1 %v11234_v49, %s10865_s18 }
 0xae5   : > { %4361 = vrot.lane.b32.xlu1 %v11234_v49, %s10866_s29 }
 0xae9   : > { %4463 = vrot.lane.b32.xlu1 %v11242_v61, %s10865_s18 }
 0xaea   : > { %4313 = vrot.lane.b32.xlu0 %v11232_v46, %s10865_s18 }
 0xaed   : > { %4461 = vrot.lane.b32.xlu1 %v11242_v61, %s10866_s29 }
 0xaee   : > { %4311 = vrot.lane.b32.xlu0 %v11232_v46, %s10866_s29 }
 0xaf1   : > { %4563 = vrot.lane.b32.xlu1 %v11250_v8, %s10865_s18 }
 0xaf2   : > { %4413 = vrot.lane.b32.xlu0 %v11240_v58, %s10865_s18 }
 0xaf5   : > { %4561 = vrot.lane.b32.xlu1 %v11250_v8, %s10866_s29 }
 0xaf6   : > { %4411 = vrot.lane.b32.xlu0 %v11240_v58, %s10866_s29 }
 0xaf9   : > { %4663 = vrot.lane.b32.xlu1 %v11258_v24, %s10865_s18 }
 0xafa   : > { %4513 = vrot.lane.b32.xlu0 %v11248_v7, %s10865_s18 }
 0xafd   : > { %4661 = vrot.lane.b32.xlu1 %v11258_v24, %s10866_s29 }
 0xafe   : > { %4511 = vrot.lane.b32.xlu0 %v11248_v7, %s10866_s29 }
 0xb01   : > { %4807 = vrot.lane.b32.xlu1 %v11232_v46, %s10867_s19 }
 0xb02   : > { %4613 = vrot.lane.b32.xlu0 %v11256_v23, %s10865_s18 }
 0xb05   : > { %4903 = vrot.lane.b32.xlu1 %v11240_v58, %s10867_s19 }
 0xb06   : > { %4611 = vrot.lane.b32.xlu0 %v11256_v23, %s10866_s29  ;;  %s13077_s29 = scalar_lea.vmem %s13112_s8, %s13223_s10 }
 0xb09   : > { %4951 = vrot.lane.b32.xlu1 %v11242_v61, %s10867_s19 }
 0xb0a   : > { %4855 = vrot.lane.b32.xlu0 %v11234_v49, %s10867_s19 }
 0xb18   : > { %v3881_v13 = vpop.xlane.xlu1 %3880 }
 0xb19   : > { %10492 = vrcp.f32 %v3881_v13  ;;  %v4077_v13 = vsel %vm1291_vm3, %v11915_v62, 0 }
 0xb1c   : > { %v3884_v42 = vpop.xlane.xlu0 %3883 }
 0xb1d   : > { %10494 = vrcp.f32 %v3884_v42 }
 0xb20   : > { %v3887_v34 = vpop.xlane.xlu1 %3886 }
 0xb21   : > { %10496 = vrcp.f32 %v3887_v34 }
 0xb23   : > { %v10493_v16 = vpop.eup %10492 }
 0xb24   : > { %v3890_v19 = vpop.xlane.xlu0 %3889  ;;  %v3911_v14 = vmul.f32 %v10493_v16, %v11917_v63  ;;  %v4125_v16 = vsel %vm1291_vm3, %v4120_v40, 0 }
 0xb25   : > { %10498 = vrcp.f32 %v3890_v19 }
 0xb26   : > { %v3919_v9 = vpack.c.bf16 %v3911_v14, %v3911_v14  ;;  %v4173_v14 = vsel %vm1291_vm3, %v4168_v27, 0 }
 0xb27   : > { %v10495_v53 = vpop.eup %10494 }
 0xb28   : > { %9640 = vmatmul.mubr.msk.bf16.vlgmr.msra.gmra.mrb[128].mxu0 %vm1287_vm5, %v3919_v9  ;;  %v3893_v1 = vpop.xlane.xlu1 %3892  ;;  %v3912_v56 = vmul.f32 %v10495_v53, %v11921_v20 }
 0xb29   : > { %9650 = vmatpush3.bf16.msra.mxu0 %v4029_v48  ;;  %10500 = vrcp.f32 %v3893_v1  ;;  %9651 = vmatprep.mubr.msk.bf16.mxu0 %vm10853_vm0, %v13163_v6 }
 0xb2a   : > { %v3920_v50 = vpack.c.bf16 %v3912_v56, %v3912_v56  ;;  %9661 = vmatprep.subr.bf16.mxu0 %v13163_v6 }
 0xb2b   : > { %v10497_v63 = vpop.eup %10496 }
 0xb2c   : > { %9646 = vmatmul.mubr.msk.bf16.vlgmr.msra.gmra.mrb[128].mxu1 %vm1287_vm5, %v3920_v50  ;;  %v3896_v3 = vpop.xlane.xlu0 %3895  ;;  %v3913_v42 = vmul.f32 %v10497_v63, %v11925_v38  ;;  %v4264_v27 = vpop.permute.xlu1 %4263 }
 0xb2d   : > { %9656 = vmatpush3.bf16.msra.mxu1 %v4077_v13  ;;  %10502 = vrcp.f32 %v3896_v3  ;;  %9657 = vmatprep.mubr.msk.bf16.mxu1 %vm10853_vm0, %v13163_v6  ;;  %v4269_v56 = vsel %vm1291_vm3, %v4264_v27, 0 }
 0xb2e   : > { %v3921_v20 = vpack.c.bf16 %v3913_v42, %v3913_v42  ;;  %9667 = vmatprep.subr.bf16.mxu1 %v13163_v6 }
 0xb2f   : > { %v10499_v34 = vpop.eup %10498 }
 0xb30   : > { %9652 = vmatmul.mubr.msk.bf16.vlgmr.msra.gmra.mrb[132].mxu0 %vm1287_vm5, %v3921_v20  ;;  %v3914_v62 = vmul.f32 %v10499_v34, %v11929_v0  ;;  %v4216_v53 = vpop.permute.xlu0 %4215 }
 0xb31   : > { %9662 = vmatpush3.bf16.msra.mxu0 %v4125_v16  ;;  %9663 = vmatprep.mubr.msk.bf16.mxu0 %vm10853_vm0, %v13163_v6  ;;  %v4221_v48 = vsel %vm1291_vm3, %v4216_v53, 0 }
 0xb32   : > { %v3922_v38 = vpack.c.bf16 %v3914_v62, %v3914_v62  ;;  %9673 = vmatprep.subr.bf16.mxu0 %v13163_v6 }
 0xb33   : > { %v10501_v19 = vpop.eup %10500 }
 0xb34   : > { %9658 = vmatmul.mubr.msk.bf16.vlgmr.msra.gmra.mrb[132].mxu1 %vm1287_vm5, %v3922_v38  ;;  %v3915_v9 = vmul.f32 %v10501_v19, %v11933_v28 }
 0xb35   : > { %9668 = vmatpush3.bf16.msra.mxu1 %v4173_v14  ;;  %9669 = vmatprep.mubr.msk.bf16.mxu1 %vm10853_vm0, %v13163_v6 }
 0xb36   : > { %v3923_v0 = vpack.c.bf16 %v3915_v9, %v3915_v9  ;;  %9679 = vmatprep.subr.bf16.mxu1 %v13163_v6 }
 0xb37   : > { %v10503_v40 = vpop.eup %10502 }
 0xb38   : > { %9664 = vmatmul.mubr.msk.bf16.vlgmr.msra.gmra.mrb[136].mxu0 %vm1287_vm5, %v3923_v0  ;;  %v3916_v1 = vmul.f32 %v10503_v40, %v11937_v31 }
 0xb39   : > { %9674 = vmatpush3.bf16.msra.mxu0 %v4221_v48  ;;  %9675 = vmatprep.mubr.msk.bf16.mxu0 %vm10853_vm0, %v13163_v6 }
 0xb3a   : > { %v3924_v28 = vpack.c.bf16 %v3916_v1, %v3916_v1  ;;  %9685 = vmatprep.subr.bf16.mxu0 %v13163_v6 }
 0xb3c   : > { %9670 = vmatmul.mubr.msk.bf16.vlgmr.msra.gmra.mrb[136].mxu1 %vm1287_vm5, %v3924_v28 }
 0xb3d   : > { %9680 = vmatpush3.bf16.msra.mxu1 %v4269_v56  ;;  %9681 = vmatprep.mubr.msk.bf16.mxu1 %vm10853_vm0, %v13163_v6 }
 0xb3e   : > { %9691 = vmatprep.subr.bf16.mxu1 %v13163_v6 }
 0xb5d   : > { %v3899_v50 = vpop.xlane.xlu1 %3898 }
 0xb5e   : > { %10504 = vrcp.f32 %v3899_v50 }
 0xb61   : > { %v3902_v31 = vpop.xlane.xlu0 %3901  ;;  %v4364_v63 = vpop.permute.xlu1 %4363 }
 0xb62   : > { %10506 = vrcp.f32 %v3902_v31  ;;  %v4369_v40 = vsel %vm798_vm2, %v4364_v63, 0 }
 0xb65   : > { %v4314_v13 = vpop.permute.xlu0 %4313  ;;  %v4362_v3 = vpop.permute.xlu1 %4361 }
 0xb66   : > { %v4319_v19 = vsel %vm798_vm2, %v4314_v13, 0 }
 0xb68   : > { %v10505_v42 = vpop.eup %10504 }
 0xb69   : > { %v4312_v20 = vpop.permute.xlu0 %4311  ;;  %v4464_v34 = vpop.permute.xlu1 %4463  ;;  %v3917_v16 = vmul.f32 %v10505_v42, %v11946_v47 }
 0xb6a   : > { %v4469_v28 = vsel %vm798_vm2, %v4464_v34, 0 }
 0xb6b   : > { %v3925_v62 = vpack.c.bf16 %v3917_v16, %v3917_v16 }
 0xb6c   : > { %v10507_v38 = vpop.eup %10506 }
 0xb6d   : > { %v4414_v14 = vpop.permute.xlu0 %4413  ;;  %9676 = vmatmul.mubr.msk.bf16.vlgmr.msra.gmra.mrb[140].mxu0 %vm1287_vm5, %v3925_v62  ;;  %v4462_v9 = vpop.permute.xlu1 %4461  ;;  %v3918_v53 = vmul.f32 %v10507_v38, %v11950_v54 }
 0xb6e   : > { %9686 = vmatpush3.bf16.xpose.msra.mxu0 %v4319_v19  ;;  %9687 = vmatprep.mubr.msk.bf16.mxu0 %vm10853_vm0, %v13163_v6  ;;  %v4419_v54 = vsel %vm798_vm2, %v4414_v14, 0 }
 0xb6f   : > { %v3926_v0 = vpack.c.bf16 %v3918_v53, %v3918_v53  ;;  %9697 = vmatprep.subr.bf16.mxu0 %v13163_v6 }
 0xb71   : > { %v4412_v47 = vpop.permute.xlu0 %4411  ;;  %9682 = vmatmul.mubr.msk.bf16.vlgmr.msra.gmra.mrb[140].mxu1 %vm1287_vm5, %v3926_v0  ;;  %v4564_v48 = vpop.permute.xlu1 %4563 }
 0xb72   : > { %9692 = vmatpush3.bf16.xpose.msra.mxu1 %v4369_v40  ;;  %9693 = vmatprep.mubr.msk.bf16.mxu1 %vm10853_vm0, %v13163_v6  ;;  %v4569_v63 = vsel %vm798_vm2, %v4564_v48, 0 }
 0xb73   : > { %9703 = vmatprep.subr.bf16.mxu1 %v13163_v6 }
 0xb75   : > { %9688 = vmatmul.mubr.msk.bf16.vlgmr.msra.gmra.mrb[144].mxu0 %vm798_vm2, %v4312_v20  ;;  %v4514_v1 = vpop.permute.xlu0 %4513  ;;  %v4562_v27 = vpop.permute.xlu1 %4561 }
 0xb76   : > { %9698 = vmatpush3.bf16.xpose.msra.mxu0 %v4419_v54  ;;  %9699 = vmatprep.mubr.msk.bf16.mxu0 %vm10853_vm0, %v13163_v6  ;;  %v4519_v50 = vsel %vm798_vm2, %v4514_v1, 0 }
 0xb77   : > { %9709 = vmatprep.subr.bf16.mxu0 %v13163_v6 }
 0xb79   : > { %9694 = vmatmul.mubr.msk.bf16.vlgmr.msra.gmra.mrb[144].mxu1 %vm798_vm2, %v4362_v3  ;;  %v4512_v56 = vpop.permute.xlu0 %4511  ;;  %v4664_v31 = vpop.permute.xlu1 %4663 }
 0xb7a   : > { %9704 = vmatpush3.bf16.xpose.msra.mxu1 %v4469_v28  ;;  %9705 = vmatprep.mubr.msk.bf16.mxu1 %vm10853_vm0, %v13163_v6  ;;  %v4669_v34 = vsel %vm798_vm2, %v4664_v31, 0 }
 0xb7b   : > { %9715 = vmatprep.subr.bf16.mxu1 %v13163_v6 }
 0xb7d   : > { %9700 = vmatmul.mubr.msk.bf16.vlgmr.msra.gmra.mrb[148].mxu0 %vm798_vm2, %v4412_v47  ;;  %v4614_v13 = vpop.permute.xlu0 %4613  ;;  %v4662_v3 = vpop.permute.xlu1 %4661 }
 0xb7e   : > { %9710 = vmatpush3.bf16.xpose.msra.mxu0 %v4519_v50  ;;  %9711 = vmatprep.mubr.msk.bf16.mxu0 %vm10853_vm0, %v13163_v6  ;;  %v4619_v42 = vsel %vm798_vm2, %v4614_v13, 0 }
 0xb7f   : > { %9721 = vmatprep.subr.bf16.mxu0 %v13163_v6 }
 0xb81   : > { %9706 = vmatmul.mubr.msk.bf16.vlgmr.msra.gmra.mrb[148].mxu1 %vm798_vm2, %v4462_v9  ;;  %v4612_v20 = vpop.permute.xlu0 %4611  ;;  %v4808_v16 = vpop.permute.xlu1 %4807 }
 0xb82   : > { %9716 = vmatpush3.bf16.xpose.msra.mxu1 %v4569_v63  ;;  %9717 = vmatprep.mubr.msk.bf16.mxu1 %vm10853_vm0, %v13163_v6  ;;  %v4813_v62 = vsel %vm1291_vm3, %v4808_v16, 0 }
 0xb83   : > { %9727 = vmatprep.subr.bf16.mxu1 %v13163_v6 }
 0xb85   : > { %9712 = vmatmul.mubr.msk.bf16.vlgmr.msra.gmra.mrb[152].mxu0 %vm798_vm2, %v4512_v56  ;;  %v4856_v38 = vpop.permute.xlu0 %4855 }
 0xb86   : > { %9722 = vmatpush3.bf16.xpose.msra.mxu0 %v4619_v42  ;;  %9723 = vmatprep.mubr.msk.bf16.mxu0 %vm10853_vm0, %v13163_v6  ;;  %v4861_v19 = vsel %vm1291_vm3, %v4856_v38, 0 }
 0xb87   : > { %9733 = vmatprep.subr.bf16.mxu0 %v13163_v6 }
 0xb89   : > { %9718 = vmatmul.mubr.msk.bf16.vlgmr.msra.gmra.mrb[152].mxu1 %vm798_vm2, %v4562_v27 }
 0xb8a   : > { %9728 = vmatpush3.bf16.xpose.msra.mxu1 %v4669_v34  ;;  %9729 = vmatprep.mubr.msk.bf16.mxu1 %vm10853_vm0, %v13163_v6 }
 0xb8b   : > { %9739 = vmatprep.subr.bf16.mxu1 %v13163_v6 }
 0xb8d   : > { %9724 = vmatmul.mubr.msk.bf16.vlgmr.msra.gmra.mrb[156].mxu0 %vm798_vm2, %v4612_v20 }
 0xb8e   : > { %9734 = vmatpush3.bf16.msra.mxu0 %v4813_v62  ;;  %9735 = vmatprep.mubr.msk.bf16.mxu0 %vm10853_vm0, %v13163_v6 }
 0xb8f   : > { %9745 = vmatprep.subr.bf16.mxu0 %v13163_v6 }
 0xb91   : > { %9730 = vmatmul.mubr.msk.bf16.vlgmr.msra.gmra.mrb[156].mxu1 %vm798_vm2, %v4662_v3 }
 0xb92   : > { %9740 = vmatpush3.bf16.msra.mxu1 %v4861_v19  ;;  %9741 = vmatprep.mubr.msk.bf16.mxu1 %vm10853_vm0, %v13163_v6 }
 0xb93   : > { %9751 = vmatprep.subr.bf16.mxu1 %v13163_v6 }
 0xbfb   : > { %v12068_v14 = vpop.f32.mrb[128].mxu0 }
 0xbfc   : > { %v9641_v9 = vpop.f32.mrb[129].mxu0 }
 0xbfd   : > { %v3972_v53 = vpop.f32.mrb[130].mxu0 }
 0xbfe   : > { %v9642_v0 = vpop.f32.mrb[131].mxu0 }
 0xbff   : > { %v12070_v40 = vpop.f32.mrb[128].mxu1 }
 0xc00   : > { %v9647_v48 = vpop.f32.mrb[129].mxu1 }
 0xc01   : > { %v4020_v54 = vpop.f32.mrb[130].mxu1 }
 0xc02   : > { %v9648_v1 = vpop.f32.mrb[131].mxu1 }
 0xc03   : > { %v12074_v27 = vpop.f32.mrb[132].mxu0 }
 0xc04   : > { %v9653_v28 = vpop.f32.mrb[133].mxu0 }
 0xc05   : > { %v4068_v56 = vpop.f32.mrb[134].mxu0 }
 0xc06   : > { %v9654_v50 = vpop.f32.mrb[135].mxu0 }
 0xc07   : > { %v12076_v31 = vpop.f32.mrb[132].mxu1 }
 0xc08   : > { %v9659_v13 = vpop.f32.mrb[133].mxu1 }
 0xc09   : > { %v4116_v3 = vpop.f32.mrb[134].mxu1 }
 0xc0a   : > { %v9660_v42 = vpop.f32.mrb[135].mxu1 }
 0xc0b   : > { %v12080_v20 = vpop.f32.mrb[136].mxu0 }
 0xc0c   : > { %v9665_v34 = vpop.f32.mrb[137].mxu0 }
 0xc0d   : > { %v4164_v16 = vpop.f32.mrb[138].mxu0 }
 0xc0e   : > { %v9666_v62 = vpop.f32.mrb[139].mxu0 }
 0xc0f   : > { %v12082_v38 = vpop.f32.mrb[136].mxu1 }
 0xc10   : > { %v9671_v9 = vpop.f32.mrb[137].mxu1 }
 0xc11   : > { %v4212_v53 = vpop.f32.mrb[138].mxu1 }
 0xc12   : > { %v9672_v0 = vpop.f32.mrb[139].mxu1 }
 0xc40   : > { %v12086_v48 = vpop.f32.mrb[140].mxu0 }
 0xc41   : > { %13164 = vst [vmem:[#allocation36_spill] sm:$0xff] %v12086_v48  ;;  %v9677_v54 = vpop.f32.mrb[141].mxu0 }
 0xc42   : > { %v4260_v1 = vpop.f32.mrb[142].mxu0 }
 0xc43   : > { %v9678_v28 = vpop.f32.mrb[143].mxu0 }
 0xc44   : > { %v12088_v56 = vpop.f32.mrb[140].mxu1 }
 0xc45   : > { %13165 = vst [vmem:[#allocation37_spill] sm:$0xff] %v12088_v56  ;;  %v9683_v13 = vpop.f32.mrb[141].mxu1 }
 0xc46   : > { %v4308_v3 = vpop.f32.mrb[142].mxu1 }
 0xc47   : > { %v9684_v42 = vpop.f32.mrb[143].mxu1 }
 0xc48   : > { %v4355_v34 = vpop.f32.mrb[144].mxu0 }
 0xc49   : > { %v9689_v16 = vpop.f32.mrb[145].mxu0  ;;  %v4711_v62 = vsel %vm1188_vm4, %v4355_v34, -inf }
 0xc4a   : > { %4712 = vmax.xlane.f32.xlu0 %v4711_v62  ;;  %v4358_v9 = vpop.f32.mrb[146].mxu0 }
 0xc4b   : > { %v9690_v53 = vpop.f32.mrb[147].mxu0 }
 0xc4c   : > { %v4405_v0 = vpop.f32.mrb[144].mxu1 }
 0xc4d   : > { %v9695_v19 = vpop.f32.mrb[145].mxu1  ;;  %v4714_v54 = vsel %vm1188_vm4, %v4405_v0, -inf }
 0xc4e   : > { %4715 = vmax.xlane.f32.xlu1 %v4714_v54  ;;  %v4408_v1 = vpop.f32.mrb[146].mxu1 }
 0xc4f   : > { %v9696_v28 = vpop.f32.mrb[147].mxu1 }
 0xc50   : > { %v4455_v63 = vpop.f32.mrb[148].mxu0 }
 0xc51   : > { %v9701_v47 = vpop.f32.mrb[149].mxu0  ;;  %v4717_v13 = vsel %vm1188_vm4, %v4455_v63, -inf }
 0xc52   : > { %4718 = vmax.xlane.f32.xlu0 %v4717_v13  ;;  %v4458_v3 = vpop.f32.mrb[150].mxu0 }
 0xc53   : > { %v9702_v42 = vpop.f32.mrb[151].mxu0 }
 0xc54   : > { %v4505_v16 = vpop.f32.mrb[148].mxu1 }
 0xc55   : > { %v9707_v50 = vpop.f32.mrb[149].mxu1  ;;  %v4720_v62 = vsel %vm1188_vm4, %v4505_v16, -inf }
 0xc56   : > { %v4508_v9 = vpop.f32.mrb[150].mxu1  ;;  %4721 = vmax.xlane.f32.xlu0 %v4720_v62 }
 0xc57   : > { %v9708_v53 = vpop.f32.mrb[151].mxu1 }
 0xc58   : > { %v4555_v19 = vpop.f32.mrb[152].mxu0 }
 0xc59   : > { %v9713_v33 = vpop.f32.mrb[153].mxu0  ;;  %v4723_v54 = vsel %vm1188_vm4, %v4555_v19, -inf }
 0xc5a   : > { %4724 = vmax.xlane.f32.xlu1 %v4723_v54  ;;  %v4558_v1 = vpop.f32.mrb[154].mxu0 }
 0xc5b   : > { %v9714_v28 = vpop.f32.mrb[155].mxu0 }
 0xc5c   : > { %v4605_v47 = vpop.f32.mrb[152].mxu1 }
 0xc5d   : > { %v9719_v26 = vpop.f32.mrb[153].mxu1  ;;  %v4726_v13 = vsel %vm1188_vm4, %v4605_v47, -inf }
 0xc5e   : > { %v4608_v3 = vpop.f32.mrb[154].mxu1  ;;  %4727 = vmax.xlane.f32.xlu0 %v4726_v13 }
 0xc5f   : > { %v9720_v42 = vpop.f32.mrb[155].mxu1 }
 0xc60   : > { %v12098_v50 = vpop.f32.mrb[156].mxu0 }
 0xc61   : > { %v9725_v25 = vpop.f32.mrb[157].mxu0  ;;  %v4729_v62 = vsel %vm1188_vm4, %v12098_v50, -inf }
 0xc62   : > { %4730 = vmax.xlane.f32.xlu1 %v4729_v62  ;;  %v4658_v33 = vpop.f32.mrb[158].mxu0  ;;  %v12107_v25 = vpop.permute.xlu1 %4903 }
 0xc63   : > { %v9726_v9 = vpop.f32.mrb[159].mxu0 }
 0xc64   : > { %v4705_v53 = vpop.f32.mrb[156].mxu1 }
 0xc65   : > { %v9731_v54 = vpop.f32.mrb[157].mxu1  ;;  %v4732_v1 = vsel %vm1188_vm4, %v4705_v53, -inf }
 0xc66   : > { %v4708_v28 = vpop.f32.mrb[158].mxu1  ;;  %4733 = vmax.xlane.f32.xlu0 %v4732_v1  ;;  %v12109_v13 = vpop.permute.xlu1 %4951 }
 0xc67   : > { %v9732_v26 = vpop.f32.mrb[159].mxu1 }
 0xc73   : > { %5047 = vrot.lane.b32.xlu1 %v11250_v8, %s10867_s19 }
 0xc7c   : > { %4999 = vrot.lane.b32.xlu0 %v11248_v7, %s10867_s19 }
 0xcd7   : > { %v4713_v3 = vpop.xlane.xlu0 %4712 }
 0xcd8   : > { %v4735_v42 = vsub.f32 %v4355_v34, %v4713_v3 }
 0xcda   : > { %v4743_v62 = vmul.f32 1.442695, %v4735_v42 }
 0xcdb   : > { %v4716_v33 = vpop.xlane.xlu1 %4715 }
 0xcdc   : > { %10508 = vpow2.f32 %v4743_v62  ;;  %v4736_v9 = vsub.f32 %v4405_v0, %v4716_v33 }
 0xcde   : > { %v4745_v54 = vmul.f32 1.442695, %v4736_v9 }
 0xcdf   : > { %v4719_v28 = vpop.xlane.xlu0 %4718 }
 0xce0   : > { %10510 = vpow2.f32 %v4745_v54  ;;  %v4737_v1 = vsub.f32 %v4455_v63, %v4719_v28 }
 0xce2   : > { %v4747_v26 = vmul.f32 1.442695, %v4737_v1 }
 0xce3   : > { %v4722_v18 = vpop.xlane.xlu0 %4721 }
 0xce4   : > { %10512 = vpow2.f32 %v4747_v26  ;;  %v4738_v17 = vsub.f32 %v4505_v16, %v4722_v18 }
 0xce6   : > { %v12111_v12 = vpop.eup %10508  ;;  %v4749_v11 = vmul.f32 1.442695, %v4738_v17 }
 0xce7   : > { %v4725_v41 = vpop.xlane.xlu1 %4724  ;;  %v4759_v36 = vsel %vm1188_vm4, %v12111_v12, 0.0 }
 0xce8   : > { %10514 = vpow2.f32 %v4749_v11  ;;  %v4739_v34 = vsub.f32 %v4555_v19, %v4725_v41  ;;  %4760 = vadd.xlane.f32.xlu1 %v4759_v36 }
 0xcea   : > { %v12115_v3 = vpop.eup %10510  ;;  %v4751_v0 = vmul.f32 1.442695, %v4739_v34 }
 0xceb   : > { %v4728_v42 = vpop.xlane.xlu0 %4727  ;;  %v4762_v63 = vsel %vm1188_vm4, %v12115_v3, 0.0 }
 0xcec   : > { %10516 = vpow2.f32 %v4751_v0  ;;  %v4740_v62 = vsub.f32 %v4605_v47, %v4728_v42  ;;  %4763 = vadd.xlane.f32.xlu0 %v4762_v63 }
 0xcee   : > { %v12119_v18 = vpop.eup %10512  ;;  %v4753_v17 = vmul.f32 1.442695, %v4740_v62 }
 0xcef   : > { %v4765_v16 = vsel %vm1188_vm4, %v12119_v18, 0.0  ;;  %v4731_v9 = vpop.xlane.xlu1 %4730 }
 0xcf0   : > { %10518 = vpow2.f32 %v4753_v17  ;;  %4766 = vadd.xlane.f32.xlu1 %v4765_v16  ;;  %v4741_v54 = vsub.f32 %v12098_v50, %v4731_v9 }
 0xcf2   : > { %v12123_v11 = vpop.eup %10514  ;;  %v4755_v1 = vmul.f32 1.442695, %v4741_v54 }
 0xcf3   : > { %v4768_v41 = vsel %vm1188_vm4, %v12123_v11, 0.0  ;;  %v4734_v28 = vpop.xlane.xlu0 %4733  ;;  %v5048_v50 = vpop.permute.xlu1 %5047 }
 0xcf4   : > { %4769 = vadd.xlane.f32.xlu0 %v4768_v41  ;;  %v4742_v26 = vsub.f32 %v4705_v53, %v4734_v28  ;;  %10520 = vpow2.f32 %v4755_v1  ;;  %v4909_v1 = vsel %vm1291_vm3, %v12107_v25, 0 }
 0xcf6   : > { %v12127_v36 = vpop.eup %10516  ;;  %v4757_v34 = vmul.f32 1.442695, %v4742_v26 }
 0xcf7   : > { %v4771_v19 = vsel %vm1188_vm4, %v12127_v36, 0.0  ;;  %v5000_v53 = vpop.permute.xlu0 %4999 }
 0xcf8   : > { %4772 = vadd.xlane.f32.xlu1 %v4771_v19  ;;  %10522 = vpow2.f32 %v4757_v34 }
 0xcfa   : > { %v12131_v47 = vpop.eup %10518 }
 0xcfb   : > { %v4774_v33 = vsel %vm1188_vm4, %v12131_v47, 0.0 }
 0xcfc   : > { %4775 = vadd.xlane.f32.xlu0 %v4774_v33 }
 0xcfe   : > { %v12140_v0 = vpop.eup %10520 }
 0xcff   : > { %v4777_v42 = vsel %vm1188_vm4, %v12140_v0, 0.0 }
 0xd02   : > { %v12144_v63 = vpop.eup %10522 }
 0xd03   : > { %v4780_v62 = vsel %vm1188_vm4, %v12144_v63, 0.0 }
 0xd09   : > { %5143 = vrot.lane.b32.xlu1 %v11258_v24, %s10867_s19 }
 0xd12   : > { %5095 = vrot.lane.b32.xlu0 %v11256_v23, %s10867_s19 }
 0xd2d   : > { %4778 = vadd.xlane.f32.xlu1 %v4777_v42 }
 0xd31   : > { %4781 = vadd.xlane.f32.xlu0 %v4780_v62  ;;  %v4957_v62 = vsel %vm1291_vm3, %v12109_v13, 0 }
 0xd3e   : > { %5243 = vrot.lane.b32.xlu1 %v11234_v49, %s10868_s20 }
 0xd42   : > { %5241 = vrot.lane.b32.xlu1 %v11234_v49, %s10869_s9 }
 0xd46   : > { %5343 = vrot.lane.b32.xlu1 %v11242_v61, %s10868_s20 }
 0xd47   : > { %5193 = vrot.lane.b32.xlu0 %v11232_v46, %s10868_s20 }
 0xd4a   : > { %5341 = vrot.lane.b32.xlu1 %v11242_v61, %s10869_s9 }
 0xd4b   : > { %5191 = vrot.lane.b32.xlu0 %v11232_v46, %s10869_s9 }
 0xd4e   : > { %5443 = vrot.lane.b32.xlu1 %v11250_v8, %s10868_s20 }
 0xd4f   : > { %5293 = vrot.lane.b32.xlu0 %v11240_v58, %s10868_s20 }
 0xd52   : > { %5441 = vrot.lane.b32.xlu1 %v11250_v8, %s10869_s9 }
 0xd53   : > { %5291 = vrot.lane.b32.xlu0 %v11240_v58, %s10869_s9 }
 0xd56   : > { %5543 = vrot.lane.b32.xlu1 %v11258_v24, %s10868_s20 }
 0xd57   : > { %5393 = vrot.lane.b32.xlu0 %v11248_v7, %s10868_s20 }
 0xd5a   : > { %5541 = vrot.lane.b32.xlu1 %v11258_v24, %s10869_s9 }
 0xd5b   : > { %5391 = vrot.lane.b32.xlu0 %v11248_v7, %s10869_s9 }
 0xd5e   : > { %5687 = vrot.lane.b32.xlu1 %v11232_v46, %s10870_s15 }
 0xd5f   : > { %5493 = vrot.lane.b32.xlu0 %v11256_v23, %s10868_s20 }
 0xd62   : > { %5783 = vrot.lane.b32.xlu1 %v11240_v58, %s10870_s15 }
 0xd63   : > { %5491 = vrot.lane.b32.xlu0 %v11256_v23, %s10869_s9 }
 0xd66   : > { %5831 = vrot.lane.b32.xlu1 %v11242_v61, %s10870_s15 }
 0xd67   : > { %5735 = vrot.lane.b32.xlu0 %v11234_v49, %s10870_s15 }
 0xd75   : > { %v4761_v17 = vpop.xlane.xlu1 %4760 }
 0xd76   : > { %10524 = vrcp.f32 %v4761_v17 }
 0xd79   : > { %v4764_v16 = vpop.xlane.xlu0 %4763 }
 0xd7a   : > { %10526 = vrcp.f32 %v4764_v16 }
 0xd7d   : > { %v4767_v41 = vpop.xlane.xlu1 %4766 }
 0xd7e   : > { %10528 = vrcp.f32 %v4767_v41  ;;  %v5005_v41 = vsel %vm1291_vm3, %v5000_v53, 0 }
 0xd80   : > { %v10525_v19 = vpop.eup %10524 }
 0xd81   : > { %v4770_v33 = vpop.xlane.xlu0 %4769  ;;  %v4791_v9 = vmul.f32 %v10525_v19, %v12111_v12 }
 0xd82   : > { %10530 = vrcp.f32 %v4770_v33  ;;  %v5053_v33 = vsel %vm1291_vm3, %v5048_v50, 0 }
 0xd83   : > { %v4799_v54 = vpack.c.bf16 %v4791_v9, %v4791_v9 }
 0xd84   : > { %v10527_v28 = vpop.eup %10526 }
 0xd85   : > { %9736 = vmatmul.mubr.msk.bf16.vlgmr.msra.gmra.mrb[160].mxu0 %vm1287_vm5, %v4799_v54  ;;  %v4773_v26 = vpop.xlane.xlu1 %4772  ;;  %v4792_v34 = vmul.f32 %v10527_v28, %v12115_v3 }
 0xd86   : > { %9746 = vmatpush3.bf16.msra.mxu0 %v4909_v1  ;;  %10532 = vrcp.f32 %v4773_v26  ;;  %9747 = vmatprep.mubr.msk.bf16.mxu0 %vm10853_vm0, %v13163_v6 }
 0xd87   : > { %v4800_v42 = vpack.c.bf16 %v4792_v34, %v4792_v34  ;;  %9757 = vmatprep.subr.bf16.mxu0 %v13163_v6 }
 0xd88   : > { %v10529_v12 = vpop.eup %10528 }
 0xd89   : > { %9742 = vmatmul.mubr.msk.bf16.vlgmr.msra.gmra.mrb[160].mxu1 %vm1287_vm5, %v4800_v42  ;;  %v4776_v25 = vpop.xlane.xlu0 %4775  ;;  %v4793_v17 = vmul.f32 %v10529_v12, %v12119_v18  ;;  %v5144_v50 = vpop.permute.xlu1 %5143 }
 0xd8a   : > { %9752 = vmatpush3.bf16.msra.mxu1 %v4957_v62  ;;  %10534 = vrcp.f32 %v4776_v25  ;;  %9753 = vmatprep.mubr.msk.bf16.mxu1 %vm10853_vm0, %v13163_v6  ;;  %v5149_v26 = vsel %vm1291_vm3, %v5144_v50, 0 }
 0xd8b   : > { %v4801_v3 = vpack.c.bf16 %v4793_v17, %v4793_v17  ;;  %9763 = vmatprep.subr.bf16.mxu1 %v13163_v6 }
 0xd8c   : > { %v10531_v16 = vpop.eup %10530 }
 0xd8d   : > { %9748 = vmatmul.mubr.msk.bf16.vlgmr.msra.gmra.mrb[164].mxu0 %vm1287_vm5, %v4801_v3  ;;  %v4794_v13 = vmul.f32 %v10531_v16, %v12123_v11  ;;  %v5096_v54 = vpop.permute.xlu0 %5095 }
 0xd8e   : > { %9758 = vmatpush3.bf16.msra.mxu0 %v5005_v41  ;;  %9759 = vmatprep.mubr.msk.bf16.mxu0 %vm10853_vm0, %v13163_v6  ;;  %v5101_v28 = vsel %vm1291_vm3, %v5096_v54, 0 }
 0xd8f   : > { %v4802_v18 = vpack.c.bf16 %v4794_v13, %v4794_v13  ;;  %9769 = vmatprep.subr.bf16.mxu0 %v13163_v6 }
 0xd90   : > { %v10533_v19 = vpop.eup %10532 }
 0xd91   : > { %9754 = vmatmul.mubr.msk.bf16.vlgmr.msra.gmra.mrb[164].mxu1 %vm1287_vm5, %v4802_v18  ;;  %v4795_v9 = vmul.f32 %v10533_v19, %v12127_v36 }
 0xd92   : > { %9764 = vmatpush3.bf16.msra.mxu1 %v5053_v33  ;;  %9765 = vmatprep.mubr.msk.bf16.mxu1 %vm10853_vm0, %v13163_v6 }
 0xd93   : > { %v4803_v11 = vpack.c.bf16 %v4795_v9, %v4795_v9  ;;  %9775 = vmatprep.subr.bf16.mxu1 %v13163_v6 }
 0xd94   : > { %v10535_v53 = vpop.eup %10534 }
 0xd95   : > { %9760 = vmatmul.mubr.msk.bf16.vlgmr.msra.gmra.mrb[168].mxu0 %vm1287_vm5, %v4803_v11  ;;  %v4796_v1 = vmul.f32 %v10535_v53, %v12131_v47 }
 0xd96   : > { %9770 = vmatpush3.bf16.msra.mxu0 %v5101_v28  ;;  %9771 = vmatprep.mubr.msk.bf16.mxu0 %vm10853_vm0, %v13163_v6 }
 0xd97   : > { %v4804_v36 = vpack.c.bf16 %v4796_v1, %v4796_v1  ;;  %9781 = vmatprep.subr.bf16.mxu0 %v13163_v6 }
 0xd99   : > { %9766 = vmatmul.mubr.msk.bf16.vlgmr.msra.gmra.mrb[168].mxu1 %vm1287_vm5, %v4804_v36 }
 0xd9a   : > { %9776 = vmatpush3.bf16.msra.mxu1 %v5149_v26  ;;  %9777 = vmatprep.mubr.msk.bf16.mxu1 %vm10853_vm0, %v13163_v6 }
 0xd9b   : > { %9787 = vmatprep.subr.bf16.mxu1 %v13163_v6 }
 0xdba   : > { %v4779_v34 = vpop.xlane.xlu1 %4778 }
 0xdbb   : > { %10536 = vrcp.f32 %v4779_v34 }
 0xdbe   : > { %v4782_v47 = vpop.xlane.xlu0 %4781  ;;  %v5244_v42 = vpop.permute.xlu1 %5243 }
 0xdbf   : > { %10538 = vrcp.f32 %v4782_v47  ;;  %v5249_v11 = vsel %vm798_vm2, %v5244_v42, 0 }
 0xdc2   : > { %v5194_v12 = vpop.permute.xlu0 %5193  ;;  %v5242_v62 = vpop.permute.xlu1 %5241 }
 0xdc3   : > { %v5199_v18 = vsel %vm798_vm2, %v5194_v12, 0 }
 0xdc5   : > { %v10537_v25 = vpop.eup %10536 }
 0xdc6   : > { %v5192_v17 = vpop.permute.xlu0 %5191  ;;  %v5344_v3 = vpop.permute.xlu1 %5343  ;;  %v4797_v16 = vmul.f32 %v10537_v25, %v12140_v0 }
 0xdc7   : > { %v5349_v50 = vsel %vm798_vm2, %v5344_v3, 0 }
 0xdc8   : > { %v4805_v41 = vpack.c.bf16 %v4797_v16, %v4797_v16 }
 0xdc9   : > { %v10539_v13 = vpop.eup %10538 }
 0xdca   : > { %v5294_v19 = vpop.permute.xlu0 %5293  ;;  %9772 = vmatmul.mubr.msk.bf16.vlgmr.msra.gmra.mrb[172].mxu0 %vm1287_vm5, %v4805_v41  ;;  %v5342_v33 = vpop.permute.xlu1 %5341  ;;  %v4798_v9 = vmul.f32 %v10539_v13, %v12144_v63 }
 0xdcb   : > { %9782 = vmatpush3.bf16.xpose.msra.mxu0 %v5199_v18  ;;  %9783 = vmatprep.mubr.msk.bf16.mxu0 %vm10853_vm0, %v13163_v6  ;;  %v5299_v63 = vsel %vm798_vm2, %v5294_v19, 0 }
 0xdcc   : > { %v4806_v54 = vpack.c.bf16 %v4798_v9, %v4798_v9  ;;  %9793 = vmatprep.subr.bf16.mxu0 %v13163_v6 }
 0xdce   : > { %v5292_v0 = vpop.permute.xlu0 %5291  ;;  %9778 = vmatmul.mubr.msk.bf16.vlgmr.msra.gmra.mrb[172].mxu1 %vm1287_vm5, %v4806_v54  ;;  %v5444_v53 = vpop.permute.xlu1 %5443 }
 0xdcf   : > { %9788 = vmatpush3.bf16.xpose.msra.mxu1 %v5249_v11  ;;  %9789 = vmatprep.mubr.msk.bf16.mxu1 %vm10853_vm0, %v13163_v6  ;;  %v5449_v47 = vsel %vm798_vm2, %v5444_v53, 0 }
 0xdd0   : > { %9799 = vmatprep.subr.bf16.mxu1 %v13163_v6 }
 0xdd2   : > { %9784 = vmatmul.mubr.msk.bf16.vlgmr.msra.gmra.mrb[176].mxu0 %vm798_vm2, %v5192_v17  ;;  %v5394_v28 = vpop.permute.xlu0 %5393  ;;  %v5442_v1 = vpop.permute.xlu1 %5441 }
 0xdd3   : > { %9794 = vmatpush3.bf16.xpose.msra.mxu0 %v5299_v63  ;;  %9795 = vmatprep.mubr.msk.bf16.mxu0 %vm10853_vm0, %v13163_v6  ;;  %v5399_v26 = vsel %vm798_vm2, %v5394_v28, 0 }
 0xdd4   : > { %9805 = vmatprep.subr.bf16.mxu0 %v13163_v6 }
 0xdd6   : > { %9790 = vmatmul.mubr.msk.bf16.vlgmr.msra.gmra.mrb[176].mxu1 %vm798_vm2, %v5242_v62  ;;  %v5392_v36 = vpop.permute.xlu0 %5391  ;;  %v5544_v34 = vpop.permute.xlu1 %5543 }
 0xdd7   : > { %9800 = vmatpush3.bf16.xpose.msra.mxu1 %v5349_v50  ;;  %9801 = vmatprep.mubr.msk.bf16.mxu1 %vm10853_vm0, %v13163_v6  ;;  %v5549_v17 = vsel %vm798_vm2, %v5544_v34, 0 }
 0xdd8   : > { %9811 = vmatprep.subr.bf16.mxu1 %v13163_v6 }
 0xdda   : > { %9796 = vmatmul.mubr.msk.bf16.vlgmr.msra.gmra.mrb[180].mxu0 %vm798_vm2, %v5292_v0  ;;  %v5494_v42 = vpop.permute.xlu0 %5493  ;;  %v5542_v12 = vpop.permute.xlu1 %5541 }
 0xddb   : > { %9806 = vmatpush3.bf16.xpose.msra.mxu0 %v5399_v26  ;;  %9807 = vmatprep.mubr.msk.bf16.mxu0 %vm10853_vm0, %v13163_v6  ;;  %v5499_v62 = vsel %vm798_vm2, %v5494_v42, 0 }
 0xddc   : > { %9817 = vmatprep.subr.bf16.mxu0 %v13163_v6 }
 0xdde   : > { %9802 = vmatmul.mubr.msk.bf16.vlgmr.msra.gmra.mrb[180].mxu1 %vm798_vm2, %v5342_v33  ;;  %v5492_v25 = vpop.permute.xlu0 %5491  ;;  %v5688_v3 = vpop.permute.xlu1 %5687 }
 0xddf   : > { %9812 = vmatpush3.bf16.xpose.msra.mxu1 %v5449_v47  ;;  %9813 = vmatprep.mubr.msk.bf16.mxu1 %vm10853_vm0, %v13163_v6  ;;  %v5693_v16 = vsel %vm1291_vm3, %v5688_v3, 0 }
 0xde0   : > { %9823 = vmatprep.subr.bf16.mxu1 %v13163_v6 }
 0xde2   : > { %9808 = vmatmul.mubr.msk.bf16.vlgmr.msra.gmra.mrb[184].mxu0 %vm798_vm2, %v5392_v36  ;;  %v5736_v41 = vpop.permute.xlu0 %5735 }
 0xde3   : > { %9818 = vmatpush3.bf16.xpose.msra.mxu0 %v5499_v62  ;;  %9819 = vmatprep.mubr.msk.bf16.mxu0 %vm10853_vm0, %v13163_v6  ;;  %v5741_v13 = vsel %vm1291_vm3, %v5736_v41, 0 }
 0xde4   : > { %9829 = vmatprep.subr.bf16.mxu0 %v13163_v6 }
 0xde6   : > { %9814 = vmatmul.mubr.msk.bf16.vlgmr.msra.gmra.mrb[184].mxu1 %vm798_vm2, %v5442_v1 }
 0xde7   : > { %9824 = vmatpush3.bf16.xpose.msra.mxu1 %v5549_v17  ;;  %9825 = vmatprep.mubr.msk.bf16.mxu1 %vm10853_vm0, %v13163_v6 }
 0xde8   : > { %9835 = vmatprep.subr.bf16.mxu1 %v13163_v6 }
 0xdea   : > { %9820 = vmatmul.mubr.msk.bf16.vlgmr.msra.gmra.mrb[188].mxu0 %vm798_vm2, %v5492_v25 }
 0xdeb   : > { %9830 = vmatpush3.bf16.msra.mxu0 %v5693_v16  ;;  %9831 = vmatprep.mubr.msk.bf16.mxu0 %vm10853_vm0, %v13163_v6 }
 0xdec   : > { %9841 = vmatprep.subr.bf16.mxu0 %v13163_v6 }
 0xdee   : > { %9826 = vmatmul.mubr.msk.bf16.vlgmr.msra.gmra.mrb[188].mxu1 %vm798_vm2, %v5542_v12 }
 0xdef   : > { %9836 = vmatpush3.bf16.msra.mxu1 %v5741_v13  ;;  %9837 = vmatprep.mubr.msk.bf16.mxu1 %vm10853_vm0, %v13163_v6 }
 0xdf0   : > { %9847 = vmatprep.subr.bf16.mxu1 %v13163_v6 }
 0xe58   : > { %v12262_v18 = vpop.f32.mrb[160].mxu0 }
 0xe59   : > { %v9737_v19 = vpop.f32.mrb[161].mxu0 }
 0xe5a   : > { %v4852_v33 = vpop.f32.mrb[162].mxu0 }
 0xe5b   : > { %v9738_v9 = vpop.f32.mrb[163].mxu0 }
 0xe5c   : > { %v12264_v54 = vpop.f32.mrb[160].mxu1 }
 0xe5d   : > { %v9743_v0 = vpop.f32.mrb[161].mxu1 }
 0xe5e   : > { %v4900_v53 = vpop.f32.mrb[162].mxu1 }
 0xe5f   : > { %v9744_v63 = vpop.f32.mrb[163].mxu1 }
 0xe60   : > { %v12268_v28 = vpop.f32.mrb[164].mxu0 }
 0xe61   : > { %v9749_v1 = vpop.f32.mrb[165].mxu0 }
 0xe62   : > { %v4948_v50 = vpop.f32.mrb[166].mxu0 }
 0xe63   : > { %v9750_v36 = vpop.f32.mrb[167].mxu0 }
 0xe64   : > { %v12270_v26 = vpop.f32.mrb[164].mxu1 }
 0xe65   : > { %v9755_v47 = vpop.f32.mrb[165].mxu1 }
 0xe66   : > { %v4996_v42 = vpop.f32.mrb[166].mxu1 }
 0xe67   : > { %v9756_v12 = vpop.f32.mrb[167].mxu1 }
 0xe68   : > { %v12274_v62 = vpop.f32.mrb[168].mxu0 }
 0xe69   : > { %v9761_v25 = vpop.f32.mrb[169].mxu0 }
 0xe6a   : > { %v5044_v17 = vpop.f32.mrb[170].mxu0 }
 0xe6b   : > { %v9762_v3 = vpop.f32.mrb[171].mxu0 }
 0xe6c   : > { %v12276_v16 = vpop.f32.mrb[168].mxu1 }
 0xe6d   : > { %v9767_v13 = vpop.f32.mrb[169].mxu1 }
 0xe6e   : > { %v5092_v19 = vpop.f32.mrb[170].mxu1 }
 0xe6f   : > { %v9768_v33 = vpop.f32.mrb[171].mxu1 }
 0xe9d   : > { %v12280_v9 = vpop.f32.mrb[172].mxu0 }
 0xe9e   : > { %13166 = vst [vmem:[#allocation38_spill] sm:$0xff] %v12280_v9  ;;  %v9773_v0 = vpop.f32.mrb[173].mxu0 }
 0xe9f   : > { %v5140_v53 = vpop.f32.mrb[174].mxu0 }
 0xea0   : > { %v9774_v63 = vpop.f32.mrb[175].mxu0 }
 0xea1   : > { %v12282_v1 = vpop.f32.mrb[172].mxu1 }
 0xea2   : > { %13167 = vst [vmem:[#allocation39_spill] sm:$0xff] %v12282_v1  ;;  %v9779_v36 = vpop.f32.mrb[173].mxu1 }
 0xea3   : > { %v5188_v47 = vpop.f32.mrb[174].mxu1 }
 0xea4   : > { %v9780_v42 = vpop.f32.mrb[175].mxu1 }
 0xea5   : > { %v5235_v12 = vpop.f32.mrb[176].mxu0 }
 0xea6   : > { %v9785_v25 = vpop.f32.mrb[177].mxu0  ;;  %v5591_v17 = vsel %vm1188_vm4, %v5235_v12, -inf }
 0xea7   : > { %5592 = vmax.xlane.f32.xlu0 %v5591_v17  ;;  %v5238_v3 = vpop.f32.mrb[178].mxu0 }
 0xea8   : > { %v9786_v13 = vpop.f32.mrb[179].mxu0 }
 0xea9   : > { %v5285_v19 = vpop.f32.mrb[176].mxu1 }
 0xeaa   : > { %v9791_v33 = vpop.f32.mrb[177].mxu1  ;;  %v5594_v0 = vsel %vm1188_vm4, %v5285_v19, -inf }
 0xeab   : > { %5595 = vmax.xlane.f32.xlu1 %v5594_v0  ;;  %v5288_v53 = vpop.f32.mrb[178].mxu1 }
 0xeac   : > { %v9792_v63 = vpop.f32.mrb[179].mxu1 }
 0xead   : > { %v5335_v41 = vpop.f32.mrb[180].mxu0 }
 0xeae   : > { %v9797_v34 = vpop.f32.mrb[181].mxu0  ;;  %v5597_v36 = vsel %vm1188_vm4, %v5335_v41, -inf }
 0xeaf   : > { %5598 = vmax.xlane.f32.xlu0 %v5597_v36  ;;  %v5338_v47 = vpop.f32.mrb[182].mxu0 }
 0xeb0   : > { %v9798_v42 = vpop.f32.mrb[183].mxu0 }
 0xeb1   : > { %v5385_v25 = vpop.f32.mrb[180].mxu1 }
 0xeb2   : > { %v9803_v50 = vpop.f32.mrb[181].mxu1  ;;  %v5600_v17 = vsel %vm1188_vm4, %v5385_v25, -inf }
 0xeb3   : > { %v5388_v3 = vpop.f32.mrb[182].mxu1  ;;  %5601 = vmax.xlane.f32.xlu0 %v5600_v17 }
 0xeb4   : > { %v9804_v13 = vpop.f32.mrb[183].mxu1 }
 0xeb5   : > { %v5435_v33 = vpop.f32.mrb[184].mxu0 }
 0xeb6   : > { %v9809_v11 = vpop.f32.mrb[185].mxu0  ;;  %v5603_v0 = vsel %vm1188_vm4, %v5435_v33, -inf }
 0xeb7   : > { %5604 = vmax.xlane.f32.xlu1 %v5603_v0  ;;  %v5438_v53 = vpop.f32.mrb[186].mxu0 }
 0xeb8   : > { %v9810_v63 = vpop.f32.mrb[187].mxu0 }
 0xeb9   : > { %v5485_v34 = vpop.f32.mrb[184].mxu1 }
 0xeba   : > { %v9815_v37 = vpop.f32.mrb[185].mxu1  ;;  %v5606_v36 = vsel %vm1188_vm4, %v5485_v34, -inf }
 0xebb   : > { %v5488_v47 = vpop.f32.mrb[186].mxu1  ;;  %5607 = vmax.xlane.f32.xlu0 %v5606_v36 }
 0xebc   : > { %v9816_v42 = vpop.f32.mrb[187].mxu1 }
 0xebd   : > { %v12292_v50 = vpop.f32.mrb[188].mxu0 }
 0xebe   : > { %v9821_v29 = vpop.f32.mrb[189].mxu0  ;;  %v5609_v17 = vsel %vm1188_vm4, %v12292_v50, -inf }
 0xebf   : > { %5610 = vmax.xlane.f32.xlu1 %v5609_v17  ;;  %v5538_v11 = vpop.f32.mrb[190].mxu0  ;;  %v12301_v29 = vpop.permute.xlu1 %5783 }
 0xec0   : > { %v9822_v3 = vpop.f32.mrb[191].mxu0 }
 0xec1   : > { %v5585_v13 = vpop.f32.mrb[188].mxu1 }
 0xec2   : > { %v9827_v0 = vpop.f32.mrb[189].mxu1  ;;  %v5612_v53 = vsel %vm1188_vm4, %v5585_v13, -inf }
 0xec3   : > { %v5588_v63 = vpop.f32.mrb[190].mxu1  ;;  %5613 = vmax.xlane.f32.xlu0 %v5612_v53  ;;  %v12303_v36 = vpop.permute.xlu1 %5831 }
 0xec4   : > { %v9828_v37 = vpop.f32.mrb[191].mxu1 }
 0xed0   : > { %5927 = vrot.lane.b32.xlu1 %v11250_v8, %s10870_s15 }
 0xed9   : > { %5879 = vrot.lane.b32.xlu0 %v11248_v7, %s10870_s15 }
 0xf34   : > { %v5593_v47 = vpop.xlane.xlu0 %5592 }
 0xf35   : > { %v5615_v42 = vsub.f32 %v5235_v12, %v5593_v47 }
 0xf37   : > { %v5623_v17 = vmul.f32 1.442695, %v5615_v42 }
 0xf38   : > { %v5596_v11 = vpop.xlane.xlu1 %5595 }
 0xf39   : > { %10540 = vpow2.f32 %v5623_v17  ;;  %v5616_v3 = vsub.f32 %v5285_v19, %v5596_v11 }
 0xf3b   : > { %v5625_v0 = vmul.f32 1.442695, %v5616_v3 }
 0xf3c   : > { %v5599_v63 = vpop.xlane.xlu0 %5598 }
 0xf3d   : > { %10542 = vpow2.f32 %v5625_v0  ;;  %v5617_v53 = vsub.f32 %v5335_v41, %v5599_v63 }
 0xf3f   : > { %v5627_v37 = vmul.f32 1.442695, %v5617_v53 }
 0xf40   : > { %v5602_v15 = vpop.xlane.xlu0 %5601 }
 0xf41   : > { %10544 = vpow2.f32 %v5627_v37  ;;  %v5618_v21 = vsub.f32 %v5385_v25, %v5602_v15 }
 0xf43   : > { %v12305_v5 = vpop.eup %10540  ;;  %v5629_v10 = vmul.f32 1.442695, %v5618_v21 }
 0xf44   : > { %v5605_v9 = vpop.xlane.xlu1 %5604  ;;  %v5639_v1 = vsel %vm1188_vm4, %v12305_v5, 0.0 }
 0xf45   : > { %10546 = vpow2.f32 %v5629_v10  ;;  %v5619_v12 = vsub.f32 %v5435_v33, %v5605_v9  ;;  %5640 = vadd.xlane.f32.xlu1 %v5639_v1 }
 0xf47   : > { %v12309_v47 = vpop.eup %10542  ;;  %v5631_v19 = vmul.f32 1.442695, %v5619_v12 }
 0xf48   : > { %v5608_v42 = vpop.xlane.xlu0 %5607  ;;  %v5642_v41 = vsel %vm1188_vm4, %v12309_v47, 0.0 }
 0xf49   : > { %10548 = vpow2.f32 %v5631_v19  ;;  %v5620_v17 = vsub.f32 %v5485_v34, %v5608_v42  ;;  %5643 = vadd.xlane.f32.xlu0 %v5642_v41 }
 0xf4b   : > { %v12313_v15 = vpop.eup %10544  ;;  %v5633_v21 = vmul.f32 1.442695, %v5620_v17 }
 0xf4c   : > { %v5645_v25 = vsel %vm1188_vm4, %v12313_v15, 0.0  ;;  %v5611_v3 = vpop.xlane.xlu1 %5610 }
 0xf4d   : > { %10550 = vpow2.f32 %v5633_v21  ;;  %5646 = vadd.xlane.f32.xlu1 %v5645_v25  ;;  %v5621_v0 = vsub.f32 %v12292_v50, %v5611_v3 }
 0xf4f   : > { %v12317_v10 = vpop.eup %10546  ;;  %v5635_v53 = vmul.f32 1.442695, %v5621_v0 }
 0xf50   : > { %v5648_v9 = vsel %vm1188_vm4, %v12317_v10, 0.0  ;;  %v5614_v63 = vpop.xlane.xlu0 %5613  ;;  %v5928_v50 = vpop.permute.xlu1 %5927 }
 0xf51   : > { %5649 = vadd.xlane.f32.xlu0 %v5648_v9  ;;  %v5622_v37 = vsub.f32 %v5585_v13, %v5614_v63  ;;  %10552 = vpow2.f32 %v5635_v53  ;;  %v5789_v53 = vsel %vm1291_vm3, %v12301_v29, 0 }
 0xf53   : > { %v12321_v1 = vpop.eup %10548  ;;  %v5637_v12 = vmul.f32 1.442695, %v5622_v37 }
 0xf54   : > { %v5651_v33 = vsel %vm1188_vm4, %v12321_v1, 0.0  ;;  %v5880_v13 = vpop.permute.xlu0 %5879 }
 0xf55   : > { %5652 = vadd.xlane.f32.xlu1 %v5651_v33  ;;  %10554 = vpow2.f32 %v5637_v12 }
 0xf57   : > { %v12325_v34 = vpop.eup %10550 }
 0xf58   : > { %v5654_v11 = vsel %vm1188_vm4, %v12325_v34, 0.0 }
 0xf59   : > { %5655 = vadd.xlane.f32.xlu0 %v5654_v11 }
 0xf5b   : > { %v12334_v19 = vpop.eup %10552 }
 0xf5c   : > { %v5657_v42 = vsel %vm1188_vm4, %v12334_v19, 0.0 }
 0xf5f   : > { %v12338_v41 = vpop.eup %10554 }
 0xf60   : > { %v5660_v17 = vsel %vm1188_vm4, %v12338_v41, 0.0 }
 0xf66   : > { %6023 = vrot.lane.b32.xlu1 %v11258_v24, %s10870_s15 }
 0xf6f   : > { %5975 = vrot.lane.b32.xlu0 %v11256_v23, %s10870_s15 }
 0xf8a   : > { %5658 = vadd.xlane.f32.xlu1 %v5657_v42 }
 0xf8e   : > { %5661 = vadd.xlane.f32.xlu0 %v5660_v17  ;;  %v5837_v17 = vsel %vm1291_vm3, %v12303_v36, 0 }
 0xf9b   : > { %6123 = vrot.lane.b32.xlu1 %v11234_v49, %s10871_s30 }
 0xf9f   : > { %6121 = vrot.lane.b32.xlu1 %v11234_v49, %s10872_s23 }
 0xfa3   : > { %6223 = vrot.lane.b32.xlu1 %v11242_v61, %s10871_s30 }
 0xfa4   : > { %6073 = vrot.lane.b32.xlu0 %v11232_v46, %s10871_s30 }
 0xfa7   : > { %6221 = vrot.lane.b32.xlu1 %v11242_v61, %s10872_s23 }
 0xfa8   : > { %6071 = vrot.lane.b32.xlu0 %v11232_v46, %s10872_s23 }
 0xfab   : > { %6323 = vrot.lane.b32.xlu1 %v11250_v8, %s10871_s30 }
 0xfac   : > { %6173 = vrot.lane.b32.xlu0 %v11240_v58, %s10871_s30 }
 0xfaf   : > { %6321 = vrot.lane.b32.xlu1 %v11250_v8, %s10872_s23 }
 0xfb0   : > { %6171 = vrot.lane.b32.xlu0 %v11240_v58, %s10872_s23 }
 0xfb3   : > { %6423 = vrot.lane.b32.xlu1 %v11258_v24, %s10871_s30 }
 0xfb4   : > { %6273 = vrot.lane.b32.xlu0 %v11248_v7, %s10871_s30 }
 0xfb7   : > { %6421 = vrot.lane.b32.xlu1 %v11258_v24, %s10872_s23 }
 0xfb8   : > { %6271 = vrot.lane.b32.xlu0 %v11248_v7, %s10872_s23 }
 0xfbb   : > { %6567 = vrot.lane.b32.xlu1 %v11232_v46, %s10873_s26 }
 0xfbc   : > { %6373 = vrot.lane.b32.xlu0 %v11256_v23, %s10871_s30 }
 0xfbf   : > { %6663 = vrot.lane.b32.xlu1 %v11240_v58, %s10873_s26 }
 0xfc0   : > { %6371 = vrot.lane.b32.xlu0 %v11256_v23, %s10872_s23 }
 0xfc3   : > { %6711 = vrot.lane.b32.xlu1 %v11242_v61, %s10873_s26 }
 0xfc4   : > { %6615 = vrot.lane.b32.xlu0 %v11234_v49, %s10873_s26 }
 0xfd2   : > { %v5641_v21 = vpop.xlane.xlu1 %5640 }
 0xfd3   : > { %10556 = vrcp.f32 %v5641_v21 }
 0xfd6   : > { %v5644_v25 = vpop.xlane.xlu0 %5643 }
 0xfd7   : > { %10558 = vrcp.f32 %v5644_v25 }
 0xfda   : > { %v5647_v9 = vpop.xlane.xlu1 %5646 }
 0xfdb   : > { %10560 = vrcp.f32 %v5647_v9  ;;  %v5885_v9 = vsel %vm1291_vm3, %v5880_v13, 0 }
 0xfdd   : > { %v10557_v33 = vpop.eup %10556 }
 0xfde   : > { %v5650_v11 = vpop.xlane.xlu0 %5649  ;;  %v5671_v3 = vmul.f32 %v10557_v33, %v12305_v5 }
 0xfdf   : > { %10562 = vrcp.f32 %v5650_v11  ;;  %v5933_v11 = vsel %vm1291_vm3, %v5928_v50, 0 }
 0xfe0   : > { %v5679_v0 = vpack.c.bf16 %v5671_v3, %v5671_v3 }
 0xfe1   : > { %v10559_v63 = vpop.eup %10558 }
 0xfe2   : > { %9832 = vmatmul.mubr.msk.bf16.vlgmr.msra.gmra.mrb[192].mxu0 %vm1287_vm5, %v5679_v0  ;;  %v5653_v37 = vpop.xlane.xlu1 %5652  ;;  %v5672_v12 = vmul.f32 %v10559_v63, %v12309_v47 }
 0xfe3   : > { %9842 = vmatpush3.bf16.msra.mxu0 %v5789_v53  ;;  %10564 = vrcp.f32 %v5653_v37  ;;  %9843 = vmatprep.mubr.msk.bf16.mxu0 %vm10853_vm0, %v13163_v6 }
 0xfe4   : > { %v5680_v42 = vpack.c.bf16 %v5672_v12, %v5672_v12  ;;  %9853 = vmatprep.subr.bf16.mxu0 %v13163_v6 }
 0xfe5   : > { %v10561_v5 = vpop.eup %10560 }
 0xfe6   : > { %9838 = vmatmul.mubr.msk.bf16.vlgmr.msra.gmra.mrb[192].mxu1 %vm1287_vm5, %v5680_v42  ;;  %v5656_v29 = vpop.xlane.xlu0 %5655  ;;  %v5673_v21 = vmul.f32 %v10561_v5, %v12313_v15  ;;  %v6024_v50 = vpop.permute.xlu1 %6023 }
 0xfe7   : > { %9848 = vmatpush3.bf16.msra.mxu1 %v5837_v17  ;;  %10566 = vrcp.f32 %v5656_v29  ;;  %9849 = vmatprep.mubr.msk.bf16.mxu1 %vm10853_vm0, %v13163_v6  ;;  %v6029_v37 = vsel %vm1291_vm3, %v6024_v50, 0 }
 0xfe8   : > { %v5681_v47 = vpack.c.bf16 %v5673_v21, %v5673_v21  ;;  %9859 = vmatprep.subr.bf16.mxu1 %v13163_v6 }
 0xfe9   : > { %v10563_v25 = vpop.eup %10562 }
 0xfea   : > { %9844 = vmatmul.mubr.msk.bf16.vlgmr.msra.gmra.mrb[196].mxu0 %vm1287_vm5, %v5681_v47  ;;  %v5674_v36 = vmul.f32 %v10563_v25, %v12317_v10  ;;  %v5976_v0 = vpop.permute.xlu0 %5975 }
 0xfeb   : > { %9854 = vmatpush3.bf16.msra.mxu0 %v5885_v9  ;;  %9855 = vmatprep.mubr.msk.bf16.mxu0 %vm10853_vm0, %v13163_v6  ;;  %v5981_v63 = vsel %vm1291_vm3, %v5976_v0, 0 }
 0xfec   : > { %v5682_v15 = vpack.c.bf16 %v5674_v36, %v5674_v36  ;;  %9865 = vmatprep.subr.bf16.mxu0 %v13163_v6 }
 0xfed   : > { %v10565_v33 = vpop.eup %10564 }
 0xfee   : > { %9850 = vmatmul.mubr.msk.bf16.vlgmr.msra.gmra.mrb[196].mxu1 %vm1287_vm5, %v5682_v15  ;;  %v5675_v3 = vmul.f32 %v10565_v33, %v12321_v1 }
 0xfef   : > { %9860 = vmatpush3.bf16.msra.mxu1 %v5933_v11  ;;  %9861 = vmatprep.mubr.msk.bf16.mxu1 %vm10853_vm0, %v13163_v6 }
 0xff0   : > { %v5683_v10 = vpack.c.bf16 %v5675_v3, %v5675_v3  ;;  %9871 = vmatprep.subr.bf16.mxu1 %v13163_v6 }
 0xff1   : > { %v10567_v13 = vpop.eup %10566 }
 0xff2   : > { %9856 = vmatmul.mubr.msk.bf16.vlgmr.msra.gmra.mrb[200].mxu0 %vm1287_vm5, %v5683_v10  ;;  %v5676_v53 = vmul.f32 %v10567_v13, %v12325_v34 }
 0xff3   : > { %9866 = vmatpush3.bf16.msra.mxu0 %v5981_v63  ;;  %9867 = vmatprep.mubr.msk.bf16.mxu0 %vm10853_vm0, %v13163_v6 }
 0xff4   : > { %v5684_v1 = vpack.c.bf16 %v5676_v53, %v5676_v53  ;;  %9877 = vmatprep.subr.bf16.mxu0 %v13163_v6 }
 0xff6   : > { %9862 = vmatmul.mubr.msk.bf16.vlgmr.msra.gmra.mrb[200].mxu1 %vm1287_vm5, %v5684_v1 }
 0xff7   : > { %9872 = vmatpush3.bf16.msra.mxu1 %v6029_v37  ;;  %9873 = vmatprep.mubr.msk.bf16.mxu1 %vm10853_vm0, %v13163_v6 }
 0xff8   : > { %9883 = vmatprep.subr.bf16.mxu1 %v13163_v6 }
0x1017   : > { %v5659_v12 = vpop.xlane.xlu1 %5658 }
0x1018   : > { %10568 = vrcp.f32 %v5659_v12 }
0x101b   : > { %v5662_v34 = vpop.xlane.xlu0 %5661  ;;  %v6124_v42 = vpop.permute.xlu1 %6123 }
0x101c   : > { %10570 = vrcp.f32 %v5662_v34  ;;  %v6129_v10 = vsel %vm798_vm2, %v6124_v42, 0 }
0x101f   : > { %v6074_v5 = vpop.permute.xlu0 %6073  ;;  %v6122_v17 = vpop.permute.xlu1 %6121 }
0x1020   : > { %v6079_v15 = vsel %vm798_vm2, %v6074_v5, 0 }
0x1022   : > { %v10569_v29 = vpop.eup %10568 }
0x1023   : > { %v6072_v21 = vpop.permute.xlu0 %6071  ;;  %v6224_v47 = vpop.permute.xlu1 %6223  ;;  %v5677_v25 = vmul.f32 %v10569_v29, %v12334_v19 }
0x1024   : > { %v6229_v50 = vsel %vm798_vm2, %v6224_v47, 0 }
0x1025   : > { %v5685_v9 = vpack.c.bf16 %v5677_v25, %v5677_v25 }
0x1026   : > { %v10571_v36 = vpop.eup %10570 }
0x1027   : > { %v6174_v33 = vpop.permute.xlu0 %6173  ;;  %9868 = vmatmul.mubr.msk.bf16.vlgmr.msra.gmra.mrb[204].mxu0 %vm1287_vm5, %v5685_v9  ;;  %v6222_v11 = vpop.permute.xlu1 %6221  ;;  %v5678_v3 = vmul.f32 %v10571_v36, %v12338_v41 }
0x1028   : > { %9878 = vmatpush3.bf16.xpose.msra.mxu0 %v6079_v15  ;;  %9879 = vmatprep.mubr.msk.bf16.mxu0 %vm10853_vm0, %v13163_v6  ;;  %v6179_v41 = vsel %vm798_vm2, %v6174_v33, 0 }
0x1029   : > { %v5686_v0 = vpack.c.bf16 %v5678_v3, %v5678_v3  ;;  %9889 = vmatprep.subr.bf16.mxu0 %v13163_v6 }
0x102b   : > { %v6172_v19 = vpop.permute.xlu0 %6171  ;;  %9874 = vmatmul.mubr.msk.bf16.vlgmr.msra.gmra.mrb[204].mxu1 %vm1287_vm5, %v5686_v0  ;;  %v6324_v13 = vpop.permute.xlu1 %6323 }
0x102c   : > { %9884 = vmatpush3.bf16.xpose.msra.mxu1 %v6129_v10  ;;  %9885 = vmatprep.mubr.msk.bf16.mxu1 %vm10853_vm0, %v13163_v6  ;;  %v6329_v34 = vsel %vm798_vm2, %v6324_v13, 0 }
0x102d   : > { %9895 = vmatprep.subr.bf16.mxu1 %v13163_v6 }
0x102f   : > { %9880 = vmatmul.mubr.msk.bf16.vlgmr.msra.gmra.mrb[208].mxu0 %vm798_vm2, %v6072_v21  ;;  %v6274_v63 = vpop.permute.xlu0 %6273  ;;  %v6322_v53 = vpop.permute.xlu1 %6321 }
0x1030   : > { %9890 = vmatpush3.bf16.xpose.msra.mxu0 %v6179_v41  ;;  %9891 = vmatprep.mubr.msk.bf16.mxu0 %vm10853_vm0, %v13163_v6  ;;  %v6279_v37 = vsel %vm798_vm2, %v6274_v63, 0 }
0x1031   : > { %9901 = vmatprep.subr.bf16.mxu0 %v13163_v6 }
0x1033   : > { %9886 = vmatmul.mubr.msk.bf16.vlgmr.msra.gmra.mrb[208].mxu1 %vm798_vm2, %v6122_v17  ;;  %v6272_v1 = vpop.permute.xlu0 %6271  ;;  %v6424_v12 = vpop.permute.xlu1 %6423 }
0x1034   : > { %9896 = vmatpush3.bf16.xpose.msra.mxu1 %v6229_v50  ;;  %9897 = vmatprep.mubr.msk.bf16.mxu1 %vm10853_vm0, %v13163_v6  ;;  %v6429_v21 = vsel %vm798_vm2, %v6424_v12, 0 }
0x1035   : > { %9907 = vmatprep.subr.bf16.mxu1 %v13163_v6 }
0x1037   : > { %9892 = vmatmul.mubr.msk.bf16.vlgmr.msra.gmra.mrb[212].mxu0 %vm798_vm2, %v6172_v19  ;;  %v6374_v42 = vpop.permute.xlu0 %6373  ;;  %v6422_v5 = vpop.permute.xlu1 %6421 }
0x1038   : > { %9902 = vmatpush3.bf16.xpose.msra.mxu0 %v6279_v37  ;;  %9903 = vmatprep.mubr.msk.bf16.mxu0 %vm10853_vm0, %v13163_v6  ;;  %v6379_v17 = vsel %vm798_vm2, %v6374_v42, 0 }
0x1039   : > { %9913 = vmatprep.subr.bf16.mxu0 %v13163_v6 }
0x103b   : > { %9898 = vmatmul.mubr.msk.bf16.vlgmr.msra.gmra.mrb[212].mxu1 %vm798_vm2, %v6222_v11  ;;  %v6372_v29 = vpop.permute.xlu0 %6371  ;;  %v6568_v47 = vpop.permute.xlu1 %6567 }
0x103c   : > { %9908 = vmatpush3.bf16.xpose.msra.mxu1 %v6329_v34  ;;  %9909 = vmatprep.mubr.msk.bf16.mxu1 %vm10853_vm0, %v13163_v6  ;;  %v6573_v25 = vsel %vm1291_vm3, %v6568_v47, 0 }
0x103d   : > { %9919 = vmatprep.subr.bf16.mxu1 %v13163_v6 }
0x103f   : > { %9904 = vmatmul.mubr.msk.bf16.vlgmr.msra.gmra.mrb[216].mxu0 %vm798_vm2, %v6272_v1  ;;  %v6616_v9 = vpop.permute.xlu0 %6615 }
0x1040   : > { %9914 = vmatpush3.bf16.xpose.msra.mxu0 %v6379_v17  ;;  %9915 = vmatprep.mubr.msk.bf16.mxu0 %vm10853_vm0, %v13163_v6  ;;  %v6621_v36 = vsel %vm1291_vm3, %v6616_v9, 0 }
0x1041   : > { %9925 = vmatprep.subr.bf16.mxu0 %v13163_v6 }
0x1043   : > { %9910 = vmatmul.mubr.msk.bf16.vlgmr.msra.gmra.mrb[216].mxu1 %vm798_vm2, %v6322_v53 }
0x1044   : > { %9920 = vmatpush3.bf16.xpose.msra.mxu1 %v6429_v21  ;;  %9921 = vmatprep.mubr.msk.bf16.mxu1 %vm10853_vm0, %v13163_v6 }
0x1045   : > { %9931 = vmatprep.subr.bf16.mxu1 %v13163_v6 }
0x1047   : > { %9916 = vmatmul.mubr.msk.bf16.vlgmr.msra.gmra.mrb[220].mxu0 %vm798_vm2, %v6372_v29 }
0x1048   : > { %9926 = vmatpush3.bf16.msra.mxu0 %v6573_v25  ;;  %9927 = vmatprep.mubr.msk.bf16.mxu0 %vm10853_vm0, %v13163_v6 }
0x1049   : > { %9937 = vmatprep.subr.bf16.mxu0 %v13163_v6 }
0x104b   : > { %9922 = vmatmul.mubr.msk.bf16.vlgmr.msra.gmra.mrb[220].mxu1 %vm798_vm2, %v6422_v5 }
0x104c   : > { %9932 = vmatpush3.bf16.msra.mxu1 %v6621_v36  ;;  %9933 = vmatprep.mubr.msk.bf16.mxu1 %vm10853_vm0, %v13163_v6 }
0x104d   : > { %9943 = vmatprep.subr.bf16.mxu1 %v13163_v6 }
0x10b5   : > { %v12456_v15 = vpop.f32.mrb[192].mxu0 }
0x10b6   : > { %v9833_v33 = vpop.f32.mrb[193].mxu0 }
0x10b7   : > { %v5732_v11 = vpop.f32.mrb[194].mxu0 }
0x10b8   : > { %v9834_v3 = vpop.f32.mrb[195].mxu0 }
0x10b9   : > { %v12458_v0 = vpop.f32.mrb[192].mxu1 }
0x10ba   : > { %v9839_v19 = vpop.f32.mrb[193].mxu1 }
0x10bb   : > { %v5780_v13 = vpop.f32.mrb[194].mxu1 }
0x10bc   : > { %v9840_v41 = vpop.f32.mrb[195].mxu1 }
0x10bd   : > { %v12462_v63 = vpop.f32.mrb[196].mxu0 }
0x10be   : > { %v9845_v53 = vpop.f32.mrb[197].mxu0 }
0x10bf   : > { %v5828_v50 = vpop.f32.mrb[198].mxu0 }
0x10c0   : > { %v9846_v1 = vpop.f32.mrb[199].mxu0 }
0x10c1   : > { %v12464_v37 = vpop.f32.mrb[196].mxu1 }
0x10c2   : > { %v9851_v34 = vpop.f32.mrb[197].mxu1 }
0x10c3   : > { %v5876_v42 = vpop.f32.mrb[198].mxu1 }
0x10c4   : > { %v9852_v5 = vpop.f32.mrb[199].mxu1 }
0x10c5   : > { %v12468_v17 = vpop.f32.mrb[200].mxu0 }
0x10c6   : > { %v9857_v29 = vpop.f32.mrb[201].mxu0 }
0x10c7   : > { %v5924_v21 = vpop.f32.mrb[202].mxu0 }
0x10c8   : > { %v9858_v47 = vpop.f32.mrb[203].mxu0 }
0x10c9   : > { %v12470_v25 = vpop.f32.mrb[200].mxu1 }
0x10ca   : > { %v9863_v36 = vpop.f32.mrb[201].mxu1 }
0x10cb   : > { %v5972_v33 = vpop.f32.mrb[202].mxu1 }
0x10cc   : > { %v9864_v11 = vpop.f32.mrb[203].mxu1 }
0x10fa   : > { %v12474_v3 = vpop.f32.mrb[204].mxu0 }
0x10fb   : > { %13168 = vst [vmem:[#allocation40_spill] sm:$0xff] %v12474_v3  ;;  %v9869_v19 = vpop.f32.mrb[205].mxu0 }
0x10fc   : > { %v6020_v13 = vpop.f32.mrb[206].mxu0 }
0x10fd   : > { %v9870_v41 = vpop.f32.mrb[207].mxu0 }
0x10fe   : > { %v12476_v53 = vpop.f32.mrb[204].mxu1 }
0x10ff   : > { %13169 = vst [vmem:[#allocation41_spill] sm:$0xff] %v12476_v53  ;;  %v9875_v1 = vpop.f32.mrb[205].mxu1 }
0x1100   : > { %v6068_v34 = vpop.f32.mrb[206].mxu1 }
0x1101   : > { %v9876_v42 = vpop.f32.mrb[207].mxu1 }
0x1102   : > { %v6115_v5 = vpop.f32.mrb[208].mxu0 }
0x1103   : > { %v9881_v29 = vpop.f32.mrb[209].mxu0  ;;  %v6471_v21 = vsel %vm1188_vm4, %v6115_v5, -inf }
0x1104   : > { %6472 = vmax.xlane.f32.xlu0 %v6471_v21  ;;  %v6118_v47 = vpop.f32.mrb[210].mxu0 }
0x1105   : > { %v9882_v36 = vpop.f32.mrb[211].mxu0 }
0x1106   : > { %v6165_v33 = vpop.f32.mrb[208].mxu1 }
0x1107   : > { %v9887_v11 = vpop.f32.mrb[209].mxu1  ;;  %v6474_v19 = vsel %vm1188_vm4, %v6165_v33, -inf }
0x1108   : > { %6475 = vmax.xlane.f32.xlu1 %v6474_v19  ;;  %v6168_v13 = vpop.f32.mrb[210].mxu1 }
0x1109   : > { %v9888_v41 = vpop.f32.mrb[211].mxu1 }
0x110a   : > { %v6215_v9 = vpop.f32.mrb[212].mxu0 }
0x110b   : > { %v9893_v12 = vpop.f32.mrb[213].mxu0  ;;  %v6477_v1 = vsel %vm1188_vm4, %v6215_v9, -inf }
0x110c   : > { %6478 = vmax.xlane.f32.xlu0 %v6477_v1  ;;  %v6218_v34 = vpop.f32.mrb[214].mxu0 }
0x110d   : > { %v9894_v42 = vpop.f32.mrb[215].mxu0 }
0x110e   : > { %v6265_v29 = vpop.f32.mrb[212].mxu1 }
0x110f   : > { %v9899_v50 = vpop.f32.mrb[213].mxu1  ;;  %v6480_v21 = vsel %vm1188_vm4, %v6265_v29, -inf }
0x1110   : > { %v6268_v47 = vpop.f32.mrb[214].mxu1  ;;  %6481 = vmax.xlane.f32.xlu0 %v6480_v21 }
0x1111   : > { %v9900_v36 = vpop.f32.mrb[215].mxu1 }
0x1112   : > { %v6315_v11 = vpop.f32.mrb[216].mxu0 }
0x1113   : > { %v9905_v10 = vpop.f32.mrb[217].mxu0  ;;  %v6483_v19 = vsel %vm1188_vm4, %v6315_v11, -inf }
0x1114   : > { %6484 = vmax.xlane.f32.xlu1 %v6483_v19  ;;  %v6318_v13 = vpop.f32.mrb[218].mxu0 }
0x1115   : > { %v9906_v41 = vpop.f32.mrb[219].mxu0 }
0x1116   : > { %v6365_v12 = vpop.f32.mrb[216].mxu1 }
0x1117   : > { %v9911_v3 = vpop.f32.mrb[217].mxu1  ;;  %v6486_v1 = vsel %vm1188_vm4, %v6365_v12, -inf }
0x1118   : > { %v6368_v34 = vpop.f32.mrb[218].mxu1  ;;  %6487 = vmax.xlane.f32.xlu0 %v6486_v1 }
0x1119   : > { %v9912_v42 = vpop.f32.mrb[219].mxu1 }
0x111a   : > { %v12486_v50 = vpop.f32.mrb[220].mxu0 }
0x111b   : > { %v9917_v53 = vpop.f32.mrb[221].mxu0  ;;  %v6489_v21 = vsel %vm1188_vm4, %v12486_v50, -inf }
0x111c   : > { %6490 = vmax.xlane.f32.xlu1 %v6489_v21  ;;  %v6418_v10 = vpop.f32.mrb[222].mxu0  ;;  %v12495_v53 = vpop.permute.xlu1 %6663 }
0x111d   : > { %v9918_v47 = vpop.f32.mrb[223].mxu0 }
0x111e   : > { %v6465_v36 = vpop.f32.mrb[220].mxu1 }
0x111f   : > { %v9923_v19 = vpop.f32.mrb[221].mxu1  ;;  %v6492_v13 = vsel %vm1188_vm4, %v6465_v36, -inf }
0x1120   : > { %v6468_v41 = vpop.f32.mrb[222].mxu1  ;;  %6493 = vmax.xlane.f32.xlu0 %v6492_v13  ;;  %v12497_v1 = vpop.permute.xlu1 %6711 }
0x1121   : > { %v9924_v3 = vpop.f32.mrb[223].mxu1 }
0x112d   : > { %6807 = vrot.lane.b32.xlu1 %v11250_v8, %s10873_s26 }
0x1136   : > { %6759 = vrot.lane.b32.xlu0 %v11248_v7, %s10873_s26 }
0x1191   : > { %v6473_v34 = vpop.xlane.xlu0 %6472 }
0x1192   : > { %v6495_v42 = vsub.f32 %v6115_v5, %v6473_v34 }
0x1194   : > { %v6503_v21 = vmul.f32 1.442695, %v6495_v42 }
0x1195   : > { %v6476_v10 = vpop.xlane.xlu1 %6475 }
0x1196   : > { %10572 = vpow2.f32 %v6503_v21  ;;  %v6496_v47 = vsub.f32 %v6165_v33, %v6476_v10 }
0x1198   : > { %v6505_v19 = vmul.f32 1.442695, %v6496_v47 }
0x1199   : > { %v6479_v41 = vpop.xlane.xlu0 %6478 }
0x119a   : > { %10574 = vpow2.f32 %v6505_v19  ;;  %v6497_v13 = vsub.f32 %v6215_v9, %v6479_v41 }
0x119c   : > { %v6507_v3 = vmul.f32 1.442695, %v6497_v13 }
0x119d   : > { %v6482_v48 = vpop.xlane.xlu0 %6481 }
0x119e   : > { %10576 = vpow2.f32 %v6507_v3  ;;  %v6498_v56 = vsub.f32 %v6265_v29, %v6482_v48 }
0x11a0   : > { %v12499_v30 = vpop.eup %10572  ;;  %v6509_v35 = vmul.f32 1.442695, %v6498_v56 }
0x11a1   : > { %v6485_v60 = vpop.xlane.xlu1 %6484  ;;  %v6519_v55 = vsel %vm1188_vm4, %v12499_v30, 0.0 }
0x11a2   : > { %10578 = vpow2.f32 %v6509_v35  ;;  %v6499_v5 = vsub.f32 %v6315_v11, %v6485_v60  ;;  %6520 = vadd.xlane.f32.xlu1 %v6519_v55 }
0x11a4   : > { %v12503_v34 = vpop.eup %10574  ;;  %v6511_v33 = vmul.f32 1.442695, %v6499_v5 }
0x11a5   : > { %v6488_v42 = vpop.xlane.xlu0 %6487  ;;  %v6522_v9 = vsel %vm1188_vm4, %v12503_v34, 0.0 }
0x11a6   : > { %10580 = vpow2.f32 %v6511_v33  ;;  %v6500_v21 = vsub.f32 %v6365_v12, %v6488_v42  ;;  %6523 = vadd.xlane.f32.xlu0 %v6522_v9 }
0x11a8   : > { %v12507_v48 = vpop.eup %10576  ;;  %v6513_v56 = vmul.f32 1.442695, %v6500_v21 }
0x11a9   : > { %v6525_v29 = vsel %vm1188_vm4, %v12507_v48, 0.0  ;;  %v6491_v47 = vpop.xlane.xlu1 %6490 }
0x11aa   : > { %10582 = vpow2.f32 %v6513_v56  ;;  %6526 = vadd.xlane.f32.xlu1 %v6525_v29  ;;  %v6501_v19 = vsub.f32 %v12486_v50, %v6491_v47 }
0x11ac   : > { %v12511_v35 = vpop.eup %10578  ;;  %v6515_v13 = vmul.f32 1.442695, %v6501_v19 }
0x11ad   : > { %v6528_v60 = vsel %vm1188_vm4, %v12511_v35, 0.0  ;;  %v6494_v41 = vpop.xlane.xlu0 %6493  ;;  %v6808_v50 = vpop.permute.xlu1 %6807 }
0x11ae   : > { %6529 = vadd.xlane.f32.xlu0 %v6528_v60  ;;  %v6502_v3 = vsub.f32 %v6465_v36, %v6494_v41  ;;  %10584 = vpow2.f32 %v6515_v13 }
0x11b0   : > { %v12515_v55 = vpop.eup %10580  ;;  %v6517_v5 = vmul.f32 1.442695, %v6502_v3 }
0x11b1   : > { %v6531_v11 = vsel %vm1188_vm4, %v12515_v55, 0.0  ;;  %v6760_v36 = vpop.permute.xlu0 %6759 }
0x11b2   : > { %6532 = vadd.xlane.f32.xlu1 %v6531_v11  ;;  %10586 = vpow2.f32 %v6517_v5 }
0x11b4   : > { %v12519_v12 = vpop.eup %10582 }
0x11b5   : > { %v6534_v10 = vsel %vm1188_vm4, %v12519_v12, 0.0 }
0x11b6   : > { %6535 = vadd.xlane.f32.xlu0 %v6534_v10 }
0x11b8   : > { %v12528_v33 = vpop.eup %10584 }
0x11b9   : > { %v6537_v42 = vsel %vm1188_vm4, %v12528_v33, 0.0 }
0x11bc   : > { %v12532_v9 = vpop.eup %10586 }
0x11bd   : > { %v6540_v21 = vsel %vm1188_vm4, %v12532_v9, 0.0 }
0x11c3   : > { %6903 = vrot.lane.b32.xlu1 %v11258_v24, %s10873_s26 }
0x11cc   : > { %6855 = vrot.lane.b32.xlu0 %v11256_v23, %s10873_s26 }
0x11e7   : > { %6538 = vadd.xlane.f32.xlu1 %v6537_v42  ;;  %v6717_v42 = vsel %vm1291_vm3, %v12497_v1, 0 }
0x11eb   : > { %6541 = vadd.xlane.f32.xlu0 %v6540_v21 }
0x11f8   : > { %7003 = vrot.lane.b32.xlu1 %v11234_v49, %s10874_s17 }
0x11fc   : > { %7001 = vrot.lane.b32.xlu1 %v11234_v49, %s10875_s22 }
0x1200   : > { %7103 = vrot.lane.b32.xlu1 %v11242_v61, %s10874_s17 }
0x1201   : > { %6953 = vrot.lane.b32.xlu0 %v11232_v46, %s10874_s17 }
0x1204   : > { %7101 = vrot.lane.b32.xlu1 %v11242_v61, %s10875_s22 }
0x1205   : > { %6951 = vrot.lane.b32.xlu0 %v11232_v46, %s10875_s22 }
0x1208   : > { %7203 = vrot.lane.b32.xlu1 %v11250_v8, %s10874_s17 }
0x1209   : > { %7053 = vrot.lane.b32.xlu0 %v11240_v58, %s10874_s17 }
0x120c   : > { %7201 = vrot.lane.b32.xlu1 %v11250_v8, %s10875_s22 }
0x120d   : > { %7051 = vrot.lane.b32.xlu0 %v11240_v58, %s10875_s22 }
0x1210   : > { %7303 = vrot.lane.b32.xlu1 %v11258_v24, %s10874_s17 }
0x1211   : > { %7153 = vrot.lane.b32.xlu0 %v11248_v7, %s10874_s17 }
0x1214   : > { %7301 = vrot.lane.b32.xlu1 %v11258_v24, %s10875_s22 }
0x1215   : > { %7151 = vrot.lane.b32.xlu0 %v11248_v7, %s10875_s22 }
0x1218   : > { %7447 = vrot.lane.b32.xlu1 %v11232_v46, %s10876_s24  ;;  %v6669_v46 = vsel %vm1291_vm3, %v12495_v53, 0 }
0x1219   : > { %7253 = vrot.lane.b32.xlu0 %v11256_v23, %s10874_s17 }
0x121d   : > { %7251 = vrot.lane.b32.xlu0 %v11256_v23, %s10875_s22 }
0x122f   : > { %v6521_v56 = vpop.xlane.xlu1 %6520 }
0x1230   : > { %10588 = vrcp.f32 %v6521_v56 }
0x1233   : > { %v6524_v29 = vpop.xlane.xlu0 %6523 }
0x1234   : > { %10590 = vrcp.f32 %v6524_v29  ;;  %v6765_v29 = vsel %vm1291_vm3, %v6760_v36, 0 }
0x1237   : > { %v6527_v60 = vpop.xlane.xlu1 %6526 }
0x1238   : > { %10592 = vrcp.f32 %v6527_v60 }
0x123a   : > { %v10589_v11 = vpop.eup %10588 }
0x123b   : > { %v6551_v10 = vmul.f32 %v10589_v11, %v12499_v30  ;;  %v6530_v47 = vpop.xlane.xlu0 %6529  ;;  %v6813_v11 = vsel %vm1291_vm3, %v6808_v50, 0 }
0x123c   : > { %10594 = vrcp.f32 %v6530_v47 }
0x123d   : > { %v6559_v19 = vpack.c.bf16 %v6551_v10, %v6551_v10 }
0x123e   : > { %v10591_v41 = vpop.eup %10590 }
0x123f   : > { %v6552_v13 = vmul.f32 %v10591_v41, %v12503_v34  ;;  %9928 = vmatmul.mubr.msk.bf16.vlgmr.msra.gmra.mrb[224].mxu0 %vm1287_vm5, %v6559_v19  ;;  %v6533_v3 = vpop.xlane.xlu1 %6532 }
0x1240   : > { %9938 = vmatpush3.bf16.msra.mxu0 %v6669_v46  ;;  %10596 = vrcp.f32 %v6533_v3  ;;  %9939 = vmatprep.mubr.msk.bf16.mxu0 %vm10853_vm0, %v13163_v6 }
0x1241   : > { %v6560_v5 = vpack.c.bf16 %v6552_v13, %v6552_v13  ;;  %9949 = vmatprep.subr.bf16.mxu0 %v13163_v6 }
0x1242   : > { %v10593_v30 = vpop.eup %10592 }
0x1243   : > { %v6553_v21 = vmul.f32 %v10593_v30, %v12507_v48  ;;  %9934 = vmatmul.mubr.msk.bf16.vlgmr.msra.gmra.mrb[224].mxu1 %vm1287_vm5, %v6560_v5  ;;  %v6536_v53 = vpop.xlane.xlu0 %6535  ;;  %v6904_v50 = vpop.permute.xlu1 %6903 }
0x1244   : > { %9944 = vmatpush3.bf16.msra.mxu1 %v6717_v42  ;;  %10598 = vrcp.f32 %v6536_v53  ;;  %9945 = vmatprep.mubr.msk.bf16.mxu1 %vm10853_vm0, %v13163_v6  ;;  %v6909_v46 = vsel %vm1291_vm3, %v6904_v50, 0 }
0x1245   : > { %v6561_v34 = vpack.c.bf16 %v6553_v21, %v6553_v21  ;;  %9955 = vmatprep.subr.bf16.mxu1 %v13163_v6 }
0x1246   : > { %v10595_v56 = vpop.eup %10594 }
0x1247   : > { %v6554_v60 = vmul.f32 %v10595_v56, %v12511_v35  ;;  %9940 = vmatmul.mubr.msk.bf16.vlgmr.msra.gmra.mrb[228].mxu0 %vm1287_vm5, %v6561_v34  ;;  %v6856_v47 = vpop.permute.xlu0 %6855 }
0x1248   : > { %9950 = vmatpush3.bf16.msra.mxu0 %v6765_v29  ;;  %9951 = vmatprep.mubr.msk.bf16.mxu0 %vm10853_vm0, %v13163_v6  ;;  %v6861_v41 = vsel %vm1291_vm3, %v6856_v47, 0 }
0x1249   : > { %v6562_v1 = vpack.c.bf16 %v6554_v60, %v6554_v60  ;;  %9961 = vmatprep.subr.bf16.mxu0 %v13163_v6 }
0x124a   : > { %v10597_v48 = vpop.eup %10596 }
0x124b   : > { %v6555_v10 = vmul.f32 %v10597_v48, %v12515_v55  ;;  %9946 = vmatmul.mubr.msk.bf16.vlgmr.msra.gmra.mrb[228].mxu1 %vm1287_vm5, %v6562_v1 }
0x124c   : > { %9956 = vmatpush3.bf16.msra.mxu1 %v6813_v11  ;;  %9957 = vmatprep.mubr.msk.bf16.mxu1 %vm10853_vm0, %v13163_v6 }
0x124d   : > { %v6563_v35 = vpack.c.bf16 %v6555_v10, %v6555_v10  ;;  %9967 = vmatprep.subr.bf16.mxu1 %v13163_v6 }
0x124e   : > { %v10599_v36 = vpop.eup %10598 }
0x124f   : > { %v6556_v19 = vmul.f32 %v10599_v36, %v12519_v12  ;;  %9952 = vmatmul.mubr.msk.bf16.vlgmr.msra.gmra.mrb[232].mxu0 %vm1287_vm5, %v6563_v35 }
0x1250   : > { %9962 = vmatpush3.bf16.msra.mxu0 %v6861_v41  ;;  %9963 = vmatprep.mubr.msk.bf16.mxu0 %vm10853_vm0, %v13163_v6 }
0x1251   : > { %v6564_v55 = vpack.c.bf16 %v6556_v19, %v6556_v19  ;;  %9973 = vmatprep.subr.bf16.mxu0 %v13163_v6 }
0x1253   : > { %9958 = vmatmul.mubr.msk.bf16.vlgmr.msra.gmra.mrb[232].mxu1 %vm1287_vm5, %v6564_v55 }
0x1254   : > { %9968 = vmatpush3.bf16.msra.mxu1 %v6909_v46  ;;  %9969 = vmatprep.mubr.msk.bf16.mxu1 %vm10853_vm0, %v13163_v6 }
0x1255   : > { %9979 = vmatprep.subr.bf16.mxu1 %v13163_v6 }
0x1274   : > { %v6539_v12 = vpop.xlane.xlu1 %6538 }
0x1275   : > { %10600 = vrcp.f32 %v6539_v12 }
0x1278   : > { %v6542_v13 = vpop.xlane.xlu0 %6541  ;;  %v7004_v3 = vpop.permute.xlu1 %7003 }
0x1279   : > { %10602 = vrcp.f32 %v6542_v13 }
0x127c   : > { %v6954_v5 = vpop.permute.xlu0 %6953  ;;  %v7002_v30 = vpop.permute.xlu1 %7001 }
0x127d   : > { %v6959_v1 = vsel %vm798_vm2, %v6954_v5, 0 }
0x127f   : > { %v10601_v42 = vpop.eup %10600 }
0x1280   : > { %v6557_v21 = vmul.f32 %v10601_v42, %v12528_v33  ;;  %v6952_v53 = vpop.permute.xlu0 %6951  ;;  %v7104_v34 = vpop.permute.xlu1 %7103  ;;  %v7009_v33 = vsel %vm798_vm2, %v7004_v3, 0 }
0x1281   : > { %v7109_v41 = vsel %vm798_vm2, %v7104_v34, 0 }
0x1282   : > { %v6565_v56 = vpack.c.bf16 %v6557_v21, %v6557_v21 }
0x1283   : > { %v10603_v29 = vpop.eup %10602 }
0x1284   : > { %v6558_v60 = vmul.f32 %v10603_v29, %v12532_v9  ;;  %v7054_v48 = vpop.permute.xlu0 %7053  ;;  %9964 = vmatmul.mubr.msk.bf16.vlgmr.msra.gmra.mrb[236].mxu0 %vm1287_vm5, %v6565_v56  ;;  %v7102_v11 = vpop.permute.xlu1 %7101 }
0x1285   : > { %9974 = vmatpush3.bf16.xpose.msra.mxu0 %v6959_v1  ;;  %9975 = vmatprep.mubr.msk.bf16.mxu0 %vm10853_vm0, %v13163_v6  ;;  %v7059_v35 = vsel %vm798_vm2, %v7054_v48, 0 }
0x1286   : > { %v6566_v10 = vpack.c.bf16 %v6558_v60, %v6558_v60  ;;  %9985 = vmatprep.subr.bf16.mxu0 %v13163_v6 }
0x1288   : > { %v7052_v47 = vpop.permute.xlu0 %7051  ;;  %9970 = vmatmul.mubr.msk.bf16.vlgmr.msra.gmra.mrb[236].mxu1 %vm1287_vm5, %v6566_v10  ;;  %v7204_v9 = vpop.permute.xlu1 %7203 }
0x1289   : > { %9980 = vmatpush3.bf16.xpose.msra.mxu1 %v7009_v33  ;;  %9981 = vmatprep.mubr.msk.bf16.mxu1 %vm10853_vm0, %v13163_v6  ;;  %v7209_v12 = vsel %vm798_vm2, %v7204_v9, 0 }
0x128a   : > { %9991 = vmatprep.subr.bf16.mxu1 %v13163_v6 }
0x128c   : > { %9976 = vmatmul.mubr.msk.bf16.vlgmr.msra.gmra.mrb[240].mxu0 %vm798_vm2, %v6952_v53  ;;  %v7154_v36 = vpop.permute.xlu0 %7153  ;;  %v7202_v19 = vpop.permute.xlu1 %7201 }
0x128d   : > { %9986 = vmatpush3.bf16.xpose.msra.mxu0 %v7059_v35  ;;  %9987 = vmatprep.mubr.msk.bf16.mxu0 %vm10853_vm0, %v13163_v6  ;;  %v7159_v55 = vsel %vm798_vm2, %v7154_v36, 0 }
0x128e   : > { %9997 = vmatprep.subr.bf16.mxu0 %v13163_v6 }
0x1290   : > { %9982 = vmatmul.mubr.msk.bf16.vlgmr.msra.gmra.mrb[240].mxu1 %vm798_vm2, %v7002_v30  ;;  %v7152_v50 = vpop.permute.xlu0 %7151  ;;  %v7304_v46 = vpop.permute.xlu1 %7303 }
0x1291   : > { %9992 = vmatpush3.bf16.xpose.msra.mxu1 %v7109_v41  ;;  %9993 = vmatprep.mubr.msk.bf16.mxu1 %vm10853_vm0, %v13163_v6  ;;  %v7309_v30 = vsel %vm798_vm2, %v7304_v46, 0 }
0x1292   : > { %10003 = vmatprep.subr.bf16.mxu1 %v13163_v6 }
0x1294   : > { %9988 = vmatmul.mubr.msk.bf16.vlgmr.msra.gmra.mrb[244].mxu0 %vm798_vm2, %v7052_v47  ;;  %v7254_v13 = vpop.permute.xlu0 %7253  ;;  %v7302_v3 = vpop.permute.xlu1 %7301 }
0x1295   : > { %9998 = vmatpush3.bf16.xpose.msra.mxu0 %v7159_v55  ;;  %9999 = vmatprep.mubr.msk.bf16.mxu0 %vm10853_vm0, %v13163_v6  ;;  %v7259_v5 = vsel %vm798_vm2, %v7254_v13, 0 }
0x1296   : > { %10009 = vmatprep.subr.bf16.mxu0 %v13163_v6 }
0x1298   : > { %9994 = vmatmul.mubr.msk.bf16.vlgmr.msra.gmra.mrb[244].mxu1 %vm798_vm2, %v7102_v11  ;;  %v7448_v42 = vpop.permute.xlu1 %7447  ;;  %v7252_v21 = vpop.permute.xlu0 %7251 }
0x1299   : > { %10004 = vmatpush3.bf16.xpose.msra.mxu1 %v7209_v12  ;;  %10005 = vmatprep.mubr.msk.bf16.mxu1 %vm10853_vm0, %v13163_v6  ;;  %v7453_v53 = vsel %vm1291_vm3, %v7448_v42, 0 }
0x129a   : > { %10015 = vmatprep.subr.bf16.mxu1 %v13163_v6 }
0x129c   : > { %10000 = vmatmul.mubr.msk.bf16.vlgmr.msra.gmra.mrb[248].mxu0 %vm798_vm2, %v7152_v50 }
0x129d   : > { %10010 = vmatpush3.bf16.xpose.msra.mxu0 %v7259_v5  ;;  %10011 = vmatprep.mubr.msk.bf16.mxu0 %vm10853_vm0, %v13163_v6 }
0x129e   : > { %10021 = vmatprep.subr.bf16.mxu0 %v13163_v6 }
0x12a0   : > { %10006 = vmatmul.mubr.msk.bf16.vlgmr.msra.gmra.mrb[248].mxu1 %vm798_vm2, %v7202_v19 }
0x12a1   : > { %10016 = vmatpush3.bf16.xpose.msra.mxu1 %v7309_v30  ;;  %10017 = vmatprep.mubr.msk.bf16.mxu1 %vm10853_vm0, %v13163_v6 }
0x12a2   : > { %10027 = vmatprep.subr.bf16.mxu1 %v13163_v6 }
0x12a4   : > { %10012 = vmatmul.mubr.msk.bf16.vlgmr.msra.gmra.mrb[252].mxu0 %vm798_vm2, %v7252_v21 }
0x12a5   : > { %10022 = vmatpush3.bf16.msra.mxu0 %v7453_v53  ;;  %10023 = vmatprep.mubr.msk.bf16.mxu0 %vm10853_vm0, %v13163_v6 }
0x12a6   : > { %10033 = vmatprep.subr.bf16.mxu0 %v13163_v6 }
0x12a8   : > { %10018 = vmatmul.mubr.msk.bf16.vlgmr.msra.gmra.mrb[252].mxu1 %vm798_vm2, %v7302_v3 }
0x12a9   : > { %10029 = vmatprep.mubr.msk.bf16.mxu1 %vm10853_vm0, %v13163_v6 }
0x1312   : > { %v12642_v34 = vpop.f32.mrb[224].mxu0 }
0x1313   : > { %v9929_v56 = vpop.f32.mrb[225].mxu0 }
0x1314   : > { %v6612_v29 = vpop.f32.mrb[226].mxu0 }
0x1315   : > { %v9930_v60 = vpop.f32.mrb[227].mxu0 }
0x1316   : > { %v12644_v1 = vpop.f32.mrb[224].mxu1 }
0x1317   : > { %v9935_v11 = vpop.f32.mrb[225].mxu1 }
0x1318   : > { %v6660_v10 = vpop.f32.mrb[226].mxu1 }
0x1319   : > { %v9936_v33 = vpop.f32.mrb[227].mxu1 }
0x131a   : > { %v12648_v47 = vpop.f32.mrb[228].mxu0 }
0x131b   : > { %v9941_v9 = vpop.f32.mrb[229].mxu0 }
0x131c   : > { %v6708_v35 = vpop.f32.mrb[230].mxu0 }
0x131d   : > { %v9942_v36 = vpop.f32.mrb[231].mxu0 }
0x131e   : > { %v12650_v19 = vpop.f32.mrb[228].mxu1 }
0x131f   : > { %v9947_v50 = vpop.f32.mrb[229].mxu1 }
0x1320   : > { %v6756_v55 = vpop.f32.mrb[230].mxu1 }
0x1321   : > { %v9948_v46 = vpop.f32.mrb[231].mxu1 }
0x1322   : > { %v12654_v12 = vpop.f32.mrb[232].mxu0 }
0x1323   : > { %v9953_v13 = vpop.f32.mrb[233].mxu0 }
0x1324   : > { %v6804_v3 = vpop.f32.mrb[234].mxu0 }
0x1325   : > { %v9954_v5 = vpop.f32.mrb[235].mxu0 }
0x1326   : > { %v12656_v30 = vpop.f32.mrb[232].mxu1 }
0x1327   : > { %v9959_v21 = vpop.f32.mrb[233].mxu1 }
0x1328   : > { %v6852_v53 = vpop.f32.mrb[234].mxu1 }
0x1329   : > { %v9960_v56 = vpop.f32.mrb[235].mxu1 }
0x1357   : > { %v12660_v29 = vpop.f32.mrb[236].mxu0 }
0x1358   : > { %13170 = vst [vmem:[#allocation42_spill] sm:$0xff] %v12660_v29  ;;  %v9965_v60 = vpop.f32.mrb[237].mxu0 }
0x1359   : > { %v6900_v11 = vpop.f32.mrb[238].mxu0 }
0x135a   : > { %v9966_v10 = vpop.f32.mrb[239].mxu0 }
0x135b   : > { %v12662_v33 = vpop.f32.mrb[236].mxu1 }
0x135c   : > { %v9971_v35 = vpop.f32.mrb[237].mxu1 }
0x135d   : > { %v6948_v36 = vpop.f32.mrb[238].mxu1 }
0x135e   : > { %v9972_v50 = vpop.f32.mrb[239].mxu1 }
0x135f   : > { %v6995_v55 = vpop.f32.mrb[240].mxu0 }
0x1360   : > { %v9977_v46 = vpop.f32.mrb[241].mxu0  ;;  %v7351_v13 = vsel %vm1188_vm4, %v6995_v55, -inf }
0x1361   : > { %7352 = vmax.xlane.f32.xlu0 %v7351_v13  ;;  %v6998_v3 = vpop.f32.mrb[242].mxu0 }
0x1362   : > { %v9978_v5 = vpop.f32.mrb[243].mxu0 }
0x1363   : > { %v7045_v21 = vpop.f32.mrb[240].mxu1 }
0x1364   : > { %v9983_v53 = vpop.f32.mrb[241].mxu1  ;;  %v7354_v56 = vsel %vm1188_vm4, %v7045_v21, -inf }
0x1365   : > { %7355 = vmax.xlane.f32.xlu1 %v7354_v56  ;;  %v7048_v60 = vpop.f32.mrb[242].mxu1 }
0x1366   : > { %v9984_v11 = vpop.f32.mrb[243].mxu1 }
0x1367   : > { %v7095_v10 = vpop.f32.mrb[244].mxu0 }
0x1368   : > { %v9989_v42 = vpop.f32.mrb[245].mxu0  ;;  %v7357_v35 = vsel %vm1188_vm4, %v7095_v10, -inf }
0x1369   : > { %7358 = vmax.xlane.f32.xlu0 %v7357_v35  ;;  %v7098_v36 = vpop.f32.mrb[246].mxu0 }
0x136a   : > { %v9990_v50 = vpop.f32.mrb[247].mxu0 }
0x136b   : > { %v7145_v46 = vpop.f32.mrb[244].mxu1 }
0x136c   : > { %v9995_v9 = vpop.f32.mrb[245].mxu1  ;;  %v7360_v13 = vsel %vm1188_vm4, %v7145_v46, -inf }
0x136d   : > { %v7148_v3 = vpop.f32.mrb[246].mxu1  ;;  %7361 = vmax.xlane.f32.xlu0 %v7360_v13 }
0x136e   : > { %v9996_v5 = vpop.f32.mrb[247].mxu1 }
0x136f   : > { %v12670_v53 = vpop.f32.mrb[248].mxu0 }
0x1370   : > { %v10001_v41 = vpop.f32.mrb[249].mxu0  ;;  %v7363_v56 = vsel %vm1188_vm4, %v12670_v53, -inf }
0x1371   : > { %7364 = vmax.xlane.f32.xlu1 %v7363_v56  ;;  %v7198_v42 = vpop.f32.mrb[250].mxu0 }
0x1372   : > { %v10002_v60 = vpop.f32.mrb[251].mxu0 }
0x1373   : > { %v12674_v11 = vpop.f32.mrb[248].mxu1 }
0x1374   : > { %v10007_v35 = vpop.f32.mrb[249].mxu1  ;;  %v7366_v9 = vsel %vm1188_vm4, %v12674_v11, -inf }
0x1375   : > { %v7248_v36 = vpop.f32.mrb[250].mxu1  ;;  %7367 = vmax.xlane.f32.xlu0 %v7366_v9 }
0x1376   : > { %v10008_v50 = vpop.f32.mrb[251].mxu1 }
0x1377   : > { %v7295_v13 = vpop.f32.mrb[252].mxu0 }
0x1378   : > { %v10013_v3 = vpop.f32.mrb[253].mxu0  ;;  %v7369_v5 = vsel %vm1188_vm4, %v7295_v13, -inf }
0x1379   : > { %7370 = vmax.xlane.f32.xlu1 %v7369_v5  ;;  %v7298_v41 = vpop.f32.mrb[254].mxu0 }
0x137a   : > { %v10014_v48 = vpop.f32.mrb[255].mxu0 }
0x137b   : > { %v7345_v29 = vpop.f32.mrb[252].mxu1 }
0x137c   : > { %v10019_v56 = vpop.f32.mrb[253].mxu1  ;;  %v7372_v42 = vsel %vm1188_vm4, %v7345_v29, -inf }
0x137d   : > { %v7348_v60 = vpop.f32.mrb[254].mxu1  ;;  %7373 = vmax.xlane.f32.xlu0 %v7372_v42 }
0x137e   : > { %v10020_v35 = vpop.f32.mrb[255].mxu1 }
0x138a   : > { %7543 = vrot.lane.b32.xlu1 %v11240_v58, %s10876_s24 }
0x138e   : > { %7591 = vrot.lane.b32.xlu1 %v11242_v61, %s10876_s24 }
0x1393   : > { %7495 = vrot.lane.b32.xlu0 %v11234_v49, %s10876_s24 }
0x13ee   : > { %v7353_v9 = vpop.xlane.xlu0 %7352 }
0x13ef   : > { %v7375_v36 = vsub.f32 %v6995_v55, %v7353_v9 }
0x13f1   : > { %v7383_v50 = vmul.f32 1.442695, %v7375_v36 }
0x13f2   : > { %v7356_v48 = vpop.xlane.xlu1 %7355 }
0x13f3   : > { %10604 = vpow2.f32 %v7383_v50  ;;  %v7376_v3 = vsub.f32 %v7045_v21, %v7356_v48 }
0x13f5   : > { %v7385_v5 = vmul.f32 1.442695, %v7376_v3 }
0x13f6   : > { %v7359_v41 = vpop.xlane.xlu0 %7358 }
0x13f7   : > { %10606 = vpow2.f32 %v7385_v5  ;;  %v7377_v56 = vsub.f32 %v7095_v10, %v7359_v41 }
0x13f9   : > { %v7387_v42 = vmul.f32 1.442695, %v7377_v56 }
0x13fa   : > { %v7362_v60 = vpop.xlane.xlu0 %7361 }
0x13fb   : > { %10608 = vpow2.f32 %v7387_v42  ;;  %v7378_v58 = vsub.f32 %v7145_v46, %v7362_v60 }
0x13fd   : > { %v12686_v35 = vpop.eup %10604  ;;  %v7389_v61 = vmul.f32 1.442695, %v7378_v58 }
0x13fe   : > { %v7399_v49 = vsel %vm1188_vm4, %v12686_v35, 0.0  ;;  %v7365_v41 = vpop.xlane.xlu1 %7364 }
0x13ff   : > { %10610 = vpow2.f32 %v7389_v61  ;;  %7400 = vadd.xlane.f32.xlu1 %v7399_v49  ;;  %v7379_v56 = vsub.f32 %v12670_v53, %v7365_v41 }
0x1401   : > { %v12690_v55 = vpop.eup %10606  ;;  %v7391_v58 = vmul.f32 1.442695, %v7379_v56 }
0x1402   : > { %v7402_v21 = vsel %vm1188_vm4, %v12690_v55, 0.0  ;;  %v7368_v10 = vpop.xlane.xlu0 %7367 }
0x1403   : > { %7403 = vadd.xlane.f32.xlu0 %v7402_v21  ;;  %v7380_v60 = vsub.f32 %v12674_v11, %v7368_v10  ;;  %10612 = vpow2.f32 %v7391_v58 }
0x1405   : > { %v12694_v9 = vpop.eup %10608  ;;  %v7393_v49 = vmul.f32 1.442695, %v7380_v60 }
0x1406   : > { %v7405_v46 = vsel %vm1188_vm4, %v12694_v9, 0.0  ;;  %v7371_v42 = vpop.xlane.xlu1 %7370 }
0x1407   : > { %7406 = vadd.xlane.f32.xlu1 %v7405_v46  ;;  %v7381_v61 = vsub.f32 %v7295_v13, %v7371_v42  ;;  %10614 = vpow2.f32 %v7393_v49 }
0x1409   : > { %v12698_v36 = vpop.eup %10610  ;;  %v7395_v21 = vmul.f32 1.442695, %v7381_v61 }
0x140a   : > { %v7374_v50 = vpop.xlane.xlu0 %7373  ;;  %v7408_v48 = vsel %vm1188_vm4, %v12698_v36, 0.0 }
0x140b   : > { %7409 = vadd.xlane.f32.xlu0 %v7408_v48  ;;  %v7382_v46 = vsub.f32 %v7345_v29, %v7374_v50  ;;  %10616 = vpow2.f32 %v7395_v21  ;;  %v13171_v50 = vpack.i.bf16 %v11876_v22, %v11874_v51  ;;  %v13174_v51 = vpack.i.bf16 %v11682_v39, %v11680_v52 }
0x140c   : > { %v13175_v22 = vpack.i.bf16 %v11688_v2, %v11686_v4  ;;  %v13178_v52 = vpack.i.bf16 %v12458_v0, %v12456_v15  ;;  %v13179_v39 = vpack.i.bf16 %v12464_v37, %v12462_v63  ;;  %v13180_v4 = vpack.i.bf16 %v11882_v43, %v11880_v59 }
0x140d   : > { %v7397_v48 = vmul.f32 1.442695, %v7382_v46  ;;  %v13181_v2 = vpack.i.bf16 %v11888_v45, %v11886_v32  ;;  %v13184_v59 = vpack.i.bf16 %v12650_v19, %v12648_v47  ;;  %v13185_v43 = vpack.i.bf16 %v12656_v30, %v12654_v12  ;;  %v7544_v45 = vpop.permute.xlu1 %7543 }
0x140e   : > { %v7496_v3 = vpop.permute.xlu0 %7495  ;;  %v13186_v32 = vpack.i.bf16 %v11694_v44, %v11692_v57  ;;  %v7549_v63 = vsel %vm1291_vm3, %v7544_v45, 0  ;;  %v13187_v45 = vpack.i.bf16 %v12082_v38, %v12080_v20  ;;  %v13192_v20 = vld [vmem:[#allocation33_spill] sm:$0xff]  ;;  %v13193_v38 = vld [vmem:[#allocation32_spill] sm:$0xff] }
0x140f   : > { %v7501_v5 = vsel %vm1291_vm3, %v7496_v3, 0  ;;  %10618 = vpow2.f32 %v7397_v48 }
0x1410   : > { %10028 = vmatpush3.bf16.msra.mxu1 %v7501_v5  ;;  %v13172_v5 = vpack.i.bf16 %v12264_v54, %v12262_v18  ;;  %v13177_v18 = vpack.i.bf16 %v12076_v31, %v12074_v27 }
0x1411   : > { %10039 = vmatprep.subr.bf16.mxu1 %v13163_v6  ;;  %v7592_v27 = vpop.permute.xlu1 %7591 }
0x1418   : > { %7687 = vrot.lane.b32.xlu1 %v11250_v8, %s10876_s24  ;;  %v12710_v8 = vpop.eup %10612 }
0x1419   : > { %v12712_v3 = vpop.eup %10614 }
0x141a   : > { %v12716_v53 = vpop.eup %10616  ;;  %v7414_v11 = vsel %vm1188_vm4, %v12712_v3, 0.0 }
0x141b   : > { %v7417_v29 = vsel %vm1188_vm4, %v12716_v53, 0.0  ;;  %v12722_v13 = vpop.eup %10618 }
0x141c   : > { %v7420_v10 = vsel %vm1188_vm4, %v12722_v13, 0.0 }
0x1421   : > { %7639 = vrot.lane.b32.xlu0 %v11248_v7, %s10876_s24  ;;  %v7411_v7 = vsel %vm1188_vm4, %v12710_v8, 0.0 }
0x143c   : > { %7412 = vadd.xlane.f32.xlu1 %v7411_v7 }
0x1440   : > { %7415 = vadd.xlane.f32.xlu0 %v7414_v11  ;;  %7418 = vadd.xlane.f32.xlu1 %v7417_v29 }
0x1444   : > { %7421 = vadd.xlane.f32.xlu0 %v7420_v10 }
0x1451   : > { %7783 = vrot.lane.b32.xlu1 %v11258_v24, %s10876_s24  ;;  %v13173_v24 = vpack.i.bf16 %v12644_v1, %v12642_v34  ;;  %v7597_v34 = vsel %vm1291_vm3, %v7592_v27, 0 }
0x1455   : > { %10242 = vrot.lane.b32.xlu1 %v13171_v50, %s10877_s14 }
0x1459   : > { %10252 = vrot.lane.b32.xlu1 %v13172_v5, %s10878_s21 }
0x145a   : > { %7735 = vrot.lane.b32.xlu0 %v11256_v23, %s10876_s24  ;;  %v13176_v23 = vpack.i.bf16 %v12070_v40, %v12068_v14  ;;  %v13182_v14 = vpack.i.bf16 %v12270_v26, %v12268_v28  ;;  %v13183_v40 = vpack.i.bf16 %v12276_v16, %v12274_v62 }
0x145d   : > { %10262 = vrot.lane.b32.xlu1 %v13173_v24, %s10879_s12 }
0x145e   : > { %10237 = vrot.lane.b32.xlu0 %v13174_v51, %s10880_s25  ;;  %v12838_v51 = vld [vmem:[#allocation6] sm:$0xff]  }
0x1461   : > { %10267 = vrot.lane.b32.xlu1 %v13175_v22, %s10880_s25 }
0x1462   : > { %10247 = vrot.lane.b32.xlu0 %v13176_v23, %s10881_s28 }
0x1465   : > { %10277 = vrot.lane.b32.xlu1 %v13177_v18, %s10881_s28 }
0x1466   : > { %10257 = vrot.lane.b32.xlu0 %v13178_v52, %s10882_s11 }
0x1469   : > { %10287 = vrot.lane.b32.xlu1 %v13179_v39, %s10882_s11 }
0x146a   : > { %10272 = vrot.lane.b32.xlu0 %v13180_v4, %s10877_s14 }
0x146d   : > { %10302 = vrot.lane.b32.xlu1 %v13181_v2, %s10877_s14 }
0x146e   : > { %10282 = vrot.lane.b32.xlu0 %v13182_v14, %s10878_s21 }
0x1471   : > { %10317 = vrot.lane.b32.xlu1 %v13183_v40, %s10878_s21 }
0x1472   : > { %10292 = vrot.lane.b32.xlu0 %v13184_v59, %s10879_s12 }
0x1475   : > { %10327 = vrot.lane.b32.xlu1 %v13185_v43, %s10879_s12 }
0x1476   : > { %10297 = vrot.lane.b32.xlu0 %v13186_v32, %s10880_s25 }
0x148c   : > { %v7401_v31 = vpop.xlane.xlu1 %7400 }
0x148d   : > { %10620 = vrcp.f32 %v7401_v31 }
0x1490   : > { %v7404_v54 = vpop.xlane.xlu0 %7403 }
0x1491   : > { %10622 = vrcp.f32 %v7404_v54 }
0x1494   : > { %v7407_v28 = vpop.xlane.xlu1 %7406 }
0x1495   : > { %10624 = vrcp.f32 %v7407_v28 }
0x1497   : > { %v10621_v26 = vpop.eup %10620 }
0x1498   : > { %v7431_v62 = vmul.f32 %v10621_v26, %v12686_v35  ;;  %v7410_v16 = vpop.xlane.xlu0 %7409 }
0x1499   : > { %10626 = vrcp.f32 %v7410_v16  ;;  %v13188_v16 = vpack.i.bf16 %v12470_v25, %v12468_v17  ;;  %v13198_v17 = vld [vmem:[#allocation41_spill] sm:$0xff]  ;;  %v13199_v25 = vld [vmem:[#allocation40_spill] sm:$0xff] }
0x149a   : > { %v7439_v15 = vpack.c.bf16 %v7431_v62, %v7431_v62 }
0x149b   : > { %v10623_v0 = vpop.eup %10622 }
0x149c   : > { %v7432_v57 = vmul.f32 %v10623_v0, %v12690_v55  ;;  %10024 = vmatmul.mubr.msk.bf16.vlgmr.msra.gmra.mrb[0].mxu0 %vm1287_vm5, %v7439_v15  ;;  %v7640_v47 = vpop.permute.xlu0 %7639  ;;  %v7688_v55 = vpop.permute.xlu1 %7687  ;;  %v13189_v15 = vld [vmem:[#allocation35_spill] sm:$0xff]  ;;  %v13190_v0 = vld [vmem:[#allocation34_spill] sm:$0xff] }
0x149d   : > { %10034 = vmatpush3.bf16.msra.mxu0 %v7549_v63  ;;  %10035 = vmatprep.mubr.msk.bf16.mxu0 %vm10853_vm0, %v13163_v6  ;;  %v7645_v35 = vsel %vm1291_vm3, %v7640_v47, 0  ;;  %v7693_v41 = vsel %vm1291_vm3, %v7688_v55, 0  ;;  %v13191_v63 = vpack.i.bf16 %v13189_v15, %v13190_v0 }
0x149e   : > { %v7440_v44 = vpack.c.bf16 %v7432_v57, %v7432_v57  ;;  %10045 = vmatprep.subr.bf16.mxu0 %v13163_v6  ;;  %v13194_v57 = vpack.i.bf16 %v13192_v20, %v13193_v38 }
0x149f   : > { %v10625_v37 = vpop.eup %10624 }
0x14a0   : > { %v7433_v1 = vmul.f32 %v10625_v37, %v12694_v9  ;;  %10030 = vmatmul.mubr.msk.bf16.vlgmr.msra.gmra.mrb[0].mxu1 %vm1287_vm5, %v7440_v44  ;;  %v13195_v44 = vld [vmem:[#allocation37_spill] sm:$0xff]  ;;  %v13196_v37 = vld [vmem:[#allocation36_spill] sm:$0xff] }
0x14a1   : > { %10040 = vmatpush3.bf16.msra.mxu1 %v7597_v34  ;;  %10041 = vmatprep.mubr.msk.bf16.mxu1 %vm10853_vm0, %v13163_v6  ;;  %v13197_v34 = vpack.i.bf16 %v13195_v44, %v13196_v37 }
0x14a2   : > { %v7441_v19 = vpack.c.bf16 %v7433_v1, %v7433_v1  ;;  %10051 = vmatprep.subr.bf16.mxu1 %v13163_v6  ;;  %v13200_v1 = vpack.i.bf16 %v13198_v17, %v13199_v25 }
0x14a3   : > { %v10627_v12 = vpop.eup %10626 }
0x14a4   : > { %v7434_v30 = vmul.f32 %v10627_v12, %v12698_v36  ;;  %10036 = vmatmul.mubr.msk.bf16.vlgmr.msra.gmra.mrb[4].mxu0 %vm1287_vm5, %v7441_v19 }
0x14a5   : > { %10046 = vmatpush3.bf16.msra.mxu0 %v7645_v35  ;;  %10047 = vmatprep.mubr.msk.bf16.mxu0 %vm10853_vm0, %v13163_v6 }
0x14a6   : > { %v7442_v9 = vpack.c.bf16 %v7434_v30, %v7434_v30  ;;  %10057 = vmatprep.subr.bf16.mxu0 %v13163_v6 }
0x14a8   : > { %10042 = vmatmul.mubr.msk.bf16.vlgmr.msra.gmra.mrb[4].mxu1 %vm1287_vm5, %v7442_v9 }
0x14a9   : > { %10052 = vmatpush3.bf16.msra.mxu1 %v7693_v41  ;;  %10053 = vmatprep.mubr.msk.bf16.mxu1 %vm10853_vm0, %v13163_v6 }
0x14aa   : > { %10063 = vmatprep.subr.bf16.mxu1 %v13163_v6 }
0x14c9   : > { %v7413_v36 = vpop.xlane.xlu1 %7412 }
0x14ca   : > { %10628 = vrcp.f32 %v7413_v36 }
0x14cd   : > { %v7416_v56 = vpop.xlane.xlu0 %7415  ;;  %v7419_v42 = vpop.xlane.xlu1 %7418 }
0x14ce   : > { %10630 = vrcp.f32 %v7416_v56 }
0x14cf   : > { %10632 = vrcp.f32 %v7419_v42 }
0x14d1   : > { %v7422_v60 = vpop.xlane.xlu0 %7421  ;;  %v7784_v29 = vpop.permute.xlu1 %7783 }
0x14d2   : > { %10634 = vrcp.f32 %v7422_v60  ;;  %v7789_v5 = vsel %vm1291_vm3, %v7784_v29, 0 }
0x14d4   : > { %v10629_v58 = vpop.eup %10628 }
0x14d5   : > { %v7435_v61 = vmul.f32 %v10629_v58, %v12710_v8  ;;  %v7736_v49 = vpop.permute.xlu0 %7735  ;;  %v13201_v58 = vld [vmem:[#allocation39_spill] sm:$0xff] }
0x14d6   : > { %v7741_v11 = vsel %vm1291_vm3, %v7736_v49, 0 }
0x14d7   : > { %v7443_v21 = vpack.c.bf16 %v7435_v61, %v7435_v61  ;;  %v13202_v61 = vld [vmem:[#allocation38_spill] sm:$0xff] }
0x14d8   : > { %v10631_v46 = vpop.eup %10630  ;;  %v13203_v49 = vpack.i.bf16 %v13201_v58, %v13202_v61 }
0x14d9   : > { %v10633_v48 = vpop.eup %10632  ;;  %v7436_v7 = vmul.f32 %v10631_v46, %v12712_v3  ;;  %10048 = vmatmul.mubr.msk.bf16.vlgmr.msra.gmra.mrb[8].mxu0 %vm1287_vm5, %v7443_v21 }
0x14da   : > { %10058 = vmatpush3.bf16.msra.mxu0 %v7741_v11  ;;  %10059 = vmatprep.mubr.msk.bf16.mxu0 %vm10853_vm0, %v13163_v6  ;;  %v7437_v50 = vmul.f32 %v10633_v48, %v12716_v53 }
0x14db   : > { %v7444_v10 = vpack.c.bf16 %v7436_v7, %v7436_v7  ;;  %10069 = vmatprep.subr.bf16.mxu0 %v13163_v6 }
0x14dc   : > { %v10635_v8 = vpop.eup %10634  ;;  %v7445_v3 = vpack.c.bf16 %v7437_v50, %v7437_v50 }
0x14dd   : > { %10054 = vmatmul.mubr.msk.bf16.vlgmr.msra.gmra.mrb[8].mxu1 %vm1287_vm5, %v7444_v10  ;;  %v7438_v24 = vmul.f32 %v10635_v8, %v12722_v13  ;;  %v12844_v13 = vld [vmem:[#allocation6 + $0x8] sm:$0xff]   ;;  %v10243_v8 = vpop.permute.xlu1 %10242 }
0x14de   : > { %10064 = vmatpush3.bf16.msra.mxu1 %v7789_v5  ;;  %10065 = vmatprep.mubr.msk.bf16.mxu1 %vm10853_vm0, %v13163_v6  ;;  %v13204_v10 = vld [vmem:[#allocation42_spill] sm:$0xff]  ;;  %v10238_v5 = vpop.permute.xlu0 %10237 }
0x14df   : > { %10077 = vmatprep.subr.bf16.mxu1 %v13163_v6  ;;  %v7446_v53 = vpack.c.bf16 %v7438_v24, %v7438_v24  ;;  %v13205_v50 = vpack.i.bf16 %v12662_v33, %v13204_v10  ;;  %v13206_v33 = vld [vmem:[#allocation25_spill] sm:$0xff] }
0x14e1   : > { %10060 = vmatmul.mubr.msk.bf16.vlgmr.msra.gmra.mrb[12].mxu0 %vm1287_vm5, %v7445_v3  ;;  %v10253_v3 = vpop.permute.xlu1 %10252 }
0x14e2   : > { %10073 = vmatprep.mubr.msk.bf16.mxu0 %vm10853_vm0, %v13163_v6  ;;  %10070 = vmatpush3.bf16.msra.mxu0 %v12838_v51  ;;  %v10248_v24 = vpop.permute.xlu0 %10247  ;;  %v10255_v20 = vunpack.i.h.bf16 %v10253_v3  ;;  %v10254_v38 = vunpack.i.l.bf16 %v10253_v3 }
0x14e3   : > { %10071 = vmatprep.subr.bf16.mxu0 %v13163_v6 }
0x14e5   : > { %10066 = vmatmul.mubr.msk.bf16.vlgmr.msra.gmra.mrb[12].mxu1 %vm1287_vm5, %v7446_v53  ;;  %v10263_v53 = vpop.permute.xlu1 %10262 }
0x14e6   : > { %10081 = vmatprep.mubr.msk.bf16.mxu1 %vm10853_vm0, %v13163_v6  ;;  %10078 = vmatpush3.bf16.msra.mxu1 %v12838_v51 }
0x14e7   : > { %10079 = vmatprep.subr.bf16.mxu1 %v13163_v6  ;;  %10072 = vmatpush3.bf16.msra.mxu0 %v12844_v13 }
0x14e8   : > { %10085 = vmatprep.subr.bf16.mxu0 %v13163_v6 }
0x14ea   : > { %10080 = vmatpush3.bf16.msra.mxu1 %v12844_v13 }
0x14eb   : > { %10093 = vmatprep.subr.bf16.mxu1 %v13163_v6 }
0x156f   : > { %v7489_v22 = vpop.f32.mrb[0].mxu0 }
0x1570   : > { %v10025_v23 = vpop.f32.mrb[1].mxu0 }
0x1571   : > { %v7492_v18 = vpop.f32.mrb[2].mxu0  ;;  %v10268_v23 = vpop.permute.xlu1 %10267 }
0x1572   : > { %v10026_v52 = vpop.f32.mrb[3].mxu0 }
0x1573   : > { %v7537_v39 = vpop.f32.mrb[0].mxu1 }
0x1574   : > { %v10306_v4 = vpack.i.bf16 %v7537_v39, %v7489_v22  ;;  %v10031_v2 = vpop.f32.mrb[1].mxu1  ;;  %v10258_v22 = vpop.permute.xlu0 %10257 }
0x1575   : > { %v7540_v14 = vpop.f32.mrb[2].mxu1  ;;  %v10278_v52 = vpop.permute.xlu1 %10277  ;;  %v10239_v2 = vunpack.i.l.bf16 %v10238_v5  ;;  %v10260_v0 = vunpack.i.h.bf16 %v10258_v22 }
0x1576   : > { %v10032_v40 = vpop.f32.mrb[3].mxu1  ;;  %10307 = vrot.lane.b32.xlu0 %v10306_v4, %s10883_s13  ;;  %v10240_v4 = vunpack.i.h.bf16 %v10238_v5  ;;  %v10280_v58 = vunpack.i.h.bf16 %v10278_v52  ;;  %v10279_v61 = vunpack.i.l.bf16 %v10278_v52 }
0x1577   : > { %v7585_v59 = vpop.f32.mrb[4].mxu0 }
0x1578   : > { %v10037_v43 = vpop.f32.mrb[5].mxu0  ;;  %v10273_v18 = vpop.permute.xlu0 %10272  ;;  %v8056_v40 = vsel %vm798_vm2, %v13206_v33, %v10240_v4 }
0x1579   : > { %v7588_v32 = vpop.f32.mrb[6].mxu0  ;;  %v12888_v14 = vpop.permute.xlu1 %10287 }
0x157a   : > { %10312 = vrot.lane.b32.xlu0 %v13187_v45, %s10881_s28  ;;  %v10038_v27 = vpop.f32.mrb[7].mxu0  ;;  %v10250_v32 = vunpack.i.h.bf16 %v10248_v24  ;;  %v10249_v45 = vunpack.i.l.bf16 %v10248_v24 }
0x157b   : > { %v7633_v31 = vpop.f32.mrb[4].mxu1  ;;  %v10245_v27 = vunpack.i.h.bf16 %v10243_v8 }
0x157c   : > { %v10331_v54 = vpack.i.bf16 %v7633_v31, %v7585_v59  ;;  %v10043_v28 = vpop.f32.mrb[5].mxu1  ;;  %v12886_v39 = vpop.permute.xlu0 %10282  ;;  %v13207_v59 = vld [vmem:[#allocation24_spill] sm:$0xff]  ;;  %v10244_v31 = vunpack.i.l.bf16 %v10243_v8 }
0x157d   : > { %v7636_v26 = vpop.f32.mrb[6].mxu1  ;;  %v8055_v43 = vsel %vm798_vm2, %v13207_v59, %v10239_v2 }
0x157e   : > { %v10044_v62 = vpop.f32.mrb[7].mxu1  ;;  %10322 = vrot.lane.b32.xlu0 %v13188_v16, %s10882_s11  ;;  %10332 = vrot.lane.b32.xlu1 %v10331_v54, %s10883_s13  ;;  %v8064_v28 = vsel %vm8063_vm6, %v8055_v43, %v10244_v31  ;;  %v8065_v26 = vsel %vm8063_vm6, %v8056_v40, %v10245_v27 }
0x157f   : > { %v12898_v62 = vpop.permute.xlu1 %10302  ;;  %v8073_v16 = vsel %vm8072_vm7, %v8064_v28, %v10249_v45  ;;  %v8074_v15 = vsel %vm8072_vm7, %v8065_v26, %v10250_v32 }
0x1580   : > { %v12894_v54 = vpop.permute.xlu0 %10292  ;;  %v8082_v44 = vsel %vm8081_vm8, %v8073_v16, %v10254_v38  ;;  %v8083_v37 = vsel %vm8081_vm8, %v8074_v15, %v10255_v20  ;;  %v13210_v16 = vld [vmem:[#allocation28_spill] sm:$0xff]  ;;  %v13211_v20 = vld [vmem:[#allocation29_spill] sm:$0xff] }
0x1581   : > { %v10295_v52 = vunpack.i.h.bf16 %v12894_v54 }
0x1582   : > { %10342 = vrot.lane.b32.xlu0 %v13191_v63, %s10877_s14  ;;  %10337 = vrot.lane.b32.xlu1 %v13194_v57, %s10880_s25  ;;  %v10259_v63 = vunpack.i.l.bf16 %v10258_v22  ;;  %v10270_v57 = vunpack.i.h.bf16 %v10268_v23  ;;  %v10289_v22 = vunpack.i.l.bf16 %v12888_v14 }
0x1584   : > { %v12904_v17 = vpop.permute.xlu0 %10297  ;;  %v8091_v25 = vsel %vm8090_vm9, %v8082_v44, %v10259_v63  ;;  %v10304_v63 = vunpack.i.l.bf16 %v12898_v62 }
0x1585   : > { %v10299_v28 = vunpack.i.l.bf16 %v12904_v17  ;;  %v10300_v26 = vunpack.i.h.bf16 %v12904_v17 }
0x1586   : > { %10347 = vrot.lane.b32.xlu1 %v13197_v34, %s10881_s28  ;;  %v10269_v34 = vunpack.i.l.bf16 %v10268_v23 }
0x1587   : > { %v8059_v15 = vsel %vm798_vm2, %v13210_v16, %v10299_v28  ;;  %v8060_v38 = vsel %vm798_vm2, %v13211_v20, %v10300_v26 }
0x158a   : > { %10362 = vrot.lane.b32.xlu1 %v13200_v1, %s10882_s11  ;;  %v8092_v1 = vsel %vm8090_vm9, %v8083_v37, %v10260_v0  ;;  %v10305_v37 = vunpack.i.h.bf16 %v12898_v62 }
0x15ac   : > { %v7681_v47 = vpop.f32.mrb[8].mxu0 }
0x15ad   : > { %v10049_v19 = vpop.f32.mrb[9].mxu0 }
0x15ae   : > { %v7684_v12 = vpop.f32.mrb[10].mxu0  ;;  %v10264_v19 = vunpack.i.l.bf16 %v10263_v53 }
0x15af   : > { %v10050_v30 = vpop.f32.mrb[11].mxu0  ;;  %v10275_v12 = vunpack.i.h.bf16 %v10273_v18 }
0x15b0   : > { %v7729_v35 = vpop.f32.mrb[8].mxu1  ;;  %v10274_v30 = vunpack.i.l.bf16 %v10273_v18 }
0x15b1   : > { %v10351_v55 = vpack.i.bf16 %v7729_v35, %v7681_v47  ;;  %v10055_v9 = vpop.f32.mrb[9].mxu1  ;;  %v10265_v47 = vunpack.i.h.bf16 %v10263_v53  ;;  %v12908_v35 = vpop.permute.xlu1 %10317  ;;  %v10290_v53 = vunpack.i.h.bf16 %v12888_v14 }
0x15b2   : > { %v7732_v41 = vpop.f32.mrb[10].mxu1 }
0x15b3   : > { %v10056_v36 = vpop.f32.mrb[11].mxu1  ;;  %10352 = vrot.lane.b32.xlu0 %v10351_v55, %s10883_s13  ;;  %v13208_v55 = vld [vmem:[#allocation27_spill] sm:$0xff]  ;;  %v13209_v41 = vld [vmem:[#allocation26_spill] sm:$0xff] }
0x15b4   : > { %v7777_v56 = vpop.f32.mrb[12].mxu0  ;;  %v8058_v9 = vsel %vm798_vm2, %v13208_v55, %v10270_v57  ;;  %v8057_v36 = vsel %vm798_vm2, %v13209_v41, %v10269_v34  ;;  %v8068_v34 = vsel %vm8063_vm6, %v8059_v15, %v10304_v63  ;;  %v10320_v55 = vunpack.i.h.bf16 %v12908_v35 }
0x15b5   : > { %v10061_v42 = vpop.f32.mrb[13].mxu0 }
0x15b6   : > { %v7780_v60 = vpop.f32.mrb[14].mxu0  ;;  %v8101_v42 = vsel %vm8099_vm10, %v8092_v1, %v10265_v47  ;;  %v8069_v1 = vsel %vm8063_vm6, %v8060_v38, %v10305_v37 }
0x15b7   : > { %10357 = vrot.lane.b32.xlu0 %v13203_v49, %s10878_s21  ;;  %v10062_v21 = vpop.f32.mrb[15].mxu0 }
0x15b8   : > { %v7825_v46 = vpop.f32.mrb[12].mxu1 }
0x15b9   : > { %v10371_v48 = vpack.i.bf16 %v7825_v46, %v7777_v56  ;;  %v10067_v7 = vpop.f32.mrb[13].mxu1  ;;  %v8100_v56 = vsel %vm8099_vm10, %v8091_v25, %v10264_v19  ;;  %v8066_v46 = vsel %vm8063_vm6, %v8057_v36, %v10274_v30  ;;  %v10319_v19 = vunpack.i.l.bf16 %v12908_v35 }
0x15ba   : > { %v7828_v11 = vpop.f32.mrb[14].mxu1  ;;  %v10285_v7 = vunpack.i.h.bf16 %v12886_v39  ;;  %v8075_v3 = vsel %vm8072_vm7, %v8066_v46, %v10279_v61 }
0x15bb   : > { %v10068_v29 = vpop.f32.mrb[15].mxu1  ;;  %10367 = vrot.lane.b32.xlu0 %v13205_v50, %s10879_s12  ;;  %10372 = vrot.lane.b32.xlu1 %v10371_v48, %s10883_s13  ;;  %v8067_v48 = vsel %vm8063_vm6, %v8058_v9, %v10275_v12  ;;  %v10284_v11 = vunpack.i.l.bf16 %v12886_v39  ;;  %v12922_v50 = vpop.permute.xlu1 %10327  ;;  %v10294_v39 = vunpack.i.l.bf16 %v12894_v54 }
0x15bc   : > { %v8076_v24 = vsel %vm8072_vm7, %v8067_v48, %v10280_v58 }
0x15bd   : > { %v8084_v23 = vsel %vm8081_vm8, %v8075_v3, %v10284_v11  ;;  %v8085_v18 = vsel %vm8081_vm8, %v8076_v24, %v10285_v7 }
0x15be   : > { %v8093_v2 = vsel %vm8090_vm9, %v8084_v23, %v10289_v22  ;;  %v8094_v14 = vsel %vm8090_vm9, %v8085_v18, %v10290_v53 }
0x15bf   : > { %v8102_v59 = vsel %vm8099_vm10, %v8093_v2, %v10294_v39  ;;  %v8103_v43 = vsel %vm8099_vm10, %v8094_v14, %v10295_v52 }
0x15e8   : > { %v10308_v60 = vpop.permute.xlu0 %10307 }
0x15e9   : > { %v10310_v49 = vunpack.i.h.bf16 %v10308_v60  ;;  %v10309_v21 = vunpack.i.l.bf16 %v10308_v60 }
0x15eb   : > { %v8110_v29 = vsel %vm8108_vm11, %v8101_v42, %v10310_v49  ;;  %v8109_v10 = vsel %vm8108_vm11, %v8100_v56, %v10309_v21  ;;  %v10329_v56 = vunpack.i.l.bf16 %v12922_v50  ;;  %v10330_v49 = vunpack.i.h.bf16 %v12922_v50 }
0x15ec   : > { %v8118_v8 = vpack.c.bf16 %v8110_v29, %v8110_v29  ;;  %v8117_v5 = vpack.c.bf16 %v8109_v10, %v8109_v10  ;;  %v10313_v54 = vpop.permute.xlu0 %10312  ;;  %v13212_v10 = vld [vmem:[#allocation31_spill] sm:$0xff] }
0x15ed   : > { %v10314_v0 = vunpack.i.l.bf16 %v10313_v54  ;;  %v10315_v57 = vunpack.i.h.bf16 %v10313_v54 }
0x15ee   : > { %10074 = vmatmul.mubr.msk.bf16.vlgmr.msra.gmra.mrb[16].mxu0 %vm442_vm1, %v8117_v5  ;;  %10082 = vmatmul.mubr.msk.bf16.vlgmr.msra.gmra.mrb[16].mxu1 %vm442_vm1, %v8118_v8  ;;  %v13213_v5 = vld [vmem:[#allocation30_spill] sm:$0xff] }
0x15ef   : > { %10086 = vmatpush3.bf16.msra.mxu0 %v12838_v51  ;;  %10094 = vmatpush3.bf16.msra.mxu1 %v12838_v51  ;;  %v8077_v17 = vsel %vm8072_vm7, %v8068_v34, %v10314_v0  ;;  %v8078_v12 = vsel %vm8072_vm7, %v8069_v1, %v10315_v57 }
0x15f0   : > { %v10333_v4 = vpop.permute.xlu1 %10332  ;;  %10087 = vmatprep.subr.bf16.mxu0 %v13163_v6  ;;  %10095 = vmatprep.subr.bf16.mxu1 %v13163_v6  ;;  %v10323_v44 = vpop.permute.xlu0 %10322  ;;  %v8086_v9 = vsel %vm8081_vm8, %v8077_v17, %v10319_v19  ;;  %v8087_v62 = vsel %vm8081_vm8, %v8078_v12, %v10320_v55 }
0x15f1   : > { %v10335_v33 = vunpack.i.h.bf16 %v10333_v4  ;;  %v10334_v40 = vunpack.i.l.bf16 %v10333_v4  ;;  %10089 = vmatprep.mubr.msk.bf16.mxu0 %vm10853_vm0, %v13163_v6  ;;  %10097 = vmatprep.mubr.msk.bf16.mxu1 %vm10853_vm0, %v13163_v6  ;;  %v10324_v47 = vunpack.i.l.bf16 %v10323_v44  ;;  %v10325_v30 = vunpack.i.h.bf16 %v10323_v44 }
0x15f3   : > { %v8112_v32 = vsel %vm8108_vm11, %v8103_v43, %v10335_v33  ;;  %v8111_v45 = vsel %vm8108_vm11, %v8102_v59, %v10334_v40  ;;  %10088 = vmatpush3.bf16.msra.mxu0 %v12844_v13  ;;  %10096 = vmatpush3.bf16.msra.mxu1 %v12844_v13  ;;  %v8095_v36 = vsel %vm8090_vm9, %v8086_v9, %v10324_v47  ;;  %v13215_v9 = vld [vmem:[#allocation17_spill] sm:$0xff] }
0x15f4   : > { %v8120_v27 = vpack.c.bf16 %v8112_v32, %v8112_v32  ;;  %v8119_v31 = vpack.c.bf16 %v8111_v45, %v8111_v45  ;;  %10101 = vmatprep.subr.bf16.mxu0 %v13163_v6  ;;  %10109 = vmatprep.subr.bf16.mxu1 %v13163_v6  ;;  %v10338_v25 = vpop.permute.xlu1 %10337  ;;  %v10343_v41 = vpop.permute.xlu0 %10342  ;;  %v8096_v42 = vsel %vm8090_vm9, %v8087_v62, %v10325_v30 }
0x15f5   : > { %v10340_v60 = vunpack.i.h.bf16 %v10338_v25  ;;  %v10339_v58 = vunpack.i.l.bf16 %v10338_v25  ;;  %v10345_v21 = vunpack.i.h.bf16 %v10343_v41  ;;  %v8104_v46 = vsel %vm8099_vm10, %v8095_v36, %v10329_v56 }
0x15f6   : > { %10090 = vmatmul.mubr.msk.bf16.vlgmr.msra.gmra.mrb[20].mxu0 %vm442_vm1, %v8119_v31  ;;  %10098 = vmatmul.mubr.msk.bf16.vlgmr.msra.gmra.mrb[20].mxu1 %vm442_vm1, %v8120_v27  ;;  %v10344_v48 = vunpack.i.l.bf16 %v10343_v41  ;;  %v8105_v7 = vsel %vm8099_vm10, %v8096_v42, %v10330_v49 }
0x15f7   : > { %10102 = vmatpush3.bf16.msra.mxu0 %v12838_v51  ;;  %10110 = vmatpush3.bf16.msra.mxu1 %v12838_v51  ;;  %v8062_v8 = vsel %vm798_vm2, %v13212_v10, %v10340_v60  ;;  %v8061_v3 = vsel %vm798_vm2, %v13213_v5, %v10339_v58 }
0x15f8   : > { %10103 = vmatprep.subr.bf16.mxu0 %v13163_v6  ;;  %10111 = vmatprep.subr.bf16.mxu1 %v13163_v6  ;;  %v10348_v61 = vpop.permute.xlu1 %10347  ;;  %v8070_v4 = vsel %vm8063_vm6, %v8061_v3, %v10344_v48  ;;  %v8071_v2 = vsel %vm8063_vm6, %v8062_v8, %v10345_v21  ;;  %v13216_v48 = vld [vmem:[#allocation18_spill] sm:$0xff]  ;;  %v13217_v8 = vld [vmem:[#allocation19_spill] sm:$0xff] }
0x15f9   : > { %10105 = vmatprep.mubr.msk.bf16.mxu0 %vm10853_vm0, %v13163_v6  ;;  %10113 = vmatprep.mubr.msk.bf16.mxu1 %vm10853_vm0, %v13163_v6  ;;  %v10350_v24 = vunpack.i.h.bf16 %v10348_v61  ;;  %v10349_v53 = vunpack.i.l.bf16 %v10348_v61 }
0x15fb   : > { %10104 = vmatpush3.bf16.msra.mxu0 %v12844_v13  ;;  %10112 = vmatpush3.bf16.msra.mxu1 %v12844_v13  ;;  %v8079_v40 = vsel %vm8072_vm7, %v8070_v4, %v10349_v53  ;;  %v8080_v59 = vsel %vm8072_vm7, %v8071_v2, %v10350_v24  ;;  %v13218_v2 = vld [vmem:[#allocation20_spill] sm:$0xff] }
0x15fc   : > { %10117 = vmatprep.subr.bf16.mxu0 %v13163_v6  ;;  %10125 = vmatprep.subr.bf16.mxu1 %v13163_v6  ;;  %v10363_v23 = vpop.permute.xlu1 %10362 }
0x15fd   : > { %v10365_v45 = vunpack.i.h.bf16 %v10363_v23  ;;  %v10364_v27 = vunpack.i.l.bf16 %v10363_v23 }
0x1625   : > { %v10353_v35 = vpop.permute.xlu0 %10352 }
0x1626   : > { %v10355_v11 = vunpack.i.h.bf16 %v10353_v35  ;;  %v10354_v29 = vunpack.i.l.bf16 %v10353_v35 }
0x1628   : > { %v8114_v22 = vsel %vm8108_vm11, %v8105_v7, %v10355_v11  ;;  %v8113_v50 = vsel %vm8108_vm11, %v8104_v46, %v10354_v29 }
0x1629   : > { %v8122_v18 = vpack.c.bf16 %v8114_v22, %v8114_v22  ;;  %v8121_v52 = vpack.c.bf16 %v8113_v50, %v8113_v50  ;;  %v10358_v39 = vpop.permute.xlu0 %10357 }
0x162a   : > { %v10360_v14 = vunpack.i.h.bf16 %v10358_v39  ;;  %v10359_v33 = vunpack.i.l.bf16 %v10358_v39 }
0x162b   : > { %10106 = vmatmul.mubr.msk.bf16.vlgmr.msra.gmra.mrb[24].mxu0 %vm442_vm1, %v8121_v52  ;;  %10114 = vmatmul.mubr.msk.bf16.vlgmr.msra.gmra.mrb[24].mxu1 %vm442_vm1, %v8122_v18 }
0x162c   : > { %v8089_v43 = vsel %vm8081_vm8, %v8080_v59, %v10360_v14  ;;  %v8088_v32 = vsel %vm8081_vm8, %v8079_v40, %v10359_v33  ;;  %10118 = vmatpush3.bf16.msra.mxu0 %v12838_v51  ;;  %10126 = vmatpush3.bf16.msra.mxu1 %v12838_v51  ;;  %v13219_v33 = vld [vmem:[#allocation21_spill] sm:$0xff] }
0x162d   : > { %v10368_v31 = vpop.permute.xlu0 %10367  ;;  %v10373_v54 = vpop.permute.xlu1 %10372  ;;  %10119 = vmatprep.subr.bf16.mxu0 %v13163_v6  ;;  %10127 = vmatprep.subr.bf16.mxu1 %v13163_v6  ;;  %v8097_v51 = vsel %vm8090_vm9, %v8088_v32, %v10364_v27  ;;  %v8098_v0 = vsel %vm8090_vm9, %v8089_v43, %v10365_v45 }
0x162e   : > { %v10370_v28 = vunpack.i.h.bf16 %v10368_v31  ;;  %v10369_v26 = vunpack.i.l.bf16 %v10368_v31  ;;  %v10375_v16 = vunpack.i.h.bf16 %v10373_v54  ;;  %v10374_v15 = vunpack.i.l.bf16 %v10373_v54  ;;  %10121 = vmatprep.mubr.msk.bf16.mxu0 %vm10853_vm0, %v13163_v6  ;;  %10129 = vmatprep.mubr.msk.bf16.mxu1 %vm10853_vm0, %v13163_v6  ;;  %v8918_v6 = vld [vmem:[#allocation7] ss:$0 sm:$0xff] }
0x1630   : > { %v8106_v63 = vsel %vm8099_vm10, %v8097_v51, %v10369_v26  ;;  %v8107_v20 = vsel %vm8099_vm10, %v8098_v0, %v10370_v28  ;;  %10120 = vmatpush3.bf16.msra.mxu0 %v12844_v13  ;;  %10128 = vmatpush3.bf16.msra.mxu1 %v12844_v13  ;;  %v13214_v13 = vld [vmem:[#allocation16_spill] sm:$0xff]  ;;  %v13220_v0 = vld [vmem:[#allocation22_spill] sm:$0xff] }
0x1631   : > { %v8116_v38 = vsel %vm8108_vm11, %v8107_v20, %v10375_v16  ;;  %v8115_v57 = vsel %vm8108_vm11, %v8106_v63, %v10374_v15  ;;  %v13221_v20 = vld [vmem:[#allocation23_spill] sm:$0xff] }
0x1632   : > { %v8124_v44 = vpack.c.bf16 %v8116_v38, %v8116_v38  ;;  %v8123_v37 = vpack.c.bf16 %v8115_v57, %v8115_v57 }
0x1634   : > { %10122 = vmatmul.mubr.msk.bf16.vlgmr.msra.gmra.mrb[28].mxu0 %vm442_vm1, %v8123_v37  ;;  %10130 = vmatmul.mubr.msk.bf16.vlgmr.msra.gmra.mrb[28].mxu1 %vm442_vm1, %v8124_v44 }
0x16c1   : > { %v8185_v34 = vpop.f32.mrb[16].mxu0  ;;  %v8228_v25 = vpop.f32.mrb[16].mxu1 }
0x16c2   : > { %v8186_v1 = vadd.f32 %v8918_v6, %v8185_v34  ;;  %v8229_v17 = vadd.f32 %v8918_v6, %v8228_v25  ;;  %v10075_v47 = vpop.f32.mrb[17].mxu0  ;;  %v10083_v19 = vpop.f32.mrb[17].mxu1 }
0x16c3   : > { %v8188_v12 = vpop.f32.mrb[18].mxu0  ;;  %v8231_v30 = vpop.f32.mrb[18].mxu1 }
0x16c4   : > { %v8492_v55 = vadd.f32 %v8186_v1, %v13214_v13  ;;  %v8493_v41 = vadd.f32 %v8229_v17, %v13215_v9  ;;  %v10076_v62 = vpop.f32.mrb[19].mxu0  ;;  %v10084_v36 = vpop.f32.mrb[19].mxu1 }
0x16c6   : > { %v8504_v56 = vsel %vm8500_vm12, %v8493_v41, 0.0  ;;  %v8501_v42 = vsel %vm8500_vm12, %v8492_v55, 0.0 }
0x16c7   : > { %8505 = vadd.xlane.f32.xlu1 %v8504_v56  ;;  %8502 = vadd.xlane.f32.xlu0 %v8501_v42 }
0x16c9   : > { %v8271_v60 = vpop.f32.mrb[20].mxu0  ;;  %v8314_v61 = vpop.f32.mrb[20].mxu1 }
0x16ca   : > { %v8272_v58 = vadd.f32 %v8918_v6, %v8271_v60  ;;  %v10091_v49 = vpop.f32.mrb[21].mxu0  ;;  %v8315_v21 = vadd.f32 %v8918_v6, %v8314_v61  ;;  %v10099_v46 = vpop.f32.mrb[21].mxu1 }
0x16cb   : > { %v8274_v35 = vpop.f32.mrb[22].mxu0  ;;  %v8317_v11 = vpop.f32.mrb[22].mxu1 }
0x16cc   : > { %v8494_v7 = vadd.f32 %v8272_v58, %v13216_v48  ;;  %v10092_v29 = vpop.f32.mrb[23].mxu0  ;;  %v10100_v10 = vpop.f32.mrb[23].mxu1  ;;  %v8495_v5 = vadd.f32 %v8315_v21, %v13217_v8 }
0x16ce   : > { %v8507_v3 = vsel %vm8500_vm12, %v8494_v7, 0.0  ;;  %v8510_v24 = vsel %vm8500_vm12, %v8495_v5, 0.0 }
0x16cf   : > { %8508 = vadd.xlane.f32.xlu0 %v8507_v3 }
0x16d3   : > { %8511 = vadd.xlane.f32.xlu0 %v8510_v24 }
0x16fe   : > { %v8357_v53 = vpop.f32.mrb[24].mxu0  ;;  %v8400_v22 = vpop.f32.mrb[24].mxu1 }
0x16ff   : > { %v8358_v50 = vadd.f32 %v8918_v6, %v8357_v53  ;;  %v8401_v23 = vadd.f32 %v8918_v6, %v8400_v22  ;;  %v10107_v18 = vpop.f32.mrb[25].mxu0  ;;  %v10115_v52 = vpop.f32.mrb[25].mxu1 }
0x1700   : > { %v8360_v39 = vpop.f32.mrb[26].mxu0  ;;  %v8403_v4 = vpop.f32.mrb[26].mxu1 }
0x1701   : > { %v8496_v14 = vadd.f32 %v8358_v50, %v13218_v2  ;;  %v8497_v40 = vadd.f32 %v8401_v23, %v13219_v33  ;;  %v10108_v59 = vpop.f32.mrb[27].mxu0  ;;  %v10116_v43 = vpop.f32.mrb[27].mxu1 }
0x1703   : > { %v8516_v32 = vsel %vm8500_vm12, %v8497_v40, 0.0  ;;  %v8513_v45 = vsel %vm8500_vm12, %v8496_v14, 0.0 }
0x1704   : > { %8517 = vadd.xlane.f32.xlu0 %v8516_v32  ;;  %8514 = vadd.xlane.f32.xlu1 %v8513_v45 }
0x1707   : > { %v8443_v27 = vpop.f32.mrb[28].mxu0  ;;  %v8486_v31 = vpop.f32.mrb[28].mxu1 }
0x1708   : > { %v8444_v54 = vadd.f32 %v8918_v6, %v8443_v27  ;;  %v8487_v28 = vadd.f32 %v8918_v6, %v8486_v31  ;;  %v10123_v26 = vpop.f32.mrb[29].mxu0  ;;  %v10131_v16 = vpop.f32.mrb[29].mxu1 }
0x1709   : > { %v8446_v15 = vpop.f32.mrb[30].mxu0  ;;  %v8489_v51 = vpop.f32.mrb[30].mxu1  ;;  %v8929_v26 = vld [vmem:[#allocation9] ss:$0 sm:$0xff] }
0x170a   : > { %v8498_v63 = vadd.f32 %v8444_v54, %v13220_v0  ;;  %v8499_v38 = vadd.f32 %v8487_v28, %v13221_v20  ;;  %v10124_v57 = vpop.f32.mrb[31].mxu0  ;;  %v10132_v44 = vpop.f32.mrb[31].mxu1  ;;  %v8930_v0 = vld [vmem:[#allocation10] ss:$0 sm:$0xff] }
0x170c   : > { %v8522_v37 = vsel %vm8500_vm12, %v8499_v38, 0.0  ;;  %v8519_v34 = vsel %vm8500_vm12, %v8498_v63, 0.0 }
0x170d   : > { %8523 = vadd.xlane.f32.xlu0 %v8522_v37  ;;  %8520 = vadd.xlane.f32.xlu1 %v8519_v34 }
0x1754   : > { %v8506_v25 = vpop.xlane.xlu1 %8505  ;;  %v8503_v1 = vpop.xlane.xlu0 %8502 }
0x1755   : > { %v8527_v17 = vmul.f32 0.03125, %v8506_v25  ;;  %v8526_v6 = vmul.f32 0.03125, %v8503_v1 }
0x1757   : > { %v8535_v47 = vsub.f32 %v8493_v41, %v8527_v17  ;;  %v13036_v19 = vsub.f32 %v8492_v55, %v8526_v6 }
0x1759   : > { %v8543_v12 = vmul.f32 %v8535_v47, %v8535_v47  ;;  %v8542_v30 = vmul.f32 %v13036_v19, %v13036_v19 }
0x175b   : > { %v8553_v13 = vsel %vm8500_vm12, %v8543_v12, 0.0  ;;  %v8550_v9 = vsel %vm8500_vm12, %v8542_v30, 0.0 }
0x175c   : > { %8554 = vadd.xlane.f32.xlu0 %v8553_v13  ;;  %v8509_v62 = vpop.xlane.xlu0 %8508  ;;  %8551 = vadd.xlane.f32.xlu1 %v8550_v9 }
0x175d   : > { %v8528_v36 = vmul.f32 0.03125, %v8509_v62 }
0x175f   : > { %v13042_v56 = vsub.f32 %v8494_v7, %v8528_v36 }
0x1760   : > { %v8512_v42 = vpop.xlane.xlu0 %8511 }
0x1761   : > { %v8529_v60 = vmul.f32 0.03125, %v8512_v42  ;;  %v8544_v55 = vmul.f32 %v13042_v56, %v13042_v56 }
0x1763   : > { %v13046_v41 = vsub.f32 %v8495_v5, %v8529_v60  ;;  %v8556_v58 = vsel %vm8500_vm12, %v8544_v55, 0.0 }
0x1764   : > { %8557 = vadd.xlane.f32.xlu1 %v8556_v58 }
0x1765   : > { %v8545_v61 = vmul.f32 %v13046_v41, %v13046_v41 }
0x1767   : > { %v8559_v49 = vsel %vm8500_vm12, %v8545_v61, 0.0 }
0x1768   : > { %8560 = vadd.xlane.f32.xlu0 %v8559_v49 }
0x1791   : > { %v8518_v21 = vpop.xlane.xlu0 %8517  ;;  %v8515_v46 = vpop.xlane.xlu1 %8514 }
0x1792   : > { %v8531_v35 = vmul.f32 0.03125, %v8518_v21  ;;  %v8530_v48 = vmul.f32 0.03125, %v8515_v46 }
0x1794   : > { %v13052_v7 = vsub.f32 %v8497_v40, %v8531_v35  ;;  %v13054_v11 = vsub.f32 %v8496_v14, %v8530_v48 }
0x1796   : > { %v8547_v29 = vmul.f32 %v13052_v7, %v13052_v7  ;;  %v8546_v10 = vmul.f32 %v13054_v11, %v13054_v11 }
0x1798   : > { %v8565_v8 = vsel %vm8500_vm12, %v8547_v29, 0.0  ;;  %v8562_v5 = vsel %vm8500_vm12, %v8546_v10, 0.0 }
0x1799   : > { %8566 = vadd.xlane.f32.xlu0 %v8565_v8  ;;  %8563 = vadd.xlane.f32.xlu1 %v8562_v5 }
0x179a   : > { %v8524_v3 = vpop.xlane.xlu0 %8523  ;;  %v8521_v24 = vpop.xlane.xlu1 %8520 }
0x179b   : > { %v8533_v53 = vmul.f32 0.03125, %v8524_v3  ;;  %v8532_v22 = vmul.f32 0.03125, %v8521_v24 }
0x179d   : > { %v13062_v50 = vsub.f32 %v8499_v38, %v8533_v53  ;;  %v13064_v23 = vsub.f32 %v8498_v63, %v8532_v22 }
0x179f   : > { %v8549_v18 = vmul.f32 %v13062_v50, %v13062_v50  ;;  %v8548_v52 = vmul.f32 %v13064_v23, %v13064_v23 }
0x17a1   : > { %v8571_v39 = vsel %vm8500_vm12, %v8549_v18, 0.0  ;;  %v8568_v4 = vsel %vm8500_vm12, %v8548_v52, 0.0 }
0x17a2   : > { %8572 = vadd.xlane.f32.xlu0 %v8571_v39  ;;  %8569 = vadd.xlane.f32.xlu1 %v8568_v4 }
0x17e9   : > { %v8555_v2 = vpop.xlane.xlu0 %8554  ;;  %v8552_v14 = vpop.xlane.xlu1 %8551 }
0x17ea   : > { %v8575_v33 = vmul.f32 0.03125, %v8555_v2  ;;  %v8574_v40 = vmul.f32 0.03125, %v8552_v14 }
0x17ec   : > { %v8583_v59 = vadd.f32 1e-05, %v8575_v33  ;;  %v8582_v43 = vadd.f32 1e-05, %v8574_v40 }
0x17ee   : > { %10636 = vrsqrt.f32 %v8583_v59 }
0x17ef   : > { %10638 = vrsqrt.f32 %v8582_v43 }
0x17f1   : > { %v8558_v32 = vpop.xlane.xlu1 %8557 }
0x17f2   : > { %v8576_v45 = vmul.f32 0.03125, %v8558_v32 }
0x17f4   : > { %v8584_v27 = vadd.f32 1e-05, %v8576_v45 }
0x17f5   : > { %v8561_v31 = vpop.xlane.xlu0 %8560 }
0x17f6   : > { %10640 = vrsqrt.f32 %v8584_v27  ;;  %v8577_v54 = vmul.f32 0.03125, %v8561_v31 }
0x17f8   : > { %v10637_v28 = vpop.eup %10636  ;;  %v8585_v16 = vadd.f32 1e-05, %v8577_v54 }
0x17f9   : > { %v10639_v15 = vpop.eup %10638  ;;  %v8599_v51 = vmul.f32 %v10637_v28, %v8535_v47 }
0x17fa   : > { %v8598_v63 = vmul.f32 %v10639_v15, %v13036_v19  ;;  %10642 = vrsqrt.f32 %v8585_v16 }
0x17fb   : > { %v8614_v20 = vmul.f32 %v8929_v26, %v8599_v51 }
0x17fc   : > { %v8613_v38 = vmul.f32 %v8929_v26, %v8598_v63 }
0x17fd   : > { %v8629_v57 = vadd.f32 %v8930_v0, %v8614_v20 }
0x17fe   : > { %v8628_v44 = vadd.f32 %v8930_v0, %v8613_v38 }
0x17ff   : > { %v8637_v37 = vpack.c.bf16 %v8629_v57, %v8629_v57 }
0x1800   : > { %v10641_v34 = vpop.eup %10640  ;;  %v8636_v25 = vpack.c.bf16 %v8628_v44, %v8628_v44 }
0x1801   : > { %8646 = vst.msk [vmem:[%s13077_s29 + $0x1] sm:$0x1] %vm8644_vm13, %v8637_v37  ;;  %v8600_v1 = vmul.f32 %v10641_v34, %v13042_v56 }
0x1802   : > { %8645 = vst.msk [vmem:[%s13077_s29] sm:$0x1] %vm8644_vm13, %v8636_v25 }
0x1803   : > { %v8615_v17 = vmul.f32 %v8929_v26, %v8600_v1 }
0x1804   : > { %v10643_v6 = vpop.eup %10642 }
0x1805   : > { %v8630_v47 = vadd.f32 %v8930_v0, %v8615_v17  ;;  %v8601_v19 = vmul.f32 %v10643_v6, %v13046_v41 }
0x1807   : > { %v8638_v12 = vpack.c.bf16 %v8630_v47, %v8630_v47  ;;  %v8616_v30 = vmul.f32 %v8929_v26, %v8601_v19 }
0x1809   : > { %8647 = vst.msk [vmem:[%s13077_s29 + $0x2] sm:$0x1] %vm8644_vm13, %v8638_v12  ;;  %v8631_v13 = vadd.f32 %v8930_v0, %v8616_v30 }
0x180b   : > { %v8639_v9 = vpack.c.bf16 %v8631_v13, %v8631_v13 }
0x180d   : > { %8648 = vst.msk [vmem:[%s13077_s29 + $0x3] sm:$0x1] %vm8644_vm13, %v8639_v9 }
0x1826   : > { %v8567_v62 = vpop.xlane.xlu0 %8566  ;;  %v8564_v36 = vpop.xlane.xlu1 %8563 }
0x1827   : > { %v8579_v42 = vmul.f32 0.03125, %v8567_v62  ;;  %v8578_v60 = vmul.f32 0.03125, %v8564_v36 }
0x1829   : > { %v8587_v56 = vadd.f32 1e-05, %v8579_v42  ;;  %v8586_v55 = vadd.f32 1e-05, %v8578_v60 }
0x182b   : > { %10644 = vrsqrt.f32 %v8587_v56 }
0x182c   : > { %10646 = vrsqrt.f32 %v8586_v55 }
0x182f   : > { %v8573_v58 = vpop.xlane.xlu0 %8572  ;;  %v8570_v61 = vpop.xlane.xlu1 %8569 }
0x1830   : > { %v8581_v49 = vmul.f32 0.03125, %v8573_v58  ;;  %v8580_v41 = vmul.f32 0.03125, %v8570_v61 }
0x1832   : > { %v8589_v21 = vadd.f32 1e-05, %v8581_v49  ;;  %v8588_v46 = vadd.f32 1e-05, %v8580_v41 }
0x1834   : > { %10648 = vrsqrt.f32 %v8589_v21 }
0x1835   : > { %v10645_v35 = vpop.eup %10644  ;;  %10650 = vrsqrt.f32 %v8588_v46 }
0x1836   : > { %v10647_v48 = vpop.eup %10646  ;;  %v8603_v29 = vmul.f32 %v10645_v35, %v13052_v7 }
0x1837   : > { %v8602_v10 = vmul.f32 %v10647_v48, %v13054_v11 }
0x1838   : > { %v8618_v8 = vmul.f32 %v8929_v26, %v8603_v29 }
0x1839   : > { %v8617_v5 = vmul.f32 %v8929_v26, %v8602_v10 }
0x183a   : > { %v8633_v3 = vadd.f32 %v8930_v0, %v8618_v8 }
0x183b   : > { %v8632_v24 = vadd.f32 %v8930_v0, %v8617_v5 }
0x183c   : > { %v8641_v53 = vpack.c.bf16 %v8633_v3, %v8633_v3 }
0x183d   : > { %v8640_v22 = vpack.c.bf16 %v8632_v24, %v8632_v24 }
0x183e   : > { %v10649_v18 = vpop.eup %10648  ;;  %8650 = vst.msk [vmem:[%s13077_s29 + $0x5] sm:$0x1] %vm8644_vm13, %v8641_v53 }
0x183f   : > { %v10651_v52 = vpop.eup %10650  ;;  %8649 = vst.msk [vmem:[%s13077_s29 + $0x4] sm:$0x1] %vm8644_vm13, %v8640_v22  ;;  %v8605_v39 = vmul.f32 %v10649_v18, %v13062_v50 }
0x1840   : > { %v8604_v7 = vmul.f32 %v10651_v52, %v13064_v23 }
0x1841   : > { %v8620_v4 = vmul.f32 %v8929_v26, %v8605_v39 }
0x1842   : > { %v8619_v11 = vmul.f32 %v8929_v26, %v8604_v7 }
0x1843   : > { %v8635_v2 = vadd.f32 %v8930_v0, %v8620_v4 }
0x1844   : > { %v8634_v14 = vadd.f32 %v8930_v0, %v8619_v11 }
0x1845   : > { %v8643_v33 = vpack.c.bf16 %v8635_v2, %v8635_v2 }
0x1846   : > { %v8642_v40 = vpack.c.bf16 %v8634_v14, %v8634_v14 }
0x1847   : > { %8652 = vst.msk [vmem:[%s13077_s29 + $0x7] sm:$0x1] %vm8644_vm13, %v8643_v33 }
0x1848   : > { %8651 = vst.msk [vmem:[%s13077_s29 + $0x6] sm:$0x1] %vm8644_vm13, %v8642_v40 }
0x1849 PF: > { %s22_s27 = sadd.s32 1, %s10842_s27  }
0x184a   : > { %p19_p7 = scmp.ge.s32.totalorder %s22_s27, 4  }
0x184c   :  { %21 = sbr.rel (!%p19_p7) target bundleno = 4 (0x4), region = 107 }
0x1853   :  { %8673 = vsyncpa [#allocation3], 1 }
0x1854   :  { %8675 = vsyncpa [#allocation3 + $0x1], 1 }
0x1855   :  { %8676 = vsyncpa [#allocation5], 1 }
0x1856   :  { %8677 = vsyncpa [#allocation8], 1 }
0x1857   :  { %8678 = vsyncpa [#allocation11], 1 }

</bundles_post_ra>
